<compile_context>
chip_gen: v7x
topology: tpu7x:2x2x1
jax: 0.10.0
libtpu: 0.0.40
codegen_flags: <defaults>
</compile_context>

<pallas_src>
import functools

import jax
import jax.numpy as jnp
from jax import lax
from jax.experimental import pallas as pl
from jax.experimental.pallas import tpu as pltpu


def _round_up(x, m):
    return ((x + m - 1) // m) * m


def _pick_tile(dim, preferred):
    """Largest MXU/lane-friendly tile that divides `dim` (falls back to full)."""
    for cand in (preferred, 512, 256, 128):
        if cand <= dim and dim % cand == 0:
            return cand
    return dim


def _pick_tile_n(n, preferred):
    """Like _pick_tile, but keeps the parallel grid extent >= 2 when N >= 256
    so both v7x TensorCores get work (single-TC v5e/v6e lose nothing at these
    sizes since every layer still fits one VMEM-resident accumulator)."""
    cap = min(preferred, n // 2) if n >= 256 else preferred
    for cand in (512, 256, 128):
        if cand <= cap and n % cand == 0:
            return cand
    return n


# ----------------------------------------------------------------------------
# Kernel 1: tiled matmul + per-group BatchNorm + ReLU + optional global-avg-pool
# ----------------------------------------------------------------------------

def _make_fused_linear_kernel(groups, apply_bn, relu, pool, has_affine,
                              eps=1e-5):
    def kernel(*refs):
        if has_affine:
            a_ref, b_ref, g_ref, beta_ref, o_ref, acc_ref = refs
        else:
            a_ref, b_ref, o_ref, acc_ref = refs
            g_ref = beta_ref = None

        k = pl.program_id(1)

        @pl.when(k == 0)
        def _():
            acc_ref[...] = jnp.zeros_like(acc_ref)

        # bf16 x bf16 -> f32 accumulate on the MXU.
        acc_ref[...] += jnp.dot(a_ref[...], b_ref[...],
                                preferred_element_type=jnp.float32)

        @pl.when(k == pl.num_programs(1) - 1)
        def _():
            acc = acc_ref[...]                       # (M, tn) f32
            m_rows, tn = acc.shape
            y = acc
            if apply_bn:
                # Per-group BN == per-forward-call batch stats of the reference
                # (training mode, biased variance).  Vectorized over groups via
                # a layout-free reshape (mg % 8 == 0); column stats are local
                # to the N tile, so tiling N is safe; M stays whole.
                mg = m_rows // groups
                x = acc.reshape(groups, mg, tn)
                mu = jnp.mean(x, axis=1, keepdims=True)
                var = jnp.mean(jnp.square(x - mu), axis=1, keepdims=True)
                y = (x - mu) * lax.rsqrt(var + eps)
                if has_affine:
                    y = y * g_ref[...] + beta_ref[...]   # (1, tn) broadcast
                y = y.reshape(m_rows, tn)
            if relu:
                y = jnp.maximum(y, 0.0)
            if pool is not None:
                # Global average pool: rows are (image, spatial)-major.
                nimg = m_rows // pool
                y = jnp.mean(y.reshape(nimg, pool, tn), axis=1)
            o_ref[...] = y.astype(o_ref.dtype)

    return kernel


def fused_linear(a, b, gamma=None, beta=None, *, groups=1, apply_bn=False,
                 relu=False, pool=None, out_dtype=jnp.float32,
                 tile_n=256, tile_k=512):
    """(M, K) @ (K, N) with fused BN/ReLU/GAP epilogue.

    grid = (N//tn, K//tk), K innermost ("arbitrary"), N "parallel".  Weights
    arrive pre-cast (bf16) and pre-padded from init; activations are cast to
    bf16 only if needed (intermediate layers already emit bf16).  Accumulation
    and all epilogue math stay f32 (v5e-friendly).  VMEM footprint per call is
    well under the 32 MiB default scoped limit (v7x-safe).
    """
    M, K = a.shape
    Kb, N = b.shape
    assert Kb >= K
    assert M % 8 == 0 and N % 128 == 0
    assert M % groups == 0 and (M // groups) % 8 == 0
    if pool is not None:
        assert (M // groups) % pool == 0

    if K < Kb:
        # Weight K was pre-padded at init; pad the activations to match (the
        # zero rows of b contribute exactly 0 to the accumulator).
        a = jnp.pad(a, ((0, 0), (0, Kb - K)))
        K = Kb
    if K % 128 != 0:
        # Generic fallback (unused at the current shapes).
        kp = _round_up(K, 128)
        a = jnp.pad(a, ((0, 0), (0, kp - K)))
        b = jnp.pad(b, ((0, kp - K), (0, 0)))
        K = kp

    if a.dtype != jnp.bfloat16:
        a = a.astype(jnp.bfloat16)
    if b.dtype != jnp.bfloat16:
        b = b.astype(jnp.bfloat16)

    tn = _pick_tile_n(N, tile_n)
    tk = _pick_tile(K, tile_k)
    out_m = M if pool is None else M // pool
    grid = (N // tn, K // tk)

    has_affine = gamma is not None
    in_specs = [pl.BlockSpec((M, tk), lambda j, k: (0, k)),
                pl.BlockSpec((tk, tn), lambda j, k: (k, j))]
    operands = [a, b]
    if has_affine:
        in_specs += [pl.BlockSpec((1, tn), lambda j, k: (0, j)),
                     pl.BlockSpec((1, tn), lambda j, k: (0, j))]
        operands += [gamma.reshape(1, N).astype(jnp.float32),
                     beta.reshape(1, N).astype(jnp.float32)]

    return pl.pallas_call(
        _make_fused_linear_kernel(groups, apply_bn, relu, pool, has_affine),
        out_shape=jax.ShapeDtypeStruct((out_m, N), out_dtype),
        grid=grid,
        in_specs=in_specs,
        out_specs=pl.BlockSpec((out_m, tn), lambda j, k: (0, j)),
        scratch_shapes=[pltpu.VMEM((M, tn), jnp.float32)],
        compiler_params=pltpu.CompilerParams(
            dimension_semantics=("parallel", "arbitrary")),
    )(*operands)


# ----------------------------------------------------------------------------
# Kernel 2: batched Barlow-Twins correlation + penalty partial sums
# ----------------------------------------------------------------------------
# One launch handles all three (z_left, z_right) pairs.  Per-pair dim_common
# arrives via scalar prefetch (singles use dim_common = D, so the "common"
# region covers the whole matrix and the "unique" region is empty).
# Accumulator row layout (per pair, per column tile):
#   row 0: sum over rows of c^2 masked to the common region     (every tile)
#   row 1: sum over rows of c^2 masked to the unique region     (every tile)
#   row 2: sum over diag of (c-1)^2 in the common region        (diag tiles)
#   row 3: sum over diag of c^2 in the common region            (diag tiles)
#   row 4: sum over diag of c^2 in the unique region            (diag tiles)
#   rows 5-7: unused padding (kept for sublane alignment)

def _make_bt_corr_kernel(scale, td):
    def kernel(dimc_ref, z1_ref, z2_ref, o_ref, acc_ref):
        p = pl.program_id(0)          # pair (parallel)
        j = pl.program_id(1)          # column tile of c (parallel)
        i = pl.program_id(2)          # row tile of c (reduced, arbitrary)

        @pl.when(i == 0)
        def _():
            acc_ref[...] = jnp.zeros_like(acc_ref)

        # c_tile = z1n[:, i-tile].T @ z2n[:, j-tile]; contraction over the
        # batch axis of BOTH operands (no explicit transpose through the XLU),
        # bf16 inputs, f32 accumulate.
        c = lax.dot_general(z1_ref[...], z2_ref[...],
                            dimension_numbers=(((0,), (0,)), ((), ())),
                            preferred_element_type=jnp.float32) * scale
        c2 = c * c
        zero = jnp.zeros_like(c)

        dim_c = dimc_ref[p]
        row = lax.broadcasted_iota(jnp.int32, c.shape, 0) + i * td
        col = lax.broadcasted_iota(jnp.int32, c.shape, 1) + j * td
        common = (row < dim_c) & (col < dim_c)
        unique = (row >= dim_c) & (col >= dim_c)

        # Generic per-tile work: two masked squares + two row reductions,
        # accumulated straight into the lane-dense partial-sum rows.
        acc_ref[0:1, :] += jnp.sum(jnp.where(common, c2, zero),
                                   axis=0, keepdims=True)
        acc_ref[1:2, :] += jnp.sum(jnp.where(unique, c2, zero),
                                   axis=0, keepdims=True)

        # All diagonal-term work only on tiles that actually contain diagonal.
        @pl.when(i == j)
        def _():
            diag = row == col
            cm1s = jnp.square(c - 1.0)
            acc_ref[2:3, :] += jnp.sum(jnp.where(diag & common, cm1s, zero),
                                       axis=0, keepdims=True)
            acc_ref[3:4, :] += jnp.sum(jnp.where(diag & common, c2, zero),
                                       axis=0, keepdims=True)
            acc_ref[4:5, :] += jnp.sum(jnp.where(diag & unique, c2, zero),
                                       axis=0, keepdims=True)

        @pl.when(i == pl.num_programs(2) - 1)
        def _():
            o_ref[...] = acc_ref[...]

    return kernel


def bt_corr_penalty_sums(z_left, z_right, dimc, scale, tile_d=256):
    """z_left/z_right: (P, B, D) stacked normalized embeddings (bf16), dimc:
    (P,) int32 per-pair dim_common.  Returns (P, 8) penalty partial sums.
    The (D, D) correlation matrices are produced tile-by-tile in VMEM and
    never written to HBM."""
    P, B, D = z_left.shape
    assert D % 128 == 0
    td = _pick_tile(D, tile_d)
    n_t = D // td

    out = pl.pallas_call(
        _make_bt_corr_kernel(scale, td),
        out_shape=jax.ShapeDtypeStruct((P, 8, D), jnp.float32),
        grid_spec=pltpu.PrefetchScalarGridSpec(
            num_scalar_prefetch=1,
            grid=(P, n_t, n_t),
            in_specs=[pl.BlockSpec((None, B, td), lambda p, j, i, dc: (p, 0, i)),
                      pl.BlockSpec((None, B, td), lambda p, j, i, dc: (p, 0, j))],
            out_specs=pl.BlockSpec((None, 8, td), lambda p, j, i, dc: (p, 0, j)),
            scratch_shapes=[pltpu.VMEM((8, td), jnp.float32)]),
        compiler_params=pltpu.CompilerParams(
            dimension_semantics=("parallel", "parallel", "arbitrary")),
    )(dimc, z_left, z_right)
    return jnp.sum(out, axis=2)          # tiny lane reduction in plain XLA


def bt_losses(z1_1n, z1_2n, z2_1n, z2_2n, batch_size, lambd, dim_c):
    """All three Barlow-Twins losses from one batched correlation launch."""
    # TODO(synk): torch.distributed.all_reduce(c) omitted (single device).
    B, D = z1_1n.shape
    scale = 1.0 / (batch_size * 4)
    z_left = jnp.stack([z1_1n, z2_1n, z1_1n], axis=0)
    z_right = jnp.stack([z1_2n, z2_2n, z2_1n], axis=0)
    dimc = jnp.array([D, D, dim_c], jnp.int32)   # singles: common == all

    s = bt_corr_penalty_sums(z_left, z_right, dimc, scale)   # (3, 8)

    # Singles (pairs 0, 1): on = diag (c-1)^2 ; off = all c^2 - diag c^2.
    on1, off1 = s[0, 2], s[0, 0] - s[0, 3]
    on2, off2 = s[1, 2], s[1, 0] - s[1, 3]
    loss1 = on1 + lambd * off1
    loss2 = on2 + lambd * off2
    # Cross (pair 2): common uses (diag-1)^2, unique uses diag^2.
    on_c, off_c = s[2, 2], s[2, 0] - s[2, 3]
    on_u, off_u = s[2, 4], s[2, 1] - s[2, 4]
    loss12_c = on_c + lambd * off_c
    loss12_u = on_u + lambd * off_u
    loss12 = (loss12_c + loss12_u) / 2.0
    return loss1, loss2, loss12, on_c


# ----------------------------------------------------------------------------
# Model glue: im2col, backbone, projector
# ----------------------------------------------------------------------------

def im2col(x, ksize, stride, pad):
    """x: (B, C, H, W) NCHW -> (B*OH*OW, C*k*k), column order = (c, kh, kw)."""
    B, C, H, W = x.shape
    xp = jnp.pad(x, ((0, 0), (0, 0), (pad, pad), (pad, pad)))
    OH = (H + 2 * pad - ksize) // stride + 1
    OW = (W + 2 * pad - ksize) // stride + 1
    cols = []
    for i in range(ksize):
        for j in range(ksize):
            cols.append(xp[:, :, i:i + stride * OH:stride, j:j + stride * OW:stride])
    patches = jnp.stack(cols, axis=2)              # (B, C, k*k, OH, OW)
    patches = patches.transpose(0, 3, 4, 1, 2)     # (B, OH, OW, C, k*k)
    return patches.reshape(B * OH * OW, C * ksize * ksize), OH, OW


def backbone_forward(x, p, groups):
    """Synthetic backbone: Conv3x3/s2 + BN2d + ReLU + GAP (one fused kernel),
    then FC (one kernel).  `groups` = number of independent forward calls that
    were batched together (BN stats are computed per group)."""
    patches, OH, OW = im2col(x, ksize=3, stride=2, pad=1)
    pooled = fused_linear(patches, p['conv_w'], p['bn_g'], p['bn_b'],
                          groups=groups, apply_bn=True, relu=True,
                          pool=OH * OW, out_dtype=jnp.bfloat16)   # (nimg, Cout)
    return fused_linear(pooled, p['fc_w'], groups=groups,
                        out_dtype=jnp.bfloat16)                   # (nimg, FEAT)


def projector_forward(f, p, groups):
    """Linear->BN->ReLU, Linear->BN->ReLU, Linear (+ the loss-side affine-free
    BN fused into the last layer's epilogue).  Returns bn(z) per group (bf16,
    ready for the correlation MXU)."""
    h = fused_linear(f, p['w1'], p['g1'], p['b1'], groups=groups,
                     apply_bn=True, relu=True, out_dtype=jnp.bfloat16)
    h = fused_linear(h, p['w2'], p['g2'], p['b2'], groups=groups,
                     apply_bn=True, relu=True, out_dtype=jnp.bfloat16)
    # Final Linear (no bias) + affine-free BatchNorm1d (no gamma/beta DMA).
    return fused_linear(h, p['w3'], groups=groups, apply_bn=True, relu=False,
                        out_dtype=jnp.bfloat16)


def decur_forward(params, y1_1, y1_2, y2_1, y2_2, batch_size, lambd, dim_c):
    # Batch the two augmentations of each modality through its backbone.
    x1 = jnp.concatenate([y1_1, y1_2], axis=0)     # (2B, C1, H, W)
    x2 = jnp.concatenate([y2_1, y2_2], axis=0)     # (2B, C2, H, W)
    f1 = backbone_forward(x1, params['backbone1'], groups=2)   # (2B, FEAT)
    f2 = backbone_forward(x2, params['backbone2'], groups=2)   # (2B, FEAT)

    # projector1 and projector2 share the same layer objects in the PyTorch
    # code, so all four feature sets go through one projector pass.  The final
    # layer's epilogue applies the loss-side affine-free BN per group, so each
    # z is normalized exactly once and reused by all loss terms.
    f_all = jnp.concatenate([f1, f2], axis=0)      # order: z1_1, z1_2, z2_1, z2_2
    zn_all = projector_forward(f_all, params['projector'], groups=4)
    z1_1n, z1_2n, z2_1n, z2_2n = jnp.split(zn_all, 4, axis=0)

    return bt_losses(z1_1n, z1_2n, z2_1n, z2_2n, batch_size, lambd, dim_c)


# ----------------------------------------------------------------------------
# Deterministic parameter init (weights pre-cast to bf16, conv K pre-padded)
# ----------------------------------------------------------------------------

def init_backbone(key, cin, cout, feat):
    k1, k2 = jax.random.split(key)
    conv_w = 0.1 * jax.random.normal(k1, (cout, cin, 3, 3), jnp.float32)
    wmat = conv_w.reshape(cout, cin * 9).T                     # (cin*9, cout)
    kpad = _round_up(cin * 9, 128)
    wmat = jnp.pad(wmat, ((0, kpad - cin * 9), (0, 0)))        # pad once, here
    return {
        'conv_w': wmat.astype(jnp.bfloat16),                   # (Kpad, Cout)
        'bn_g': jnp.ones((cout,), jnp.float32),
        'bn_b': jnp.zeros((cout,), jnp.float32),
        'fc_w': (0.1 * jax.random.normal(k2, (cout, feat), jnp.float32)
                 ).astype(jnp.bfloat16),
    }


def init_projector(key, sizes):
    k1, k2, k3 = jax.random.split(key, 3)
    return {
        'w1': (0.1 * jax.random.normal(k1, (sizes[0], sizes[1]), jnp.float32)
               ).astype(jnp.bfloat16),
        'g1': jnp.ones((sizes[1],), jnp.float32),
        'b1': jnp.zeros((sizes[1],), jnp.float32),
        'w2': (0.1 * jax.random.normal(k2, (sizes[1], sizes[2]), jnp.float32)
               ).astype(jnp.bfloat16),
        'g2': jnp.ones((sizes[2],), jnp.float32),
        'b2': jnp.zeros((sizes[2],), jnp.float32),
        'w3': (0.1 * jax.random.normal(k3, (sizes[2], sizes[3]), jnp.float32)
               ).astype(jnp.bfloat16),
    }


if __name__ == "__main__":
    # Small, lane-aligned configuration ("s1" = 2 ch, "s2c" = 13 ch inputs).
    B = 8                  # args.batch_size
    H = W = 16             # spatial
    CIN1, CIN2 = 2, 13     # modality channel counts
    CONV_OUT = 128         # lane-aligned channel count
    FEAT = 128             # stand-in for resnet50's 2048-d features
    PROJ_SIZES = [FEAT, 512, 512, 256]   # stand-in for "8192-8192-8192"
    DIM_COMMON = 64        # args.dim_common
    LAMBD = 0.0051         # args.lambd

    root = jax.random.PRNGKey(0)
    kb1, kb2, kp, kx1, kx2, kx3, kx4 = jax.random.split(root, 7)

    params = {
        'backbone1': init_backbone(kb1, CIN1, CONV_OUT, FEAT),
        'backbone2': init_backbone(kb2, CIN2, CONV_OUT, FEAT),
        'projector': init_projector(kp, PROJ_SIZES),
    }

    y1_1 = jax.random.normal(kx1, (B, CIN1, H, W), jnp.float32)
    y1_2 = jax.random.normal(kx2, (B, CIN1, H, W), jnp.float32)
    y2_1 = jax.random.normal(kx3, (B, CIN2, H, W), jnp.float32)
    y2_2 = jax.random.normal(kx4, (B, CIN2, H, W), jnp.float32)

    fwd = jax.jit(functools.partial(decur_forward,
                                    batch_size=B, lambd=LAMBD, dim_c=DIM_COMMON))
    loss1, loss2, loss12, on_diag12_c = fwd(params, y1_1, y1_2, y2_1, y2_2)
    jax.block_until_ready((loss1, loss2, loss12, on_diag12_c))
    print("KERNEL_OK")
</pallas_src>

<mosaic_0001>
module attributes {stable_mosaic.version = 11 : i64} {
  func.func @kernel(%arg0: i32, %arg1: i32, %arg2: memref<1024x128xbf16, #tpu.memory_space<vmem>>, %arg3: memref<128x128xbf16, #tpu.memory_space<vmem>>, %arg4: memref<1x128xf32, #tpu.memory_space<vmem>>, %arg5: memref<1x128xf32, #tpu.memory_space<vmem>>, %arg6: memref<16x128xbf16, #tpu.memory_space<vmem>>, %arg7: memref<1024x128xf32, #tpu.memory_space<vmem>>) attributes {dimension_semantics = [#tpu.dimension_semantics<parallel>, #tpu.dimension_semantics<arbitrary>], iteration_bounds = array<i64: 1, 1>, scalar_prefetch = 0 : i64, scratch_operands = 1 : i64, tpu.core_type = #tpu.core_type<tc>, window_params = [{transform_indices = @transform_0, window_bounds = array<i64: 1024, 128>}, {transform_indices = @transform_1, window_bounds = array<i64: 128, 128>}, {transform_indices = @transform_2, window_bounds = array<i64: 1, 128>}, {transform_indices = @transform_3, window_bounds = array<i64: 1, 128>}, {transform_indices = @transform_4, window_bounds = array<i64: 16, 128>}]} {
    %c0_i32 = arith.constant 0 : i32
    %0 = arith.cmpi eq, %arg1, %c0_i32 : i32
    %1 = arith.extui %0 : i1 to i32
    %c0_i32_0 = arith.constant 0 : i32
    %2 = arith.cmpi ne, %1, %c0_i32_0 : i32
    scf.if %2 {
      %cst_10 = arith.constant 0.000000e+00 : f32
      %12 = vector.broadcast %cst_10 : f32 to vector<1024x128xf32>
      %c0_11 = arith.constant 0 : index
      %c0_12 = arith.constant 0 : index
      %13 = vector.load %arg7[%c0_11, %c0_12] : memref<1024x128xf32, #tpu.memory_space<vmem>>, vector<1024x128xf32>
      tpu.vector_store %arg7[%c0_11, %c0_12], %12 {strides = array<i32>} : memref<1024x128xf32, #tpu.memory_space<vmem>>, vector<1024x128xf32>,
    } else {
    }
    %c0 = arith.constant 0 : index
    %c0_1 = arith.constant 0 : index
    %3 = vector.load %arg7[%c0, %c0_1] : memref<1024x128xf32, #tpu.memory_space<vmem>>, vector<1024x128xf32>
    %c0_2 = arith.constant 0 : index
    %c0_3 = arith.constant 0 : index
    %4 = vector.load %arg2[%c0_2, %c0_3] : memref<1024x128xbf16, #tpu.memory_space<vmem>>, vector<1024x128xbf16>
    %c0_4 = arith.constant 0 : index
    %c0_5 = arith.constant 0 : index
    %5 = vector.load %arg3[%c0_4, %c0_5] : memref<128x128xbf16, #tpu.memory_space<vmem>>, vector<128x128xbf16>
    %cst = arith.constant dense<0.000000e+00> : vector<1024x128xf32>
    %6 = tpu.matmul %4, %5, %cst {dimension_numbers = #tpu.dot_dimension_numbers<[1], [0], [0], [1], [0, 0, 1, 1], [], []>} : vector<1024x128xbf16>, vector<128x128xbf16>, vector<1024x128xf32> -> vector<1024x128xf32>
    %7 = arith.addf %3, %6 : vector<1024x128xf32>
    %c0_6 = arith.constant 0 : index
    %c0_7 = arith.constant 0 : index
    %8 = vector.load %arg7[%c0_6, %c0_7] : memref<1024x128xf32, #tpu.memory_space<vmem>>, vector<1024x128xf32>
    tpu.vector_store %arg7[%c0_6, %c0_7], %7 {strides = array<i32>} : memref<1024x128xf32, #tpu.memory_space<vmem>>, vector<1024x128xf32>,
    %c0_i32_8 = arith.constant 0 : i32
    %9 = arith.cmpi eq, %arg1, %c0_i32_8 : i32
    %10 = arith.extui %9 : i1 to i32
    %c0_i32_9 = arith.constant 0 : i32
    %11 = arith.cmpi ne, %10, %c0_i32_9 : i32
    scf.if %11 {
      %c0_10 = arith.constant 0 : index
      %c0_11 = arith.constant 0 : index
      %12 = vector.load %arg7[%c0_10, %c0_11] : memref<1024x128xf32, #tpu.memory_space<vmem>>, vector<1024x128xf32>
      %13 = vector.shape_cast %12 : vector<1024x128xf32> to vector<2x512x128xf32>
      %cst_12 = arith.constant dense<0.000000e+00> : vector<2x128xf32>
      %14 = vector.multi_reduction <add>, %13, %cst_12 [1] : vector<2x512x128xf32> to vector<2x128xf32>
      %15 = vector.shape_cast %14 : vector<2x128xf32> to vector<2x1x128xf32>
      %cst_13 = arith.constant 5.120000e+02 : f32
      %16 = vector.broadcast %cst_13 : f32 to vector<2x1x128xf32>
      %17 = arith.divf %15, %16 : vector<2x1x128xf32>
      %18 = vector.broadcast %17 : vector<2x1x128xf32> to vector<2x512x128xf32>
      %19 = arith.subf %13, %18 : vector<2x512x128xf32>
      %20 = arith.mulf %19, %19 : vector<2x512x128xf32>
      %cst_14 = arith.constant dense<0.000000e+00> : vector<2x128xf32>
      %21 = vector.multi_reduction <add>, %20, %cst_14 [1] : vector<2x512x128xf32> to vector<2x128xf32>
      %22 = vector.shape_cast %21 : vector<2x128xf32> to vector<2x1x128xf32>
      %cst_15 = arith.constant 5.120000e+02 : f32
      %23 = vector.broadcast %cst_15 : f32 to vector<2x1x128xf32>
      %24 = arith.divf %22, %23 : vector<2x1x128xf32>
      %25 = vector.broadcast %17 : vector<2x1x128xf32> to vector<2x512x128xf32>
      %26 = arith.subf %13, %25 : vector<2x512x128xf32>
      %cst_16 = arith.constant 9.99999974E-6 : f32
      %27 = vector.broadcast %cst_16 : f32 to vector<2x1x128xf32>
      %28 = arith.addf %24, %27 : vector<2x1x128xf32>
      %29 = math.rsqrt %28 : vector<2x1x128xf32>
      %30 = vector.broadcast %29 : vector<2x1x128xf32> to vector<2x512x128xf32>
      %31 = arith.mulf %26, %30 : vector<2x512x128xf32>
      %c0_17 = arith.constant 0 : index
      %c0_18 = arith.constant 0 : index
      %32 = vector.load %arg4[%c0_17, %c0_18] : memref<1x128xf32, #tpu.memory_space<vmem>>, vector<1x128xf32>
      %33 = vector.shape_cast %32 : vector<1x128xf32> to vector<1x1x128xf32>
      %34 = vector.broadcast %33 : vector<1x1x128xf32> to vector<2x512x128xf32>
      %35 = arith.mulf %31, %34 : vector<2x512x128xf32>
      %c0_19 = arith.constant 0 : index
      %c0_20 = arith.constant 0 : index
      %36 = vector.load %arg5[%c0_19, %c0_20] : memref<1x128xf32, #tpu.memory_space<vmem>>, vector<1x128xf32>
      %37 = vector.shape_cast %36 : vector<1x128xf32> to vector<1x1x128xf32>
      %38 = vector.broadcast %37 : vector<1x1x128xf32> to vector<2x512x128xf32>
      %39 = arith.addf %35, %38 : vector<2x512x128xf32>
      %40 = vector.shape_cast %39 : vector<2x512x128xf32> to vector<1024x128xf32>
      %cst_21 = arith.constant 0.000000e+00 : f32
      %41 = vector.broadcast %cst_21 : f32 to vector<1024x128xf32>
      %42 = arith.maximumf %40, %41 : vector<1024x128xf32>
      %43 = vector.shape_cast %42 : vector<1024x128xf32> to vector<16x64x128xf32>
      %cst_22 = arith.constant dense<0.000000e+00> : vector<16x128xf32>
      %44 = vector.multi_reduction <add>, %43, %cst_22 [1] : vector<16x64x128xf32> to vector<16x128xf32>
      %cst_23 = arith.constant 6.400000e+01 : f32
      %45 = vector.broadcast %cst_23 : f32 to vector<16x128xf32>
      %46 = arith.divf %44, %45 : vector<16x128xf32>
      %47 = arith.truncf %46 : vector<16x128xf32> to vector<16x128xbf16>
      %c0_24 = arith.constant 0 : index
      %c0_25 = arith.constant 0 : index
      %48 = vector.load %arg6[%c0_24, %c0_25] : memref<16x128xbf16, #tpu.memory_space<vmem>>, vector<16x128xbf16>
      tpu.vector_store %arg6[%c0_24, %c0_25], %47 {strides = array<i32>} : memref<16x128xbf16, #tpu.memory_space<vmem>>, vector<16x128xbf16>,
    } else {
    }
    return
  }
  func.func @transform_0(%arg0: i32, %arg1: i32) -> (i32, i32) {
    %c0_i32 = arith.constant 0 : i32
    %c0_i32_0 = arith.constant 0 : i32
    return %c0_i32, %arg1 : i32, i32
  }
  func.func @transform_1(%arg0: i32, %arg1: i32) -> (i32, i32) {
    %c0_i32 = arith.constant 0 : i32
    return %arg1, %arg0 : i32, i32
  }
  func.func @transform_2(%arg0: i32, %arg1: i32) -> (i32, i32) {
    %c0_i32 = arith.constant 0 : i32
    %c0_i32_0 = arith.constant 0 : i32
    return %c0_i32, %arg0 : i32, i32
  }
  func.func @transform_3(%arg0: i32, %arg1: i32) -> (i32, i32) {
    %c0_i32 = arith.constant 0 : i32
    %c0_i32_0 = arith.constant 0 : i32
    return %c0_i32, %arg0 : i32, i32
  }
  func.func @transform_4(%arg0: i32, %arg1: i32) -> (i32, i32) {
    %c0_i32 = arith.constant 0 : i32
    %c0_i32_0 = arith.constant 0 : i32
    return %c0_i32, %arg0 : i32, i32
  }
}

module attributes {stable_mosaic.version = 11 : i64} {
  func.func @kernel(%arg0: i32, %arg1: i32, %arg2: memref<16x128xbf16, #tpu.memory_space<vmem>>, %arg3: memref<128x128xbf16, #tpu.memory_space<vmem>>, %arg4: memref<16x128xbf16, #tpu.memory_space<vmem>>, %arg5: memref<16x128xf32, #tpu.memory_space<vmem>>) attributes {dimension_semantics = [#tpu.dimension_semantics<parallel>, #tpu.dimension_semantics<arbitrary>], iteration_bounds = array<i64: 1, 1>, scalar_prefetch = 0 : i64, scratch_operands = 1 : i64, tpu.core_type = #tpu.core_type<tc>, window_params = [{transform_indices = @transform_0, window_bounds = array<i64: 16, 128>}, {transform_indices = @transform_1, window_bounds = array<i64: 128, 128>}, {transform_indices = @transform_2, window_bounds = array<i64: 16, 128>}]} {
    %c0_i32 = arith.constant 0 : i32
    %0 = arith.cmpi eq, %arg1, %c0_i32 : i32
    %1 = arith.extui %0 : i1 to i32
    %c0_i32_0 = arith.constant 0 : i32
    %2 = arith.cmpi ne, %1, %c0_i32_0 : i32
    scf.if %2 {
      %cst_10 = arith.constant 0.000000e+00 : f32
      %12 = vector.broadcast %cst_10 : f32 to vector<16x128xf32>
      %c0_11 = arith.constant 0 : index
      %c0_12 = arith.constant 0 : index
      %13 = vector.load %arg5[%c0_11, %c0_12] : memref<16x128xf32, #tpu.memory_space<vmem>>, vector<16x128xf32>
      tpu.vector_store %arg5[%c0_11, %c0_12], %12 {strides = array<i32>} : memref<16x128xf32, #tpu.memory_space<vmem>>, vector<16x128xf32>,
    } else {
    }
    %c0 = arith.constant 0 : index
    %c0_1 = arith.constant 0 : index
    %3 = vector.load %arg5[%c0, %c0_1] : memref<16x128xf32, #tpu.memory_space<vmem>>, vector<16x128xf32>
    %c0_2 = arith.constant 0 : index
    %c0_3 = arith.constant 0 : index
    %4 = vector.load %arg2[%c0_2, %c0_3] : memref<16x128xbf16, #tpu.memory_space<vmem>>, vector<16x128xbf16>
    %c0_4 = arith.constant 0 : index
    %c0_5 = arith.constant 0 : index
    %5 = vector.load %arg3[%c0_4, %c0_5] : memref<128x128xbf16, #tpu.memory_space<vmem>>, vector<128x128xbf16>
    %cst = arith.constant dense<0.000000e+00> : vector<16x128xf32>
    %6 = tpu.matmul %4, %5, %cst {dimension_numbers = #tpu.dot_dimension_numbers<[1], [0], [0], [1], [0, 0, 1, 1], [], []>} : vector<16x128xbf16>, vector<128x128xbf16>, vector<16x128xf32> -> vector<16x128xf32>
    %7 = arith.addf %3, %6 : vector<16x128xf32>
    %c0_6 = arith.constant 0 : index
    %c0_7 = arith.constant 0 : index
    %8 = vector.load %arg5[%c0_6, %c0_7] : memref<16x128xf32, #tpu.memory_space<vmem>>, vector<16x128xf32>
    tpu.vector_store %arg5[%c0_6, %c0_7], %7 {strides = array<i32>} : memref<16x128xf32, #tpu.memory_space<vmem>>, vector<16x128xf32>,
    %c0_i32_8 = arith.constant 0 : i32
    %9 = arith.cmpi eq, %arg1, %c0_i32_8 : i32
    %10 = arith.extui %9 : i1 to i32
    %c0_i32_9 = arith.constant 0 : i32
    %11 = arith.cmpi ne, %10, %c0_i32_9 : i32
    scf.if %11 {
      %c0_10 = arith.constant 0 : index
      %c0_11 = arith.constant 0 : index
      %12 = vector.load %arg5[%c0_10, %c0_11] : memref<16x128xf32, #tpu.memory_space<vmem>>, vector<16x128xf32>
      %13 = arith.truncf %12 : vector<16x128xf32> to vector<16x128xbf16>
      %c0_12 = arith.constant 0 : index
      %c0_13 = arith.constant 0 : index
      %14 = vector.load %arg4[%c0_12, %c0_13] : memref<16x128xbf16, #tpu.memory_space<vmem>>, vector<16x128xbf16>
      tpu.vector_store %arg4[%c0_12, %c0_13], %13 {strides = array<i32>} : memref<16x128xbf16, #tpu.memory_space<vmem>>, vector<16x128xbf16>,
    } else {
    }
    return
  }
  func.func @transform_0(%arg0: i32, %arg1: i32) -> (i32, i32) {
    %c0_i32 = arith.constant 0 : i32
    %c0_i32_0 = arith.constant 0 : i32
    return %c0_i32, %arg1 : i32, i32
  }
  func.func @transform_1(%arg0: i32, %arg1: i32) -> (i32, i32) {
    %c0_i32 = arith.constant 0 : i32
    return %arg1, %arg0 : i32, i32
  }
  func.func @transform_2(%arg0: i32, %arg1: i32) -> (i32, i32) {
    %c0_i32 = arith.constant 0 : i32
    %c0_i32_0 = arith.constant 0 : i32
    return %c0_i32, %arg0 : i32, i32
  }
}

module attributes {stable_mosaic.version = 11 : i64} {
  func.func @kernel(%arg0: i32, %arg1: i32, %arg2: memref<32x128xbf16, #tpu.memory_space<vmem>>, %arg3: memref<128x256xbf16, #tpu.memory_space<vmem>>, %arg4: memref<1x256xf32, #tpu.memory_space<vmem>>, %arg5: memref<1x256xf32, #tpu.memory_space<vmem>>, %arg6: memref<32x256xbf16, #tpu.memory_space<vmem>>, %arg7: memref<32x256xf32, #tpu.memory_space<vmem>>) attributes {dimension_semantics = [#tpu.dimension_semantics<parallel>, #tpu.dimension_semantics<arbitrary>], iteration_bounds = array<i64: 2, 1>, scalar_prefetch = 0 : i64, scratch_operands = 1 : i64, tpu.core_type = #tpu.core_type<tc>, window_params = [{transform_indices = @transform_0, window_bounds = array<i64: 32, 128>}, {transform_indices = @transform_1, window_bounds = array<i64: 128, 256>}, {transform_indices = @transform_2, window_bounds = array<i64: 1, 256>}, {transform_indices = @transform_3, window_bounds = array<i64: 1, 256>}, {transform_indices = @transform_4, window_bounds = array<i64: 32, 256>}]} {
    %c0_i32 = arith.constant 0 : i32
    %0 = arith.cmpi eq, %arg1, %c0_i32 : i32
    %1 = arith.extui %0 : i1 to i32
    %c0_i32_0 = arith.constant 0 : i32
    %2 = arith.cmpi ne, %1, %c0_i32_0 : i32
    scf.if %2 {
      %cst_10 = arith.constant 0.000000e+00 : f32
      %12 = vector.broadcast %cst_10 : f32 to vector<32x256xf32>
      %c0_11 = arith.constant 0 : index
      %c0_12 = arith.constant 0 : index
      %13 = vector.load %arg7[%c0_11, %c0_12] : memref<32x256xf32, #tpu.memory_space<vmem>>, vector<32x256xf32>
      tpu.vector_store %arg7[%c0_11, %c0_12], %12 {strides = array<i32>} : memref<32x256xf32, #tpu.memory_space<vmem>>, vector<32x256xf32>,
    } else {
    }
    %c0 = arith.constant 0 : index
    %c0_1 = arith.constant 0 : index
    %3 = vector.load %arg7[%c0, %c0_1] : memref<32x256xf32, #tpu.memory_space<vmem>>, vector<32x256xf32>
    %c0_2 = arith.constant 0 : index
    %c0_3 = arith.constant 0 : index
    %4 = vector.load %arg2[%c0_2, %c0_3] : memref<32x128xbf16, #tpu.memory_space<vmem>>, vector<32x128xbf16>
    %c0_4 = arith.constant 0 : index
    %c0_5 = arith.constant 0 : index
    %5 = vector.load %arg3[%c0_4, %c0_5] : memref<128x256xbf16, #tpu.memory_space<vmem>>, vector<128x256xbf16>
    %cst = arith.constant dense<0.000000e+00> : vector<32x256xf32>
    %6 = tpu.matmul %4, %5, %cst {dimension_numbers = #tpu.dot_dimension_numbers<[1], [0], [0], [1], [0, 0, 1, 1], [], []>} : vector<32x128xbf16>, vector<128x256xbf16>, vector<32x256xf32> -> vector<32x256xf32>
    %7 = arith.addf %3, %6 : vector<32x256xf32>
    %c0_6 = arith.constant 0 : index
    %c0_7 = arith.constant 0 : index
    %8 = vector.load %arg7[%c0_6, %c0_7] : memref<32x256xf32, #tpu.memory_space<vmem>>, vector<32x256xf32>
    tpu.vector_store %arg7[%c0_6, %c0_7], %7 {strides = array<i32>} : memref<32x256xf32, #tpu.memory_space<vmem>>, vector<32x256xf32>,
    %c0_i32_8 = arith.constant 0 : i32
    %9 = arith.cmpi eq, %arg1, %c0_i32_8 : i32
    %10 = arith.extui %9 : i1 to i32
    %c0_i32_9 = arith.constant 0 : i32
    %11 = arith.cmpi ne, %10, %c0_i32_9 : i32
    scf.if %11 {
      %c0_10 = arith.constant 0 : index
      %c0_11 = arith.constant 0 : index
      %12 = vector.load %arg7[%c0_10, %c0_11] : memref<32x256xf32, #tpu.memory_space<vmem>>, vector<32x256xf32>
      %13 = vector.shape_cast %12 : vector<32x256xf32> to vector<4x8x256xf32>
      %cst_12 = arith.constant dense<0.000000e+00> : vector<4x256xf32>
      %14 = vector.multi_reduction <add>, %13, %cst_12 [1] : vector<4x8x256xf32> to vector<4x256xf32>
      %15 = vector.shape_cast %14 : vector<4x256xf32> to vector<4x1x256xf32>
      %cst_13 = arith.constant 8.000000e+00 : f32
      %16 = vector.broadcast %cst_13 : f32 to vector<4x1x256xf32>
      %17 = arith.divf %15, %16 : vector<4x1x256xf32>
      %18 = vector.broadcast %17 : vector<4x1x256xf32> to vector<4x8x256xf32>
      %19 = arith.subf %13, %18 : vector<4x8x256xf32>
      %20 = arith.mulf %19, %19 : vector<4x8x256xf32>
      %cst_14 = arith.constant dense<0.000000e+00> : vector<4x256xf32>
      %21 = vector.multi_reduction <add>, %20, %cst_14 [1] : vector<4x8x256xf32> to vector<4x256xf32>
      %22 = vector.shape_cast %21 : vector<4x256xf32> to vector<4x1x256xf32>
      %cst_15 = arith.constant 8.000000e+00 : f32
      %23 = vector.broadcast %cst_15 : f32 to vector<4x1x256xf32>
      %24 = arith.divf %22, %23 : vector<4x1x256xf32>
      %25 = vector.broadcast %17 : vector<4x1x256xf32> to vector<4x8x256xf32>
      %26 = arith.subf %13, %25 : vector<4x8x256xf32>
      %cst_16 = arith.constant 9.99999974E-6 : f32
      %27 = vector.broadcast %cst_16 : f32 to vector<4x1x256xf32>
      %28 = arith.addf %24, %27 : vector<4x1x256xf32>
      %29 = math.rsqrt %28 : vector<4x1x256xf32>
      %30 = vector.broadcast %29 : vector<4x1x256xf32> to vector<4x8x256xf32>
      %31 = arith.mulf %26, %30 : vector<4x8x256xf32>
      %c0_17 = arith.constant 0 : index
      %c0_18 = arith.constant 0 : index
      %32 = vector.load %arg4[%c0_17, %c0_18] : memref<1x256xf32, #tpu.memory_space<vmem>>, vector<1x256xf32>
      %33 = vector.shape_cast %32 : vector<1x256xf32> to vector<1x1x256xf32>
      %34 = vector.broadcast %33 : vector<1x1x256xf32> to vector<4x8x256xf32>
      %35 = arith.mulf %31, %34 : vector<4x8x256xf32>
      %c0_19 = arith.constant 0 : index
      %c0_20 = arith.constant 0 : index
      %36 = vector.load %arg5[%c0_19, %c0_20] : memref<1x256xf32, #tpu.memory_space<vmem>>, vector<1x256xf32>
      %37 = vector.shape_cast %36 : vector<1x256xf32> to vector<1x1x256xf32>
      %38 = vector.broadcast %37 : vector<1x1x256xf32> to vector<4x8x256xf32>
      %39 = arith.addf %35, %38 : vector<4x8x256xf32>
      %40 = vector.shape_cast %39 : vector<4x8x256xf32> to vector<32x256xf32>
      %cst_21 = arith.constant 0.000000e+00 : f32
      %41 = vector.broadcast %cst_21 : f32 to vector<32x256xf32>
      %42 = arith.maximumf %40, %41 : vector<32x256xf32>
      %43 = arith.truncf %42 : vector<32x256xf32> to vector<32x256xbf16>
      %c0_22 = arith.constant 0 : index
      %c0_23 = arith.constant 0 : index
      %44 = vector.load %arg6[%c0_22, %c0_23] : memref<32x256xbf16, #tpu.memory_space<vmem>>, vector<32x256xbf16>
      tpu.vector_store %arg6[%c0_22, %c0_23], %43 {strides = array<i32>} : memref<32x256xbf16, #tpu.memory_space<vmem>>, vector<32x256xbf16>,
    } else {
    }
    return
  }
  func.func @transform_0(%arg0: i32, %arg1: i32) -> (i32, i32) {
    %c0_i32 = arith.constant 0 : i32
    %c0_i32_0 = arith.constant 0 : i32
    return %c0_i32, %arg1 : i32, i32
  }
  func.func @transform_1(%arg0: i32, %arg1: i32) -> (i32, i32) {
    %c0_i32 = arith.constant 0 : i32
    return %arg1, %arg0 : i32, i32
  }
  func.func @transform_2(%arg0: i32, %arg1: i32) -> (i32, i32) {
    %c0_i32 = arith.constant 0 : i32
    %c0_i32_0 = arith.constant 0 : i32
    return %c0_i32, %arg0 : i32, i32
  }
  func.func @transform_3(%arg0: i32, %arg1: i32) -> (i32, i32) {
    %c0_i32 = arith.constant 0 : i32
    %c0_i32_0 = arith.constant 0 : i32
    return %c0_i32, %arg0 : i32, i32
  }
  func.func @transform_4(%arg0: i32, %arg1: i32) -> (i32, i32) {
    %c0_i32 = arith.constant 0 : i32
    %c0_i32_0 = arith.constant 0 : i32
    return %c0_i32, %arg0 : i32, i32
  }
}

module attributes {stable_mosaic.version = 11 : i64} {
  func.func @kernel(%arg0: i32, %arg1: i32, %arg2: memref<32x512xbf16, #tpu.memory_space<vmem>>, %arg3: memref<512x256xbf16, #tpu.memory_space<vmem>>, %arg4: memref<1x256xf32, #tpu.memory_space<vmem>>, %arg5: memref<1x256xf32, #tpu.memory_space<vmem>>, %arg6: memref<32x256xbf16, #tpu.memory_space<vmem>>, %arg7: memref<32x256xf32, #tpu.memory_space<vmem>>) attributes {dimension_semantics = [#tpu.dimension_semantics<parallel>, #tpu.dimension_semantics<arbitrary>], iteration_bounds = array<i64: 2, 1>, scalar_prefetch = 0 : i64, scratch_operands = 1 : i64, tpu.core_type = #tpu.core_type<tc>, window_params = [{transform_indices = @transform_0, window_bounds = array<i64: 32, 512>}, {transform_indices = @transform_1, window_bounds = array<i64: 512, 256>}, {transform_indices = @transform_2, window_bounds = array<i64: 1, 256>}, {transform_indices = @transform_3, window_bounds = array<i64: 1, 256>}, {transform_indices = @transform_4, window_bounds = array<i64: 32, 256>}]} {
    %c0_i32 = arith.constant 0 : i32
    %0 = arith.cmpi eq, %arg1, %c0_i32 : i32
    %1 = arith.extui %0 : i1 to i32
    %c0_i32_0 = arith.constant 0 : i32
    %2 = arith.cmpi ne, %1, %c0_i32_0 : i32
    scf.if %2 {
      %cst_10 = arith.constant 0.000000e+00 : f32
      %12 = vector.broadcast %cst_10 : f32 to vector<32x256xf32>
      %c0_11 = arith.constant 0 : index
      %c0_12 = arith.constant 0 : index
      %13 = vector.load %arg7[%c0_11, %c0_12] : memref<32x256xf32, #tpu.memory_space<vmem>>, vector<32x256xf32>
      tpu.vector_store %arg7[%c0_11, %c0_12], %12 {strides = array<i32>} : memref<32x256xf32, #tpu.memory_space<vmem>>, vector<32x256xf32>,
    } else {
    }
    %c0 = arith.constant 0 : index
    %c0_1 = arith.constant 0 : index
    %3 = vector.load %arg7[%c0, %c0_1] : memref<32x256xf32, #tpu.memory_space<vmem>>, vector<32x256xf32>
    %c0_2 = arith.constant 0 : index
    %c0_3 = arith.constant 0 : index
    %4 = vector.load %arg2[%c0_2, %c0_3] : memref<32x512xbf16, #tpu.memory_space<vmem>>, vector<32x512xbf16>
    %c0_4 = arith.constant 0 : index
    %c0_5 = arith.constant 0 : index
    %5 = vector.load %arg3[%c0_4, %c0_5] : memref<512x256xbf16, #tpu.memory_space<vmem>>, vector<512x256xbf16>
    %cst = arith.constant dense<0.000000e+00> : vector<32x256xf32>
    %6 = tpu.matmul %4, %5, %cst {dimension_numbers = #tpu.dot_dimension_numbers<[1], [0], [0], [1], [0, 0, 1, 1], [], []>} : vector<32x512xbf16>, vector<512x256xbf16>, vector<32x256xf32> -> vector<32x256xf32>
    %7 = arith.addf %3, %6 : vector<32x256xf32>
    %c0_6 = arith.constant 0 : index
    %c0_7 = arith.constant 0 : index
    %8 = vector.load %arg7[%c0_6, %c0_7] : memref<32x256xf32, #tpu.memory_space<vmem>>, vector<32x256xf32>
    tpu.vector_store %arg7[%c0_6, %c0_7], %7 {strides = array<i32>} : memref<32x256xf32, #tpu.memory_space<vmem>>, vector<32x256xf32>,
    %c0_i32_8 = arith.constant 0 : i32
    %9 = arith.cmpi eq, %arg1, %c0_i32_8 : i32
    %10 = arith.extui %9 : i1 to i32
    %c0_i32_9 = arith.constant 0 : i32
    %11 = arith.cmpi ne, %10, %c0_i32_9 : i32
    scf.if %11 {
      %c0_10 = arith.constant 0 : index
      %c0_11 = arith.constant 0 : index
      %12 = vector.load %arg7[%c0_10, %c0_11] : memref<32x256xf32, #tpu.memory_space<vmem>>, vector<32x256xf32>
      %13 = vector.shape_cast %12 : vector<32x256xf32> to vector<4x8x256xf32>
      %cst_12 = arith.constant dense<0.000000e+00> : vector<4x256xf32>
      %14 = vector.multi_reduction <add>, %13, %cst_12 [1] : vector<4x8x256xf32> to vector<4x256xf32>
      %15 = vector.shape_cast %14 : vector<4x256xf32> to vector<4x1x256xf32>
      %cst_13 = arith.constant 8.000000e+00 : f32
      %16 = vector.broadcast %cst_13 : f32 to vector<4x1x256xf32>
      %17 = arith.divf %15, %16 : vector<4x1x256xf32>
      %18 = vector.broadcast %17 : vector<4x1x256xf32> to vector<4x8x256xf32>
      %19 = arith.subf %13, %18 : vector<4x8x256xf32>
      %20 = arith.mulf %19, %19 : vector<4x8x256xf32>
      %cst_14 = arith.constant dense<0.000000e+00> : vector<4x256xf32>
      %21 = vector.multi_reduction <add>, %20, %cst_14 [1] : vector<4x8x256xf32> to vector<4x256xf32>
      %22 = vector.shape_cast %21 : vector<4x256xf32> to vector<4x1x256xf32>
      %cst_15 = arith.constant 8.000000e+00 : f32
      %23 = vector.broadcast %cst_15 : f32 to vector<4x1x256xf32>
      %24 = arith.divf %22, %23 : vector<4x1x256xf32>
      %25 = vector.broadcast %17 : vector<4x1x256xf32> to vector<4x8x256xf32>
      %26 = arith.subf %13, %25 : vector<4x8x256xf32>
      %cst_16 = arith.constant 9.99999974E-6 : f32
      %27 = vector.broadcast %cst_16 : f32 to vector<4x1x256xf32>
      %28 = arith.addf %24, %27 : vector<4x1x256xf32>
      %29 = math.rsqrt %28 : vector<4x1x256xf32>
      %30 = vector.broadcast %29 : vector<4x1x256xf32> to vector<4x8x256xf32>
      %31 = arith.mulf %26, %30 : vector<4x8x256xf32>
      %c0_17 = arith.constant 0 : index
      %c0_18 = arith.constant 0 : index
      %32 = vector.load %arg4[%c0_17, %c0_18] : memref<1x256xf32, #tpu.memory_space<vmem>>, vector<1x256xf32>
      %33 = vector.shape_cast %32 : vector<1x256xf32> to vector<1x1x256xf32>
      %34 = vector.broadcast %33 : vector<1x1x256xf32> to vector<4x8x256xf32>
      %35 = arith.mulf %31, %34 : vector<4x8x256xf32>
      %c0_19 = arith.constant 0 : index
      %c0_20 = arith.constant 0 : index
      %36 = vector.load %arg5[%c0_19, %c0_20] : memref<1x256xf32, #tpu.memory_space<vmem>>, vector<1x256xf32>
      %37 = vector.shape_cast %36 : vector<1x256xf32> to vector<1x1x256xf32>
      %38 = vector.broadcast %37 : vector<1x1x256xf32> to vector<4x8x256xf32>
      %39 = arith.addf %35, %38 : vector<4x8x256xf32>
      %40 = vector.shape_cast %39 : vector<4x8x256xf32> to vector<32x256xf32>
      %cst_21 = arith.constant 0.000000e+00 : f32
      %41 = vector.broadcast %cst_21 : f32 to vector<32x256xf32>
      %42 = arith.maximumf %40, %41 : vector<32x256xf32>
      %43 = arith.truncf %42 : vector<32x256xf32> to vector<32x256xbf16>
      %c0_22 = arith.constant 0 : index
      %c0_23 = arith.constant 0 : index
      %44 = vector.load %arg6[%c0_22, %c0_23] : memref<32x256xbf16, #tpu.memory_space<vmem>>, vector<32x256xbf16>
      tpu.vector_store %arg6[%c0_22, %c0_23], %43 {strides = array<i32>} : memref<32x256xbf16, #tpu.memory_space<vmem>>, vector<32x256xbf16>,
    } else {
    }
    return
  }
  func.func @transform_0(%arg0: i32, %arg1: i32) -> (i32, i32) {
    %c0_i32 = arith.constant 0 : i32
    %c0_i32_0 = arith.constant 0 : i32
    return %c0_i32, %arg1 : i32, i32
  }
  func.func @transform_1(%arg0: i32, %arg1: i32) -> (i32, i32) {
    %c0_i32 = arith.constant 0 : i32
    return %arg1, %arg0 : i32, i32
  }
  func.func @transform_2(%arg0: i32, %arg1: i32) -> (i32, i32) {
    %c0_i32 = arith.constant 0 : i32
    %c0_i32_0 = arith.constant 0 : i32
    return %c0_i32, %arg0 : i32, i32
  }
  func.func @transform_3(%arg0: i32, %arg1: i32) -> (i32, i32) {
    %c0_i32 = arith.constant 0 : i32
    %c0_i32_0 = arith.constant 0 : i32
    return %c0_i32, %arg0 : i32, i32
  }
  func.func @transform_4(%arg0: i32, %arg1: i32) -> (i32, i32) {
    %c0_i32 = arith.constant 0 : i32
    %c0_i32_0 = arith.constant 0 : i32
    return %c0_i32, %arg0 : i32, i32
  }
}

module attributes {stable_mosaic.version = 11 : i64} {
  func.func @kernel(%arg0: i32, %arg1: i32, %arg2: memref<32x512xbf16, #tpu.memory_space<vmem>>, %arg3: memref<512x128xbf16, #tpu.memory_space<vmem>>, %arg4: memref<32x128xbf16, #tpu.memory_space<vmem>>, %arg5: memref<32x128xf32, #tpu.memory_space<vmem>>) attributes {dimension_semantics = [#tpu.dimension_semantics<parallel>, #tpu.dimension_semantics<arbitrary>], iteration_bounds = array<i64: 2, 1>, scalar_prefetch = 0 : i64, scratch_operands = 1 : i64, tpu.core_type = #tpu.core_type<tc>, window_params = [{transform_indices = @transform_0, window_bounds = array<i64: 32, 512>}, {transform_indices = @transform_1, window_bounds = array<i64: 512, 128>}, {transform_indices = @transform_2, window_bounds = array<i64: 32, 128>}]} {
    %c0_i32 = arith.constant 0 : i32
    %0 = arith.cmpi eq, %arg1, %c0_i32 : i32
    %1 = arith.extui %0 : i1 to i32
    %c0_i32_0 = arith.constant 0 : i32
    %2 = arith.cmpi ne, %1, %c0_i32_0 : i32
    scf.if %2 {
      %cst_10 = arith.constant 0.000000e+00 : f32
      %12 = vector.broadcast %cst_10 : f32 to vector<32x128xf32>
      %c0_11 = arith.constant 0 : index
      %c0_12 = arith.constant 0 : index
      %13 = vector.load %arg5[%c0_11, %c0_12] : memref<32x128xf32, #tpu.memory_space<vmem>>, vector<32x128xf32>
      tpu.vector_store %arg5[%c0_11, %c0_12], %12 {strides = array<i32>} : memref<32x128xf32, #tpu.memory_space<vmem>>, vector<32x128xf32>,
    } else {
    }
    %c0 = arith.constant 0 : index
    %c0_1 = arith.constant 0 : index
    %3 = vector.load %arg5[%c0, %c0_1] : memref<32x128xf32, #tpu.memory_space<vmem>>, vector<32x128xf32>
    %c0_2 = arith.constant 0 : index
    %c0_3 = arith.constant 0 : index
    %4 = vector.load %arg2[%c0_2, %c0_3] : memref<32x512xbf16, #tpu.memory_space<vmem>>, vector<32x512xbf16>
    %c0_4 = arith.constant 0 : index
    %c0_5 = arith.constant 0 : index
    %5 = vector.load %arg3[%c0_4, %c0_5] : memref<512x128xbf16, #tpu.memory_space<vmem>>, vector<512x128xbf16>
    %cst = arith.constant dense<0.000000e+00> : vector<32x128xf32>
    %6 = tpu.matmul %4, %5, %cst {dimension_numbers = #tpu.dot_dimension_numbers<[1], [0], [0], [1], [0, 0, 1, 1], [], []>} : vector<32x512xbf16>, vector<512x128xbf16>, vector<32x128xf32> -> vector<32x128xf32>
    %7 = arith.addf %3, %6 : vector<32x128xf32>
    %c0_6 = arith.constant 0 : index
    %c0_7 = arith.constant 0 : index
    %8 = vector.load %arg5[%c0_6, %c0_7] : memref<32x128xf32, #tpu.memory_space<vmem>>, vector<32x128xf32>
    tpu.vector_store %arg5[%c0_6, %c0_7], %7 {strides = array<i32>} : memref<32x128xf32, #tpu.memory_space<vmem>>, vector<32x128xf32>,
    %c0_i32_8 = arith.constant 0 : i32
    %9 = arith.cmpi eq, %arg1, %c0_i32_8 : i32
    %10 = arith.extui %9 : i1 to i32
    %c0_i32_9 = arith.constant 0 : i32
    %11 = arith.cmpi ne, %10, %c0_i32_9 : i32
    scf.if %11 {
      %c0_10 = arith.constant 0 : index
      %c0_11 = arith.constant 0 : index
      %12 = vector.load %arg5[%c0_10, %c0_11] : memref<32x128xf32, #tpu.memory_space<vmem>>, vector<32x128xf32>
      %13 = vector.shape_cast %12 : vector<32x128xf32> to vector<4x8x128xf32>
      %cst_12 = arith.constant dense<0.000000e+00> : vector<4x128xf32>
      %14 = vector.multi_reduction <add>, %13, %cst_12 [1] : vector<4x8x128xf32> to vector<4x128xf32>
      %15 = vector.shape_cast %14 : vector<4x128xf32> to vector<4x1x128xf32>
      %cst_13 = arith.constant 8.000000e+00 : f32
      %16 = vector.broadcast %cst_13 : f32 to vector<4x1x128xf32>
      %17 = arith.divf %15, %16 : vector<4x1x128xf32>
      %18 = vector.broadcast %17 : vector<4x1x128xf32> to vector<4x8x128xf32>
      %19 = arith.subf %13, %18 : vector<4x8x128xf32>
      %20 = arith.mulf %19, %19 : vector<4x8x128xf32>
      %cst_14 = arith.constant dense<0.000000e+00> : vector<4x128xf32>
      %21 = vector.multi_reduction <add>, %20, %cst_14 [1] : vector<4x8x128xf32> to vector<4x128xf32>
      %22 = vector.shape_cast %21 : vector<4x128xf32> to vector<4x1x128xf32>
      %cst_15 = arith.constant 8.000000e+00 : f32
      %23 = vector.broadcast %cst_15 : f32 to vector<4x1x128xf32>
      %24 = arith.divf %22, %23 : vector<4x1x128xf32>
      %25 = vector.broadcast %17 : vector<4x1x128xf32> to vector<4x8x128xf32>
      %26 = arith.subf %13, %25 : vector<4x8x128xf32>
      %cst_16 = arith.constant 9.99999974E-6 : f32
      %27 = vector.broadcast %cst_16 : f32 to vector<4x1x128xf32>
      %28 = arith.addf %24, %27 : vector<4x1x128xf32>
      %29 = math.rsqrt %28 : vector<4x1x128xf32>
      %30 = vector.broadcast %29 : vector<4x1x128xf32> to vector<4x8x128xf32>
      %31 = arith.mulf %26, %30 : vector<4x8x128xf32>
      %32 = vector.shape_cast %31 : vector<4x8x128xf32> to vector<32x128xf32>
      %33 = arith.truncf %32 : vector<32x128xf32> to vector<32x128xbf16>
      %c0_17 = arith.constant 0 : index
      %c0_18 = arith.constant 0 : index
      %34 = vector.load %arg4[%c0_17, %c0_18] : memref<32x128xbf16, #tpu.memory_space<vmem>>, vector<32x128xbf16>
      tpu.vector_store %arg4[%c0_17, %c0_18], %33 {strides = array<i32>} : memref<32x128xbf16, #tpu.memory_space<vmem>>, vector<32x128xbf16>,
    } else {
    }
    return
  }
  func.func @transform_0(%arg0: i32, %arg1: i32) -> (i32, i32) {
    %c0_i32 = arith.constant 0 : i32
    %c0_i32_0 = arith.constant 0 : i32
    return %c0_i32, %arg1 : i32, i32
  }
  func.func @transform_1(%arg0: i32, %arg1: i32) -> (i32, i32) {
    %c0_i32 = arith.constant 0 : i32
    return %arg1, %arg0 : i32, i32
  }
  func.func @transform_2(%arg0: i32, %arg1: i32) -> (i32, i32) {
    %c0_i32 = arith.constant 0 : i32
    %c0_i32_0 = arith.constant 0 : i32
    return %c0_i32, %arg0 : i32, i32
  }
}

module attributes {stable_mosaic.version = 11 : i64} {
  func.func @kernel(%arg0: i32, %arg1: i32, %arg2: i32, %arg3: memref<3xi32, #tpu.memory_space<smem>>, %arg4: memref<1x8x256xbf16, #tpu.memory_space<vmem>>, %arg5: memref<1x8x256xbf16, #tpu.memory_space<vmem>>, %arg6: memref<1x8x256xf32, #tpu.memory_space<vmem>>, %arg7: memref<8x256xf32, #tpu.memory_space<vmem>>) attributes {dimension_semantics = [#tpu.dimension_semantics<parallel>, #tpu.dimension_semantics<parallel>, #tpu.dimension_semantics<arbitrary>], iteration_bounds = array<i64: 3, 1, 1>, scalar_prefetch = 1 : i64, scratch_operands = 1 : i64, tpu.core_type = #tpu.core_type<tc>, window_params = [{transform_indices = @transform_0, window_bounds = array<i64: 1, 8, 256>}, {transform_indices = @transform_1, window_bounds = array<i64: 1, 8, 256>}, {transform_indices = @transform_2, window_bounds = array<i64: 1, 8, 256>}]} {
    %c0_i32 = arith.constant 0 : i32
    %0 = arith.cmpi eq, %arg2, %c0_i32 : i32
    %1 = arith.extui %0 : i1 to i32
    %c0_i32_0 = arith.constant 0 : i32
    %2 = arith.cmpi ne, %1, %c0_i32_0 : i32
    scf.if %2 {
      %cst_21 = arith.constant 0.000000e+00 : f32
      %50 = vector.broadcast %cst_21 : f32 to vector<8x256xf32>
      %c0_22 = arith.constant 0 : index
      %c0_23 = arith.constant 0 : index
      %51 = vector.load %arg7[%c0_22, %c0_23] : memref<8x256xf32, #tpu.memory_space<vmem>>, vector<8x256xf32>
      tpu.vector_store %arg7[%c0_22, %c0_23], %50 {strides = array<i32>} : memref<8x256xf32, #tpu.memory_space<vmem>>, vector<8x256xf32>,
    } else {
    }
    %c0 = arith.constant 0 : index
    %c0_1 = arith.constant 0 : index
    %c0_2 = arith.constant 0 : index
    %3 = vector.load %arg4[%c0, %c0_1, %c0_2] : memref<1x8x256xbf16, #tpu.memory_space<vmem>>, vector<1x8x256xbf16>
    %4 = vector.shape_cast %3 : vector<1x8x256xbf16> to vector<8x256xbf16>
    %c0_3 = arith.constant 0 : index
    %c0_4 = arith.constant 0 : index
    %c0_5 = arith.constant 0 : index
    %5 = vector.load %arg5[%c0_3, %c0_4, %c0_5] : memref<1x8x256xbf16, #tpu.memory_space<vmem>>, vector<1x8x256xbf16>
    %6 = vector.shape_cast %5 : vector<1x8x256xbf16> to vector<8x256xbf16>
    %cst = arith.constant dense<0.000000e+00> : vector<256x256xf32>
    %7 = tpu.matmul %4, %6, %cst {dimension_numbers = #tpu.dot_dimension_numbers<[0], [0], [1], [1], [0, 1, 1, 1], [], []>} : vector<8x256xbf16>, vector<8x256xbf16>, vector<256x256xf32> -> vector<256x256xf32>
    %cst_6 = arith.constant 3.125000e-02 : f32
    %8 = vector.broadcast %cst_6 : f32 to vector<256x256xf32>
    %9 = arith.mulf %7, %8 : vector<256x256xf32>
    %10 = arith.mulf %9, %9 : vector<256x256xf32>
    %cst_7 = arith.constant 0.000000e+00 : f32
    %11 = vector.broadcast %cst_7 : f32 to vector<256x256xf32>
    %12 = arith.index_cast %arg0 : i32 to index
    %13 = memref.load %arg3[%12] : memref<3xi32, #tpu.memory_space<smem>>
    %14 = tpu.iota {dimensions = array<i32: 0>} : vector<256x256xi32>
    %c256_i32 = arith.constant 256 : i32
    %15 = arith.muli %arg2, %c256_i32 : i32
    %16 = vector.broadcast %15 : i32 to vector<256x256xi32>
    %17 = arith.addi %14, %16 : vector<256x256xi32>
    %18 = tpu.iota {dimensions = array<i32: 1>} : vector<256x256xi32>
    %c256_i32_8 = arith.constant 256 : i32
    %19 = arith.muli %arg1, %c256_i32_8 : i32
    %20 = vector.broadcast %19 : i32 to vector<256x256xi32>
    %21 = arith.addi %18, %20 : vector<256x256xi32>
    %22 = vector.broadcast %13 : i32 to vector<256x256xi32>
    %23 = arith.cmpi slt, %17, %22 : vector<256x256xi32>
    %24 = vector.broadcast %13 : i32 to vector<256x256xi32>
    %25 = arith.cmpi slt, %21, %24 : vector<256x256xi32>
    %26 = arith.andi %23, %25 : vector<256x256xi1>
    %27 = vector.broadcast %13 : i32 to vector<256x256xi32>
    %28 = arith.cmpi sge, %17, %27 : vector<256x256xi32>
    %29 = vector.broadcast %13 : i32 to vector<256x256xi32>
    %30 = arith.cmpi sge, %21, %29 : vector<256x256xi32>
    %31 = arith.andi %28, %30 : vector<256x256xi1>
    %c0_9 = arith.constant 0 : index
    %c0_10 = arith.constant 0 : index
    %32 = vector.load %arg7[%c0_9, %c0_10] : memref<8x256xf32, #tpu.memory_space<vmem>>, vector<1x256xf32>
    %33 = arith.select %26, %10, %11 : vector<256x256xi1>, vector<256x256xf32>
    %cst_11 = arith.constant dense<0.000000e+00> : vector<256xf32>
    %34 = vector.multi_reduction <add>, %33, %cst_11 [0] : vector<256x256xf32> to vector<256xf32>
    %35 = vector.shape_cast %34 : vector<256xf32> to vector<1x256xf32>
    %36 = arith.addf %32, %35 : vector<1x256xf32>
    %c0_12 = arith.constant 0 : index
    %c0_13 = arith.constant 0 : index
    %37 = vector.load %arg7[%c0_12, %c0_13] : memref<8x256xf32, #tpu.memory_space<vmem>>, vector<1x256xf32>
    tpu.vector_store %arg7[%c0_12, %c0_13], %36 {strides = array<i32>} : memref<8x256xf32, #tpu.memory_space<vmem>>, vector<1x256xf32>,
    %c1 = arith.constant 1 : index
    %c0_14 = arith.constant 0 : index
    %38 = vector.load %arg7[%c1, %c0_14] : memref<8x256xf32, #tpu.memory_space<vmem>>, vector<1x256xf32>
    %39 = arith.select %31, %10, %11 : vector<256x256xi1>, vector<256x256xf32>
    %cst_15 = arith.constant dense<0.000000e+00> : vector<256xf32>
    %40 = vector.multi_reduction <add>, %39, %cst_15 [0] : vector<256x256xf32> to vector<256xf32>
    %41 = vector.shape_cast %40 : vector<256xf32> to vector<1x256xf32>
    %42 = arith.addf %38, %41 : vector<1x256xf32>
    %c1_16 = arith.constant 1 : index
    %c0_17 = arith.constant 0 : index
    %43 = vector.load %arg7[%c1_16, %c0_17] : memref<8x256xf32, #tpu.memory_space<vmem>>, vector<1x256xf32>
    tpu.vector_store %arg7[%c1_16, %c0_17], %42 {strides = array<i32>} : memref<8x256xf32, #tpu.memory_space<vmem>>, vector<1x256xf32>,
    %44 = arith.cmpi eq, %arg2, %arg1 : i32
    %45 = arith.extui %44 : i1 to i32
    %c0_i32_18 = arith.constant 0 : i32
    %46 = arith.cmpi ne, %45, %c0_i32_18 : i32
    scf.if %46 {
      %50 = arith.cmpi eq, %17, %21 : vector<256x256xi32>
      %cst_21 = arith.constant 1.000000e+00 : f32
      %51 = vector.broadcast %cst_21 : f32 to vector<256x256xf32>
      %52 = arith.subf %9, %51 : vector<256x256xf32>
      %53 = arith.mulf %52, %52 : vector<256x256xf32>
      %c2 = arith.constant 2 : index
      %c0_22 = arith.constant 0 : index
      %54 = vector.load %arg7[%c2, %c0_22] : memref<8x256xf32, #tpu.memory_space<vmem>>, vector<1x256xf32>
      %55 = arith.andi %50, %26 : vector<256x256xi1>
      %56 = arith.select %55, %53, %11 : vector<256x256xi1>, vector<256x256xf32>
      %cst_23 = arith.constant dense<0.000000e+00> : vector<256xf32>
      %57 = vector.multi_reduction <add>, %56, %cst_23 [0] : vector<256x256xf32> to vector<256xf32>
      %58 = vector.shape_cast %57 : vector<256xf32> to vector<1x256xf32>
      %59 = arith.addf %54, %58 : vector<1x256xf32>
      %c2_24 = arith.constant 2 : index
      %c0_25 = arith.constant 0 : index
      %60 = vector.load %arg7[%c2_24, %c0_25] : memref<8x256xf32, #tpu.memory_space<vmem>>, vector<1x256xf32>
      tpu.vector_store %arg7[%c2_24, %c0_25], %59 {strides = array<i32>} : memref<8x256xf32, #tpu.memory_space<vmem>>, vector<1x256xf32>,
      %c3 = arith.constant 3 : index
      %c0_26 = arith.constant 0 : index
      %61 = vector.load %arg7[%c3, %c0_26] : memref<8x256xf32, #tpu.memory_space<vmem>>, vector<1x256xf32>
      %62 = arith.andi %50, %26 : vector<256x256xi1>
      %63 = arith.select %62, %10, %11 : vector<256x256xi1>, vector<256x256xf32>
      %cst_27 = arith.constant dense<0.000000e+00> : vector<256xf32>
      %64 = vector.multi_reduction <add>, %63, %cst_27 [0] : vector<256x256xf32> to vector<256xf32>
      %65 = vector.shape_cast %64 : vector<256xf32> to vector<1x256xf32>
      %66 = arith.addf %61, %65 : vector<1x256xf32>
      %c3_28 = arith.constant 3 : index
      %c0_29 = arith.constant 0 : index
      %67 = vector.load %arg7[%c3_28, %c0_29] : memref<8x256xf32, #tpu.memory_space<vmem>>, vector<1x256xf32>
      tpu.vector_store %arg7[%c3_28, %c0_29], %66 {strides = array<i32>} : memref<8x256xf32, #tpu.memory_space<vmem>>, vector<1x256xf32>,
      %c4 = arith.constant 4 : index
      %c0_30 = arith.constant 0 : index
      %68 = vector.load %arg7[%c4, %c0_30] : memref<8x256xf32, #tpu.memory_space<vmem>>, vector<1x256xf32>
      %69 = arith.andi %50, %31 : vector<256x256xi1>
      %70 = arith.select %69, %10, %11 : vector<256x256xi1>, vector<256x256xf32>
      %cst_31 = arith.constant dense<0.000000e+00> : vector<256xf32>
      %71 = vector.multi_reduction <add>, %70, %cst_31 [0] : vector<256x256xf32> to vector<256xf32>
      %72 = vector.shape_cast %71 : vector<256xf32> to vector<1x256xf32>
      %73 = arith.addf %68, %72 : vector<1x256xf32>
      %c4_32 = arith.constant 4 : index
      %c0_33 = arith.constant 0 : index
      %74 = vector.load %arg7[%c4_32, %c0_33] : memref<8x256xf32, #tpu.memory_space<vmem>>, vector<1x256xf32>
      tpu.vector_store %arg7[%c4_32, %c0_33], %73 {strides = array<i32>} : memref<8x256xf32, #tpu.memory_space<vmem>>, vector<1x256xf32>,
    } else {
    }
    %c0_i32_19 = arith.constant 0 : i32
    %47 = arith.cmpi eq, %arg2, %c0_i32_19 : i32
    %48 = arith.extui %47 : i1 to i32
    %c0_i32_20 = arith.constant 0 : i32
    %49 = arith.cmpi ne, %48, %c0_i32_20 : i32
    scf.if %49 {
      %c0_21 = arith.constant 0 : index
      %c0_22 = arith.constant 0 : index
      %50 = vector.load %arg7[%c0_21, %c0_22] : memref<8x256xf32, #tpu.memory_space<vmem>>, vector<8x256xf32>
      %c0_23 = arith.constant 0 : index
      %c0_24 = arith.constant 0 : index
      %c0_25 = arith.constant 0 : index
      %51 = vector.load %arg6[%c0_23, %c0_24, %c0_25] : memref<1x8x256xf32, #tpu.memory_space<vmem>>, vector<1x8x256xf32>
      %52 = vector.shape_cast %51 : vector<1x8x256xf32> to vector<8x256xf32>
      %53 = vector.shape_cast %50 : vector<8x256xf32> to vector<1x8x256xf32>
      tpu.vector_store %arg6[%c0_23, %c0_24, %c0_25], %53 {strides = array<i32>} : memref<1x8x256xf32, #tpu.memory_space<vmem>>, vector<1x8x256xf32>,
    } else {
    }
    return
  }
  func.func @transform_0(%arg0: i32, %arg1: i32, %arg2: i32, %arg3: memref<3xi32, #tpu.memory_space<smem>>) -> (i32, i32, i32) {
    %c0_i32 = arith.constant 0 : i32
    %c0_i32_0 = arith.constant 0 : i32
    return %arg0, %c0_i32, %arg2 : i32, i32, i32
  }
  func.func @transform_1(%arg0: i32, %arg1: i32, %arg2: i32, %arg3: memref<3xi32, #tpu.memory_space<smem>>) -> (i32, i32, i32) {
    %c0_i32 = arith.constant 0 : i32
    %c0_i32_0 = arith.constant 0 : i32
    return %arg0, %c0_i32, %arg1 : i32, i32, i32
  }
  func.func @transform_2(%arg0: i32, %arg1: i32, %arg2: i32, %arg3: memref<3xi32, #tpu.memory_space<smem>>) -> (i32, i32, i32) {
    %c0_i32 = arith.constant 0 : i32
    %c0_i32_0 = arith.constant 0 : i32
    return %arg0, %c0_i32, %arg1 : i32, i32, i32
  }
}

</mosaic_0001>

<bundles_post_ra>
// kernel: decur_forward.10
= control target key start
LH: loop header
LB: loop body
LE: loop exit
PB: predicated region body
PF: predicated region fallthrough
CT: control target
= control target key end

     0   :  { %vm3158_vm0 = vcmask 1041409   ;;  %vm3160_vm1 = vcmask 1042434   ;;  %vm3162_vm2 = vcmask 1043459   ;;  %vm3164_vm3 = vcmask 1044484   ;;  %s6829_s1 = inlined_call_operand.vmem [shape: bf16[128,128], index: 1, kind: input, shape index: {}]   ;;  %s6830_s0 = inlined_call_operand.vmem [shape: bf16[1024,128], index: 0, kind: input, shape index: {}]   ;;  %s6831_s2 = inlined_call_operand.vmem [shape: f32[1,128], index: 2, kind: input, shape index: {}]   ;;  %s6832_s3 = inlined_call_operand.vmem [shape: f32[1,128], index: 3, kind: input, shape index: {}]   ;;  %s6833_s4 = inlined_call_operand.vmem [shape: bf16[16,128], index: 4, kind: output, shape index: {}]  }
   0x1   :  { %v3527_v0 = vld [vmem:[%s6829_s1] sm:$0xff]   ;;  %v3528_v1 = vld [vmem:[%s6829_s1 + $0x8] sm:$0xff]   ;;  %v3529_v2 = vld [vmem:[%s6829_s1 + $0x10] sm:$0xff]   ;;  %vm3166_vm4 = vcmask 1045509   ;;  %vm3168_vm5 = vcmask 1046534   ;;  %vm3170_vm6 = vcmask 1047559  }
   0x2   :  { %3367 = vmatprep.subr.bf16.mxu0 %v3527_v0  ;;  %3511 = vmatprep.subr.bf16.mxu1 %v3527_v0  ;;  %v3530_v3 = vld [vmem:[%s6829_s1 + $0x18] sm:$0xff]   ;;  %v3535_v4 = vld [vmem:[%s6830_s0] sm:$0xff]   ;;  %v3532_v7 = vld [vmem:[%s6829_s1 + $0x28] sm:$0xff]  }
   0x3   :  { %3368 = vmatpush3.bf16.msra.mxu0 %v3527_v0  ;;  %3519 = vmatpush3.bf16.msra.mxu1 %v3527_v0  ;;  %v3536_v5 = vld [vmem:[%s6830_s0 + $0x100] sm:$0xff]   ;;  %v3533_v8 = vld [vmem:[%s6829_s1 + $0x30] sm:$0xff]   ;;  %v3534_v9 = vld [vmem:[%s6829_s1 + $0x38] sm:$0xff]  }
   0x4   :  { %3369 = vmatprep.subr.bf16.mxu0 %v3528_v1  ;;  %3512 = vmatprep.subr.bf16.mxu1 %v3528_v1  ;;  %v3531_v6 = vld [vmem:[%s6829_s1 + $0x20] sm:$0xff]   ;;  %v3537_v10 = vld [vmem:[%s6830_s0 + $0x8] sm:$0xff]   ;;  %v3539_v12 = vld [vmem:[%s6830_s0 + $0x10] sm:$0xff]  }
   0x5   :  { %3383 = vmatprep.mubr.bf16.mxu0 %v3535_v4  ;;  %3447 = vmatprep.mubr.bf16.mxu1 %v3536_v5  ;;  %v3538_v11 = vld [vmem:[%s6830_s0 + $0x108] sm:$0xff]   ;;  %v3540_v13 = vld [vmem:[%s6830_s0 + $0x110] sm:$0xff]   ;;  %v3541_v14 = vld [vmem:[%s6830_s0 + $0x18] sm:$0xff]  }
   0x6   :  { %v3542_v15 = vld [vmem:[%s6830_s0 + $0x118] sm:$0xff]   ;;  %v3543_v16 = vld [vmem:[%s6830_s0 + $0x20] sm:$0xff]   ;;  %v3545_v18 = vld [vmem:[%s6830_s0 + $0x28] sm:$0xff]  }
   0x7   :  { %3370 = vmatpush3.bf16.msra.mxu0 %v3528_v1  ;;  %3520 = vmatpush3.bf16.msra.mxu1 %v3528_v1  ;;  %v3544_v17 = vld [vmem:[%s6830_s0 + $0x120] sm:$0xff]   ;;  %v3546_v19 = vld [vmem:[%s6830_s0 + $0x128] sm:$0xff]   ;;  %v3547_v20 = vld [vmem:[%s6830_s0 + $0x30] sm:$0xff]  }
   0x8   :  { %3371 = vmatprep.subr.bf16.mxu0 %v3529_v2  ;;  %3513 = vmatprep.subr.bf16.mxu1 %v3529_v2  ;;  %v3548_v21 = vld [vmem:[%s6830_s0 + $0x130] sm:$0xff]   ;;  %v3549_v22 = vld [vmem:[%s6830_s0 + $0x38] sm:$0xff]   ;;  %v3551_v24 = vld [vmem:[%s6830_s0 + $0x40] sm:$0xff]  }
   0x9   :  { %v3550_v23 = vld [vmem:[%s6830_s0 + $0x138] sm:$0xff]   ;;  %v3552_v25 = vld [vmem:[%s6830_s0 + $0x140] sm:$0xff]   ;;  %v3553_v26 = vld [vmem:[%s6830_s0 + $0x48] sm:$0xff]  }
   0xa   :  { %v3554_v27 = vld [vmem:[%s6830_s0 + $0x148] sm:$0xff]   ;;  %v3555_v28 = vld [vmem:[%s6830_s0 + $0x50] sm:$0xff]   ;;  %v3557_v30 = vld [vmem:[%s6830_s0 + $0x58] sm:$0xff]  }
   0xb   :  { %3372 = vmatpush3.bf16.msra.mxu0 %v3529_v2  ;;  %3521 = vmatpush3.bf16.msra.mxu1 %v3529_v2  ;;  %v3556_v29 = vld [vmem:[%s6830_s0 + $0x150] sm:$0xff]   ;;  %v3558_v31 = vld [vmem:[%s6830_s0 + $0x158] sm:$0xff]   ;;  %v3559_v32 = vld [vmem:[%s6830_s0 + $0x60] sm:$0xff]  }
   0xc   :  { %3373 = vmatprep.subr.bf16.mxu0 %v3530_v3  ;;  %3514 = vmatprep.subr.bf16.mxu1 %v3530_v3  ;;  %v3560_v33 = vld [vmem:[%s6830_s0 + $0x160] sm:$0xff]   ;;  %v3561_v34 = vld [vmem:[%s6830_s0 + $0x68] sm:$0xff]   ;;  %v3563_v36 = vld [vmem:[%s6830_s0 + $0x70] sm:$0xff]  }
   0xd   :  { %v3562_v35 = vld [vmem:[%s6830_s0 + $0x168] sm:$0xff]   ;;  %v3564_v37 = vld [vmem:[%s6830_s0 + $0x170] sm:$0xff]   ;;  %v3565_v38 = vld [vmem:[%s6830_s0 + $0x78] sm:$0xff]  }
   0xe   :  { %v3566_v39 = vld [vmem:[%s6830_s0 + $0x178] sm:$0xff]   ;;  %v3567_v40 = vld [vmem:[%s6830_s0 + $0x80] sm:$0xff]   ;;  %v3569_v42 = vld [vmem:[%s6830_s0 + $0x88] sm:$0xff]  }
   0xf   :  { %3374 = vmatpush3.bf16.msra.mxu0 %v3530_v3  ;;  %3522 = vmatpush3.bf16.msra.mxu1 %v3530_v3  ;;  %v3568_v41 = vld [vmem:[%s6830_s0 + $0x180] sm:$0xff]   ;;  %v3570_v43 = vld [vmem:[%s6830_s0 + $0x188] sm:$0xff]   ;;  %v3571_v44 = vld [vmem:[%s6830_s0 + $0x90] sm:$0xff]  }
  0x10   :  { %3375 = vmatprep.subr.bf16.mxu0 %v3531_v6  ;;  %3515 = vmatprep.subr.bf16.mxu1 %v3531_v6  ;;  %v3572_v45 = vld [vmem:[%s6830_s0 + $0x190] sm:$0xff]   ;;  %v3573_v46 = vld [vmem:[%s6830_s0 + $0x98] sm:$0xff]   ;;  %v3575_v48 = vld [vmem:[%s6830_s0 + $0xa0] sm:$0xff]  }
  0x11   :  { %v3574_v47 = vld [vmem:[%s6830_s0 + $0x198] sm:$0xff]   ;;  %v3576_v49 = vld [vmem:[%s6830_s0 + $0x1a0] sm:$0xff]   ;;  %v3577_v50 = vld [vmem:[%s6830_s0 + $0xa8] sm:$0xff]  }
  0x12   :  { %v3578_v51 = vld [vmem:[%s6830_s0 + $0x1a8] sm:$0xff]   ;;  %v3579_v52 = vld [vmem:[%s6830_s0 + $0xb0] sm:$0xff]   ;;  %v3581_v54 = vld [vmem:[%s6830_s0 + $0xb8] sm:$0xff]  }
  0x13   :  { %3376 = vmatpush3.bf16.msra.mxu0 %v3531_v6  ;;  %3523 = vmatpush3.bf16.msra.mxu1 %v3531_v6  ;;  %v3580_v53 = vld [vmem:[%s6830_s0 + $0x1b0] sm:$0xff]   ;;  %v3582_v55 = vld [vmem:[%s6830_s0 + $0x1b8] sm:$0xff]   ;;  %v3583_v56 = vld [vmem:[%s6830_s0 + $0xc0] sm:$0xff]  }
  0x14   :  { %3377 = vmatprep.subr.bf16.mxu0 %v3532_v7  ;;  %3516 = vmatprep.subr.bf16.mxu1 %v3532_v7  ;;  %v3584_v57 = vld [vmem:[%s6830_s0 + $0x1c0] sm:$0xff]   ;;  %v3585_v58 = vld [vmem:[%s6830_s0 + $0xc8] sm:$0xff]   ;;  %v3587_v60 = vld [vmem:[%s6830_s0 + $0xd0] sm:$0xff]  }
  0x15   :  { %v3586_v59 = vld [vmem:[%s6830_s0 + $0x1c8] sm:$0xff]   ;;  %v3588_v61 = vld [vmem:[%s6830_s0 + $0x1d0] sm:$0xff]   ;;  %v3589_v62 = vld [vmem:[%s6830_s0 + $0xd8] sm:$0xff]  }
  0x16   :  { %v3590_v63 = vld [vmem:[%s6830_s0 + $0x1d8] sm:$0xff]   ;;  %v3591_v0 = vld [vmem:[%s6830_s0 + $0xe0] sm:$0xff]   ;;  %v3593_v2 = vld [vmem:[%s6830_s0 + $0xe8] sm:$0xff]  }
  0x17   :  { %3378 = vmatpush3.bf16.msra.mxu0 %v3532_v7  ;;  %3524 = vmatpush3.bf16.msra.mxu1 %v3532_v7  ;;  %v3592_v1 = vld [vmem:[%s6830_s0 + $0x1e0] sm:$0xff]   ;;  %v3594_v3 = vld [vmem:[%s6830_s0 + $0x1e8] sm:$0xff]   ;;  %v3595_v4 = vld [vmem:[%s6830_s0 + $0xf0] sm:$0xff]  }
  0x18   :  { %3379 = vmatprep.subr.bf16.mxu0 %v3533_v8  ;;  %3517 = vmatprep.subr.bf16.mxu1 %v3533_v8  ;;  %v3596_v5 = vld [vmem:[%s6830_s0 + $0x1f0] sm:$0xff]   ;;  %v3597_v6 = vld [vmem:[%s6830_s0 + $0xf8] sm:$0xff]  }
  0x19   :  { %v3598_v7 = vld [vmem:[%s6830_s0 + $0x1f8] sm:$0xff]  }
  0x1b   :  { %3380 = vmatpush3.bf16.msra.mxu0 %v3533_v8  ;;  %3525 = vmatpush3.bf16.msra.mxu1 %v3533_v8 }
  0x1c   :  { %3381 = vmatprep.subr.bf16.mxu0 %v3534_v9  ;;  %3518 = vmatprep.subr.bf16.mxu1 %v3534_v9 }
  0x1f   :  { %3382 = vmatpush3.bf16.msra.mxu0 %v3534_v9  ;;  %3526 = vmatpush3.bf16.msra.mxu1 %v3534_v9 }
  0x22   :  { %3384 = vmatmul.mubr.bf16.vlgmr.msra.gmra.mrb[0].mxu0 %v3537_v10  ;;  %3448 = vmatmul.mubr.bf16.vlgmr.msra.gmra.mrb[0].mxu1 %v3538_v11 }
  0x23   :  { %3387 = vmatprep.mubr.bf16.mxu0 %v3539_v12  ;;  %3451 = vmatprep.mubr.bf16.mxu1 %v3540_v13 }
  0x2a   :  { %3388 = vmatmul.mubr.bf16.gmra.mrb[4].mxu0 %v3541_v14  ;;  %3452 = vmatmul.mubr.bf16.gmra.mrb[4].mxu1 %v3542_v15 }
  0x2b   :  { %3391 = vmatprep.mubr.bf16.mxu0 %v3543_v16  ;;  %3455 = vmatprep.mubr.bf16.mxu1 %v3544_v17 }
  0x32   :  { %3392 = vmatmul.mubr.bf16.gmra.mrb[8].mxu0 %v3545_v18  ;;  %3456 = vmatmul.mubr.bf16.gmra.mrb[8].mxu1 %v3546_v19 }
  0x33   :  { %3395 = vmatprep.mubr.bf16.mxu0 %v3547_v20  ;;  %3459 = vmatprep.mubr.bf16.mxu1 %v3548_v21 }
  0x3a   :  { %3396 = vmatmul.mubr.bf16.gmra.mrb[12].mxu0 %v3549_v22  ;;  %3460 = vmatmul.mubr.bf16.gmra.mrb[12].mxu1 %v3550_v23 }
  0x3b   :  { %3399 = vmatprep.mubr.bf16.mxu0 %v3551_v24  ;;  %3463 = vmatprep.mubr.bf16.mxu1 %v3552_v25 }
  0x42   :  { %3400 = vmatmul.mubr.bf16.gmra.mrb[16].mxu0 %v3553_v26  ;;  %3464 = vmatmul.mubr.bf16.gmra.mrb[16].mxu1 %v3554_v27 }
  0x43   :  { %3403 = vmatprep.mubr.bf16.mxu0 %v3555_v28  ;;  %3467 = vmatprep.mubr.bf16.mxu1 %v3556_v29 }
  0x4a   :  { %3404 = vmatmul.mubr.bf16.gmra.mrb[20].mxu0 %v3557_v30  ;;  %3468 = vmatmul.mubr.bf16.gmra.mrb[20].mxu1 %v3558_v31 }
  0x4b   :  { %3407 = vmatprep.mubr.bf16.mxu0 %v3559_v32  ;;  %3471 = vmatprep.mubr.bf16.mxu1 %v3560_v33 }
  0x52   :  { %3408 = vmatmul.mubr.bf16.gmra.mrb[24].mxu0 %v3561_v34  ;;  %3472 = vmatmul.mubr.bf16.gmra.mrb[24].mxu1 %v3562_v35 }
  0x53   :  { %3411 = vmatprep.mubr.bf16.mxu0 %v3563_v36  ;;  %3475 = vmatprep.mubr.bf16.mxu1 %v3564_v37 }
  0x5a   :  { %3412 = vmatmul.mubr.bf16.gmra.mrb[28].mxu0 %v3565_v38  ;;  %3476 = vmatmul.mubr.bf16.gmra.mrb[28].mxu1 %v3566_v39 }
  0x5b   :  { %3415 = vmatprep.mubr.bf16.mxu0 %v3567_v40  ;;  %3479 = vmatprep.mubr.bf16.mxu1 %v3568_v41 }
  0x62   :  { %3416 = vmatmul.mubr.bf16.gmra.mrb[32].mxu0 %v3569_v42  ;;  %3480 = vmatmul.mubr.bf16.gmra.mrb[32].mxu1 %v3570_v43 }
  0x63   :  { %3419 = vmatprep.mubr.bf16.mxu0 %v3571_v44  ;;  %3483 = vmatprep.mubr.bf16.mxu1 %v3572_v45 }
  0x6a   :  { %3420 = vmatmul.mubr.bf16.gmra.mrb[36].mxu0 %v3573_v46  ;;  %3484 = vmatmul.mubr.bf16.gmra.mrb[36].mxu1 %v3574_v47 }
  0x6b   :  { %3423 = vmatprep.mubr.bf16.mxu0 %v3575_v48  ;;  %3487 = vmatprep.mubr.bf16.mxu1 %v3576_v49 }
  0x72   :  { %3424 = vmatmul.mubr.bf16.gmra.mrb[40].mxu0 %v3577_v50  ;;  %3488 = vmatmul.mubr.bf16.gmra.mrb[40].mxu1 %v3578_v51 }
  0x73   :  { %3427 = vmatprep.mubr.bf16.mxu0 %v3579_v52  ;;  %3491 = vmatprep.mubr.bf16.mxu1 %v3580_v53 }
  0x7a   :  { %3428 = vmatmul.mubr.bf16.gmra.mrb[44].mxu0 %v3581_v54  ;;  %3492 = vmatmul.mubr.bf16.gmra.mrb[44].mxu1 %v3582_v55 }
  0x7b   :  { %3431 = vmatprep.mubr.bf16.mxu0 %v3583_v56  ;;  %3495 = vmatprep.mubr.bf16.mxu1 %v3584_v57 }
  0x82   :  { %3432 = vmatmul.mubr.bf16.gmra.mrb[48].mxu0 %v3585_v58  ;;  %3496 = vmatmul.mubr.bf16.gmra.mrb[48].mxu1 %v3586_v59 }
  0x83   :  { %3435 = vmatprep.mubr.bf16.mxu0 %v3587_v60  ;;  %3499 = vmatprep.mubr.bf16.mxu1 %v3588_v61 }
  0x8a   :  { %3436 = vmatmul.mubr.bf16.gmra.mrb[52].mxu0 %v3589_v62  ;;  %3500 = vmatmul.mubr.bf16.gmra.mrb[52].mxu1 %v3590_v63 }
  0x8b   :  { %3439 = vmatprep.mubr.bf16.mxu0 %v3591_v0  ;;  %3503 = vmatprep.mubr.bf16.mxu1 %v3592_v1 }
  0x92   :  { %3440 = vmatmul.mubr.bf16.gmra.mrb[56].mxu0 %v3593_v2  ;;  %3504 = vmatmul.mubr.bf16.gmra.mrb[56].mxu1 %v3594_v3 }
  0x93   :  { %3443 = vmatprep.mubr.bf16.mxu0 %v3595_v4  ;;  %3507 = vmatprep.mubr.bf16.mxu1 %v3596_v5 }
  0x9a   :  { %3444 = vmatmul.mubr.bf16.gmra.mrb[60].mxu0 %v3597_v6  ;;  %3508 = vmatmul.mubr.bf16.gmra.mrb[60].mxu1 %v3598_v7 }
  0xf5   :  { %v3844_v8 = vpop.f32.mrb[0].mxu0  ;;  %v3846_v9 = vpop.f32.mrb[0].mxu1 }
  0xf6   :  { %7058 = vst [vmem:[#allocation3_spill] sm:$0xff] %v3846_v9  ;;  %v3848_v10 = vpop.f32.mrb[1].mxu0  ;;  %v3850_v11 = vpop.f32.mrb[1].mxu1 }
  0xf7   :  { %7059 = vst [vmem:[#allocation4_spill] sm:$0xff] %v3850_v11  ;;  %v3852_v12 = vpop.f32.mrb[2].mxu0  ;;  %v3854_v13 = vpop.f32.mrb[2].mxu1 }
  0xf8   :  { %7060 = vst [vmem:[#allocation5_spill] sm:$0xff] %v3854_v13  ;;  %v3856_v14 = vpop.f32.mrb[3].mxu0  ;;  %v3858_v15 = vpop.f32.mrb[3].mxu1 }
  0xf9   :  { %7061 = vst [vmem:[#allocation6_spill] sm:$0xff] %v3858_v15  ;;  %v1786_v16 = vadd.f32 %v3856_v14, %v3848_v10  ;;  %v1855_v17 = vadd.f32 %v3858_v15, %v3850_v11 }
  0xfb   :  { %v1787_v18 = vadd.f32 %v3844_v8, %v1786_v16  ;;  %v1856_v19 = vadd.f32 %v3846_v9, %v1855_v17 }
  0xfd   :  { %v3866_v20 = vpop.f32.mrb[4].mxu0  ;;  %v3868_v21 = vpop.f32.mrb[4].mxu1  ;;  %v1788_v22 = vadd.f32 %v3852_v12, %v1787_v18  ;;  %v1857_v23 = vadd.f32 %v3854_v13, %v1856_v19 }
  0xfe   :  { %7062 = vst [vmem:[#allocation7_spill] sm:$0xff] %v3868_v21  ;;  %v3872_v24 = vpop.f32.mrb[5].mxu0  ;;  %v3874_v25 = vpop.f32.mrb[5].mxu1 }
  0xff   :  { %7063 = vst [vmem:[#allocation8_spill] sm:$0xff] %v3874_v25  ;;  %v1789_v26 = vadd.f32 %v1788_v22, %v3872_v24  ;;  %v1858_v27 = vadd.f32 %v1857_v23, %v3874_v25  ;;  %v3878_v28 = vpop.f32.mrb[6].mxu0  ;;  %v3880_v29 = vpop.f32.mrb[6].mxu1 }
 0x100   :  { %7064 = vst [vmem:[#allocation9_spill] sm:$0xff] %v3880_v29  ;;  %v3882_v30 = vpop.f32.mrb[7].mxu0  ;;  %v3884_v31 = vpop.f32.mrb[7].mxu1 }
 0x101   :  { %7065 = vst [vmem:[#allocation10_spill] sm:$0xff] %v3884_v31  ;;  %v1790_v32 = vadd.f32 %v1789_v26, %v3882_v30  ;;  %v1859_v33 = vadd.f32 %v1858_v27, %v3884_v31 }
 0x103   :  { %v1791_v34 = vadd.f32 %v3866_v20, %v1790_v32  ;;  %v1860_v35 = vadd.f32 %v3868_v21, %v1859_v33 }
 0x105   :  { %v3890_v36 = vpop.f32.mrb[8].mxu0  ;;  %v3892_v37 = vpop.f32.mrb[8].mxu1  ;;  %v1792_v38 = vadd.f32 %v3878_v28, %v1791_v34  ;;  %v1861_v39 = vadd.f32 %v3880_v29, %v1860_v35 }
 0x106   :  { %7066 = vst [vmem:[#allocation11_spill] sm:$0xff] %v3892_v37  ;;  %v3896_v40 = vpop.f32.mrb[9].mxu0  ;;  %v3898_v41 = vpop.f32.mrb[9].mxu1 }
 0x107   :  { %7067 = vst [vmem:[#allocation12_spill] sm:$0xff] %v3898_v41  ;;  %v1793_v42 = vadd.f32 %v1792_v38, %v3896_v40  ;;  %v1862_v43 = vadd.f32 %v1861_v39, %v3898_v41  ;;  %v3902_v44 = vpop.f32.mrb[10].mxu0  ;;  %v3904_v45 = vpop.f32.mrb[10].mxu1 }
 0x108   :  { %7068 = vst [vmem:[#allocation13_spill] sm:$0xff] %v3904_v45  ;;  %v3906_v46 = vpop.f32.mrb[11].mxu0  ;;  %v3908_v47 = vpop.f32.mrb[11].mxu1 }
 0x109   :  { %7069 = vst [vmem:[#allocation14_spill] sm:$0xff] %v3908_v47  ;;  %v1794_v48 = vadd.f32 %v1793_v42, %v3906_v46  ;;  %v1863_v49 = vadd.f32 %v1862_v43, %v3908_v47 }
 0x10b   :  { %v1795_v50 = vadd.f32 %v3890_v36, %v1794_v48  ;;  %v1864_v51 = vadd.f32 %v3892_v37, %v1863_v49 }
 0x10d   :  { %v3914_v52 = vpop.f32.mrb[12].mxu0  ;;  %v3916_v53 = vpop.f32.mrb[12].mxu1  ;;  %v1796_v54 = vadd.f32 %v3902_v44, %v1795_v50  ;;  %v1865_v55 = vadd.f32 %v3904_v45, %v1864_v51 }
 0x10e   :  { %7070 = vst [vmem:[#allocation15_spill] sm:$0xff] %v3916_v53  ;;  %v3920_v56 = vpop.f32.mrb[13].mxu0  ;;  %v3922_v57 = vpop.f32.mrb[13].mxu1 }
 0x10f   :  { %7071 = vst [vmem:[#allocation16_spill] sm:$0xff] %v3922_v57  ;;  %v1797_v58 = vadd.f32 %v1796_v54, %v3920_v56  ;;  %v1866_v59 = vadd.f32 %v1865_v55, %v3922_v57  ;;  %v3926_v60 = vpop.f32.mrb[14].mxu0  ;;  %v3928_v61 = vpop.f32.mrb[14].mxu1 }
 0x110   :  { %7072 = vst [vmem:[#allocation17_spill] sm:$0xff] %v3928_v61  ;;  %v3930_v62 = vpop.f32.mrb[15].mxu0  ;;  %v3932_v63 = vpop.f32.mrb[15].mxu1 }
 0x111   :  { %7073 = vst [vmem:[#allocation18_spill] sm:$0xff] %v3932_v63  ;;  %v1798_v0 = vadd.f32 %v1797_v58, %v3930_v62  ;;  %v1867_v1 = vadd.f32 %v1866_v59, %v3932_v63 }
 0x113   :  { %v1799_v2 = vadd.f32 %v3914_v52, %v1798_v0  ;;  %v1868_v3 = vadd.f32 %v3916_v53, %v1867_v1 }
 0x115   :  { %v3938_v4 = vpop.f32.mrb[16].mxu0  ;;  %v3940_v5 = vpop.f32.mrb[16].mxu1  ;;  %v1800_v6 = vadd.f32 %v3926_v60, %v1799_v2  ;;  %v1869_v7 = vadd.f32 %v3928_v61, %v1868_v3 }
 0x116   :  { %7074 = vst [vmem:[#allocation19_spill] sm:$0xff] %v3940_v5  ;;  %v3944_v16 = vpop.f32.mrb[17].mxu0  ;;  %v3946_v17 = vpop.f32.mrb[17].mxu1 }
 0x117   :  { %7075 = vst [vmem:[#allocation20_spill] sm:$0xff] %v3946_v17  ;;  %v1801_v18 = vadd.f32 %v1800_v6, %v3944_v16  ;;  %v1870_v19 = vadd.f32 %v1869_v7, %v3946_v17  ;;  %v3950_v22 = vpop.f32.mrb[18].mxu0  ;;  %v3952_v23 = vpop.f32.mrb[18].mxu1 }
 0x118   :  { %7076 = vst [vmem:[#allocation21_spill] sm:$0xff] %v3952_v23  ;;  %v3954_v26 = vpop.f32.mrb[19].mxu0  ;;  %v3956_v27 = vpop.f32.mrb[19].mxu1 }
 0x119   :  { %7077 = vst [vmem:[#allocation22_spill] sm:$0xff] %v3956_v27  ;;  %v1802_v32 = vadd.f32 %v1801_v18, %v3954_v26  ;;  %v1871_v33 = vadd.f32 %v1870_v19, %v3956_v27 }
 0x11b   :  { %v1803_v34 = vadd.f32 %v3938_v4, %v1802_v32  ;;  %v1872_v35 = vadd.f32 %v3940_v5, %v1871_v33 }
 0x11d   :  { %v3962_v38 = vpop.f32.mrb[20].mxu0  ;;  %v3964_v39 = vpop.f32.mrb[20].mxu1  ;;  %v1804_v42 = vadd.f32 %v3950_v22, %v1803_v34  ;;  %v1873_v43 = vadd.f32 %v3952_v23, %v1872_v35 }
 0x11e   :  { %7078 = vst [vmem:[#allocation23_spill] sm:$0xff] %v3964_v39  ;;  %v3968_v48 = vpop.f32.mrb[21].mxu0  ;;  %v3970_v49 = vpop.f32.mrb[21].mxu1 }
 0x11f   :  { %7079 = vst [vmem:[#allocation24_spill] sm:$0xff] %v3970_v49  ;;  %v1805_v50 = vadd.f32 %v1804_v42, %v3968_v48  ;;  %v1874_v51 = vadd.f32 %v1873_v43, %v3970_v49  ;;  %v3974_v54 = vpop.f32.mrb[22].mxu0  ;;  %v3976_v55 = vpop.f32.mrb[22].mxu1 }
 0x120   :  { %7080 = vst [vmem:[#allocation25_spill] sm:$0xff] %v3976_v55  ;;  %v3978_v58 = vpop.f32.mrb[23].mxu0  ;;  %v3980_v59 = vpop.f32.mrb[23].mxu1 }
 0x121   :  { %7081 = vst [vmem:[#allocation26_spill] sm:$0xff] %v3980_v59  ;;  %v1806_v0 = vadd.f32 %v1805_v50, %v3978_v58  ;;  %v1875_v1 = vadd.f32 %v1874_v51, %v3980_v59 }
 0x123   :  { %v1807_v2 = vadd.f32 %v3962_v38, %v1806_v0  ;;  %v1876_v3 = vadd.f32 %v3964_v39, %v1875_v1 }
 0x125   :  { %v3986_v6 = vpop.f32.mrb[24].mxu0  ;;  %v3988_v7 = vpop.f32.mrb[24].mxu1  ;;  %v1808_v18 = vadd.f32 %v3974_v54, %v1807_v2  ;;  %v1877_v19 = vadd.f32 %v3976_v55, %v1876_v3 }
 0x126   :  { %7082 = vst [vmem:[#allocation27_spill] sm:$0xff] %v3988_v7  ;;  %v3992_v32 = vpop.f32.mrb[25].mxu0  ;;  %v3994_v33 = vpop.f32.mrb[25].mxu1 }
 0x127   :  { %7083 = vst [vmem:[#allocation28_spill] sm:$0xff] %v3994_v33  ;;  %v1809_v34 = vadd.f32 %v1808_v18, %v3992_v32  ;;  %v1878_v35 = vadd.f32 %v1877_v19, %v3994_v33  ;;  %v3998_v42 = vpop.f32.mrb[26].mxu0  ;;  %v4000_v43 = vpop.f32.mrb[26].mxu1 }
 0x128   :  { %7084 = vst [vmem:[#allocation29_spill] sm:$0xff] %v4000_v43  ;;  %v4002_v50 = vpop.f32.mrb[27].mxu0  ;;  %v4004_v51 = vpop.f32.mrb[27].mxu1 }
 0x129   :  { %7085 = vst [vmem:[#allocation30_spill] sm:$0xff] %v4004_v51  ;;  %v1810_v0 = vadd.f32 %v1809_v34, %v4002_v50  ;;  %v1879_v1 = vadd.f32 %v1878_v35, %v4004_v51 }
 0x12b   :  { %v1811_v2 = vadd.f32 %v3986_v6, %v1810_v0  ;;  %v1880_v3 = vadd.f32 %v3988_v7, %v1879_v1 }
 0x12d   :  { %v4010_v55 = vpop.f32.mrb[28].mxu0  ;;  %v4012_v18 = vpop.f32.mrb[28].mxu1  ;;  %v1812_v19 = vadd.f32 %v3998_v42, %v1811_v2  ;;  %v1881_v33 = vadd.f32 %v4000_v43, %v1880_v3 }
 0x12e   :  { %7086 = vst [vmem:[#allocation31_spill] sm:$0xff] %v4012_v18  ;;  %v4016_v39 = vpop.f32.mrb[29].mxu0  ;;  %v4018_v59 = vpop.f32.mrb[29].mxu1 }
 0x12f   :  { %7087 = vst [vmem:[#allocation32_spill] sm:$0xff] %v4018_v59  ;;  %v1813_v34 = vadd.f32 %v1812_v19, %v4016_v39  ;;  %v1882_v35 = vadd.f32 %v1881_v33, %v4018_v59  ;;  %v4022_v51 = vpop.f32.mrb[30].mxu0  ;;  %v4024_v0 = vpop.f32.mrb[30].mxu1 }
 0x130   :  { %7088 = vst [vmem:[#allocation33_spill] sm:$0xff] %v4024_v0  ;;  %v4026_v1 = vpop.f32.mrb[31].mxu0  ;;  %v4028_v7 = vpop.f32.mrb[31].mxu1 }
 0x131   :  { %7089 = vst [vmem:[#allocation34_spill] sm:$0xff] %v4028_v7  ;;  %v1814_v2 = vadd.f32 %v1813_v34, %v4026_v1  ;;  %v1883_v3 = vadd.f32 %v1882_v35, %v4028_v7 }
 0x133   :  { %v1815_v43 = vadd.f32 %v4010_v55, %v1814_v2  ;;  %v1884_v49 = vadd.f32 %v4012_v18, %v1883_v3 }
 0x135   :  { %v4034_v23 = vpop.f32.mrb[32].mxu0  ;;  %v4036_v19 = vpop.f32.mrb[32].mxu1  ;;  %v1816_v33 = vadd.f32 %v4022_v51, %v1815_v43  ;;  %v1885_v59 = vadd.f32 %v4024_v0, %v1884_v49 }
 0x136   :  { %7090 = vst [vmem:[#allocation35_spill] sm:$0xff] %v4036_v19  ;;  %v4040_v5 = vpop.f32.mrb[33].mxu0  ;;  %v4042_v27 = vpop.f32.mrb[33].mxu1 }
 0x137   :  { %7091 = vst [vmem:[#allocation36_spill] sm:$0xff] %v4042_v27  ;;  %v1817_v34 = vadd.f32 %v1816_v33, %v4040_v5  ;;  %v1886_v35 = vadd.f32 %v1885_v59, %v4042_v27  ;;  %v4046_v7 = vpop.f32.mrb[34].mxu0  ;;  %v4048_v2 = vpop.f32.mrb[34].mxu1 }
 0x138   :  { %7092 = vst [vmem:[#allocation37_spill] sm:$0xff] %v4048_v2  ;;  %v4050_v3 = vpop.f32.mrb[35].mxu0  ;;  %v4052_v18 = vpop.f32.mrb[35].mxu1 }
 0x139   :  { %7093 = vst [vmem:[#allocation38_spill] sm:$0xff] %v4052_v18  ;;  %v1818_v43 = vadd.f32 %v1817_v34, %v4050_v3  ;;  %v1887_v49 = vadd.f32 %v1886_v35, %v4052_v18 }
 0x13b   :  { %v1819_v0 = vadd.f32 %v4034_v23, %v1818_v43  ;;  %v1888_v17 = vadd.f32 %v4036_v19, %v1887_v49 }
 0x13d   :  { %v4058_v61 = vpop.f32.mrb[36].mxu0  ;;  %v4060_v33 = vpop.f32.mrb[36].mxu1  ;;  %v1820_v59 = vadd.f32 %v4046_v7, %v1819_v0  ;;  %v1889_v27 = vadd.f32 %v4048_v2, %v1888_v17 }
 0x13e   :  { %7094 = vst [vmem:[#allocation39_spill] sm:$0xff] %v4060_v33  ;;  %v4064_v53 = vpop.f32.mrb[37].mxu0  ;;  %v4066_v63 = vpop.f32.mrb[37].mxu1 }
 0x13f   :  { %7095 = vst [vmem:[#allocation40_spill] sm:$0xff] %v4066_v63  ;;  %v1821_v34 = vadd.f32 %v1820_v59, %v4064_v53  ;;  %v1890_v35 = vadd.f32 %v1889_v27, %v4066_v63  ;;  %v4070_v18 = vpop.f32.mrb[38].mxu0  ;;  %v4072_v43 = vpop.f32.mrb[38].mxu1 }
 0x140   :  { %7096 = vst [vmem:[#allocation41_spill] sm:$0xff] %v4072_v43  ;;  %v4074_v49 = vpop.f32.mrb[39].mxu0  ;;  %v4076_v19 = vpop.f32.mrb[39].mxu1 }
 0x141   :  { %7097 = vst [vmem:[#allocation42_spill] sm:$0xff] %v4076_v19  ;;  %v1822_v0 = vadd.f32 %v1821_v34, %v4074_v49  ;;  %v1891_v17 = vadd.f32 %v1890_v35, %v4076_v19 }
 0x143   :  { %v1823_v2 = vadd.f32 %v4058_v61, %v1822_v0  ;;  %v1892_v57 = vadd.f32 %v4060_v33, %v1891_v17 }
 0x145   :  { %v4082_v45 = vpop.f32.mrb[40].mxu0  ;;  %v4084_v59 = vpop.f32.mrb[40].mxu1  ;;  %v1824_v27 = vadd.f32 %v4070_v18, %v1823_v2  ;;  %v1893_v63 = vadd.f32 %v4072_v43, %v1892_v57 }
 0x146   :  { %7098 = vst [vmem:[#allocation43_spill] sm:$0xff] %v4082_v45  ;;  %7099 = vst [vmem:[#allocation44_spill] sm:$0xff] %v4084_v59  ;;  %v4088_v37 = vpop.f32.mrb[41].mxu0  ;;  %v4090_v47 = vpop.f32.mrb[41].mxu1 }
 0x147   :  { %7100 = vst [vmem:[#allocation45_spill] sm:$0xff] %v4090_v47  ;;  %v1825_v34 = vadd.f32 %v1824_v27, %v4088_v37  ;;  %v1894_v35 = vadd.f32 %v1893_v63, %v4090_v47  ;;  %v4094_v19 = vpop.f32.mrb[42].mxu0  ;;  %v4096_v0 = vpop.f32.mrb[42].mxu1 }
 0x148   :  { %7101 = vst [vmem:[#allocation46_spill] sm:$0xff] %v4094_v19  ;;  %7102 = vst [vmem:[#allocation47_spill] sm:$0xff] %v4096_v0  ;;  %v4098_v17 = vpop.f32.mrb[43].mxu0  ;;  %v4100_v33 = vpop.f32.mrb[43].mxu1 }
 0x149   :  { %7103 = vst [vmem:[#allocation48_spill] sm:$0xff] %v4100_v33  ;;  %v1826_v2 = vadd.f32 %v1825_v34, %v4098_v17  ;;  %v1895_v57 = vadd.f32 %v1894_v35, %v4100_v33 }
 0x14b   :  { %v1827_v43 = vadd.f32 %v4082_v45, %v1826_v2  ;;  %v1896_v41 = vadd.f32 %v4084_v59, %v1895_v57 }
 0x14d   :  { %v4106_v29 = vpop.f32.mrb[44].mxu0  ;;  %v4108_v27 = vpop.f32.mrb[44].mxu1  ;;  %v1828_v63 = vadd.f32 %v4094_v19, %v1827_v43  ;;  %v1897_v47 = vadd.f32 %v4096_v0, %v1896_v41 }
 0x14e   :  { %7104 = vst [vmem:[#allocation49_spill] sm:$0xff] %v4106_v29  ;;  %7105 = vst [vmem:[#allocation50_spill] sm:$0xff] %v4108_v27  ;;  %v4112_v21 = vpop.f32.mrb[45].mxu0  ;;  %v4114_v31 = vpop.f32.mrb[45].mxu1 }
 0x14f   :  { %7106 = vst [vmem:[#allocation51_spill] sm:$0xff] %v4112_v21  ;;  %7107 = vst [vmem:[#allocation52_spill] sm:$0xff] %v4114_v31  ;;  %v1829_v34 = vadd.f32 %v1828_v63, %v4112_v21  ;;  %v1898_v35 = vadd.f32 %v1897_v47, %v4114_v31  ;;  %v4118_v33 = vpop.f32.mrb[46].mxu0  ;;  %v4120_v2 = vpop.f32.mrb[46].mxu1 }
 0x150   :  { %7108 = vst [vmem:[#allocation53_spill] sm:$0xff] %v4118_v33  ;;  %7109 = vst [vmem:[#allocation54_spill] sm:$0xff] %v4120_v2  ;;  %v4122_v57 = vpop.f32.mrb[47].mxu0  ;;  %v4124_v59 = vpop.f32.mrb[47].mxu1 }
 0x151   :  { %7110 = vst [vmem:[#allocation55_spill] sm:$0xff] %v4122_v57  ;;  %7111 = vst [vmem:[#allocation56_spill] sm:$0xff] %v4124_v59  ;;  %v1830_v43 = vadd.f32 %v1829_v34, %v4122_v57  ;;  %v1899_v41 = vadd.f32 %v1898_v35, %v4124_v59 }
 0x153   :  { %v1831_v0 = vadd.f32 %v4106_v29, %v1830_v43  ;;  %v1900_v25 = vadd.f32 %v4108_v27, %v1899_v41 }
 0x155   :  { %v4130_v13 = vpop.f32.mrb[48].mxu0  ;;  %v4132_v63 = vpop.f32.mrb[48].mxu1  ;;  %v1832_v47 = vadd.f32 %v4118_v33, %v1831_v0  ;;  %v1901_v31 = vadd.f32 %v4120_v2, %v1900_v25 }
 0x156   :  { %7112 = vst [vmem:[#allocation57_spill] sm:$0xff] %v4130_v13  ;;  %7113 = vst [vmem:[#allocation58_spill] sm:$0xff] %v4132_v63  ;;  %v4136_v9 = vpop.f32.mrb[49].mxu0  ;;  %v4138_v15 = vpop.f32.mrb[49].mxu1 }
 0x157   :  { %7114 = vst [vmem:[#allocation59_spill] sm:$0xff] %v4136_v9  ;;  %7115 = vst [vmem:[#allocation60_spill] sm:$0xff] %v4138_v15  ;;  %v1833_v34 = vadd.f32 %v1832_v47, %v4136_v9  ;;  %v1902_v35 = vadd.f32 %v1901_v31, %v4138_v15  ;;  %v4142_v59 = vpop.f32.mrb[50].mxu0  ;;  %v4144_v43 = vpop.f32.mrb[50].mxu1 }
 0x158   :  { %7116 = vst [vmem:[#allocation61_spill] sm:$0xff] %v4142_v59  ;;  %7117 = vst [vmem:[#allocation62_spill] sm:$0xff] %v4144_v43  ;;  %v4146_v41 = vpop.f32.mrb[51].mxu0  ;;  %v4148_v27 = vpop.f32.mrb[51].mxu1 }
 0x159   :  { %7118 = vst [vmem:[#allocation63_spill] sm:$0xff] %v4146_v41  ;;  %7119 = vst [vmem:[#allocation64_spill] sm:$0xff] %v4148_v27  ;;  %v1834_v0 = vadd.f32 %v1833_v34, %v4146_v41  ;;  %v1903_v25 = vadd.f32 %v1902_v35, %v4148_v27 }
 0x15b   :  { %v1835_v2 = vadd.f32 %v4130_v13, %v1834_v0  ;;  %v1904_v11 = vadd.f32 %v4132_v63, %v1903_v25 }
 0x15d   :  { %v4154_v33 = vpop.f32.mrb[52].mxu0  ;;  %v4156_v47 = vpop.f32.mrb[52].mxu1  ;;  %v1836_v31 = vadd.f32 %v4142_v59, %v1835_v2  ;;  %v1905_v15 = vadd.f32 %v4144_v43, %v1904_v11 }
 0x15e   :  { %7120 = vst [vmem:[#allocation65_spill] sm:$0xff] %v4154_v33  ;;  %7121 = vst [vmem:[#allocation66_spill] sm:$0xff] %v4156_v47  ;;  %v4160_v9 = vpop.f32.mrb[53].mxu0  ;;  %v4162_v29 = vpop.f32.mrb[53].mxu1 }
 0x15f   :  { %7122 = vst [vmem:[#allocation67_spill] sm:$0xff] %v4160_v9  ;;  %7123 = vst [vmem:[#allocation68_spill] sm:$0xff] %v4162_v29  ;;  %v1837_v34 = vadd.f32 %v1836_v31, %v4160_v9  ;;  %v1906_v35 = vadd.f32 %v1905_v15, %v4162_v29  ;;  %v4166_v27 = vpop.f32.mrb[54].mxu0  ;;  %v4168_v0 = vpop.f32.mrb[54].mxu1 }
 0x160   :  { %7124 = vst [vmem:[#allocation69_spill] sm:$0xff] %v4166_v27  ;;  %7125 = vst [vmem:[#allocation70_spill] sm:$0xff] %v4168_v0  ;;  %v4170_v25 = vpop.f32.mrb[55].mxu0  ;;  %v4172_v63 = vpop.f32.mrb[55].mxu1 }
 0x161   :  { %7126 = vst [vmem:[#allocation71_spill] sm:$0xff] %v4170_v25  ;;  %7127 = vst [vmem:[#allocation72_spill] sm:$0xff] %v4172_v63  ;;  %v1838_v2 = vadd.f32 %v1837_v34, %v4170_v25  ;;  %v1907_v11 = vadd.f32 %v1906_v35, %v4172_v63 }
 0x163   :  { %v1839_v43 = vadd.f32 %v4154_v33, %v1838_v2  ;;  %v1908_v59 = vadd.f32 %v4156_v47, %v1907_v11 }
 0x165   :  { %v4178_v13 = vpop.f32.mrb[56].mxu0  ;;  %v4180_v31 = vpop.f32.mrb[56].mxu1  ;;  %v1840_v15 = vadd.f32 %v4166_v27, %v1839_v43  ;;  %v1909_v29 = vadd.f32 %v4168_v0, %v1908_v59 }
 0x166   :  { %7128 = vst [vmem:[#allocation73_spill] sm:$0xff] %v4178_v13  ;;  %7129 = vst [vmem:[#allocation74_spill] sm:$0xff] %v4180_v31  ;;  %v4184_v9 = vpop.f32.mrb[57].mxu0  ;;  %v4186_v41 = vpop.f32.mrb[57].mxu1 }
 0x167   :  { %7130 = vst [vmem:[#allocation75_spill] sm:$0xff] %v4184_v9  ;;  %7131 = vst [vmem:[#allocation76_spill] sm:$0xff] %v4186_v41  ;;  %v1841_v34 = vadd.f32 %v1840_v15, %v4184_v9  ;;  %v1910_v35 = vadd.f32 %v1909_v29, %v4186_v41  ;;  %v4190_v63 = vpop.f32.mrb[58].mxu0  ;;  %v4192_v2 = vpop.f32.mrb[58].mxu1 }
 0x168   :  { %7132 = vst [vmem:[#allocation77_spill] sm:$0xff] %v4190_v63  ;;  %7133 = vst [vmem:[#allocation78_spill] sm:$0xff] %v4192_v2  ;;  %v4194_v11 = vpop.f32.mrb[59].mxu0  ;;  %v4196_v47 = vpop.f32.mrb[59].mxu1 }
 0x169   :  { %7134 = vst [vmem:[#allocation79_spill] sm:$0xff] %v4194_v11  ;;  %7135 = vst [vmem:[#allocation80_spill] sm:$0xff] %v4196_v47  ;;  %v1842_v43 = vadd.f32 %v1841_v34, %v4194_v11  ;;  %v1911_v59 = vadd.f32 %v1910_v35, %v4196_v47 }
 0x16b   :  { %v1843_v0 = vadd.f32 %v4178_v13, %v1842_v43  ;;  %v1912_v27 = vadd.f32 %v4180_v31, %v1911_v59 }
 0x16d   :  { %v4202_v33 = vpop.f32.mrb[60].mxu0  ;;  %v4204_v15 = vpop.f32.mrb[60].mxu1  ;;  %v1844_v29 = vadd.f32 %v4190_v63, %v1843_v0  ;;  %v1913_v41 = vadd.f32 %v4192_v2, %v1912_v27 }
 0x16e   :  { %v4208_v9 = vpop.f32.mrb[61].mxu0  ;;  %v4210_v25 = vpop.f32.mrb[61].mxu1 }
 0x16f   :  { %7136 = vst [vmem:[#allocation81_spill] sm:$0xff] %v4208_v9  ;;  %7137 = vst [vmem:[#allocation82_spill] sm:$0xff] %v4210_v25  ;;  %v1845_v34 = vadd.f32 %v1844_v29, %v4208_v9  ;;  %v1914_v35 = vadd.f32 %v1913_v41, %v4210_v25  ;;  %v4214_v47 = vpop.f32.mrb[62].mxu0  ;;  %v4216_v43 = vpop.f32.mrb[62].mxu1 }
 0x170   :  { %v4218_v59 = vpop.f32.mrb[63].mxu0  ;;  %v4220_v31 = vpop.f32.mrb[63].mxu1 }
 0x171   :  { %v1846_v0 = vadd.f32 %v1845_v34, %v4218_v59  ;;  %v1915_v27 = vadd.f32 %v1914_v35, %v4220_v31  ;;  %v7172_v35 = vld [vmem:[#allocation57_spill] sm:$0xff] }
 0x173   :  { %v1847_v2 = vadd.f32 %v4202_v33, %v1846_v0  ;;  %v1916_v63 = vadd.f32 %v4204_v15, %v1915_v27  ;;  %v7166_v27 = vld [vmem:[#allocation53_spill] sm:$0xff] }
 0x175   :  { %v1848_v29 = vadd.f32 %v4214_v47, %v1847_v2  ;;  %v1917_v41 = vadd.f32 %v4216_v43, %v1916_v63  ;;  %v7162_v2 = vld [vmem:[#allocation55_spill] sm:$0xff] }
 0x177   :  { %v1849_v25 = vrot.slane %v1848_v29, 4  ;;  %v1918_v11 = vrot.slane %v1917_v41, 4 }
 0x179   :  { %v1850_v9 = vadd.f32 %v1849_v25, %v1848_v29  ;;  %v4228_v19 = vadd.f32 %v1918_v11, %v1917_v41  ;;  %v7164_v11 = vld [vmem:[#allocation49_spill] sm:$0xff]  ;;  %v7168_v41 = vld [vmem:[#allocation59_spill] sm:$0xff] }
 0x17b   :  { %v1851_v13 = vrot.slane %v1850_v9, 2 }
 0x17d   :  { %v1852_v57 = vadd.f32 %v1851_v13, %v1850_v9 }
 0x17f   :  { %v1853_v21 = vrot.slane %v1852_v57, 1 }
 0x181   :  { %v1854_v45 = vadd.f32 %v1853_v21, %v1852_v57  ;;  %v7160_v57 = vld [vmem:[#allocation51_spill] sm:$0xff] }
 0x183   :  { %v4230_v34 = vmul.f32 0.001953125, %v1854_v45 }
 0x185   :  { %v4235_v0 = vsub.f32 %v3848_v10, %v4230_v34  ;;  %v4239_v63 = vsub.f32 %v3856_v14, %v4230_v34  ;;  %v4243_v25 = vsub.f32 %v3844_v8, %v4230_v34  ;;  %v4247_v9 = vsub.f32 %v3852_v12, %v4230_v34 }
 0x186   :  { %v4251_v13 = vsub.f32 %v3872_v24, %v4230_v34  ;;  %v4255_v10 = vsub.f32 %v3882_v30, %v4230_v34  ;;  %v4259_v14 = vsub.f32 %v3866_v20, %v4230_v34  ;;  %v4263_v8 = vsub.f32 %v3878_v28, %v4230_v34 }
 0x187   :  { %7138 = vst [vmem:[#allocation83_spill] sm:$0xff] %v4235_v0  ;;  %7139 = vst [vmem:[#allocation84_spill] sm:$0xff] %v4239_v63  ;;  %v4267_v12 = vsub.f32 %v3896_v40, %v4230_v34  ;;  %v4271_v21 = vsub.f32 %v3906_v46, %v4230_v34  ;;  %v4275_v24 = vsub.f32 %v3890_v36, %v4230_v34 }
 0x188   :  { %7140 = vst [vmem:[#allocation85_spill] sm:$0xff] %v4243_v25  ;;  %7141 = vst [vmem:[#allocation86_spill] sm:$0xff] %v4247_v9  ;;  %v4279_v20 = vsub.f32 %v3902_v44, %v4230_v34  ;;  %v4283_v28 = vsub.f32 %v3920_v56, %v4230_v34  ;;  %v4287_v30 = vsub.f32 %v3930_v62, %v4230_v34 }
 0x189   :  { %7142 = vst [vmem:[#allocation87_spill] sm:$0xff] %v4251_v13  ;;  %7143 = vst [vmem:[#allocation88_spill] sm:$0xff] %v4255_v10  ;;  %v4291_v40 = vsub.f32 %v3914_v52, %v4230_v34  ;;  %v4295_v36 = vsub.f32 %v3926_v60, %v4230_v34  ;;  %v4299_v44 = vsub.f32 %v3944_v16, %v4230_v34 }
 0x18a   :  { %7144 = vst [vmem:[#allocation89_spill] sm:$0xff] %v4259_v14  ;;  %7145 = vst [vmem:[#allocation90_spill] sm:$0xff] %v4263_v8  ;;  %v4303_v45 = vsub.f32 %v3954_v26, %v4230_v34  ;;  %v4307_v46 = vsub.f32 %v3938_v4, %v4230_v34  ;;  %v4311_v52 = vsub.f32 %v3950_v22, %v4230_v34 }
 0x18b   :  { %7146 = vst [vmem:[#allocation91_spill] sm:$0xff] %v4267_v12  ;;  %7147 = vst [vmem:[#allocation92_spill] sm:$0xff] %v4271_v21  ;;  %v4315_v56 = vsub.f32 %v3968_v48, %v4230_v34  ;;  %v4319_v60 = vsub.f32 %v3978_v58, %v4230_v34  ;;  %v4323_v62 = vsub.f32 %v3962_v38, %v4230_v34 }
 0x18c   :  { %7148 = vst [vmem:[#allocation93_spill] sm:$0xff] %v4275_v24  ;;  %v4327_v4 = vsub.f32 %v3974_v54, %v4230_v34  ;;  %v4331_v16 = vsub.f32 %v3992_v32, %v4230_v34  ;;  %v4335_v22 = vsub.f32 %v4002_v50, %v4230_v34  ;;  %v4339_v26 = vsub.f32 %v3986_v6, %v4230_v34 }
 0x18d   :  { %v4343_v38 = vsub.f32 %v3998_v42, %v4230_v34  ;;  %v4347_v48 = vsub.f32 %v4016_v39, %v4230_v34  ;;  %v4351_v54 = vsub.f32 %v4026_v1, %v4230_v34  ;;  %v4355_v58 = vsub.f32 %v4010_v55, %v4230_v34  ;;  %v7156_v1 = vld [vmem:[#allocation43_spill] sm:$0xff] }
 0x18e   :  { %v4359_v6 = vsub.f32 %v4022_v51, %v4230_v34  ;;  %v4363_v32 = vsub.f32 %v4040_v5, %v4230_v34  ;;  %v4367_v39 = vsub.f32 %v4050_v3, %v4230_v34  ;;  %v4371_v42 = vsub.f32 %v4034_v23, %v4230_v34 }
 0x18f   :  { %v4375_v55 = vsub.f32 %v4046_v7, %v4230_v34  ;;  %v4379_v50 = vsub.f32 %v4064_v53, %v4230_v34  ;;  %v4383_v5 = vsub.f32 %v4074_v49, %v4230_v34  ;;  %v4387_v51 = vsub.f32 %v4058_v61, %v4230_v34  ;;  %v7158_v49 = vld [vmem:[#allocation46_spill] sm:$0xff] }
 0x190   :  { %v4391_v23 = vsub.f32 %v4070_v18, %v4230_v34  ;;  %v4395_v7 = vsub.f32 %v4088_v37, %v4230_v34  ;;  %v4399_v53 = vsub.f32 %v4098_v17, %v4230_v34  ;;  %v4403_v3 = vsub.f32 %v7156_v1, %v4230_v34 }
 0x191   :  { %7149 = vst [vmem:[#allocation94_spill] sm:$0xff] %v4375_v55  ;;  %7150 = vst [vmem:[#allocation95_spill] sm:$0xff] %v4379_v50  ;;  %v4407_v61 = vsub.f32 %v7158_v49, %v4230_v34  ;;  %v4411_v18 = vsub.f32 %v7160_v57, %v4230_v34  ;;  %v4415_v37 = vsub.f32 %v7162_v2, %v4230_v34  ;;  %v7170_v49 = vld [vmem:[#allocation63_spill] sm:$0xff] }
 0x192   :  { %7151 = vst [vmem:[#allocation96_spill] sm:$0xff] %v4383_v5  ;;  %7152 = vst [vmem:[#allocation97_spill] sm:$0xff] %v4387_v51  ;;  %v4419_v17 = vsub.f32 %v7164_v11, %v4230_v34  ;;  %v4423_v29 = vsub.f32 %v7166_v27, %v4230_v34  ;;  %v4427_v1 = vsub.f32 %v7168_v41, %v4230_v34 }
 0x193   :  { %7153 = vst [vmem:[#allocation98_spill] sm:$0xff] %v4391_v23  ;;  %7154 = vst [vmem:[#allocation99_spill] sm:$0xff] %v4395_v7  ;;  %v4431_v57 = vsub.f32 %v7170_v49, %v4230_v34  ;;  %v4435_v2 = vsub.f32 %v7172_v35, %v4230_v34 }
 0x194   :  { %7155 = vst [vmem:[#allocation100_spill] sm:$0xff] %v4399_v53  ;;  %7157 = vst [vmem:[#allocation43_spill] sm:$0xff] %v4403_v3 }
 0x195   :  { %7159 = vst [vmem:[#allocation46_spill] sm:$0xff] %v4407_v61  ;;  %7161 = vst [vmem:[#allocation51_spill] sm:$0xff] %v4411_v18 }
 0x196   :  { %7163 = vst [vmem:[#allocation55_spill] sm:$0xff] %v4415_v37  ;;  %7165 = vst [vmem:[#allocation49_spill] sm:$0xff] %v4419_v17  ;;  %v7174_v37 = vld [vmem:[#allocation61_spill] sm:$0xff]  ;;  %v7176_v17 = vld [vmem:[#allocation67_spill] sm:$0xff] }
 0x197   :  { %7167 = vst [vmem:[#allocation53_spill] sm:$0xff] %v4423_v29  ;;  %7169 = vst [vmem:[#allocation59_spill] sm:$0xff] %v4427_v1  ;;  %v4439_v11 = vsub.f32 %v7174_v37, %v4230_v34  ;;  %v4443_v27 = vsub.f32 %v7176_v17, %v4230_v34  ;;  %v7178_v29 = vld [vmem:[#allocation71_spill] sm:$0xff]  ;;  %v7180_v1 = vld [vmem:[#allocation65_spill] sm:$0xff] }
 0x198   :  { %7171 = vst [vmem:[#allocation63_spill] sm:$0xff] %v4431_v57  ;;  %7173 = vst [vmem:[#allocation57_spill] sm:$0xff] %v4435_v2  ;;  %v4447_v41 = vsub.f32 %v7178_v29, %v4230_v34  ;;  %v4451_v49 = vsub.f32 %v7180_v1, %v4230_v34  ;;  %v7182_v57 = vld [vmem:[#allocation69_spill] sm:$0xff]  ;;  %v7184_v2 = vld [vmem:[#allocation75_spill] sm:$0xff] }
 0x199   :  { %7175 = vst [vmem:[#allocation61_spill] sm:$0xff] %v4439_v11  ;;  %7177 = vst [vmem:[#allocation67_spill] sm:$0xff] %v4443_v27  ;;  %v4455_v35 = vsub.f32 %v7182_v57, %v4230_v34  ;;  %v4459_v37 = vsub.f32 %v7184_v2, %v4230_v34  ;;  %v7186_v11 = vld [vmem:[#allocation79_spill] sm:$0xff]  ;;  %v7188_v27 = vld [vmem:[#allocation73_spill] sm:$0xff]  ;;  %v4479_v2 = vsub.f32 %v4218_v59, %v4230_v34 }
 0x19a   :  { %7179 = vst [vmem:[#allocation71_spill] sm:$0xff] %v4447_v41  ;;  %7181 = vst [vmem:[#allocation65_spill] sm:$0xff] %v4451_v49  ;;  %v4463_v17 = vsub.f32 %v7186_v11, %v4230_v34  ;;  %v4467_v29 = vsub.f32 %v7188_v27, %v4230_v34  ;;  %v7190_v41 = vld [vmem:[#allocation77_spill] sm:$0xff]  ;;  %v4483_v11 = vsub.f32 %v4202_v33, %v4230_v34 }
 0x19b   :  { %7183 = vst [vmem:[#allocation69_spill] sm:$0xff] %v4455_v35  ;;  %7185 = vst [vmem:[#allocation75_spill] sm:$0xff] %v4459_v37  ;;  %v4471_v1 = vsub.f32 %v7190_v41, %v4230_v34  ;;  %v7192_v49 = vld [vmem:[#allocation81_spill] sm:$0xff]  ;;  %v4487_v27 = vsub.f32 %v4214_v47, %v4230_v34  ;;  %v7197_v41 = vrot.slane %v4228_v19, 2  ;;  %v2056_v59 = vmul.f32 %v4239_v63, %v4239_v63 }
 0x19c   :  { %7187 = vst [vmem:[#allocation79_spill] sm:$0xff] %v4463_v17  ;;  %7189 = vst [vmem:[#allocation73_spill] sm:$0xff] %v4467_v29  ;;  %v4475_v57 = vsub.f32 %v7192_v49, %v4230_v34  ;;  %v2055_v49 = vmul.f32 %v4235_v0, %v4235_v0  ;;  %v2057_v33 = vmul.f32 %v4243_v25, %v4243_v25 }
 0x19d   :  { %7191 = vst [vmem:[#allocation77_spill] sm:$0xff] %v4471_v1  ;;  %7194 = vst [vmem:[#allocation101_spill] sm:$0xff] %v4479_v2  ;;  %v1921_v1 = vadd.f32 %v7197_v41, %v4228_v19  ;;  %v2058_v47 = vmul.f32 %v4247_v9, %v4247_v9  ;;  %v2059_v34 = vmul.f32 %v4251_v13, %v4251_v13 }
 0x19e   :  { %7193 = vst [vmem:[#allocation81_spill] sm:$0xff] %v4475_v57  ;;  %7195 = vst [vmem:[#allocation102_spill] sm:$0xff] %v4483_v11  ;;  %v2060_v19 = vmul.f32 %v4255_v10, %v4255_v10  ;;  %v4514_v41 = vmul.f32 %v4271_v21, %v4271_v21  ;;  %v4518_v9 = vmul.f32 %v4275_v24, %v4275_v24  ;;  %v7198_v10 = vld [vmem:[#allocation4_spill] sm:$0xff]  ;;  %v7204_v21 = vld [vmem:[#allocation5_spill] sm:$0xff] }
 0x19f   :  { %7196 = vst [vmem:[#allocation103_spill] sm:$0xff] %v4487_v27  ;;  %v1922_v29 = vrot.slane %v1921_v1, 1  ;;  %v2183_v13 = vadd.f32 %v2056_v59, %v2055_v49  ;;  %v7206_v24 = vld [vmem:[#allocation8_spill] sm:$0xff]  ;;  %v7208_v49 = vld [vmem:[#allocation10_spill] sm:$0xff]  ;;  %v7210_v59 = vld [vmem:[#allocation7_spill] sm:$0xff] }
 0x1a1   :  { %v1923_v17 = vadd.f32 %v1922_v29, %v1921_v1  ;;  %v2061_v29 = vmul.f32 %v4259_v14, %v4259_v14  ;;  %v2062_v1 = vmul.f32 %v4263_v8, %v4263_v8  ;;  %v7200_v14 = vld [vmem:[#allocation6_spill] sm:$0xff]  ;;  %v7202_v8 = vld [vmem:[#allocation3_spill] sm:$0xff]  ;;  %v2184_v11 = vadd.f32 %v2183_v13, %v2057_v33  ;;  %v7222_v13 = vld [vmem:[#allocation16_spill] sm:$0xff] }
 0x1a3   :  { %v4496_v2 = vmul.f32 0.001953125, %v1923_v17  ;;  %v2063_v17 = vmul.f32 %v4267_v12, %v4267_v12  ;;  %v2185_v3 = vadd.f32 %v2184_v11, %v2058_v47  ;;  %v7236_v11 = vld [vmem:[#allocation21_spill] sm:$0xff] }
 0x1a5   :  { %v4522_v25 = vsub.f32 %v7198_v10, %v4496_v2  ;;  %v4526_v63 = vsub.f32 %v7200_v14, %v4496_v2  ;;  %v4530_v12 = vsub.f32 %v7202_v8, %v4496_v2  ;;  %v4534_v0 = vsub.f32 %v7204_v21, %v4496_v2  ;;  %v7212_v8 = vld [vmem:[#allocation9_spill] sm:$0xff]  ;;  %v7214_v21 = vld [vmem:[#allocation12_spill] sm:$0xff] }
 0x1a6   :  { %v4538_v27 = vsub.f32 %v7206_v24, %v4496_v2  ;;  %v4542_v10 = vsub.f32 %v7208_v49, %v4496_v2  ;;  %v4546_v14 = vsub.f32 %v7210_v59, %v4496_v2  ;;  %v4550_v57 = vsub.f32 %v7212_v8, %v4496_v2  ;;  %v7216_v24 = vld [vmem:[#allocation14_spill] sm:$0xff]  ;;  %v7218_v49 = vld [vmem:[#allocation11_spill] sm:$0xff]  ;;  %v7220_v59 = vld [vmem:[#allocation13_spill] sm:$0xff] }
 0x1a7   :  { %7199 = vst [vmem:[#allocation4_spill] sm:$0xff] %v4522_v25  ;;  %7201 = vst [vmem:[#allocation6_spill] sm:$0xff] %v4526_v63  ;;  %v4554_v37 = vsub.f32 %v7214_v21, %v4496_v2  ;;  %v4558_v35 = vsub.f32 %v7216_v24, %v4496_v2  ;;  %v4562_v18 = vsub.f32 %v7218_v49, %v4496_v2  ;;  %v7224_v8 = vld [vmem:[#allocation18_spill] sm:$0xff]  ;;  %v7226_v24 = vld [vmem:[#allocation15_spill] sm:$0xff] }
 0x1a8   :  { %7203 = vst [vmem:[#allocation3_spill] sm:$0xff] %v4530_v12  ;;  %7205 = vst [vmem:[#allocation5_spill] sm:$0xff] %v4534_v0  ;;  %v4566_v61 = vsub.f32 %v7220_v59, %v4496_v2  ;;  %v4570_v33 = vsub.f32 %v7222_v13, %v4496_v2  ;;  %v4574_v21 = vsub.f32 %v7224_v8, %v4496_v2  ;;  %v7228_v49 = vld [vmem:[#allocation17_spill] sm:$0xff]  ;;  %v7230_v59 = vld [vmem:[#allocation20_spill] sm:$0xff] }
 0x1a9   :  { %7207 = vst [vmem:[#allocation8_spill] sm:$0xff] %v4538_v27  ;;  %7209 = vst [vmem:[#allocation10_spill] sm:$0xff] %v4542_v10  ;;  %v4578_v53 = vsub.f32 %v7226_v24, %v4496_v2  ;;  %v4582_v7 = vsub.f32 %v7228_v49, %v4496_v2  ;;  %v4586_v23 = vsub.f32 %v7230_v59, %v4496_v2  ;;  %v7232_v13 = vld [vmem:[#allocation22_spill] sm:$0xff]  ;;  %v7234_v8 = vld [vmem:[#allocation19_spill] sm:$0xff] }
 0x1aa   :  { %7211 = vst [vmem:[#allocation7_spill] sm:$0xff] %v4546_v14  ;;  %7213 = vst [vmem:[#allocation9_spill] sm:$0xff] %v4550_v57  ;;  %v4590_v51 = vsub.f32 %v7232_v13, %v4496_v2  ;;  %v4594_v5 = vsub.f32 %v7234_v8, %v4496_v2  ;;  %v4598_v47 = vsub.f32 %v7236_v11, %v4496_v2  ;;  %v7238_v24 = vld [vmem:[#allocation24_spill] sm:$0xff]  ;;  %v7240_v59 = vld [vmem:[#allocation26_spill] sm:$0xff] }
 0x1ab   :  { %7215 = vst [vmem:[#allocation12_spill] sm:$0xff] %v4554_v37  ;;  %7217 = vst [vmem:[#allocation14_spill] sm:$0xff] %v4558_v35  ;;  %v4602_v49 = vsub.f32 %v7238_v24, %v4496_v2  ;;  %v2186_v50 = vadd.f32 %v2185_v3, %v2059_v34  ;;  %v4606_v55 = vsub.f32 %v7240_v59, %v4496_v2  ;;  %v7242_v13 = vld [vmem:[#allocation23_spill] sm:$0xff]  ;;  %v7244_v8 = vld [vmem:[#allocation25_spill] sm:$0xff] }
 0x1ac   :  { %7219 = vst [vmem:[#allocation11_spill] sm:$0xff] %v4562_v18  ;;  %7221 = vst [vmem:[#allocation13_spill] sm:$0xff] %v4566_v61  ;;  %v7246_v11 = vld [vmem:[#allocation28_spill] sm:$0xff]  ;;  %v7248_v24 = vld [vmem:[#allocation30_spill] sm:$0xff] }
 0x1ad   :  { %7223 = vst [vmem:[#allocation16_spill] sm:$0xff] %v4570_v33  ;;  %7225 = vst [vmem:[#allocation18_spill] sm:$0xff] %v4574_v21  ;;  %v7250_v3 = vld [vmem:[#allocation27_spill] sm:$0xff]  ;;  %v7252_v59 = vld [vmem:[#allocation29_spill] sm:$0xff] }
 0x1ae   :  { %7227 = vst [vmem:[#allocation15_spill] sm:$0xff] %v4578_v53  ;;  %7229 = vst [vmem:[#allocation17_spill] sm:$0xff] %v4582_v7  ;;  %v4626_v34 = vsub.f32 %v7250_v3, %v4496_v2  ;;  %v7260_v3 = vld [vmem:[#allocation33_spill] sm:$0xff] }
 0x1af   :  { %7231 = vst [vmem:[#allocation20_spill] sm:$0xff] %v4586_v23  ;;  %7233 = vst [vmem:[#allocation22_spill] sm:$0xff] %v4590_v51  ;;  %v4610_v51 = vsub.f32 %v7242_v13, %v4496_v2  ;;  %v4630_v13 = vsub.f32 %v7252_v59, %v4496_v2  ;;  %v7262_v59 = vld [vmem:[#allocation36_spill] sm:$0xff] }
 0x1b0   :  { %7235 = vst [vmem:[#allocation19_spill] sm:$0xff] %v4594_v5  ;;  %7237 = vst [vmem:[#allocation21_spill] sm:$0xff] %v4598_v47  ;;  %v4614_v5 = vsub.f32 %v7244_v8, %v4496_v2  ;;  %v4618_v47 = vsub.f32 %v7246_v11, %v4496_v2  ;;  %v7254_v8 = vld [vmem:[#allocation32_spill] sm:$0xff]  ;;  %v7256_v11 = vld [vmem:[#allocation34_spill] sm:$0xff] }
 0x1b1   :  { %7239 = vst [vmem:[#allocation24_spill] sm:$0xff] %v4602_v49  ;;  %7241 = vst [vmem:[#allocation26_spill] sm:$0xff] %v4606_v55  ;;  %v4622_v49 = vsub.f32 %v7248_v24, %v4496_v2  ;;  %v7258_v24 = vld [vmem:[#allocation31_spill] sm:$0xff] }
 0x1b2   :  { %7243 = vst [vmem:[#allocation23_spill] sm:$0xff] %v4610_v51  ;;  %7245 = vst [vmem:[#allocation25_spill] sm:$0xff] %v4614_v5  ;;  %v2187_v51 = vadd.f32 %v2186_v50, %v2060_v19  ;;  %v4634_v5 = vsub.f32 %v7254_v8, %v4496_v2  ;;  %v7264_v50 = vld [vmem:[#allocation38_spill] sm:$0xff]  ;;  %v7266_v8 = vld [vmem:[#allocation35_spill] sm:$0xff] }
 0x1b3   :  { %7247 = vst [vmem:[#allocation28_spill] sm:$0xff] %v4618_v47  ;;  %7249 = vst [vmem:[#allocation30_spill] sm:$0xff] %v4622_v49  ;;  %v4638_v47 = vsub.f32 %v7256_v11, %v4496_v2  ;;  %v4642_v49 = vsub.f32 %v7258_v24, %v4496_v2  ;;  %v4654_v19 = vsub.f32 %v7264_v50, %v4496_v2  ;;  %v7268_v24 = vld [vmem:[#allocation37_spill] sm:$0xff]  ;;  %v7274_v50 = vld [vmem:[#allocation39_spill] sm:$0xff] }
 0x1b4   :  { %7251 = vst [vmem:[#allocation27_spill] sm:$0xff] %v4626_v34  ;;  %7253 = vst [vmem:[#allocation29_spill] sm:$0xff] %v4630_v13  ;;  %v4646_v34 = vsub.f32 %v7260_v3, %v4496_v2  ;;  %v4650_v13 = vsub.f32 %v7262_v59, %v4496_v2  ;;  %v4658_v11 = vsub.f32 %v7266_v8, %v4496_v2  ;;  %v7270_v3 = vld [vmem:[#allocation40_spill] sm:$0xff]  ;;  %v7272_v59 = vld [vmem:[#allocation42_spill] sm:$0xff] }
 0x1b5   :  { %7255 = vst [vmem:[#allocation32_spill] sm:$0xff] %v4634_v5  ;;  %7257 = vst [vmem:[#allocation34_spill] sm:$0xff] %v4638_v47  ;;  %v2188_v47 = vadd.f32 %v2187_v51, %v2061_v29  ;;  %v7276_v8 = vld [vmem:[#allocation41_spill] sm:$0xff] }
 0x1b6   :  { %7259 = vst [vmem:[#allocation31_spill] sm:$0xff] %v4642_v49  ;;  %7261 = vst [vmem:[#allocation33_spill] sm:$0xff] %v4646_v34  ;;  %v4662_v49 = vsub.f32 %v7268_v24, %v4496_v2  ;;  %v4666_v34 = vsub.f32 %v7270_v3, %v4496_v2  ;;  %v7278_v51 = vld [vmem:[#allocation45_spill] sm:$0xff]  ;;  %v7280_v24 = vld [vmem:[#allocation48_spill] sm:$0xff] }
 0x1b7   :  { %7263 = vst [vmem:[#allocation36_spill] sm:$0xff] %v4650_v13  ;;  %7265 = vst [vmem:[#allocation38_spill] sm:$0xff] %v4654_v19  ;;  %v4670_v13 = vsub.f32 %v7272_v59, %v4496_v2  ;;  %v4674_v19 = vsub.f32 %v7274_v50, %v4496_v2  ;;  %v4682_v29 = vsub.f32 %v7278_v51, %v4496_v2  ;;  %v7282_v59 = vld [vmem:[#allocation44_spill] sm:$0xff]  ;;  %v7284_v50 = vld [vmem:[#allocation47_spill] sm:$0xff] }
 0x1b8   :  { %7267 = vst [vmem:[#allocation35_spill] sm:$0xff] %v4658_v11  ;;  %7269 = vst [vmem:[#allocation37_spill] sm:$0xff] %v4662_v49  ;;  %v4678_v11 = vsub.f32 %v7276_v8, %v4496_v2  ;;  %v4686_v3 = vsub.f32 %v7280_v24, %v4496_v2  ;;  %v7286_v8 = vld [vmem:[#allocation52_spill] sm:$0xff]  ;;  %v7290_v24 = vld [vmem:[#allocation50_spill] sm:$0xff] }
 0x1b9   :  { %7271 = vst [vmem:[#allocation40_spill] sm:$0xff] %v4666_v34  ;;  %7273 = vst [vmem:[#allocation42_spill] sm:$0xff] %v4670_v13  ;;  %v2189_v34 = vadd.f32 %v2188_v47, %v2062_v1  ;;  %v4690_v13 = vsub.f32 %v7282_v59, %v4496_v2  ;;  %v7288_v51 = vld [vmem:[#allocation56_spill] sm:$0xff]  ;;  %v7292_v1 = vld [vmem:[#allocation54_spill] sm:$0xff] }
 0x1ba   :  { %7275 = vst [vmem:[#allocation39_spill] sm:$0xff] %v4674_v19  ;;  %7277 = vst [vmem:[#allocation41_spill] sm:$0xff] %v4678_v11  ;;  %v4694_v19 = vsub.f32 %v7284_v50, %v4496_v2  ;;  %v4698_v11 = vsub.f32 %v7286_v8, %v4496_v2  ;;  %v4710_v47 = vsub.f32 %v7292_v1, %v4496_v2  ;;  %v7294_v59 = vld [vmem:[#allocation60_spill] sm:$0xff] }
 0x1bb   :  { %7279 = vst [vmem:[#allocation45_spill] sm:$0xff] %v4682_v29  ;;  %7281 = vst [vmem:[#allocation48_spill] sm:$0xff] %v4686_v3  ;;  %v4702_v29 = vsub.f32 %v7288_v51, %v4496_v2  ;;  %v4706_v3 = vsub.f32 %v7290_v24, %v4496_v2  ;;  %v4714_v50 = vsub.f32 %v7294_v59, %v4496_v2  ;;  %v7296_v8 = vld [vmem:[#allocation64_spill] sm:$0xff]  ;;  %v7298_v51 = vld [vmem:[#allocation58_spill] sm:$0xff] }
 0x1bc   :  { %7283 = vst [vmem:[#allocation44_spill] sm:$0xff] %v4690_v13  ;;  %7285 = vst [vmem:[#allocation47_spill] sm:$0xff] %v4694_v19  ;;  %v2190_v19 = vadd.f32 %v2189_v34, %v2063_v17  ;;  %v7300_v24 = vld [vmem:[#allocation62_spill] sm:$0xff]  ;;  %v7302_v1 = vld [vmem:[#allocation68_spill] sm:$0xff] }
 0x1bd   :  { %7287 = vst [vmem:[#allocation52_spill] sm:$0xff] %v4698_v11  ;;  %7289 = vst [vmem:[#allocation56_spill] sm:$0xff] %v4702_v29  ;;  %v4718_v11 = vsub.f32 %v7296_v8, %v4496_v2  ;;  %v4722_v29 = vsub.f32 %v7298_v51, %v4496_v2  ;;  %v7304_v59 = vld [vmem:[#allocation72_spill] sm:$0xff]  ;;  %v7306_v17 = vld [vmem:[#allocation66_spill] sm:$0xff] }
 0x1be   :  { %7291 = vst [vmem:[#allocation50_spill] sm:$0xff] %v4706_v3  ;;  %7293 = vst [vmem:[#allocation54_spill] sm:$0xff] %v4710_v47  ;;  %v4726_v3 = vsub.f32 %v7300_v24, %v4496_v2  ;;  %v4730_v47 = vsub.f32 %v7302_v1, %v4496_v2  ;;  %v4738_v34 = vsub.f32 %v7306_v17, %v4496_v2  ;;  %v7308_v8 = vld [vmem:[#allocation70_spill] sm:$0xff]  ;;  %v7310_v24 = vld [vmem:[#allocation76_spill] sm:$0xff] }
 0x1bf   :  { %7295 = vst [vmem:[#allocation60_spill] sm:$0xff] %v4714_v50  ;;  %7297 = vst [vmem:[#allocation64_spill] sm:$0xff] %v4718_v11  ;;  %v4734_v50 = vsub.f32 %v7304_v59, %v4496_v2  ;;  %v4742_v51 = vsub.f32 %v7308_v8, %v4496_v2  ;;  %v7312_v1 = vld [vmem:[#allocation80_spill] sm:$0xff]  ;;  %v7314_v59 = vld [vmem:[#allocation74_spill] sm:$0xff] }
 0x1c0   :  { %7299 = vst [vmem:[#allocation58_spill] sm:$0xff] %v4722_v29  ;;  %7301 = vst [vmem:[#allocation62_spill] sm:$0xff] %v4726_v3  ;;  %v2191_v29 = vadd.f32 %v2190_v19, %v4514_v41  ;;  %v4747_v3 = vsub.f32 %v7310_v24, %v4496_v2  ;;  %v7316_v17 = vld [vmem:[#allocation78_spill] sm:$0xff]  ;;  %v4767_v41 = vsub.f32 %v4220_v31, %v4496_v2 }
 0x1c1   :  { %7303 = vst [vmem:[#allocation68_spill] sm:$0xff] %v4730_v47  ;;  %7305 = vst [vmem:[#allocation72_spill] sm:$0xff] %v4734_v50  ;;  %v4751_v47 = vsub.f32 %v7312_v1, %v4496_v2  ;;  %v4755_v50 = vsub.f32 %v7314_v59, %v4496_v2  ;;  %v7318_v8 = vld [vmem:[#allocation82_spill] sm:$0xff]  ;;  %v4771_v19 = vsub.f32 %v4204_v15, %v4496_v2 }
 0x1c2   :  { %7307 = vst [vmem:[#allocation66_spill] sm:$0xff] %v4738_v34  ;;  %7309 = vst [vmem:[#allocation70_spill] sm:$0xff] %v4742_v51  ;;  %v4759_v34 = vsub.f32 %v7316_v17, %v4496_v2  ;;  %v4763_v51 = vsub.f32 %v7318_v8, %v4496_v2  ;;  %v2066_v24 = vmul.f32 %v4279_v20, %v4279_v20 }
 0x1c3   :  { %7311 = vst [vmem:[#allocation76_spill] sm:$0xff] %v4747_v3  ;;  %7313 = vst [vmem:[#allocation80_spill] sm:$0xff] %v4751_v47  ;;  %v2192_v1 = vadd.f32 %v2191_v29, %v4518_v9  ;;  %v4778_v59 = vsub.f32 %v4216_v43, %v4496_v2  ;;  %v2067_v17 = vmul.f32 %v4283_v28, %v4283_v28 }
 0x1c4   :  { %7315 = vst [vmem:[#allocation74_spill] sm:$0xff] %v4755_v50  ;;  %7317 = vst [vmem:[#allocation78_spill] sm:$0xff] %v4759_v34  ;;  %v2068_v31 = vmul.f32 %v4287_v30, %v4287_v30  ;;  %v2069_v15 = vmul.f32 %v4291_v40, %v4291_v40  ;;  %v2071_v43 = vmul.f32 %v4299_v44, %v4299_v44 }
 0x1c5   :  { %7319 = vst [vmem:[#allocation82_spill] sm:$0xff] %v4763_v51  ;;  %7320 = vst [vmem:[#allocation104_spill] sm:$0xff] %v4767_v41  ;;  %v2193_v8 = vadd.f32 %v2192_v1, %v2066_v24  ;;  %v2070_v51 = vmul.f32 %v4295_v36, %v4295_v36  ;;  %v2072_v29 = vmul.f32 %v4303_v45, %v4303_v45 }
 0x1c6   :  { %7321 = vst [vmem:[#allocation105_spill] sm:$0xff] %v4771_v19  ;;  %7322 = vst [vmem:[#allocation106_spill] sm:$0xff] %v4778_v59  ;;  %v2073_v1 = vmul.f32 %v4307_v46, %v4307_v46 }
 0x1c7   :  { %v2194_v41 = vadd.f32 %v2193_v8, %v2067_v17  ;;  %v2119_v8 = vmul.f32 %v4522_v25, %v4522_v25  ;;  %v2077_v25 = vmul.f32 %v4323_v62, %v4323_v62 }
 0x1c9   :  { %v2195_v19 = vadd.f32 %v2194_v41, %v2068_v31  ;;  %v2120_v41 = vmul.f32 %v4526_v63, %v4526_v63 }
 0x1cb   :  { %v2196_v9 = vadd.f32 %v2195_v19, %v2069_v15  ;;  %v2074_v19 = vmul.f32 %v4311_v52, %v4311_v52 }
 0x1cd   :  { %v2197_v2 = vadd.f32 %v2196_v9, %v2070_v51  ;;  %v2075_v51 = vmul.f32 %v4315_v56, %v4315_v56  ;;  %v2121_v9 = vmul.f32 %v4530_v12, %v4530_v12 }
 0x1cf   :  { %v2198_v24 = vadd.f32 %v2197_v2, %v2071_v43  ;;  %v2252_v43 = vadd.f32 %v2120_v41, %v2119_v8  ;;  %v2076_v2 = vmul.f32 %v4319_v60, %v4319_v60  ;;  %v2124_v41 = vmul.f32 %v4542_v10, %v4542_v10 }
 0x1d1   :  { %v2199_v17 = vadd.f32 %v2198_v24, %v2072_v29  ;;  %v2122_v24 = vmul.f32 %v4534_v0, %v4534_v0  ;;  %v2253_v63 = vadd.f32 %v2252_v43, %v2121_v9  ;;  %v2125_v43 = vmul.f32 %v4546_v14, %v4546_v14 }
 0x1d3   :  { %v2200_v31 = vadd.f32 %v2199_v17, %v2073_v1  ;;  %v2123_v17 = vmul.f32 %v4538_v27, %v4538_v27 }
 0x1d5   :  { %v2201_v15 = vadd.f32 %v2200_v31, %v2074_v19  ;;  %v2254_v19 = vadd.f32 %v2253_v63, %v2122_v24  ;;  %v2078_v31 = vmul.f32 %v4327_v4, %v4327_v4  ;;  %v2126_v24 = vmul.f32 %v4550_v57, %v4550_v57 }
 0x1d7   :  { %v2202_v29 = vadd.f32 %v2201_v15, %v2075_v51  ;;  %v2255_v51 = vadd.f32 %v2254_v19, %v2123_v17  ;;  %v2079_v15 = vmul.f32 %v4331_v16, %v4331_v16  ;;  %v2127_v19 = vmul.f32 %v4554_v37, %v4554_v37 }
 0x1d9   :  { %v2203_v1 = vadd.f32 %v2202_v29, %v2076_v2  ;;  %v2256_v2 = vadd.f32 %v2255_v51, %v2124_v41  ;;  %v2080_v29 = vmul.f32 %v4335_v22, %v4335_v22  ;;  %v2128_v51 = vmul.f32 %v4558_v35, %v4558_v35 }
 0x1db   :  { %v2204_v8 = vadd.f32 %v2203_v1, %v2077_v25  ;;  %v2257_v25 = vadd.f32 %v2256_v2, %v2125_v43  ;;  %v2081_v1 = vmul.f32 %v4339_v26, %v4339_v26  ;;  %v2129_v2 = vmul.f32 %v4562_v18, %v4562_v18 }
 0x1dd   :  { %v2205_v9 = vadd.f32 %v2204_v8, %v2078_v31  ;;  %v2258_v31 = vadd.f32 %v2257_v25, %v2126_v24  ;;  %v2082_v8 = vmul.f32 %v4343_v38, %v4343_v38  ;;  %v2130_v25 = vmul.f32 %v4566_v61, %v4566_v61 }
 0x1df   :  { %v2206_v63 = vadd.f32 %v2205_v9, %v2079_v15  ;;  %v2259_v15 = vadd.f32 %v2258_v31, %v2127_v19  ;;  %v2083_v9 = vmul.f32 %v4347_v48, %v4347_v48  ;;  %v2131_v31 = vmul.f32 %v4570_v33, %v4570_v33 }
 0x1e1   :  { %v2207_v17 = vadd.f32 %v2206_v63, %v2080_v29  ;;  %v2260_v29 = vadd.f32 %v2259_v15, %v2128_v51  ;;  %v2084_v63 = vmul.f32 %v4351_v54, %v4351_v54  ;;  %v2132_v15 = vmul.f32 %v4574_v21, %v4574_v21 }
 0x1e3   :  { %v2208_v41 = vadd.f32 %v2207_v17, %v2081_v1  ;;  %v2261_v1 = vadd.f32 %v2260_v29, %v2129_v2  ;;  %v2085_v17 = vmul.f32 %v4355_v58, %v4355_v58  ;;  %v2133_v29 = vmul.f32 %v4578_v53, %v4578_v53 }
 0x1e5   :  { %v2209_v43 = vadd.f32 %v2208_v41, %v2082_v8  ;;  %v2262_v8 = vadd.f32 %v2261_v1, %v2130_v25  ;;  %v2086_v41 = vmul.f32 %v4359_v6, %v4359_v6  ;;  %v2134_v1 = vmul.f32 %v4582_v7, %v4582_v7 }
 0x1e7   :  { %v2210_v24 = vadd.f32 %v2209_v43, %v2083_v9  ;;  %v2263_v9 = vadd.f32 %v2262_v8, %v2131_v31  ;;  %v2087_v43 = vmul.f32 %v4363_v32, %v4363_v32  ;;  %v2135_v8 = vmul.f32 %v4586_v23, %v4586_v23 }
 0x1e9   :  { %v2211_v19 = vadd.f32 %v2210_v24, %v2084_v63  ;;  %v2264_v63 = vadd.f32 %v2263_v9, %v2132_v15  ;;  %v2088_v24 = vmul.f32 %v4367_v39, %v4367_v39  ;;  %v7324_v9 = vld [vmem:[#allocation22_spill] sm:$0xff] }
 0x1ea   :  { %v2136_v21 = vmul.f32 %v7324_v9, %v7324_v9 }
 0x1eb   :  { %v2212_v51 = vadd.f32 %v2211_v19, %v2085_v17  ;;  %v2265_v17 = vadd.f32 %v2264_v63, %v2133_v29  ;;  %v2089_v19 = vmul.f32 %v4371_v42, %v4371_v42  ;;  %v7326_v63 = vld [vmem:[#allocation19_spill] sm:$0xff] }
 0x1ec   :  { %v2137_v33 = vmul.f32 %v7326_v63, %v7326_v63 }
 0x1ed   :  { %v2213_v2 = vadd.f32 %v2212_v51, %v2086_v41  ;;  %v2266_v41 = vadd.f32 %v2265_v17, %v2134_v1  ;;  %v7323_v51 = vld [vmem:[#allocation94_spill] sm:$0xff]  ;;  %v7328_v17 = vld [vmem:[#allocation21_spill] sm:$0xff] }
 0x1ee   :  { %v2090_v53 = vmul.f32 %v7323_v51, %v7323_v51  ;;  %v2138_v61 = vmul.f32 %v7328_v17, %v7328_v17 }
 0x1ef   :  { %v2214_v25 = vadd.f32 %v2213_v2, %v2087_v43  ;;  %v2267_v43 = vadd.f32 %v2266_v41, %v2135_v8  ;;  %v7325_v2 = vld [vmem:[#allocation95_spill] sm:$0xff]  ;;  %v7330_v41 = vld [vmem:[#allocation24_spill] sm:$0xff] }
 0x1f0   :  { %v2091_v7 = vmul.f32 %v7325_v2, %v7325_v2  ;;  %v2139_v18 = vmul.f32 %v7330_v41, %v7330_v41 }
 0x1f1   :  { %v2215_v31 = vadd.f32 %v2214_v25, %v2088_v24  ;;  %v2268_v24 = vadd.f32 %v2267_v43, %v2136_v21  ;;  %v7327_v25 = vld [vmem:[#allocation96_spill] sm:$0xff]  ;;  %v2140_v43 = vmul.f32 %v4606_v55, %v4606_v55 }
 0x1f2   :  { %v2092_v23 = vmul.f32 %v7327_v25, %v7327_v25 }
 0x1f3   :  { %v2216_v15 = vadd.f32 %v2215_v31, %v2089_v19  ;;  %v2269_v19 = vadd.f32 %v2268_v24, %v2137_v33  ;;  %v7329_v31 = vld [vmem:[#allocation97_spill] sm:$0xff]  ;;  %v7333_v24 = vld [vmem:[#allocation23_spill] sm:$0xff] }
 0x1f4   :  { %v2093_v9 = vmul.f32 %v7329_v31, %v7329_v31  ;;  %v2141_v35 = vmul.f32 %v7333_v24, %v7333_v24 }
 0x1f5   :  { %v2217_v29 = vadd.f32 %v2216_v15, %v2090_v53  ;;  %v2270_v53 = vadd.f32 %v2269_v19, %v2138_v61  ;;  %v7331_v15 = vld [vmem:[#allocation98_spill] sm:$0xff]  ;;  %v7335_v19 = vld [vmem:[#allocation25_spill] sm:$0xff] }
 0x1f6   :  { %v2094_v63 = vmul.f32 %v7331_v15, %v7331_v15  ;;  %v2142_v37 = vmul.f32 %v7335_v19, %v7335_v19 }
 0x1f7   :  { %v2218_v1 = vadd.f32 %v2217_v29, %v2091_v7  ;;  %v2271_v7 = vadd.f32 %v2270_v53, %v2139_v18  ;;  %v7332_v29 = vld [vmem:[#allocation99_spill] sm:$0xff]  ;;  %v7337_v53 = vld [vmem:[#allocation28_spill] sm:$0xff] }
 0x1f8   :  { %v2095_v17 = vmul.f32 %v7332_v29, %v7332_v29  ;;  %v2143_v57 = vmul.f32 %v7337_v53, %v7337_v53 }
 0x1f9   :  { %v2219_v8 = vadd.f32 %v2218_v1, %v2092_v23  ;;  %v2272_v23 = vadd.f32 %v2271_v7, %v2140_v43  ;;  %v7334_v1 = vld [vmem:[#allocation100_spill] sm:$0xff]  ;;  %v7339_v7 = vld [vmem:[#allocation30_spill] sm:$0xff] }
 0x1fa   :  { %v2096_v41 = vmul.f32 %v7334_v1, %v7334_v1  ;;  %v2144_v14 = vmul.f32 %v7339_v7, %v7339_v7 }
 0x1fb   :  { %v2220_v21 = vadd.f32 %v2219_v8, %v2093_v9  ;;  %v2273_v9 = vadd.f32 %v2272_v23, %v2141_v35  ;;  %v7336_v8 = vld [vmem:[#allocation43_spill] sm:$0xff] }
 0x1fc   :  { %v2097_v55 = vmul.f32 %v7336_v8, %v7336_v8  ;;  %v7341_v23 = vld [vmem:[#allocation27_spill] sm:$0xff] }
 0x1fd   :  { %v2221_v33 = vadd.f32 %v2220_v21, %v2094_v63  ;;  %v2274_v63 = vadd.f32 %v2273_v9, %v2142_v37  ;;  %v7338_v21 = vld [vmem:[#allocation46_spill] sm:$0xff]  ;;  %v2145_v10 = vmul.f32 %v7341_v23, %v7341_v23  ;;  %v7343_v9 = vld [vmem:[#allocation29_spill] sm:$0xff] }
 0x1fe   :  { %v2098_v24 = vmul.f32 %v7338_v21, %v7338_v21  ;;  %v2146_v27 = vmul.f32 %v7343_v9, %v7343_v9 }
 0x1ff   :  { %v2222_v61 = vadd.f32 %v2221_v33, %v2095_v17  ;;  %v2275_v17 = vadd.f32 %v2274_v63, %v2143_v57  ;;  %v7340_v33 = vld [vmem:[#allocation51_spill] sm:$0xff]  ;;  %v2147_v63 = vmul.f32 %v4634_v5, %v4634_v5 }
 0x200   :  { %v2099_v19 = vmul.f32 %v7340_v33, %v7340_v33 }
 0x201   :  { %v2223_v18 = vadd.f32 %v2222_v61, %v2096_v41  ;;  %v2276_v41 = vadd.f32 %v2275_v17, %v2144_v14  ;;  %v7342_v61 = vld [vmem:[#allocation55_spill] sm:$0xff]  ;;  %v7346_v17 = vld [vmem:[#allocation34_spill] sm:$0xff] }
 0x202   :  { %v2100_v53 = vmul.f32 %v7342_v61, %v7342_v61  ;;  %v2148_v0 = vmul.f32 %v7346_v17, %v7346_v17 }
 0x203   :  { %v2224_v43 = vadd.f32 %v2223_v18, %v2097_v55  ;;  %v2277_v55 = vadd.f32 %v2276_v41, %v2145_v10  ;;  %v7344_v18 = vld [vmem:[#allocation49_spill] sm:$0xff]  ;;  %v7348_v41 = vld [vmem:[#allocation31_spill] sm:$0xff] }
 0x204   :  { %v2101_v7 = vmul.f32 %v7344_v18, %v7344_v18  ;;  %v2149_v12 = vmul.f32 %v7348_v41, %v7348_v41 }
 0x205   :  { %v2225_v35 = vadd.f32 %v2224_v43, %v2098_v24  ;;  %v2278_v24 = vadd.f32 %v2277_v55, %v2146_v27  ;;  %v7345_v43 = vld [vmem:[#allocation53_spill] sm:$0xff] }
 0x206   :  { %v2102_v23 = vmul.f32 %v7345_v43, %v7345_v43  ;;  %v7350_v55 = vld [vmem:[#allocation33_spill] sm:$0xff] }
 0x207   :  { %v2226_v37 = vadd.f32 %v2225_v35, %v2099_v19  ;;  %v2279_v19 = vadd.f32 %v2278_v24, %v2147_v63  ;;  %v7347_v35 = vld [vmem:[#allocation59_spill] sm:$0xff]  ;;  %v2150_v59 = vmul.f32 %v7350_v55, %v7350_v55  ;;  %v7352_v24 = vld [vmem:[#allocation36_spill] sm:$0xff] }
 0x208   :  { %v2103_v9 = vmul.f32 %v7347_v35, %v7347_v35  ;;  %v2151_v35 = vmul.f32 %v7352_v24, %v7352_v24 }
 0x209   :  { %v2227_v57 = vadd.f32 %v2226_v37, %v2100_v53  ;;  %v2280_v53 = vadd.f32 %v2279_v19, %v2148_v0  ;;  %v7349_v37 = vld [vmem:[#allocation63_spill] sm:$0xff]  ;;  %v7354_v19 = vld [vmem:[#allocation38_spill] sm:$0xff] }
 0x20a   :  { %v2104_v5 = vmul.f32 %v7349_v37, %v7349_v37  ;;  %v2152_v37 = vmul.f32 %v7354_v19, %v7354_v19 }
 0x20b   :  { %v2228_v14 = vadd.f32 %v2227_v57, %v2101_v7  ;;  %v2281_v7 = vadd.f32 %v2280_v53, %v2149_v12  ;;  %v7351_v57 = vld [vmem:[#allocation57_spill] sm:$0xff]  ;;  %v7356_v53 = vld [vmem:[#allocation35_spill] sm:$0xff] }
 0x20c   :  { %v2105_v17 = vmul.f32 %v7351_v57, %v7351_v57  ;;  %v2153_v57 = vmul.f32 %v7356_v53, %v7356_v53 }
 0x20d   :  { %v2229_v10 = vadd.f32 %v2228_v14, %v2102_v23  ;;  %v2282_v23 = vadd.f32 %v2281_v7, %v2150_v59  ;;  %v7353_v14 = vld [vmem:[#allocation61_spill] sm:$0xff]  ;;  %v2154_v7 = vmul.f32 %v4662_v49, %v4662_v49 }
 0x20e   :  { %v2106_v41 = vmul.f32 %v7353_v14, %v7353_v14 }
 0x20f   :  { %v2230_v27 = vadd.f32 %v2229_v10, %v2103_v9  ;;  %v2283_v9 = vadd.f32 %v2282_v23, %v2151_v35  ;;  %v7355_v10 = vld [vmem:[#allocation67_spill] sm:$0xff]  ;;  %v7359_v23 = vld [vmem:[#allocation40_spill] sm:$0xff] }
 0x210   :  { %v2107_v55 = vmul.f32 %v7355_v10, %v7355_v10  ;;  %v2155_v10 = vmul.f32 %v7359_v23, %v7359_v23 }
 0x211   :  { %v2231_v63 = vadd.f32 %v2230_v27, %v2104_v5  ;;  %v2284_v5 = vadd.f32 %v2283_v9, %v2152_v37  ;;  %v7357_v27 = vld [vmem:[#allocation71_spill] sm:$0xff]  ;;  %v7361_v9 = vld [vmem:[#allocation42_spill] sm:$0xff] }
 0x212   :  { %v2108_v24 = vmul.f32 %v7357_v27, %v7357_v27  ;;  %v2156_v27 = vmul.f32 %v7361_v9, %v7361_v9 }
 0x213   :  { %v2232_v0 = vadd.f32 %v2231_v63, %v2105_v17  ;;  %v2285_v17 = vadd.f32 %v2284_v5, %v2153_v57  ;;  %v7358_v63 = vld [vmem:[#allocation65_spill] sm:$0xff]  ;;  %v7363_v5 = vld [vmem:[#allocation39_spill] sm:$0xff] }
 0x214   :  { %v2109_v19 = vmul.f32 %v7358_v63, %v7358_v63  ;;  %v2157_v63 = vmul.f32 %v7363_v5, %v7363_v5 }
 0x215   :  { %v2233_v12 = vadd.f32 %v2232_v0, %v2106_v41  ;;  %v2286_v41 = vadd.f32 %v2285_v17, %v2154_v7  ;;  %v7360_v0 = vld [vmem:[#allocation69_spill] sm:$0xff] }
 0x216   :  { %v2110_v53 = vmul.f32 %v7360_v0, %v7360_v0  ;;  %v7365_v17 = vld [vmem:[#allocation41_spill] sm:$0xff] }
 0x217   :  { %v2234_v59 = vadd.f32 %v2233_v12, %v2107_v55  ;;  %v2287_v55 = vadd.f32 %v2286_v41, %v2155_v10  ;;  %v7362_v12 = vld [vmem:[#allocation75_spill] sm:$0xff]  ;;  %v2158_v0 = vmul.f32 %v7365_v17, %v7365_v17  ;;  %v7367_v41 = vld [vmem:[#allocation45_spill] sm:$0xff] }
 0x218   :  { %v2111_v49 = vmul.f32 %v7362_v12, %v7362_v12  ;;  %v2159_v12 = vmul.f32 %v7367_v41, %v7367_v41 }
 0x219   :  { %v2235_v35 = vadd.f32 %v2234_v59, %v2108_v24  ;;  %v2288_v24 = vadd.f32 %v2287_v55, %v2156_v27  ;;  %v7364_v59 = vld [vmem:[#allocation79_spill] sm:$0xff]  ;;  %v7369_v55 = vld [vmem:[#allocation48_spill] sm:$0xff] }
 0x21a   :  { %v2112_v23 = vmul.f32 %v7364_v59, %v7364_v59  ;;  %v2160_v59 = vmul.f32 %v7369_v55, %v7369_v55 }
 0x21b   :  { %v2236_v37 = vadd.f32 %v2235_v35, %v2109_v19  ;;  %v2289_v19 = vadd.f32 %v2288_v24, %v2157_v63  ;;  %v7366_v35 = vld [vmem:[#allocation73_spill] sm:$0xff]  ;;  %v2161_v24 = vmul.f32 %v4690_v13, %v4690_v13 }
 0x21c   :  { %v2113_v9 = vmul.f32 %v7366_v35, %v7366_v35  ;;  %v7377_v35 = vld [vmem:[#allocation50_spill] sm:$0xff] }
 0x21d   :  { %v2237_v57 = vadd.f32 %v2236_v37, %v2110_v53  ;;  %v2290_v53 = vadd.f32 %v2289_v19, %v2158_v0  ;;  %v7368_v37 = vld [vmem:[#allocation77_spill] sm:$0xff]  ;;  %v7372_v19 = vld [vmem:[#allocation47_spill] sm:$0xff] }
 0x21e   :  { %v2114_v5 = vmul.f32 %v7368_v37, %v7368_v37  ;;  %v2162_v37 = vmul.f32 %v7372_v19, %v7372_v19 }
 0x21f   :  { %v2238_v7 = vadd.f32 %v2237_v57, %v2111_v49  ;;  %v2291_v49 = vadd.f32 %v2290_v53, %v2159_v12  ;;  %v7370_v57 = vld [vmem:[#allocation81_spill] sm:$0xff]  ;;  %v7374_v53 = vld [vmem:[#allocation52_spill] sm:$0xff] }
 0x220   :  { %v2115_v17 = vmul.f32 %v7370_v57, %v7370_v57  ;;  %v2163_v57 = vmul.f32 %v7374_v53, %v7374_v53 }
 0x221   :  { %v2239_v10 = vadd.f32 %v2238_v7, %v2112_v23  ;;  %v2292_v23 = vadd.f32 %v2291_v49, %v2160_v59  ;;  %v7371_v7 = vld [vmem:[#allocation101_spill] sm:$0xff]  ;;  %v7376_v49 = vld [vmem:[#allocation56_spill] sm:$0xff] }
 0x222   :  { %v2116_v41 = vmul.f32 %v7371_v7, %v7371_v7  ;;  %v2164_v7 = vmul.f32 %v7376_v49, %v7376_v49  ;;  %v7411_v49 = vld [vmem:[#allocation75_spill] sm:$0xff] }
 0x223   :  { %v2240_v27 = vadd.f32 %v2239_v10, %v2113_v9  ;;  %v2293_v9 = vadd.f32 %v2292_v23, %v2161_v24  ;;  %v7373_v10 = vld [vmem:[#allocation102_spill] sm:$0xff]  ;;  %v2165_v24 = vmul.f32 %v7377_v35, %v7377_v35 }
 0x224   :  { %v2117_v55 = vmul.f32 %v7373_v10, %v7373_v10  ;;  %v7378_v10 = vld [vmem:[#allocation54_spill] sm:$0xff] }
 0x225   :  { %v2241_v63 = vadd.f32 %v2240_v27, %v2114_v5  ;;  %v2294_v5 = vadd.f32 %v2293_v9, %v2162_v37  ;;  %v7375_v27 = vld [vmem:[#allocation103_spill] sm:$0xff]  ;;  %v7379_v37 = vld [vmem:[#allocation60_spill] sm:$0xff]  ;;  %v7381_v35 = vld [vmem:[#allocation62_spill] sm:$0xff] }
 0x226   :  { %v2118_v13 = vmul.f32 %v7375_v27, %v7375_v27  ;;  %v2167_v9 = vmul.f32 %v7379_v37, %v7379_v37  ;;  %v7383_v37 = vld [vmem:[#allocation72_spill] sm:$0xff] }
 0x227   :  { %v2242_v0 = vadd.f32 %v2241_v63, %v2115_v17  ;;  %v2295_v17 = vadd.f32 %v2294_v5, %v2163_v57  ;;  %v7380_v5 = vld [vmem:[#allocation58_spill] sm:$0xff] }
 0x229   :  { %v2243_v12 = vadd.f32 %v2242_v0, %v2116_v41  ;;  %v2296_v23 = vadd.f32 %v2295_v17, %v2164_v7  ;;  %v2166_v41 = vmul.f32 %v7378_v10, %v7378_v10  ;;  %v2170_v10 = vmul.f32 %v7381_v35, %v7381_v35 }
 0x22b   :  { %v2244_v59 = vadd.f32 %v2243_v12, %v2117_v55  ;;  %v2297_v0 = vadd.f32 %v2296_v23, %v2165_v24  ;;  %v2168_v12 = vmul.f32 %v4718_v11, %v4718_v11  ;;  %v2172_v11 = vmul.f32 %v7383_v37, %v7383_v37  ;;  %v7404_v37 = vld [vmem:[#allocation71_spill] sm:$0xff] }
 0x22d   :  { %v2245_v63 = vadd.f32 %v2244_v59, %v2118_v13  ;;  %v2298_v27 = vadd.f32 %v2297_v0, %v2166_v41  ;;  %v2169_v59 = vmul.f32 %v7380_v5, %v7380_v5  ;;  %v7408_v5 = vld [vmem:[#allocation69_spill] sm:$0xff] }
 0x22f   :  { %v2246_v19 = vrot.slane %v2245_v63, 4  ;;  %v2299_v57 = vadd.f32 %v2298_v27, %v2167_v9  ;;  %v7384_v9 = vld [vmem:[#allocation66_spill] sm:$0xff] }
 0x231   :  { %v2247_v53 = vadd.f32 %v2246_v19, %v2245_v63  ;;  %v2300_v7 = vadd.f32 %v2299_v57, %v2168_v12  ;;  %v7382_v63 = vld [vmem:[#allocation68_spill] sm:$0xff]  ;;  %v7385_v57 = vld [vmem:[#allocation70_spill] sm:$0xff] }
 0x232   :  { %v2171_v23 = vmul.f32 %v7382_v63, %v7382_v63  ;;  %v2174_v35 = vmul.f32 %v7385_v57, %v7385_v57  ;;  %v7400_v57 = vld [vmem:[#allocation57_spill] sm:$0xff] }
 0x233   :  { %v2248_v55 = vrot.slane %v2247_v53, 2  ;;  %v2301_v24 = vadd.f32 %v2300_v7, %v2169_v59  ;;  %v7406_v63 = vld [vmem:[#allocation65_spill] sm:$0xff] }
 0x235   :  { %v2249_v13 = vadd.f32 %v2248_v55, %v2247_v53  ;;  %v2302_v41 = vadd.f32 %v2301_v24, %v2170_v10  ;;  %v2173_v55 = vmul.f32 %v7384_v9, %v7384_v9  ;;  %v2176_v10 = vmul.f32 %v4751_v47, %v4751_v47  ;;  %v7398_v47 = vld [vmem:[#allocation59_spill] sm:$0xff] }
 0x236   :  { %v2177_v24 = vmul.f32 %v4755_v50, %v4755_v50  ;;  %v7397_v50 = vld [vmem:[#allocation93_spill] sm:$0xff]  ;;  %v7402_v9 = vld [vmem:[#allocation67_spill] sm:$0xff] }
 0x237   :  { %v2250_v17 = vrot.slane %v2249_v13, 1  ;;  %v2303_v27 = vadd.f32 %v2302_v41, %v2171_v23 }
 0x239   :  { %v2251_v19 = vadd.f32 %v2250_v17, %v2249_v13  ;;  %v2304_v12 = vadd.f32 %v2303_v27, %v2172_v11  ;;  %v2175_v13 = vmul.f32 %v4747_v3, %v4747_v3  ;;  %v2178_v11 = vmul.f32 %v4759_v34, %v4759_v34  ;;  %v7387_v27 = vld [vmem:[#allocation83_spill] sm:$0xff]  ;;  %v7396_v34 = vld [vmem:[#allocation92_spill] sm:$0xff] }
 0x23a   :  { %v7399_v3 = vld [vmem:[#allocation63_spill] sm:$0xff] }
 0x23b   :  { %v2321_v0 = vmul.f32 0.001953125, %v2251_v19  ;;  %v2305_v59 = vadd.f32 %v2304_v12, %v2173_v55  ;;  %v7389_v12 = vld [vmem:[#allocation85_spill] sm:$0xff] }
 0x23d   :  { %v2323_v53 = vadd.f32 1e-05, %v2321_v0  ;;  %v2306_v7 = vadd.f32 %v2305_v59, %v2174_v35  ;;  %v7388_v35 = vld [vmem:[#allocation84_spill] sm:$0xff] }
 0x23f   :  { %3599 = vrsqrt.f32 %v2323_v53  ;;  %v2307_v17 = vadd.f32 %v2306_v7, %v2175_v13  ;;  %v7390_v13 = vld [vmem:[#allocation86_spill] sm:$0xff] }
 0x241   :  { %v2308_v19 = vadd.f32 %v2307_v17, %v2176_v10  ;;  %v7391_v10 = vld [vmem:[#allocation87_spill] sm:$0xff] }
 0x243   :  { %v2309_v23 = vadd.f32 %v2308_v19, %v2177_v24  ;;  %v7392_v24 = vld [vmem:[#allocation88_spill] sm:$0xff] }
 0x245   :  { %v5006_v0 = vadd.f32 %v2309_v23, %v2178_v11  ;;  %v7393_v11 = vld [vmem:[#allocation89_spill] sm:$0xff] }
 0x247   :  { %7386 = vst [vmem:[#allocation94_spill] sm:$0xff] %v5006_v0  ;;  %v7413_v0 = vld [vmem:[#allocation79_spill] sm:$0xff] }
 0x249   :  { %v5004_v41 = vpop.eup %3599 }
 0x24a   :  { %v5010_v53 = vmul.f32 %v5004_v41, %v7387_v27  ;;  %v5014_v55 = vmul.f32 %v5004_v41, %v7388_v35  ;;  %v5018_v59 = vmul.f32 %v5004_v41, %v7389_v12  ;;  %v5022_v7 = vmul.f32 %v5004_v41, %v7390_v13  ;;  %v7394_v27 = vld [vmem:[#allocation90_spill] sm:$0xff]  ;;  %v7395_v12 = vld [vmem:[#allocation91_spill] sm:$0xff] }
 0x24b   :  { %v5026_v17 = vmul.f32 %v5004_v41, %v7391_v10  ;;  %v5030_v19 = vmul.f32 %v5004_v41, %v7392_v24  ;;  %v5034_v23 = vmul.f32 %v5004_v41, %v7393_v11  ;;  %v5038_v35 = vmul.f32 %v5004_v41, %v7394_v27 }
 0x24c   :  { %v5042_v13 = vmul.f32 %v5004_v41, %v7395_v12  ;;  %v5046_v10 = vmul.f32 %v5004_v41, %v7396_v34  ;;  %v5050_v24 = vmul.f32 %v5004_v41, %v7397_v50  ;;  %v5054_v11 = vmul.f32 %v5004_v41, %v4279_v20 }
 0x24d   :  { %v5058_v27 = vmul.f32 %v5004_v41, %v4283_v28  ;;  %v5062_v12 = vmul.f32 %v5004_v41, %v4287_v30  ;;  %v5066_v34 = vmul.f32 %v5004_v41, %v4291_v40  ;;  %v5070_v50 = vmul.f32 %v5004_v41, %v4295_v36 }
 0x24e   :  { %v5074_v20 = vmul.f32 %v5004_v41, %v4299_v44  ;;  %v5078_v28 = vmul.f32 %v5004_v41, %v4303_v45  ;;  %v5082_v30 = vmul.f32 %v5004_v41, %v4307_v46  ;;  %v5086_v40 = vmul.f32 %v5004_v41, %v4311_v52 }
 0x24f   :  { %v5090_v36 = vmul.f32 %v5004_v41, %v4315_v56  ;;  %v5094_v44 = vmul.f32 %v5004_v41, %v4319_v60  ;;  %v5098_v45 = vmul.f32 %v5004_v41, %v4323_v62  ;;  %v5102_v46 = vmul.f32 %v5004_v41, %v4327_v4 }
 0x250   :  { %v5106_v52 = vmul.f32 %v5004_v41, %v4331_v16  ;;  %v5110_v56 = vmul.f32 %v5004_v41, %v4335_v22  ;;  %v5114_v60 = vmul.f32 %v5004_v41, %v4339_v26  ;;  %v5118_v62 = vmul.f32 %v5004_v41, %v4343_v38 }
 0x251   :  { %v5122_v4 = vmul.f32 %v5004_v41, %v4347_v48  ;;  %v5126_v16 = vmul.f32 %v5004_v41, %v4351_v54  ;;  %v5130_v22 = vmul.f32 %v5004_v41, %v4355_v58  ;;  %v5134_v26 = vmul.f32 %v5004_v41, %v4359_v6 }
 0x252   :  { %v5138_v38 = vmul.f32 %v5004_v41, %v4363_v32  ;;  %v5142_v48 = vmul.f32 %v5004_v41, %v4367_v39  ;;  %v5146_v54 = vmul.f32 %v5004_v41, %v4371_v42  ;;  %v5150_v58 = vmul.f32 %v5004_v41, %v7323_v51 }
 0x253   :  { %v5154_v6 = vmul.f32 %v5004_v41, %v7325_v2  ;;  %v5158_v32 = vmul.f32 %v5004_v41, %v7327_v25  ;;  %v5162_v39 = vmul.f32 %v5004_v41, %v7329_v31  ;;  %v5166_v42 = vmul.f32 %v5004_v41, %v7331_v15 }
 0x254   :  { %v5170_v51 = vmul.f32 %v5004_v41, %v7332_v29  ;;  %v5174_v2 = vmul.f32 %v5004_v41, %v7334_v1  ;;  %v5178_v25 = vmul.f32 %v5004_v41, %v7336_v8  ;;  %v5182_v31 = vmul.f32 %v5004_v41, %v7338_v21 }
 0x255   :  { %v5186_v15 = vmul.f32 %v5004_v41, %v7340_v33  ;;  %v5190_v29 = vmul.f32 %v5004_v41, %v7342_v61  ;;  %v5194_v1 = vmul.f32 %v5004_v41, %v7344_v18  ;;  %v5198_v8 = vmul.f32 %v5004_v41, %v7345_v43 }
 0x256   :  { %v5202_v21 = vmul.f32 %v5004_v41, %v7398_v47  ;;  %v5206_v33 = vmul.f32 %v5004_v41, %v7399_v3  ;;  %v5210_v61 = vmul.f32 %v5004_v41, %v7400_v57  ;;  %v5214_v18 = vmul.f32 %v5004_v41, %v7353_v14  ;;  %v5235_v14 = vld [vmem:[%s6831_s2] ss:$0 sm:$0xff] }
 0x257   :  { %v5218_v43 = vmul.f32 %v5004_v41, %v7402_v9  ;;  %v5222_v47 = vmul.f32 %v5004_v41, %v7404_v37  ;;  %v5226_v3 = vmul.f32 %v5004_v41, %v7406_v63  ;;  %v5230_v57 = vmul.f32 %v5004_v41, %v7408_v5  ;;  %7410 = vst [vmem:[#allocation100_spill] sm:$0xff] %v5235_v14 }
 0x258   :  { %7401 = vst [vmem:[#allocation95_spill] sm:$0xff] %v5214_v18  ;;  %v5239_v9 = vmul.f32 %v5004_v41, %v7411_v49  ;;  %v5243_v37 = vmul.f32 %v5004_v41, %v7413_v0  ;;  %v7418_v18 = vld [vmem:[#allocation101_spill] sm:$0xff] }
 0x259   :  { %7403 = vst [vmem:[#allocation96_spill] sm:$0xff] %v5218_v43  ;;  %7405 = vst [vmem:[#allocation97_spill] sm:$0xff] %v5222_v47  ;;  %v7415_v47 = vld [vmem:[#allocation73_spill] sm:$0xff]  ;;  %v5259_v49 = vmul.f32 %v5004_v41, %v7418_v18  ;;  %v5279_v18 = vmul.f32 %v5235_v14, %v5018_v59  ;;  %v5299_v59 = vmul.f32 %v5235_v14, %v5038_v35 }
 0x25a   :  { %7407 = vst [vmem:[#allocation98_spill] sm:$0xff] %v5226_v3  ;;  %7409 = vst [vmem:[#allocation99_spill] sm:$0xff] %v5230_v57  ;;  %v5247_v63 = vmul.f32 %v5004_v41, %v7415_v47  ;;  %v7416_v3 = vld [vmem:[#allocation77_spill] sm:$0xff]  ;;  %v5319_v35 = vmul.f32 %v5235_v14, %v5058_v27  ;;  %v5339_v27 = vmul.f32 %v5235_v14, %v5078_v28 }
 0x25b   :  { %7412 = vst [vmem:[#allocation43_spill] sm:$0xff] %v5239_v9  ;;  %7414 = vst [vmem:[#allocation46_spill] sm:$0xff] %v5243_v37  ;;  %v5251_v5 = vmul.f32 %v5004_v41, %v7416_v3  ;;  %v7417_v57 = vld [vmem:[#allocation81_spill] sm:$0xff]  ;;  %v7419_v9 = vld [vmem:[#allocation102_spill] sm:$0xff]  ;;  %v5271_v3 = vmul.f32 %v5235_v14, %v5010_v53  ;;  %v5291_v53 = vmul.f32 %v5235_v14, %v5030_v19 }
 0x25c   :  { %v5255_v43 = vmul.f32 %v5004_v41, %v7417_v57  ;;  %v5263_v0 = vmul.f32 %v5004_v41, %v7419_v9  ;;  %v7420_v37 = vld [vmem:[#allocation103_spill] sm:$0xff]  ;;  %v5275_v57 = vmul.f32 %v5235_v14, %v5014_v55  ;;  %v5283_v9 = vmul.f32 %v5235_v14, %v5022_v7 }
 0x25d   :  { %v5267_v47 = vmul.f32 %v5004_v41, %v7420_v37  ;;  %v5287_v41 = vmul.f32 %v5235_v14, %v5026_v17  ;;  %v5295_v55 = vmul.f32 %v5235_v14, %v5034_v23  ;;  %v5303_v7 = vmul.f32 %v5235_v14, %v5042_v13 }
 0x25e   :  { %v5307_v17 = vmul.f32 %v5235_v14, %v5046_v10  ;;  %v5311_v19 = vmul.f32 %v5235_v14, %v5050_v24  ;;  %v5315_v23 = vmul.f32 %v5235_v14, %v5054_v11  ;;  %v5323_v13 = vmul.f32 %v5235_v14, %v5062_v12 }
 0x25f   :  { %v5327_v10 = vmul.f32 %v5235_v14, %v5066_v34  ;;  %v5331_v24 = vmul.f32 %v5235_v14, %v5070_v50  ;;  %v5335_v11 = vmul.f32 %v5235_v14, %v5074_v20  ;;  %v5343_v12 = vmul.f32 %v5235_v14, %v5082_v30  ;;  %v7425_v37 = vld [vmem:[#allocation95_spill] sm:$0xff] }
 0x260   :  { %v5347_v34 = vmul.f32 %v5235_v14, %v5086_v40  ;;  %v5351_v50 = vmul.f32 %v5235_v14, %v5090_v36  ;;  %v5355_v20 = vmul.f32 %v5235_v14, %v5094_v44  ;;  %v5359_v28 = vmul.f32 %v5235_v14, %v5098_v45 }
 0x261   :  { %v5363_v30 = vmul.f32 %v5235_v14, %v5102_v46  ;;  %v5367_v40 = vmul.f32 %v5235_v14, %v5106_v52  ;;  %v5371_v36 = vmul.f32 %v5235_v14, %v5110_v56  ;;  %v5375_v44 = vmul.f32 %v5235_v14, %v5114_v60 }
 0x262   :  { %v5379_v45 = vmul.f32 %v5235_v14, %v5118_v62  ;;  %v5383_v46 = vmul.f32 %v5235_v14, %v5122_v4  ;;  %v5387_v52 = vmul.f32 %v5235_v14, %v5126_v16  ;;  %v5391_v56 = vmul.f32 %v5235_v14, %v5130_v22 }
 0x263   :  { %v5395_v60 = vmul.f32 %v5235_v14, %v5134_v26  ;;  %v5399_v62 = vmul.f32 %v5235_v14, %v5138_v38  ;;  %v5403_v4 = vmul.f32 %v5235_v14, %v5142_v48  ;;  %v5407_v16 = vmul.f32 %v5235_v14, %v5146_v54 }
 0x264   :  { %v5411_v22 = vmul.f32 %v5235_v14, %v5150_v58  ;;  %v5415_v26 = vmul.f32 %v5235_v14, %v5154_v6  ;;  %v5419_v38 = vmul.f32 %v5235_v14, %v5158_v32  ;;  %v5423_v48 = vmul.f32 %v5235_v14, %v5162_v39 }
 0x265   :  { %v5427_v54 = vmul.f32 %v5235_v14, %v5166_v42  ;;  %v5431_v58 = vmul.f32 %v5235_v14, %v5170_v51  ;;  %v5435_v6 = vmul.f32 %v5235_v14, %v5174_v2  ;;  %v5439_v32 = vmul.f32 %v5235_v14, %v5178_v25 }
 0x266   :  { %v5443_v39 = vmul.f32 %v5235_v14, %v5182_v31  ;;  %v5447_v42 = vmul.f32 %v5235_v14, %v5186_v15  ;;  %v5451_v51 = vmul.f32 %v5235_v14, %v5190_v29  ;;  %v5455_v2 = vmul.f32 %v5235_v14, %v5194_v1 }
 0x267   :  { %v5459_v25 = vmul.f32 %v5235_v14, %v5198_v8  ;;  %v5463_v31 = vmul.f32 %v5235_v14, %v5202_v21  ;;  %v5467_v15 = vmul.f32 %v5235_v14, %v5206_v33  ;;  %v5471_v29 = vmul.f32 %v5235_v14, %v5210_v61 }
 0x268   :  { %7421 = vst [vmem:[#allocation51_spill] sm:$0xff] %v5455_v2  ;;  %v5475_v1 = vmul.f32 %v5235_v14, %v7425_v37  ;;  %v7427_v2 = vld [vmem:[#allocation96_spill] sm:$0xff]  ;;  %v5496_v37 = vld [vmem:[%s6832_s3] ss:$0 sm:$0xff] }
 0x269   :  { %7422 = vst [vmem:[#allocation55_spill] sm:$0xff] %v5459_v25  ;;  %7423 = vst [vmem:[#allocation49_spill] sm:$0xff] %v5463_v31  ;;  %v5479_v8 = vmul.f32 %v5235_v14, %v7427_v2  ;;  %v7429_v25 = vld [vmem:[#allocation97_spill] sm:$0xff]  ;;  %v7430_v31 = vld [vmem:[#allocation98_spill] sm:$0xff] }
 0x26a   :  { %7424 = vst [vmem:[#allocation53_spill] sm:$0xff] %v5467_v15  ;;  %7426 = vst [vmem:[#allocation61_spill] sm:$0xff] %v5475_v1  ;;  %v5483_v21 = vmul.f32 %v5235_v14, %v7429_v25  ;;  %v5487_v33 = vmul.f32 %v5235_v14, %v7430_v31  ;;  %v7431_v15 = vld [vmem:[#allocation99_spill] sm:$0xff]  ;;  %v5508_v31 = vmul.f32 %v5235_v14, %v5247_v63 }
 0x26b   :  { %7428 = vst [vmem:[#allocation83_spill] sm:$0xff] %v5479_v8  ;;  %v5491_v61 = vmul.f32 %v5235_v14, %v7431_v15  ;;  %7433 = vst [vmem:[#allocation85_spill] sm:$0xff] %v5496_v37  ;;  %v7434_v1 = vld [vmem:[#allocation43_spill] sm:$0xff]  ;;  %v7435_v8 = vld [vmem:[#allocation46_spill] sm:$0xff]  ;;  %v5512_v15 = vmul.f32 %v5235_v14, %v5251_v5  ;;  %v5528_v63 = vmul.f32 %v5235_v14, %v5267_v47 }
 0x26c   :  { %v5500_v2 = vmul.f32 %v5235_v14, %v7434_v1  ;;  %v5504_v25 = vmul.f32 %v5235_v14, %v7435_v8  ;;  %v5520_v1 = vmul.f32 %v5235_v14, %v5259_v49  ;;  %v5524_v8 = vmul.f32 %v5235_v14, %v5263_v0 }
 0x26d   :  { %7432 = vst [vmem:[#allocation84_spill] sm:$0xff] %v5491_v61  ;;  %v5516_v61 = vmul.f32 %v5235_v14, %v5255_v43  ;;  %v5532_v5 = vadd.f32 %v5496_v37, %v5271_v3  ;;  %v5536_v43 = vadd.f32 %v5496_v37, %v5275_v57  ;;  %v5540_v49 = vadd.f32 %v5496_v37, %v5279_v18 }
 0x26e   :  { %v5544_v0 = vadd.f32 %v5496_v37, %v5283_v9  ;;  %v5548_v47 = vadd.f32 %v5496_v37, %v5287_v41  ;;  %v5552_v3 = vadd.f32 %v5496_v37, %v5291_v53  ;;  %v5556_v57 = vadd.f32 %v5496_v37, %v5295_v55 }
 0x26f   :  { %v5560_v18 = vadd.f32 %v5496_v37, %v5299_v59  ;;  %v5564_v9 = vadd.f32 %v5496_v37, %v5303_v7  ;;  %v5568_v41 = vadd.f32 %v5496_v37, %v5307_v17  ;;  %v5572_v53 = vadd.f32 %v5496_v37, %v5311_v19  ;;  %v7455_v14 = vld [vmem:[#allocation51_spill] sm:$0xff] }
 0x270   :  { %7436 = vst [vmem:[#allocation86_spill] sm:$0xff] %v5552_v3  ;;  %7437 = vst [vmem:[#allocation87_spill] sm:$0xff] %v5556_v57  ;;  %v5576_v55 = vadd.f32 %v5496_v37, %v5315_v23  ;;  %v5580_v59 = vadd.f32 %v5496_v37, %v5319_v35  ;;  %v5584_v7 = vadd.f32 %v5496_v37, %v5323_v13 }
 0x271   :  { %7438 = vst [vmem:[#allocation88_spill] sm:$0xff] %v5560_v18  ;;  %v5588_v17 = vadd.f32 %v5496_v37, %v5327_v10  ;;  %v5592_v19 = vadd.f32 %v5496_v37, %v5331_v24  ;;  %v5596_v23 = vadd.f32 %v5496_v37, %v5335_v11  ;;  %v5600_v35 = vadd.f32 %v5496_v37, %v5339_v27 }
 0x272   :  { %7439 = vst [vmem:[#allocation89_spill] sm:$0xff] %v5584_v7  ;;  %v5604_v13 = vadd.f32 %v5496_v37, %v5343_v12  ;;  %v5608_v10 = vadd.f32 %v5496_v37, %v5347_v34  ;;  %v5612_v24 = vadd.f32 %v5496_v37, %v5351_v50  ;;  %v5616_v11 = vadd.f32 %v5496_v37, %v5355_v20 }
 0x273   :  { %7440 = vst [vmem:[#allocation90_spill] sm:$0xff] %v5588_v17  ;;  %7441 = vst [vmem:[#allocation91_spill] sm:$0xff] %v5592_v19  ;;  %v5620_v27 = vadd.f32 %v5496_v37, %v5359_v28  ;;  %v5624_v12 = vadd.f32 %v5496_v37, %v5363_v30  ;;  %v5628_v34 = vadd.f32 %v5496_v37, %v5367_v40 }
 0x274   :  { %7442 = vst [vmem:[#allocation92_spill] sm:$0xff] %v5616_v11  ;;  %v5632_v50 = vadd.f32 %v5496_v37, %v5371_v36  ;;  %v5636_v20 = vadd.f32 %v5496_v37, %v5375_v44  ;;  %v5640_v28 = vadd.f32 %v5496_v37, %v5379_v45  ;;  %v5644_v30 = vadd.f32 %v5496_v37, %v5383_v46 }
 0x275   :  { %7443 = vst [vmem:[#allocation93_spill] sm:$0xff] %v5620_v27  ;;  %7444 = vst [vmem:[#allocation59_spill] sm:$0xff] %v5624_v12  ;;  %v5648_v40 = vadd.f32 %v5496_v37, %v5387_v52  ;;  %v5652_v36 = vadd.f32 %v5496_v37, %v5391_v56  ;;  %v5656_v44 = vadd.f32 %v5496_v37, %v5395_v60 }
 0x276   :  { %v5660_v45 = vadd.f32 %v5496_v37, %v5399_v62  ;;  %v5664_v46 = vadd.f32 %v5496_v37, %v5403_v4  ;;  %v5668_v52 = vadd.f32 %v5496_v37, %v5407_v16  ;;  %v5672_v56 = vadd.f32 %v5496_v37, %v5411_v22 }
 0x277   :  { %7445 = vst [vmem:[#allocation63_spill] sm:$0xff] %v5648_v40  ;;  %7446 = vst [vmem:[#allocation57_spill] sm:$0xff] %v5652_v36  ;;  %v5676_v60 = vadd.f32 %v5496_v37, %v5415_v26  ;;  %v5680_v62 = vadd.f32 %v5496_v37, %v5419_v38  ;;  %v5684_v4 = vadd.f32 %v5496_v37, %v5423_v48 }
 0x278   :  { %7447 = vst [vmem:[#allocation67_spill] sm:$0xff] %v5656_v44  ;;  %v5688_v16 = vadd.f32 %v5496_v37, %v5427_v54  ;;  %v5692_v22 = vadd.f32 %v5496_v37, %v5431_v58  ;;  %v5696_v26 = vadd.f32 %v5496_v37, %v5435_v6  ;;  %v5700_v38 = vadd.f32 %v5496_v37, %v5439_v32 }
 0x279   :  { %7448 = vst [vmem:[#allocation71_spill] sm:$0xff] %v5680_v62  ;;  %7449 = vst [vmem:[#allocation65_spill] sm:$0xff] %v5684_v4  ;;  %v5704_v48 = vadd.f32 %v5496_v37, %v5443_v39  ;;  %v5708_v54 = vadd.f32 %v5496_v37, %v5447_v42  ;;  %v5712_v58 = vadd.f32 %v5496_v37, %v5451_v51 }
 0x27a   :  { %7450 = vst [vmem:[#allocation69_spill] sm:$0xff] %v5688_v16  ;;  %7451 = vst [vmem:[#allocation75_spill] sm:$0xff] %v5696_v26  ;;  %v5716_v6 = vadd.f32 %v5496_v37, %v7455_v14  ;;  %v7457_v26 = vld [vmem:[#allocation55_spill] sm:$0xff]  ;;  %v5732_v51 = vadd.f32 %v5496_v37, %v5471_v29 }
 0x27b   :  { %7452 = vst [vmem:[#allocation79_spill] sm:$0xff] %v5700_v38  ;;  %7453 = vst [vmem:[#allocation73_spill] sm:$0xff] %v5704_v48  ;;  %v5720_v32 = vadd.f32 %v5496_v37, %v7457_v26  ;;  %v7459_v38 = vld [vmem:[#allocation49_spill] sm:$0xff] }
 0x27c   :  { %7454 = vst [vmem:[#allocation77_spill] sm:$0xff] %v5712_v58  ;;  %7456 = vst [vmem:[#allocation81_spill] sm:$0xff] %v5716_v6  ;;  %v5724_v39 = vadd.f32 %v5496_v37, %v7459_v38  ;;  %v7460_v48 = vld [vmem:[#allocation53_spill] sm:$0xff]  ;;  %v7463_v6 = vld [vmem:[#allocation83_spill] sm:$0xff]  ;;  %v5744_v38 = vadd.f32 %v5496_v37, %v5483_v21  ;;  %v5764_v21 = vadd.f32 %v5496_v37, %v5508_v31 }
 0x27d   :  { %7458 = vst [vmem:[#allocation101_spill] sm:$0xff] %v5720_v32  ;;  %v5728_v42 = vadd.f32 %v5496_v37, %v7460_v48  ;;  %v7462_v58 = vld [vmem:[#allocation61_spill] sm:$0xff]  ;;  %v5740_v26 = vadd.f32 %v5496_v37, %v7463_v6  ;;  %v5748_v48 = vadd.f32 %v5496_v37, %v5487_v33  ;;  %v5760_v6 = vadd.f32 %v5496_v37, %v5504_v25 }
 0x27e   :  { %v5736_v14 = vadd.f32 %v5496_v37, %v7462_v58  ;;  %v5756_v58 = vadd.f32 %v5496_v37, %v5500_v2  ;;  %7466 = vst [vmem:[#allocation95_spill] sm:$0xff] %v5764_v21  ;;  %v5768_v33 = vadd.f32 %v5496_v37, %v5512_v15  ;;  %v5776_v2 = vadd.f32 %v5496_v37, %v5520_v1 }
 0x27f   :  { %7461 = vst [vmem:[#allocation102_spill] sm:$0xff] %v5728_v42  ;;  %v7464_v42 = vld [vmem:[#allocation84_spill] sm:$0xff]  ;;  %v5780_v25 = vadd.f32 %v5496_v37, %v5524_v8  ;;  %v5784_v31 = vadd.f32 %v5496_v37, %v5528_v63  ;;  %v2734_v63 = vmax.f32 %v5568_v41, 0.0  ;;  %v2742_v8 = vmax.f32 %v5600_v35, 0.0 }
 0x280   :  { %v5752_v29 = vadd.f32 %v5496_v37, %v7464_v42  ;;  %7467 = vst [vmem:[#allocation96_spill] sm:$0xff] %v5768_v33  ;;  %v5772_v42 = vadd.f32 %v5496_v37, %v5516_v61  ;;  %7469 = vst [vmem:[#allocation98_spill] sm:$0xff] %v5776_v2  ;;  %v2741_v2 = vmax.f32 %v5596_v23, 0.0  ;;  %v2750_v1 = vmax.f32 %v5632_v50, 0.0 }
 0x281   :  { %7470 = vst [vmem:[#allocation99_spill] sm:$0xff] %v5780_v25  ;;  %v2733_v25 = vmax.f32 %v5564_v9, 0.0  ;;  %v2743_v9 = vmax.f32 %v5604_v13, 0.0  ;;  %v2751_v23 = vmax.f32 %v5636_v20, 0.0  ;;  %v2752_v35 = vmax.f32 %v5640_v28, 0.0  ;;  %v7471_v37 = vld [vmem:[#allocation75_spill] sm:$0xff] }
 0x282   :  { %7465 = vst [vmem:[#allocation103_spill] sm:$0xff] %v5752_v29  ;;  %7468 = vst [vmem:[#allocation97_spill] sm:$0xff] %v5772_v42  ;;  %v2749_v42 = vmax.f32 %v5628_v34, 0.0  ;;  %v2757_v33 = vmax.f32 %v5660_v45, 0.0  ;;  %v2758_v61 = vmax.f32 %v5664_v46, 0.0  ;;  %v2759_v34 = vmax.f32 %v5668_v52, 0.0 }
 0x283   :  { %v2760_v50 = vmax.f32 %v5672_v56, 0.0  ;;  %v2761_v20 = vmax.f32 %v5676_v60, 0.0  ;;  %v2765_v21 = vmax.f32 %v5692_v22, 0.0  ;;  %v2766_v15 = vmax.f32 %v7471_v37, 0.0  ;;  %v7472_v44 = vld [vmem:[#allocation79_spill] sm:$0xff]  ;;  %v7473_v12 = vld [vmem:[#allocation73_spill] sm:$0xff] }
 0x284   :  { %v2767_v45 = vmax.f32 %v7472_v44, 0.0  ;;  %v2768_v46 = vmax.f32 %v7473_v12, 0.0  ;;  %v2769_v52 = vmax.f32 %v5708_v54, 0.0  ;;  %v7474_v19 = vld [vmem:[#allocation77_spill] sm:$0xff]  ;;  %v2773_v13 = vmax.f32 %v5724_v39, 0.0 }
 0x285   :  { %v2770_v56 = vmax.f32 %v7474_v19, 0.0  ;;  %v2775_v22 = vmax.f32 %v5732_v51, 0.0  ;;  %v2776_v37 = vmax.f32 %v5736_v14, 0.0  ;;  %v2777_v44 = vmax.f32 %v5740_v26, 0.0  ;;  %v7477_v32 = vld [vmem:[#allocation95_spill] sm:$0xff] }
 0x286   :  { %v7476_v4 = vld [vmem:[#allocation102_spill] sm:$0xff]  ;;  %v2778_v12 = vmax.f32 %v5744_v38, 0.0  ;;  %v2779_v54 = vmax.f32 %v5748_v48, 0.0  ;;  %v2781_v60 = vmax.f32 %v5756_v58, 0.0  ;;  %v2782_v28 = vmax.f32 %v5760_v6, 0.0 }
 0x287   :  { %v2774_v41 = vmax.f32 %v7476_v4, 0.0  ;;  %v2783_v39 = vmax.f32 %v7477_v32, 0.0  ;;  %v7478_v16 = vld [vmem:[#allocation96_spill] sm:$0xff]  ;;  %v7480_v36 = vld [vmem:[#allocation98_spill] sm:$0xff]  ;;  %v2788_v38 = vmax.f32 %v5784_v31, 0.0  ;;  %v7482_v48 = vmax.f32 %v5532_v5, 0.0 }
 0x288   :  { %v2784_v4 = vmax.f32 %v7478_v16, 0.0  ;;  %v2786_v14 = vmax.f32 %v7480_v36, 0.0  ;;  %v7481_v27 = vld [vmem:[#allocation99_spill] sm:$0xff]  ;;  %v7483_v19 = vmax.f32 %v5536_v43, 0.0  ;;  %v2866_v58 = vadd.f32 %v2734_v63, %v2733_v25 }
 0x289   :  { %v7479_v18 = vld [vmem:[#allocation97_spill] sm:$0xff]  ;;  %v2787_v26 = vmax.f32 %v7481_v27, 0.0  ;;  %v2879_v17 = vadd.f32 %v2742_v8, %v2741_v2  ;;  %v2892_v6 = vadd.f32 %v2750_v1, %v2749_v42  ;;  %v2905_v57 = vadd.f32 %v2758_v61, %v2757_v33 }
 0x28a   :  { %v2785_v51 = vmax.f32 %v7479_v18, 0.0  ;;  %v2853_v29 = vadd.f32 %v7483_v19, %v7482_v48  ;;  %v2918_v32 = vadd.f32 %v2766_v15, %v2765_v21  ;;  %v2931_v62 = vadd.f32 %v2774_v41, %v2773_v13  ;;  %v7507_v48 = vld [vmem:[#allocation93_spill] sm:$0xff] }
 0x28b   :  { %v2944_v16 = vadd.f32 %v2782_v28, %v2781_v60  ;;  %v7484_v18 = vmax.f32 %v5540_v49, 0.0  ;;  %v7485_v36 = vmax.f32 %v5572_v53, 0.0  ;;  %v2880_v11 = vadd.f32 %v2879_v17, %v2743_v9  ;;  %v7499_v28 = vld [vmem:[#allocation63_spill] sm:$0xff] }
 0x28c   :  { %v2893_v31 = vadd.f32 %v2892_v6, %v2751_v23  ;;  %v2906_v7 = vadd.f32 %v2905_v57, %v2759_v34  ;;  %v2919_v5 = vadd.f32 %v2918_v32, %v2767_v45  ;;  %v2932_v3 = vadd.f32 %v2931_v62, %v2775_v22  ;;  %v7497_v34 = vld [vmem:[#allocation92_spill] sm:$0xff]  ;;  %v7509_v32 = vld [vmem:[#allocation57_spill] sm:$0xff] }
 0x28d   :  { %v2854_v40 = vadd.f32 %v2853_v29, %v7484_v18  ;;  %v2867_v27 = vadd.f32 %v2866_v58, %v7485_v36  ;;  %v2945_v43 = vadd.f32 %v2944_v16, %v2783_v39  ;;  %v7486_v25 = vmax.f32 %v5544_v0, 0.0  ;;  %v7505_v39 = vld [vmem:[#allocation90_spill] sm:$0xff]  ;;  %v7511_v36 = vld [vmem:[#allocation65_spill] sm:$0xff] }
 0x28e   :  { %v7487_v33 = vmax.f32 %v5576_v55, 0.0  ;;  %v7488_v42 = vmax.f32 %v5608_v10, 0.0  ;;  %v2894_v49 = vadd.f32 %v2893_v31, %v2752_v35  ;;  %v2907_v29 = vadd.f32 %v2906_v7, %v2760_v50  ;;  %v7493_v7 = vld [vmem:[#allocation86_spill] sm:$0xff]  ;;  %v7495_v35 = vld [vmem:[#allocation89_spill] sm:$0xff] }
 0x28f   :  { %v2855_v2 = vadd.f32 %v2854_v40, %v7486_v25  ;;  %v2920_v61 = vadd.f32 %v2919_v5, %v2768_v46  ;;  %v2933_v53 = vadd.f32 %v2932_v3, %v2776_v37  ;;  %v2946_v1 = vadd.f32 %v2945_v43, %v2784_v4  ;;  %v7501_v46 = vld [vmem:[#allocation71_spill] sm:$0xff]  ;;  %v7513_v5 = vld [vmem:[#allocation81_spill] sm:$0xff]  ;;  %v7515_v25 = vld [vmem:[#allocation88_spill] sm:$0xff] }
 0x290   :  { %v2868_v21 = vadd.f32 %v2867_v27, %v7487_v33  ;;  %v2881_v15 = vadd.f32 %v2880_v11, %v7488_v42  ;;  %v7489_v17 = vmax.f32 %v5548_v47, 0.0  ;;  %v7490_v62 = vmax.f32 %v5580_v59, 0.0  ;;  %v7503_v37 = vld [vmem:[#allocation87_spill] sm:$0xff] }
 0x291   :  { %v7491_v0 = vmax.f32 %v5612_v24, 0.0  ;;  %v7492_v55 = vmax.f32 %v5644_v30, 0.0  ;;  %v2908_v9 = vadd.f32 %v2907_v29, %v2761_v20  ;;  %v2921_v10 = vadd.f32 %v2920_v61, %v2769_v52 }
 0x292   :  { %v2856_v57 = vadd.f32 %v2855_v2, %v7489_v17  ;;  %v2869_v8 = vadd.f32 %v2868_v21, %v7490_v62  ;;  %v2934_v11 = vadd.f32 %v2933_v53, %v2777_v44  ;;  %v2947_v41 = vadd.f32 %v2946_v1, %v2785_v51  ;;  %v7517_v21 = vld [vmem:[#allocation91_spill] sm:$0xff] }
 0x293   :  { %v2882_v40 = vadd.f32 %v2881_v15, %v7491_v0  ;;  %v2895_v63 = vadd.f32 %v2894_v49, %v7492_v55  ;;  %v7494_v23 = vmax.f32 %v7493_v7, 0.0  ;;  %v7496_v13 = vmax.f32 %v7495_v35, 0.0  ;;  %v7519_v49 = vld [vmem:[#allocation59_spill] sm:$0xff]  ;;  %v7525_v0 = vld [vmem:[#allocation101_spill] sm:$0xff] }
 0x294   :  { %v7498_v50 = vmax.f32 %v7497_v34, 0.0  ;;  %v7500_v45 = vmax.f32 %v7499_v28, 0.0  ;;  %v7502_v60 = vmax.f32 %v7501_v46, 0.0  ;;  %v2922_v22 = vadd.f32 %v2921_v10, %v2770_v56  ;;  %v7521_v53 = vld [vmem:[#allocation67_spill] sm:$0xff] }
 0x295   :  { %v2857_v3 = vadd.f32 %v2856_v57, %v7494_v23  ;;  %v2870_v47 = vadd.f32 %v2869_v8, %v7496_v13  ;;  %v2935_v20 = vadd.f32 %v2934_v11, %v2778_v12  ;;  %v2948_v52 = vadd.f32 %v2947_v41, %v2786_v14  ;;  %v7523_v57 = vld [vmem:[#allocation69_spill] sm:$0xff] }
 0x296   :  { %v2883_v59 = vadd.f32 %v2882_v40, %v7498_v50  ;;  %v2896_v24 = vadd.f32 %v2895_v63, %v7500_v45  ;;  %v2909_v30 = vadd.f32 %v2908_v9, %v7502_v60  ;;  %v7504_v44 = vmax.f32 %v7503_v37, 0.0 }
 0x297   :  { %v7506_v4 = vmax.f32 %v7505_v39, 0.0  ;;  %v7508_v58 = vmax.f32 %v7507_v48, 0.0  ;;  %v7510_v16 = vmax.f32 %v7509_v32, 0.0  ;;  %v7512_v27 = vmax.f32 %v7511_v36, 0.0 }
 0x298   :  { %v2858_v19 = vadd.f32 %v2857_v3, %v7504_v44  ;;  %v7514_v43 = vmax.f32 %v7513_v5, 0.0  ;;  %v2936_v12 = vadd.f32 %v2935_v20, %v2779_v54  ;;  %v2949_v14 = vadd.f32 %v2948_v52, %v2787_v26  ;;  %v7527_v54 = vld [vmem:[#allocation103_spill] sm:$0xff] }
 0x299   :  { %v2871_v51 = vadd.f32 %v2870_v47, %v7506_v4  ;;  %v2884_v6 = vadd.f32 %v2883_v59, %v7508_v58  ;;  %v2897_v18 = vadd.f32 %v2896_v24, %v7510_v16  ;;  %v2910_v31 = vadd.f32 %v2909_v30, %v7512_v27 }
 0x29a   :  { %v2923_v56 = vadd.f32 %v2922_v22, %v7514_v43  ;;  %v7516_v2 = vmax.f32 %v7515_v25, 0.0  ;;  %v7518_v42 = vmax.f32 %v7517_v21, 0.0  ;;  %v7520_v29 = vmax.f32 %v7519_v49, 0.0 }
 0x29b   :  { %v7522_v1 = vmax.f32 %v7521_v53, 0.0  ;;  %v7524_v62 = vmax.f32 %v7523_v57, 0.0  ;;  %v7526_v40 = vmax.f32 %v7525_v0, 0.0  ;;  %v7528_v26 = vmax.f32 %v7527_v54, 0.0 }
 0x29c   :  { %v2859_v33 = vadd.f32 %v2858_v19, %v7516_v2  ;;  %v2872_v15 = vadd.f32 %v2871_v51, %v7518_v42  ;;  %v2885_v61 = vadd.f32 %v2884_v6, %v7520_v29  ;;  %v2950_v9 = vadd.f32 %v2949_v14, %v2788_v38 }
 0x29d   :  { %v2898_v17 = vadd.f32 %v2897_v18, %v7522_v1  ;;  %v2911_v8 = vadd.f32 %v2910_v31, %v7524_v62  ;;  %v2924_v55 = vadd.f32 %v2923_v56, %v7526_v40  ;;  %v2937_v63 = vadd.f32 %v2936_v12, %v7528_v26  ;;  %v7529_v26 = vld [vmem:[#allocation82_spill] sm:$0xff] }
 0x29e   :  { %v2860_v10 = vrot.slane %v2859_v33, 4  ;;  %v2873_v11 = vrot.slane %v2872_v15, 4  ;;  %v2886_v41 = vrot.slane %v2885_v61, 4  ;;  %v2951_v13 = vrot.slane %v2950_v9, 4 }
 0x29f   :  { %v2899_v7 = vrot.slane %v2898_v17, 4  ;;  %v2912_v23 = vrot.slane %v2911_v8, 4  ;;  %v2925_v3 = vrot.slane %v2924_v55, 4  ;;  %v2938_v35 = vrot.slane %v2937_v63, 4 }
 0x2a0   :  { %v2861_v47 = vadd.f32 %v2860_v10, %v2859_v33  ;;  %v2874_v34 = vadd.f32 %v2873_v11, %v2872_v15  ;;  %v2887_v50 = vadd.f32 %v2886_v41, %v2885_v61  ;;  %v2952_v46 = vadd.f32 %v2951_v13, %v2950_v9 }
 0x2a1   :  { %v2900_v59 = vadd.f32 %v2899_v7, %v2898_v17  ;;  %v2913_v28 = vadd.f32 %v2912_v23, %v2911_v8  ;;  %v2926_v45 = vadd.f32 %v2925_v3, %v2924_v55  ;;  %v2939_v24 = vadd.f32 %v2938_v35, %v2937_v63  ;;  %v7530_v23 = vld [vmem:[#allocation104_spill] sm:$0xff] }
 0x2a2   :  { %v2862_v60 = vrot.slane %v2861_v47, 2  ;;  %v2875_v30 = vrot.slane %v2874_v34, 2  ;;  %v2888_v22 = vrot.slane %v2887_v50, 2  ;;  %v2953_v44 = vrot.slane %v2952_v46, 2 }
 0x2a3   :  { %v2901_v38 = vrot.slane %v2900_v59, 2  ;;  %v2914_v20 = vrot.slane %v2913_v28, 2  ;;  %v2927_v52 = vrot.slane %v2926_v45, 2  ;;  %v2940_v37 = vrot.slane %v2939_v24, 2 }
 0x2a4   :  { %v2863_v19 = vadd.f32 %v2862_v60, %v2861_v47  ;;  %v2876_v39 = vadd.f32 %v2875_v30, %v2874_v34  ;;  %v2889_v4 = vadd.f32 %v2888_v22, %v2887_v50  ;;  %v2954_v32 = vadd.f32 %v2953_v44, %v2952_v46  ;;  %v7531_v34 = vld [vmem:[#allocation94_spill] sm:$0xff] }
 0x2a5   :  { %v2902_v51 = vadd.f32 %v2901_v38, %v2900_v59  ;;  %v2915_v48 = vadd.f32 %v2914_v20, %v2913_v28  ;;  %v2928_v58 = vadd.f32 %v2927_v52, %v2926_v45  ;;  %v2941_v6 = vadd.f32 %v2940_v37, %v2939_v24  ;;  %v7532_v45 = vld [vmem:[#allocation105_spill] sm:$0xff]  ;;  %v7533_v37 = vld [vmem:[#allocation106_spill] sm:$0xff] }
 0x2a6   :  { %v2864_v16 = vrot.slane %v2863_v19, 1  ;;  %v2877_v18 = vrot.slane %v2876_v39, 1  ;;  %v2890_v36 = vrot.slane %v2889_v4, 1  ;;  %v2955_v56 = vrot.slane %v2954_v32, 1 }
 0x2a7   :  { %v2903_v27 = vrot.slane %v2902_v51, 1  ;;  %v2916_v31 = vrot.slane %v2915_v48, 1  ;;  %v2929_v5 = vrot.slane %v2928_v58, 1  ;;  %v2942_v43 = vrot.slane %v2941_v6, 1 }
 0x2a8   :  { %v2865_v12 = vadd.f32 %v2864_v16, %v2863_v19  ;;  %v2878_v14 = vadd.f32 %v2877_v18, %v2876_v39  ;;  %v2891_v25 = vadd.f32 %v2890_v36, %v2889_v4  ;;  %v2956_v15 = vadd.f32 %v2955_v56, %v2954_v32 }
 0x2a9   :  { %v2904_v2 = vadd.f32 %v2903_v27, %v2902_v51  ;;  %v2917_v33 = vadd.f32 %v2916_v31, %v2915_v48  ;;  %v2930_v21 = vadd.f32 %v2929_v5, %v2928_v58  ;;  %v2943_v42 = vadd.f32 %v2942_v43, %v2941_v6  ;;  %v7534_v43 = vld [vmem:[#allocation4_spill] sm:$0xff] }
 0x2aa   :  { %v3062_v49 = vmul.f32 0.015625, %v2865_v12  ;;  %v3063_v29 = vmul.f32 0.015625, %v2878_v14  ;;  %v3064_v61 = vmul.f32 0.015625, %v2891_v25  ;;  %v3069_v62 = vmul.f32 0.015625, %v2956_v15  ;;  %v7535_v12 = vld [vmem:[#allocation6_spill] sm:$0xff]  ;;  %v7536_v25 = vld [vmem:[#allocation3_spill] sm:$0xff] }
 0x2ab   :  { %v3065_v53 = vmul.f32 0.015625, %v2904_v2  ;;  %v3066_v1 = vmul.f32 0.015625, %v2917_v33  ;;  %v3067_v17 = vmul.f32 0.015625, %v2930_v21  ;;  %v3068_v57 = vmul.f32 0.015625, %v2943_v42  ;;  %v7537_v33 = vld [vmem:[#allocation5_spill] sm:$0xff]  ;;  %v7538_v42 = vld [vmem:[#allocation8_spill] sm:$0xff] }
 0x2ac   :  { %v3279_v8 = vpack.c.bf16 %v3062_v49, %v3062_v49  ;;  %v3280_v0 = vpack.c.bf16 %v3063_v29, %v3063_v29  ;;  %v3281_v40 = vpack.c.bf16 %v3064_v61, %v3064_v61  ;;  %v2179_v63 = vmul.f32 %v7529_v26, %v7529_v26  ;;  %v7539_v49 = vld [vmem:[#allocation10_spill] sm:$0xff]  ;;  %v7540_v61 = vld [vmem:[#allocation7_spill] sm:$0xff] }
 0x2ad   :  { %v3282_v55 = vpack.c.bf16 %v3065_v53, %v3065_v53  ;;  %v3283_v54 = vpack.c.bf16 %v3066_v1, %v3066_v1  ;;  %v3284_v9 = vpack.c.bf16 %v3067_v17, %v3067_v17  ;;  %v3285_v7 = vpack.c.bf16 %v3068_v57, %v3068_v57  ;;  %v7541_v1 = vld [vmem:[#allocation9_spill] sm:$0xff]  ;;  %v7542_v57 = vld [vmem:[#allocation12_spill] sm:$0xff] }
 0x2ae   :  { %v3142_v10 = vunpack.c.l.b16 %v3279_v8  ;;  %v3143_v11 = vunpack.c.l.b16 %v3280_v0  ;;  %v3144_v41 = vunpack.c.l.b16 %v3281_v40  ;;  %v2180_v3 = vmul.f32 %v7530_v23, %v7530_v23  ;;  %v7543_v8 = vld [vmem:[#allocation14_spill] sm:$0xff]  ;;  %v7544_v40 = vld [vmem:[#allocation11_spill] sm:$0xff] }
 0x2af   :  { %v3286_v35 = vpack.c.bf16 %v3069_v62, %v3069_v62  ;;  %v3145_v13 = vunpack.c.l.b16 %v3282_v55  ;;  %v2311_v50 = vadd.f32 %v7531_v34, %v2179_v63  ;;  %v3146_v59 = vunpack.c.l.b16 %v3283_v54  ;;  %v7545_v54 = vld [vmem:[#allocation13_spill] sm:$0xff] }
 0x2b0   :  { %v3159_v47 = vsel %vm3158_vm0, %v3143_v11, %v3142_v10  ;;  %v2181_v24 = vmul.f32 %v7532_v45, %v7532_v45  ;;  %v3147_v46 = vunpack.c.l.b16 %v3284_v9  ;;  %v3148_v22 = vunpack.c.l.b16 %v3285_v7  ;;  %v7546_v9 = vld [vmem:[#allocation16_spill] sm:$0xff]  ;;  %v7547_v11 = vld [vmem:[#allocation18_spill] sm:$0xff]  ;;  %v7548_v7 = vld [vmem:[#allocation15_spill] sm:$0xff] }
 0x2b1   :  { %v3161_v28 = vsel %vm3160_vm1, %v3144_v41, %v3159_v47  ;;  %v2312_v30 = vadd.f32 %v2311_v50, %v2180_v3  ;;  %v3149_v20 = vunpack.c.l.b16 %v3286_v35  ;;  %v2182_v44 = vmul.f32 %v7533_v37, %v7533_v37  ;;  %v7549_v35 = vld [vmem:[#allocation17_spill] sm:$0xff]  ;;  %v7550_v47 = vld [vmem:[#allocation20_spill] sm:$0xff]  ;;  %v7551_v50 = vld [vmem:[#allocation22_spill] sm:$0xff] }
 0x2b2   :  { %v3163_v60 = vsel %vm3162_vm2, %v3145_v13, %v3161_v28  ;;  %v7552_v28 = vld [vmem:[#allocation19_spill] sm:$0xff] }
 0x2b3   :  { %v3165_v38 = vsel %vm3164_vm3, %v3146_v59, %v3163_v60  ;;  %v2313_v19 = vadd.f32 %v2312_v30, %v2181_v24  ;;  %v7554_v30 = vld [vmem:[#allocation24_spill] sm:$0xff] }
 0x2b4   :  { %v3167_v52 = vsel %vm3166_vm4, %v3147_v46, %v3165_v38  ;;  %v7553_v46 = vld [vmem:[#allocation21_spill] sm:$0xff]  ;;  %v7555_v38 = vld [vmem:[#allocation26_spill] sm:$0xff] }
 0x2b5   :  { %v3169_v39 = vsel %vm3168_vm5, %v3148_v22, %v3167_v52  ;;  %v2314_v51 = vadd.f32 %v2313_v19, %v2182_v44  ;;  %v7556_v52 = vld [vmem:[#allocation23_spill] sm:$0xff]  ;;  %v7557_v19 = vld [vmem:[#allocation25_spill] sm:$0xff] }
 0x2b6   :  { %v3171_v4 = vsel %vm3170_vm6, %v3149_v20, %v3169_v39 }
 0x2b7   :  { %v3179_v48 = vpack.c.b16 %v3171_v4, %v3171_v4  ;;  %v2315_v58 = vrot.slane %v2314_v51, 4  ;;  %v7558_v4 = vld [vmem:[#allocation28_spill] sm:$0xff] }
 0x2b9   :  { %3183 = vst [vmem:[%s6833_s4] sm:$0xf] %v3179_v48  ;;  %v2316_v6 = vadd.f32 %v2315_v58, %v2314_v51  ;;  %v7559_v48 = vld [vmem:[#allocation30_spill] sm:$0xff] }
 0x2bb   :  { %v2317_v32 = vrot.slane %v2316_v6, 2 }
 0x2bd   :  { %v2318_v16 = vadd.f32 %v2317_v32, %v2316_v6  ;;  %v7560_v6 = vld [vmem:[#allocation27_spill] sm:$0xff] }
 0x2bf   :  { %v2319_v18 = vrot.slane %v2318_v16, 1 }
 0x2c1   :  { %v2320_v36 = vadd.f32 %v2319_v18, %v2318_v16  ;;  %v7561_v16 = vld [vmem:[#allocation29_spill] sm:$0xff] }
 0x2c3   :  { %v2322_v27 = vmul.f32 0.001953125, %v2320_v36  ;;  %v7562_v36 = vld [vmem:[#allocation32_spill] sm:$0xff] }
 0x2c5   :  { %v2324_v31 = vadd.f32 1e-05, %v2322_v27 }
 0x2c7   :  { %3601 = vrsqrt.f32 %v2324_v31  ;;  %v7563_v31 = vld [vmem:[#allocation34_spill] sm:$0xff] }
 0x2d1   :  { %v5927_v5 = vpop.eup %3601 }
 0x2d2   :  { %v5931_v56 = vmul.f32 %v5927_v5, %v7534_v43  ;;  %v5935_v14 = vmul.f32 %v5927_v5, %v7535_v12  ;;  %v5939_v2 = vmul.f32 %v5927_v5, %v7536_v25  ;;  %v5943_v21 = vmul.f32 %v5927_v5, %v7537_v33  ;;  %v7564_v12 = vld [vmem:[#allocation31_spill] sm:$0xff]  ;;  %v7565_v33 = vld [vmem:[#allocation33_spill] sm:$0xff] }
 0x2d3   :  { %v5947_v15 = vmul.f32 %v5927_v5, %v7538_v42  ;;  %v5951_v29 = vmul.f32 %v5927_v5, %v7539_v49  ;;  %v5955_v53 = vmul.f32 %v5927_v5, %v7540_v61  ;;  %v5959_v17 = vmul.f32 %v5927_v5, %v7541_v1  ;;  %v7566_v49 = vld [vmem:[#allocation36_spill] sm:$0xff]  ;;  %v7567_v1 = vld [vmem:[#allocation38_spill] sm:$0xff] }
 0x2d4   :  { %v5963_v62 = vmul.f32 %v5927_v5, %v7542_v57  ;;  %v5967_v0 = vmul.f32 %v5927_v5, %v7543_v8  ;;  %v5971_v55 = vmul.f32 %v5927_v5, %v7544_v40  ;;  %v5975_v63 = vmul.f32 %v5927_v5, %v7545_v54  ;;  %v7568_v8 = vld [vmem:[#allocation35_spill] sm:$0xff]  ;;  %v7569_v54 = vld [vmem:[#allocation37_spill] sm:$0xff] }
 0x2d5   :  { %v5979_v10 = vmul.f32 %v5927_v5, %v7546_v9  ;;  %v5983_v41 = vmul.f32 %v5927_v5, %v7547_v11  ;;  %v5987_v3 = vmul.f32 %v5927_v5, %v7548_v7  ;;  %v5991_v13 = vmul.f32 %v5927_v5, %v7549_v35  ;;  %v7570_v11 = vld [vmem:[#allocation40_spill] sm:$0xff]  ;;  %v7571_v35 = vld [vmem:[#allocation42_spill] sm:$0xff] }
 0x2d6   :  { %v5995_v34 = vmul.f32 %v5927_v5, %v7550_v47  ;;  %v5999_v59 = vmul.f32 %v5927_v5, %v7551_v50  ;;  %v6003_v24 = vmul.f32 %v5927_v5, %v7552_v28  ;;  %v6007_v60 = vmul.f32 %v5927_v5, %v7553_v46  ;;  %v7572_v50 = vld [vmem:[#allocation39_spill] sm:$0xff]  ;;  %v7573_v46 = vld [vmem:[#allocation41_spill] sm:$0xff] }
 0x2d7   :  { %v6011_v22 = vmul.f32 %v5927_v5, %v7554_v30  ;;  %v6015_v20 = vmul.f32 %v5927_v5, %v7555_v38  ;;  %v6019_v44 = vmul.f32 %v5927_v5, %v7556_v52  ;;  %v6023_v39 = vmul.f32 %v5927_v5, %v7557_v19  ;;  %v7574_v38 = vld [vmem:[#allocation45_spill] sm:$0xff]  ;;  %v7575_v19 = vld [vmem:[#allocation48_spill] sm:$0xff] }
 0x2d8   :  { %v6027_v51 = vmul.f32 %v5927_v5, %v7558_v4  ;;  %v6031_v58 = vmul.f32 %v5927_v5, %v7559_v48  ;;  %v6035_v32 = vmul.f32 %v5927_v5, %v7560_v6  ;;  %v6039_v18 = vmul.f32 %v5927_v5, %v7561_v16  ;;  %v7576_v48 = vld [vmem:[#allocation44_spill] sm:$0xff]  ;;  %v7577_v16 = vld [vmem:[#allocation47_spill] sm:$0xff] }
 0x2d9   :  { %v6043_v27 = vmul.f32 %v5927_v5, %v7562_v36  ;;  %v6047_v43 = vmul.f32 %v5927_v5, %v7563_v31  ;;  %v6051_v25 = vmul.f32 %v5927_v5, %v7564_v12  ;;  %v6055_v42 = vmul.f32 %v5927_v5, %v7565_v33  ;;  %v7578_v31 = vld [vmem:[#allocation52_spill] sm:$0xff] }
 0x2da   :  { %v6059_v61 = vmul.f32 %v5927_v5, %v7566_v49  ;;  %v6063_v57 = vmul.f32 %v5927_v5, %v7567_v1  ;;  %v6067_v40 = vmul.f32 %v5927_v5, %v7568_v8  ;;  %v6071_v9 = vmul.f32 %v5927_v5, %v7569_v54  ;;  %v7579_v33 = vld [vmem:[#allocation56_spill] sm:$0xff]  ;;  %v7580_v1 = vld [vmem:[#allocation50_spill] sm:$0xff] }
 0x2db   :  { %v6075_v7 = vmul.f32 %v5927_v5, %v7570_v11  ;;  %v6079_v47 = vmul.f32 %v5927_v5, %v7571_v35  ;;  %v6083_v28 = vmul.f32 %v5927_v5, %v7572_v50  ;;  %v6087_v30 = vmul.f32 %v5927_v5, %v7573_v46  ;;  %v7581_v54 = vld [vmem:[#allocation54_spill] sm:$0xff]  ;;  %v7582_v35 = vld [vmem:[#allocation60_spill] sm:$0xff] }
 0x2dc   :  { %v6091_v52 = vmul.f32 %v5927_v5, %v7574_v38  ;;  %v6095_v4 = vmul.f32 %v5927_v5, %v7575_v19  ;;  %v6099_v6 = vmul.f32 %v5927_v5, %v7576_v48  ;;  %v6103_v36 = vmul.f32 %v5927_v5, %v7577_v16  ;;  %v7584_v46 = vld [vmem:[#allocation64_spill] sm:$0xff]  ;;  %v7586_v19 = vld [vmem:[#allocation58_spill] sm:$0xff] }
 0x2dd   :  { %v6107_v12 = vmul.f32 %v5927_v5, %v7578_v31  ;;  %v6111_v49 = vmul.f32 %v5927_v5, %v7579_v33  ;;  %v6115_v8 = vmul.f32 %v5927_v5, %v7580_v1  ;;  %v6119_v11 = vmul.f32 %v5927_v5, %v7581_v54  ;;  %v7588_v16 = vld [vmem:[#allocation62_spill] sm:$0xff]  ;;  %v7590_v33 = vld [vmem:[#allocation68_spill] sm:$0xff] }
 0x2de   :  { %v6123_v50 = vmul.f32 %v5927_v5, %v7582_v35  ;;  %v6127_v38 = vmul.f32 %v5927_v5, %v7584_v46  ;;  %v6131_v48 = vmul.f32 %v5927_v5, %v7586_v19  ;;  %v6135_v31 = vmul.f32 %v5927_v5, %v7588_v16  ;;  %v7592_v54 = vld [vmem:[#allocation72_spill] sm:$0xff] }
 0x2df   :  { %v6139_v1 = vmul.f32 %v5927_v5, %v7590_v33  ;;  %v6143_v35 = vmul.f32 %v5927_v5, %v7592_v54 }
 0x2e0   :  { %7583 = vst [vmem:[#allocation43_spill] sm:$0xff] %v6123_v50  ;;  %7585 = vst [vmem:[#allocation46_spill] sm:$0xff] %v6127_v38  ;;  %v7594_v50 = vld [vmem:[#allocation66_spill] sm:$0xff] }
 0x2e1   :  { %7587 = vst [vmem:[#allocation51_spill] sm:$0xff] %v6131_v48  ;;  %7589 = vst [vmem:[#allocation55_spill] sm:$0xff] %v6135_v31  ;;  %v6147_v46 = vmul.f32 %v5927_v5, %v7594_v50  ;;  %v7595_v38 = vld [vmem:[#allocation70_spill] sm:$0xff]  ;;  %v7596_v48 = vld [vmem:[#allocation76_spill] sm:$0xff] }
 0x2e2   :  { %7591 = vst [vmem:[#allocation49_spill] sm:$0xff] %v6139_v1  ;;  %7593 = vst [vmem:[#allocation53_spill] sm:$0xff] %v6143_v35  ;;  %v6151_v19 = vmul.f32 %v5927_v5, %v7595_v38  ;;  %v6155_v16 = vmul.f32 %v5927_v5, %v7596_v48  ;;  %v7597_v31 = vld [vmem:[#allocation80_spill] sm:$0xff]  ;;  %v7598_v1 = vld [vmem:[#allocation74_spill] sm:$0xff]  ;;  %v6171_v38 = vmul.f32 %v5927_v5, %v7529_v26 }
 0x2e3   :  { %v6159_v33 = vmul.f32 %v5927_v5, %v7597_v31  ;;  %v6163_v54 = vmul.f32 %v5927_v5, %v7598_v1  ;;  %v7600_v35 = vld [vmem:[#allocation78_spill] sm:$0xff]  ;;  %v6175_v48 = vmul.f32 %v5927_v5, %v7530_v23  ;;  %v6179_v31 = vmul.f32 %v5927_v5, %v7532_v45 }
 0x2e4   :  { %v6167_v50 = vmul.f32 %v5927_v5, %v7600_v35  ;;  %v6183_v1 = vmul.f32 %v5927_v5, %v7533_v37 }
 0x2e5   :  { %7599 = vst [vmem:[#allocation61_spill] sm:$0xff] %v6163_v54  ;;  %v7601_v54 = vld [vmem:[#allocation100_spill] sm:$0xff] }
 0x2e6   :  { %v6187_v35 = vmul.f32 %v7601_v54, %v5931_v56  ;;  %v6191_v26 = vmul.f32 %v7601_v54, %v5935_v14  ;;  %v6195_v23 = vmul.f32 %v7601_v54, %v5939_v2  ;;  %v6199_v45 = vmul.f32 %v7601_v54, %v5943_v21 }
 0x2e7   :  { %v6203_v37 = vmul.f32 %v7601_v54, %v5947_v15  ;;  %v6207_v5 = vmul.f32 %v7601_v54, %v5951_v29  ;;  %v6211_v56 = vmul.f32 %v7601_v54, %v5955_v53  ;;  %v6215_v14 = vmul.f32 %v7601_v54, %v5959_v17 }
 0x2e8   :  { %v6219_v2 = vmul.f32 %v7601_v54, %v5963_v62  ;;  %v6223_v21 = vmul.f32 %v7601_v54, %v5967_v0  ;;  %v6227_v15 = vmul.f32 %v7601_v54, %v5971_v55  ;;  %v6231_v29 = vmul.f32 %v7601_v54, %v5975_v63 }
 0x2e9   :  { %v6235_v53 = vmul.f32 %v7601_v54, %v5979_v10  ;;  %v6239_v17 = vmul.f32 %v7601_v54, %v5983_v41  ;;  %v6243_v62 = vmul.f32 %v7601_v54, %v5987_v3  ;;  %v6247_v0 = vmul.f32 %v7601_v54, %v5991_v13 }
 0x2ea   :  { %v6251_v55 = vmul.f32 %v7601_v54, %v5995_v34  ;;  %v6255_v63 = vmul.f32 %v7601_v54, %v5999_v59  ;;  %v6259_v10 = vmul.f32 %v7601_v54, %v6003_v24  ;;  %v6263_v41 = vmul.f32 %v7601_v54, %v6007_v60 }
 0x2eb   :  { %v6267_v3 = vmul.f32 %v7601_v54, %v6011_v22  ;;  %v6271_v13 = vmul.f32 %v7601_v54, %v6015_v20  ;;  %v6275_v34 = vmul.f32 %v7601_v54, %v6019_v44  ;;  %v6279_v59 = vmul.f32 %v7601_v54, %v6023_v39 }
 0x2ec   :  { %v6283_v24 = vmul.f32 %v7601_v54, %v6027_v51  ;;  %v6287_v60 = vmul.f32 %v7601_v54, %v6031_v58  ;;  %v6291_v22 = vmul.f32 %v7601_v54, %v6035_v32  ;;  %v6295_v20 = vmul.f32 %v7601_v54, %v6039_v18 }
 0x2ed   :  { %v6299_v44 = vmul.f32 %v7601_v54, %v6043_v27  ;;  %v6303_v39 = vmul.f32 %v7601_v54, %v6047_v43  ;;  %v6307_v51 = vmul.f32 %v7601_v54, %v6051_v25  ;;  %v6311_v58 = vmul.f32 %v7601_v54, %v6055_v42 }
 0x2ee   :  { %v6315_v32 = vmul.f32 %v7601_v54, %v6059_v61  ;;  %v6319_v18 = vmul.f32 %v7601_v54, %v6063_v57  ;;  %v6323_v27 = vmul.f32 %v7601_v54, %v6067_v40  ;;  %v6327_v43 = vmul.f32 %v7601_v54, %v6071_v9 }
 0x2ef   :  { %v6331_v25 = vmul.f32 %v7601_v54, %v6075_v7  ;;  %v6335_v42 = vmul.f32 %v7601_v54, %v6079_v47  ;;  %v6339_v61 = vmul.f32 %v7601_v54, %v6083_v28  ;;  %v6343_v57 = vmul.f32 %v7601_v54, %v6087_v30 }
 0x2f0   :  { %v6347_v40 = vmul.f32 %v7601_v54, %v6091_v52  ;;  %v6351_v9 = vmul.f32 %v7601_v54, %v6095_v4  ;;  %v6355_v7 = vmul.f32 %v7601_v54, %v6099_v6  ;;  %v6359_v47 = vmul.f32 %v7601_v54, %v6103_v36  ;;  %v7607_v6 = vld [vmem:[#allocation43_spill] sm:$0xff] }
 0x2f1   :  { %v6363_v28 = vmul.f32 %v7601_v54, %v6107_v12  ;;  %v6367_v30 = vmul.f32 %v7601_v54, %v6111_v49  ;;  %v6371_v52 = vmul.f32 %v7601_v54, %v6115_v8  ;;  %v6375_v4 = vmul.f32 %v7601_v54, %v6119_v11 }
 0x2f2   :  { %7602 = vst [vmem:[#allocation83_spill] sm:$0xff] %v6359_v47  ;;  %v6379_v36 = vmul.f32 %v7601_v54, %v7607_v6  ;;  %v7608_v47 = vld [vmem:[#allocation46_spill] sm:$0xff] }
 0x2f3   :  { %7603 = vst [vmem:[#allocation84_spill] sm:$0xff] %v6363_v28  ;;  %7604 = vst [vmem:[#allocation75_spill] sm:$0xff] %v6367_v30  ;;  %v6383_v12 = vmul.f32 %v7601_v54, %v7608_v47  ;;  %v7609_v28 = vld [vmem:[#allocation51_spill] sm:$0xff]  ;;  %v6403_v47 = vmul.f32 %v7601_v54, %v6147_v46  ;;  %v6423_v46 = vmul.f32 %v7601_v54, %v6167_v50 }
 0x2f4   :  { %7605 = vst [vmem:[#allocation79_spill] sm:$0xff] %v6371_v52  ;;  %7606 = vst [vmem:[#allocation73_spill] sm:$0xff] %v6375_v4  ;;  %v6387_v49 = vmul.f32 %v7601_v54, %v7609_v28  ;;  %v7610_v30 = vld [vmem:[#allocation55_spill] sm:$0xff]  ;;  %v7611_v52 = vld [vmem:[#allocation49_spill] sm:$0xff]  ;;  %v6407_v28 = vmul.f32 %v7601_v54, %v6151_v19  ;;  %v6427_v19 = vmul.f32 %v7601_v54, %v6171_v38 }
 0x2f5   :  { %v6391_v8 = vmul.f32 %v7601_v54, %v7610_v30  ;;  %v6395_v11 = vmul.f32 %v7601_v54, %v7611_v52  ;;  %v7613_v4 = vld [vmem:[#allocation53_spill] sm:$0xff]  ;;  %v6411_v30 = vmul.f32 %v7601_v54, %v6155_v16  ;;  %v6415_v52 = vmul.f32 %v7601_v54, %v6159_v33 }
 0x2f6   :  { %v6399_v6 = vmul.f32 %v7601_v54, %v7613_v4  ;;  %v6431_v16 = vmul.f32 %v7601_v54, %v6175_v48  ;;  %v6435_v33 = vmul.f32 %v7601_v54, %v6179_v31 }
 0x2f7   :  { %7612 = vst [vmem:[#allocation77_spill] sm:$0xff] %v6395_v11  ;;  %v7614_v11 = vld [vmem:[#allocation61_spill] sm:$0xff] }
 0x2f8   :  { %v6419_v4 = vmul.f32 %v7601_v54, %v7614_v11  ;;  %v6439_v11 = vmul.f32 %v7601_v54, %v6183_v1 }
 0x2fa   :  { %7615 = vst [vmem:[#allocation102_spill] sm:$0xff] %v6419_v4  ;;  %v7616_v4 = vld [vmem:[#allocation85_spill] sm:$0xff] }
 0x2fb   :  { %v6443_v50 = vadd.f32 %v7616_v4, %v6187_v35  ;;  %v6447_v38 = vadd.f32 %v7616_v4, %v6191_v26  ;;  %v6451_v48 = vadd.f32 %v7616_v4, %v6195_v23  ;;  %v6455_v31 = vadd.f32 %v7616_v4, %v6199_v45 }
 0x2fc   :  { %v6459_v54 = vadd.f32 %v7616_v4, %v6203_v37  ;;  %v6463_v1 = vadd.f32 %v7616_v4, %v6207_v5  ;;  %v6467_v35 = vadd.f32 %v7616_v4, %v6211_v56  ;;  %v6471_v26 = vadd.f32 %v7616_v4, %v6215_v14 }
 0x2fd   :  { %v6475_v23 = vadd.f32 %v7616_v4, %v6219_v2  ;;  %v6479_v45 = vadd.f32 %v7616_v4, %v6223_v21  ;;  %v6483_v37 = vadd.f32 %v7616_v4, %v6227_v15  ;;  %v6487_v5 = vadd.f32 %v7616_v4, %v6231_v29 }
 0x2fe   :  { %7617 = vst [vmem:[#allocation95_spill] sm:$0xff] %v6463_v1  ;;  %7618 = vst [vmem:[#allocation96_spill] sm:$0xff] %v6467_v35  ;;  %v6491_v56 = vadd.f32 %v7616_v4, %v6235_v53  ;;  %v6495_v14 = vadd.f32 %v7616_v4, %v6239_v17  ;;  %v6499_v2 = vadd.f32 %v7616_v4, %v6243_v62 }
 0x2ff   :  { %7619 = vst [vmem:[#allocation97_spill] sm:$0xff] %v6471_v26  ;;  %v6503_v21 = vadd.f32 %v7616_v4, %v6247_v0  ;;  %v6507_v15 = vadd.f32 %v7616_v4, %v6251_v55  ;;  %v6511_v29 = vadd.f32 %v7616_v4, %v6255_v63  ;;  %v6515_v53 = vadd.f32 %v7616_v4, %v6259_v10 }
 0x300   :  { %7620 = vst [vmem:[#allocation98_spill] sm:$0xff] %v6495_v14  ;;  %7621 = vst [vmem:[#allocation99_spill] sm:$0xff] %v6499_v2  ;;  %v6519_v17 = vadd.f32 %v7616_v4, %v6263_v41  ;;  %v6523_v62 = vadd.f32 %v7616_v4, %v6267_v3  ;;  %v6527_v0 = vadd.f32 %v7616_v4, %v6271_v13 }
 0x301   :  { %7622 = vst [vmem:[#allocation86_spill] sm:$0xff] %v6503_v21  ;;  %v6531_v55 = vadd.f32 %v7616_v4, %v6275_v34  ;;  %v6535_v63 = vadd.f32 %v7616_v4, %v6279_v59  ;;  %v6539_v10 = vadd.f32 %v7616_v4, %v6283_v24  ;;  %v6543_v41 = vadd.f32 %v7616_v4, %v6287_v60 }
 0x302   :  { %7623 = vst [vmem:[#allocation89_spill] sm:$0xff] %v6527_v0  ;;  %v6547_v3 = vadd.f32 %v7616_v4, %v6291_v22  ;;  %v6551_v13 = vadd.f32 %v7616_v4, %v6295_v20  ;;  %v6555_v34 = vadd.f32 %v7616_v4, %v6299_v44  ;;  %v6559_v59 = vadd.f32 %v7616_v4, %v6303_v39 }
 0x303   :  { %7624 = vst [vmem:[#allocation92_spill] sm:$0xff] %v6531_v55  ;;  %7625 = vst [vmem:[#allocation63_spill] sm:$0xff] %v6535_v63  ;;  %v6563_v24 = vadd.f32 %v7616_v4, %v6307_v51  ;;  %v6567_v60 = vadd.f32 %v7616_v4, %v6311_v58  ;;  %v6571_v22 = vadd.f32 %v7616_v4, %v6315_v32 }
 0x304   :  { %7626 = vst [vmem:[#allocation71_spill] sm:$0xff] %v6559_v59  ;;  %v6575_v20 = vadd.f32 %v7616_v4, %v6319_v18  ;;  %v6579_v44 = vadd.f32 %v7616_v4, %v6323_v27  ;;  %v6583_v39 = vadd.f32 %v7616_v4, %v6327_v43  ;;  %v6587_v51 = vadd.f32 %v7616_v4, %v6331_v25 }
 0x305   :  { %7627 = vst [vmem:[#allocation87_spill] sm:$0xff] %v6563_v24  ;;  %7628 = vst [vmem:[#allocation90_spill] sm:$0xff] %v6567_v60  ;;  %v6591_v58 = vadd.f32 %v7616_v4, %v6335_v42  ;;  %v6595_v32 = vadd.f32 %v7616_v4, %v6339_v61  ;;  %v6599_v18 = vadd.f32 %v7616_v4, %v6343_v57  ;;  %v7634_v42 = vld [vmem:[#allocation83_spill] sm:$0xff] }
 0x306   :  { %v6603_v27 = vadd.f32 %v7616_v4, %v6347_v40  ;;  %v6607_v43 = vadd.f32 %v7616_v4, %v6351_v9  ;;  %v6611_v25 = vadd.f32 %v7616_v4, %v6355_v7  ;;  %v6615_v61 = vadd.f32 %v7616_v4, %v7634_v42 }
 0x307   :  { %7629 = vst [vmem:[#allocation93_spill] sm:$0xff] %v6591_v58  ;;  %7630 = vst [vmem:[#allocation57_spill] sm:$0xff] %v6595_v32  ;;  %v7635_v32 = vld [vmem:[#allocation84_spill] sm:$0xff]  ;;  %v6635_v42 = vadd.f32 %v7616_v4, %v6379_v36  ;;  %v6655_v36 = vadd.f32 %v7616_v4, %v6399_v6 }
 0x308   :  { %7631 = vst [vmem:[#allocation65_spill] sm:$0xff] %v6599_v18  ;;  %7632 = vst [vmem:[#allocation81_spill] sm:$0xff] %v6603_v27  ;;  %v6619_v57 = vadd.f32 %v7616_v4, %v7635_v32  ;;  %v7636_v18 = vld [vmem:[#allocation75_spill] sm:$0xff]  ;;  %v6639_v32 = vadd.f32 %v7616_v4, %v6383_v12  ;;  %v6659_v12 = vadd.f32 %v7616_v4, %v6403_v47 }
 0x309   :  { %7633 = vst [vmem:[#allocation88_spill] sm:$0xff] %v6607_v43  ;;  %v6623_v40 = vadd.f32 %v7616_v4, %v7636_v18  ;;  %v7637_v27 = vld [vmem:[#allocation79_spill] sm:$0xff]  ;;  %v7639_v43 = vld [vmem:[#allocation73_spill] sm:$0xff]  ;;  %v6643_v18 = vadd.f32 %v7616_v4, %v6387_v49  ;;  %v6663_v49 = vadd.f32 %v7616_v4, %v6407_v28  ;;  %v6679_v47 = vadd.f32 %v7616_v4, %v6423_v46 }
 0x30a   :  { %v6627_v9 = vadd.f32 %v7616_v4, %v7637_v27  ;;  %v6631_v7 = vadd.f32 %v7616_v4, %v7639_v43  ;;  %v6647_v27 = vadd.f32 %v7616_v4, %v6391_v8  ;;  %v6667_v8 = vadd.f32 %v7616_v4, %v6411_v30 }
 0x30b   :  { %7643 = vst [vmem:[#allocation69_spill] sm:$0xff] %v6663_v49  ;;  %7646 = vst [vmem:[#allocation103_spill] sm:$0xff] %v6679_v47  ;;  %v6683_v28 = vadd.f32 %v7616_v4, %v6427_v19  ;;  %v6687_v30 = vadd.f32 %v7616_v4, %v6431_v16  ;;  %v2814_v16 = vmax.f32 %v6543_v41, 0.0  ;;  %v2821_v47 = vmax.f32 %v6571_v22, 0.0 }
 0x30c   :  { %7638 = vst [vmem:[#allocation91_spill] sm:$0xff] %v6627_v9  ;;  %7640 = vst [vmem:[#allocation59_spill] sm:$0xff] %v6631_v7  ;;  %v7641_v9 = vld [vmem:[#allocation77_spill] sm:$0xff]  ;;  %v2822_v19 = vmax.f32 %v6575_v20, 0.0  ;;  %v2824_v41 = vmax.f32 %v6583_v39, 0.0  ;;  %v2831_v22 = vmax.f32 %v6611_v25, 0.0 }
 0x30d   :  { %v6651_v43 = vadd.f32 %v7616_v4, %v7641_v9  ;;  %v6671_v9 = vadd.f32 %v7616_v4, %v6415_v52  ;;  %7647 = vst [vmem:[#allocation82_spill] sm:$0xff] %v6683_v28  ;;  %7648 = vst [vmem:[#allocation104_spill] sm:$0xff] %v6687_v30  ;;  %v6691_v52 = vadd.f32 %v7616_v4, %v6435_v33  ;;  %v2805_v30 = vmax.f32 %v6507_v15, 0.0 }
 0x30e   :  { %v2806_v33 = vmax.f32 %v6511_v29, 0.0  ;;  %v2813_v28 = vmax.f32 %v6539_v10, 0.0  ;;  %v2815_v15 = vmax.f32 %v6547_v3, 0.0  ;;  %v2816_v29 = vmax.f32 %v6551_v13, 0.0 }
 0x30f   :  { %7642 = vst [vmem:[#allocation67_spill] sm:$0xff] %v6651_v43  ;;  %v7644_v43 = vld [vmem:[#allocation102_spill] sm:$0xff]  ;;  %7649 = vst [vmem:[#allocation94_spill] sm:$0xff] %v6691_v52  ;;  %v2797_v52 = vmax.f32 %v6475_v23, 0.0  ;;  %v2807_v23 = vmax.f32 %v6515_v53, 0.0  ;;  %v2823_v10 = vmax.f32 %v6579_v44, 0.0  ;;  %v3009_v35 = vadd.f32 %v2822_v19, %v2821_v47 }
 0x310   :  { %v6675_v6 = vadd.f32 %v7616_v4, %v7644_v43  ;;  %v6695_v43 = vadd.f32 %v7616_v4, %v6439_v11  ;;  %v2798_v4 = vmax.f32 %v6479_v45, 0.0  ;;  %v2825_v3 = vmax.f32 %v6587_v51, 0.0  ;;  %v7652_v21 = vld [vmem:[#allocation81_spill] sm:$0xff]  ;;  %v7653_v26 = vld [vmem:[#allocation88_spill] sm:$0xff] }
 0x311   :  { %v2829_v11 = vmax.f32 %v7652_v21, 0.0  ;;  %v2830_v46 = vmax.f32 %v7653_v26, 0.0  ;;  %v2832_v20 = vmax.f32 %v6615_v61, 0.0  ;;  %v2833_v44 = vmax.f32 %v6619_v57, 0.0 }
 0x312   :  { %7645 = vst [vmem:[#allocation101_spill] sm:$0xff] %v6675_v6  ;;  %v2834_v39 = vmax.f32 %v6623_v40, 0.0  ;;  %v2837_v53 = vmax.f32 %v6635_v42, 0.0  ;;  %v2838_v45 = vmax.f32 %v6639_v32, 0.0  ;;  %v2839_v21 = vmax.f32 %v6643_v18, 0.0  ;;  %v7657_v60 = vld [vmem:[#allocation103_spill] sm:$0xff] }
 0x313   :  { %v2840_v26 = vmax.f32 %v6647_v27, 0.0  ;;  %v2842_v61 = vmax.f32 %v6655_v36, 0.0  ;;  %v2843_v57 = vmax.f32 %v6659_v12, 0.0  ;;  %v2845_v51 = vmax.f32 %v6667_v8, 0.0 }
 0x314   :  { %v2846_v13 = vmax.f32 %v6671_v9, 0.0  ;;  %v2848_v32 = vmax.f32 %v7657_v60, 0.0  ;;  %v7658_v6 = vld [vmem:[#allocation82_spill] sm:$0xff]  ;;  %v7659_v24 = vld [vmem:[#allocation104_spill] sm:$0xff]  ;;  %v2852_v36 = vmax.f32 %v6695_v43, 0.0  ;;  %v7661_v12 = vmax.f32 %v6443_v50, 0.0 }
 0x315   :  { %v2849_v18 = vmax.f32 %v7658_v6, 0.0  ;;  %v2850_v27 = vmax.f32 %v7659_v24, 0.0  ;;  %v7662_v40 = vmax.f32 %v6447_v38, 0.0  ;;  %v2970_v8 = vadd.f32 %v2798_v4, %v2797_v52 }
 0x316   :  { %v7655_v63 = vld [vmem:[#allocation67_spill] sm:$0xff]  ;;  %v7660_v55 = vld [vmem:[#allocation94_spill] sm:$0xff]  ;;  %v2983_v2 = vadd.f32 %v2806_v33, %v2805_v30  ;;  %v2996_v9 = vadd.f32 %v2814_v16, %v2813_v28  ;;  %v3035_v58 = vadd.f32 %v2838_v45, %v2837_v53  ;;  %v3048_v60 = vadd.f32 %v2846_v13, %v2845_v51 }
 0x317   :  { %v2841_v25 = vmax.f32 %v7655_v63, 0.0  ;;  %v2851_v63 = vmax.f32 %v7660_v55, 0.0  ;;  %v2957_v49 = vadd.f32 %v7662_v40, %v7661_v12  ;;  %v7663_v6 = vmax.f32 %v6451_v48, 0.0  ;;  %v7678_v13 = vld [vmem:[#allocation71_spill] sm:$0xff]  ;;  %v7686_v12 = vld [vmem:[#allocation92_spill] sm:$0xff] }
 0x318   :  { %v7664_v24 = vmax.f32 %v6483_v37, 0.0  ;;  %v2984_v0 = vadd.f32 %v2983_v2, %v2807_v23  ;;  %v2997_v43 = vadd.f32 %v2996_v9, %v2815_v15  ;;  %v3010_v14 = vadd.f32 %v3009_v35, %v2823_v10  ;;  %v7676_v10 = vld [vmem:[#allocation89_spill] sm:$0xff] }
 0x319   :  { %v7656_v7 = vld [vmem:[#allocation101_spill] sm:$0xff]  ;;  %v2958_v59 = vadd.f32 %v2957_v49, %v7663_v6  ;;  %v3036_v1 = vadd.f32 %v3035_v58, %v2839_v21  ;;  %v7665_v52 = vmax.f32 %v6455_v31, 0.0  ;;  %v7666_v47 = vmax.f32 %v6487_v5, 0.0 }
 0x31a   :  { %v2847_v42 = vmax.f32 %v7656_v7, 0.0  ;;  %v3022_v7 = vadd.f32 %v2830_v46, %v2829_v11  ;;  %v2971_v55 = vadd.f32 %v2970_v8, %v7664_v24  ;;  %v7667_v46 = vmax.f32 %v6519_v17, 0.0  ;;  %v7690_v24 = vld [vmem:[#allocation57_spill] sm:$0xff] }
 0x31b   :  { %v2959_v30 = vadd.f32 %v2958_v59, %v7665_v52  ;;  %v2998_v48 = vadd.f32 %v2997_v43, %v2816_v29  ;;  %v3011_v49 = vadd.f32 %v3010_v14, %v2824_v41  ;;  %v3037_v37 = vadd.f32 %v3036_v1, %v2840_v26  ;;  %v7672_v14 = vld [vmem:[#allocation95_spill] sm:$0xff]  ;;  %v7674_v29 = vld [vmem:[#allocation98_spill] sm:$0xff]  ;;  %v7682_v26 = vld [vmem:[#allocation96_spill] sm:$0xff] }
 0x31c   :  { %v3023_v50 = vadd.f32 %v3022_v7, %v2831_v22  ;;  %v3049_v38 = vadd.f32 %v3048_v60, %v2847_v42  ;;  %v2972_v28 = vadd.f32 %v2971_v55, %v7666_v47  ;;  %v2985_v19 = vadd.f32 %v2984_v0, %v7667_v46  ;;  %v7684_v42 = vld [vmem:[#allocation99_spill] sm:$0xff]  ;;  %v7694_v52 = vld [vmem:[#allocation97_spill] sm:$0xff] }
 0x31d   :  { %v7668_v2 = vmax.f32 %v6459_v54, 0.0  ;;  %v7669_v58 = vmax.f32 %v6491_v56, 0.0  ;;  %v7670_v31 = vmax.f32 %v6523_v62, 0.0  ;;  %v7671_v5 = vmax.f32 %v6555_v34, 0.0  ;;  %v7688_v7 = vld [vmem:[#allocation87_spill] sm:$0xff] }
 0x31e   :  { %v3024_v16 = vadd.f32 %v3023_v50, %v2832_v20  ;;  %v3050_v33 = vadd.f32 %v3049_v38, %v2848_v32  ;;  %v3012_v23 = vadd.f32 %v3011_v49, %v2825_v3  ;;  %v3038_v0 = vadd.f32 %v3037_v37, %v2841_v25  ;;  %v7680_v20 = vld [vmem:[#allocation93_spill] sm:$0xff]  ;;  %v7692_v50 = vld [vmem:[#allocation91_spill] sm:$0xff]  ;;  %v7700_v37 = vld [vmem:[#allocation90_spill] sm:$0xff] }
 0x31f   :  { %v2960_v35 = vadd.f32 %v2959_v30, %v7668_v2  ;;  %v2973_v4 = vadd.f32 %v2972_v28, %v7669_v58  ;;  %v2986_v59 = vadd.f32 %v2985_v19, %v7670_v31  ;;  %v2999_v11 = vadd.f32 %v2998_v48, %v7671_v5  ;;  %v7696_v28 = vld [vmem:[#allocation86_spill] sm:$0xff]  ;;  %v7698_v48 = vld [vmem:[#allocation63_spill] sm:$0xff] }
 0x320   :  { %v3025_v17 = vadd.f32 %v3024_v16, %v2833_v44  ;;  %v3051_v45 = vadd.f32 %v3050_v33, %v2849_v18  ;;  %v7673_v15 = vmax.f32 %v7672_v14, 0.0  ;;  %v7675_v53 = vmax.f32 %v7674_v29, 0.0  ;;  %v7704_v31 = vld [vmem:[#allocation59_spill] sm:$0xff] }
 0x321   :  { %v7677_v41 = vmax.f32 %v7676_v10, 0.0  ;;  %v7679_v22 = vmax.f32 %v7678_v13, 0.0  ;;  %v7681_v51 = vmax.f32 %v7680_v20, 0.0  ;;  %v3039_v3 = vadd.f32 %v3038_v0, %v2842_v61 }
 0x322   :  { %v2961_v1 = vadd.f32 %v2960_v35, %v7673_v15  ;;  %v2974_v54 = vadd.f32 %v2973_v4, %v7675_v53  ;;  %v3026_v21 = vadd.f32 %v3025_v17, %v2834_v39  ;;  %v3052_v44 = vadd.f32 %v3051_v45, %v2850_v27  ;;  %v7702_v35 = vld [vmem:[#allocation65_spill] sm:$0xff] }
 0x323   :  { %v2987_v56 = vadd.f32 %v2986_v59, %v7677_v41  ;;  %v3000_v62 = vadd.f32 %v2999_v11, %v7679_v22  ;;  %v3013_v34 = vadd.f32 %v3012_v23, %v7681_v51  ;;  %v7683_v25 = vmax.f32 %v7682_v26, 0.0 }
 0x324   :  { %v7685_v32 = vmax.f32 %v7684_v42, 0.0  ;;  %v7687_v8 = vmax.f32 %v7686_v12, 0.0  ;;  %v7689_v60 = vmax.f32 %v7688_v7, 0.0  ;;  %v7691_v55 = vmax.f32 %v7690_v24, 0.0 }
 0x325   :  { %v2962_v40 = vadd.f32 %v2961_v1, %v7683_v25  ;;  %v7693_v38 = vmax.f32 %v7692_v50, 0.0  ;;  %v3040_v61 = vadd.f32 %v3039_v3, %v2843_v57  ;;  %v3053_v27 = vadd.f32 %v3052_v44, %v2851_v63  ;;  %v7706_v57 = vld [vmem:[#allocation69_spill] sm:$0xff] }
 0x326   :  { %v2975_v18 = vadd.f32 %v2974_v54, %v7685_v32  ;;  %v2988_v9 = vadd.f32 %v2987_v56, %v7687_v8  ;;  %v3001_v6 = vadd.f32 %v3000_v62, %v7689_v60  ;;  %v3014_v43 = vadd.f32 %v3013_v34, %v7691_v55 }
 0x327   :  { %v3027_v39 = vadd.f32 %v3026_v21, %v7693_v38  ;;  %v7695_v30 = vmax.f32 %v7694_v52, 0.0  ;;  %v7697_v46 = vmax.f32 %v7696_v28, 0.0  ;;  %v7699_v49 = vmax.f32 %v7698_v48, 0.0 }
 0x328   :  { %v7701_v33 = vmax.f32 %v7700_v37, 0.0  ;;  %v7703_v58 = vmax.f32 %v7702_v35, 0.0  ;;  %v7705_v59 = vmax.f32 %v7704_v31, 0.0  ;;  %v7707_v63 = vmax.f32 %v7706_v57, 0.0 }
 0x329   :  { %v2963_v47 = vadd.f32 %v2962_v40, %v7695_v30  ;;  %v2976_v19 = vadd.f32 %v2975_v18, %v7697_v46  ;;  %v2989_v16 = vadd.f32 %v2988_v9, %v7699_v49  ;;  %v3054_v23 = vadd.f32 %v3053_v27, %v2852_v36 }
 0x32a   :  { %v3002_v2 = vadd.f32 %v3001_v6, %v7701_v33  ;;  %v3015_v4 = vadd.f32 %v3014_v43, %v7703_v58  ;;  %v3028_v5 = vadd.f32 %v3027_v39, %v7705_v59  ;;  %v3041_v11 = vadd.f32 %v3040_v61, %v7707_v63 }
 0x32b   :  { %v2964_v17 = vrot.slane %v2963_v47, 4  ;;  %v2977_v0 = vrot.slane %v2976_v19, 4  ;;  %v2990_v45 = vrot.slane %v2989_v16, 4  ;;  %v3055_v53 = vrot.slane %v3054_v23, 4 }
 0x32c   :  { %v3003_v14 = vrot.slane %v3002_v2, 4  ;;  %v3016_v15 = vrot.slane %v3015_v4, 4  ;;  %v3029_v1 = vrot.slane %v3028_v5, 4  ;;  %v3042_v29 = vrot.slane %v3041_v11, 4 }
 0x32d   :  { %v2965_v54 = vadd.f32 %v2964_v17, %v2963_v47  ;;  %v2978_v10 = vadd.f32 %v2977_v0, %v2976_v19  ;;  %v2991_v41 = vadd.f32 %v2990_v45, %v2989_v16  ;;  %v3056_v20 = vadd.f32 %v3055_v53, %v3054_v23 }
 0x32e   :  { %v3004_v56 = vadd.f32 %v3003_v14, %v3002_v2  ;;  %v3017_v13 = vadd.f32 %v3016_v15, %v3015_v4  ;;  %v3030_v22 = vadd.f32 %v3029_v1, %v3028_v5  ;;  %v3043_v62 = vadd.f32 %v3042_v29, %v3041_v11 }
 0x32f   :  { %v2966_v51 = vrot.slane %v2965_v54, 2  ;;  %v2979_v34 = vrot.slane %v2978_v10, 2  ;;  %v2992_v21 = vrot.slane %v2991_v41, 2  ;;  %v3057_v25 = vrot.slane %v3056_v20, 2 }
 0x330   :  { %v3005_v36 = vrot.slane %v3004_v56, 2  ;;  %v3018_v3 = vrot.slane %v3017_v13, 2  ;;  %v3031_v44 = vrot.slane %v3030_v22, 2  ;;  %v3044_v26 = vrot.slane %v3043_v62, 2 }
 0x331   :  { %v2967_v40 = vadd.f32 %v2966_v51, %v2965_v54  ;;  %v2980_v42 = vadd.f32 %v2979_v34, %v2978_v10  ;;  %v2993_v32 = vadd.f32 %v2992_v21, %v2991_v41  ;;  %v3058_v7 = vadd.f32 %v3057_v25, %v3056_v20 }
 0x332   :  { %v3006_v18 = vadd.f32 %v3005_v36, %v3004_v56  ;;  %v3019_v12 = vadd.f32 %v3018_v3, %v3017_v13  ;;  %v3032_v8 = vadd.f32 %v3031_v44, %v3030_v22  ;;  %v3045_v9 = vadd.f32 %v3044_v26, %v3043_v62 }
 0x333   :  { %v2968_v60 = vrot.slane %v2967_v40, 1  ;;  %v2981_v6 = vrot.slane %v2980_v42, 1  ;;  %v2994_v24 = vrot.slane %v2993_v32, 1  ;;  %v3059_v39 = vrot.slane %v3058_v7, 1 }
 0x334   :  { %v3007_v55 = vrot.slane %v3006_v18, 1  ;;  %v3020_v43 = vrot.slane %v3019_v12, 1  ;;  %v3033_v50 = vrot.slane %v3032_v8, 1  ;;  %v3046_v38 = vrot.slane %v3045_v9, 1 }
 0x335   :  { %v2969_v61 = vadd.f32 %v2968_v60, %v2967_v40  ;;  %v2982_v27 = vadd.f32 %v2981_v6, %v2980_v42  ;;  %v2995_v52 = vadd.f32 %v2994_v24, %v2993_v32  ;;  %v3060_v19 = vadd.f32 %v3059_v39, %v3058_v7 }
 0x336   :  { %v3008_v30 = vadd.f32 %v3007_v55, %v3006_v18  ;;  %v3021_v47 = vadd.f32 %v3020_v43, %v3019_v12  ;;  %v3034_v28 = vadd.f32 %v3033_v50, %v3032_v8  ;;  %v3047_v46 = vadd.f32 %v3046_v38, %v3045_v9 }
 0x337   :  { %v3070_v48 = vmul.f32 0.015625, %v2969_v61  ;;  %v3071_v49 = vmul.f32 0.015625, %v2982_v27  ;;  %v3072_v16 = vmul.f32 0.015625, %v2995_v52  ;;  %v3077_v58 = vmul.f32 0.015625, %v3060_v19 }
 0x338   :  { %v3073_v37 = vmul.f32 0.015625, %v3008_v30  ;;  %v3074_v33 = vmul.f32 0.015625, %v3021_v47  ;;  %v3075_v2 = vmul.f32 0.015625, %v3034_v28  ;;  %v3076_v35 = vmul.f32 0.015625, %v3047_v46 }
 0x339   :  { %v3287_v4 = vpack.c.bf16 %v3070_v48, %v3070_v48  ;;  %v3288_v31 = vpack.c.bf16 %v3071_v49, %v3071_v49  ;;  %v3289_v59 = vpack.c.bf16 %v3072_v16, %v3072_v16  ;;  %v3294_v45 = vpack.c.bf16 %v3077_v58, %v3077_v58 }
 0x33a   :  { %v3290_v5 = vpack.c.bf16 %v3073_v37, %v3073_v37  ;;  %v3291_v57 = vpack.c.bf16 %v3074_v33, %v3074_v33  ;;  %v3292_v63 = vpack.c.bf16 %v3075_v2, %v3075_v2  ;;  %v3293_v0 = vpack.c.bf16 %v3076_v35, %v3076_v35 }
 0x33b   :  { %v3150_v11 = vunpack.c.l.b16 %v3287_v4  ;;  %v3151_v23 = vunpack.c.l.b16 %v3288_v31  ;;  %v3152_v17 = vunpack.c.l.b16 %v3289_v59  ;;  %v3157_v56 = vunpack.c.l.b16 %v3294_v45 }
 0x33c   :  { %v3153_v14 = vunpack.c.l.b16 %v3290_v5  ;;  %v3154_v1 = vunpack.c.l.b16 %v3291_v57  ;;  %v3155_v53 = vunpack.c.l.b16 %v3292_v63  ;;  %v3156_v10 = vunpack.c.l.b16 %v3293_v0 }
 0x33d   :  { %v3172_v15 = vsel %vm3158_vm0, %v3151_v23, %v3150_v11 }
 0x33e   :  { %v3173_v29 = vsel %vm3160_vm1, %v3152_v17, %v3172_v15 }
 0x33f   :  { %v3174_v54 = vsel %vm3162_vm2, %v3153_v14, %v3173_v29 }
 0x340   :  { %v3175_v41 = vsel %vm3164_vm3, %v3154_v1, %v3174_v54 }
 0x341   :  { %v3176_v13 = vsel %vm3166_vm4, %v3155_v53, %v3175_v41 }
 0x342   :  { %v3177_v22 = vsel %vm3168_vm5, %v3156_v10, %v3176_v13 }
 0x343   :  { %v3178_v62 = vsel %vm3170_vm6, %v3157_v56, %v3177_v22 }
 0x344   :  { %v3180_v20 = vpack.c.b16 %v3178_v62, %v3178_v62 }
 0x346   :  { %3184 = vst [vmem:[%s6833_s4 + $0x4] sm:$0xf] %v3180_v20 }

// kernel: decur_forward.11
= control target key start
LH: loop header
LB: loop body
LE: loop exit
PB: predicated region body
PF: predicated region fallthrough
CT: control target
= control target key end

     0   :  { %v214_v0 = vmov 0.0   ;;  %vm215_vm0 = vmmov 0   ;;  %s261_s1 = inlined_call_operand.vmem [shape: bf16[128,128], index: 1, kind: input, shape index: {}]   ;;  %s262_s0 = inlined_call_operand.vmem [shape: bf16[16,128], index: 0, kind: input, shape index: {}]   ;;  %s263_s2 = inlined_call_operand.vmem [shape: bf16[16,128], index: 2, kind: output, shape index: {}]  }
   0x1   :  { %183 = vmatprep.subr.bf16.mxu0 %v214_v0  ;;  %v205_v1 = vld [vmem:[%s261_s1] sm:$0xff]   ;;  %199 = vmatprep.mubr.msk.bf16.mxu0 %vm215_vm0, %v214_v0  ;;  %v206_v2 = vld [vmem:[%s261_s1 + $0x8] sm:$0xff]   ;;  %v207_v3 = vld [vmem:[%s261_s1 + $0x10] sm:$0xff]  }
   0x2   :  { %184 = vmatpush3.bf16.msra.mxu0 %v205_v1  ;;  %v208_v4 = vld [vmem:[%s261_s1 + $0x18] sm:$0xff]   ;;  %v209_v5 = vld [vmem:[%s261_s1 + $0x20] sm:$0xff]   ;;  %v210_v6 = vld [vmem:[%s261_s1 + $0x28] sm:$0xff]  }
   0x3   :  { %185 = vmatprep.subr.bf16.mxu0 %v214_v0  ;;  %v211_v7 = vld [vmem:[%s261_s1 + $0x30] sm:$0xff]   ;;  %v212_v8 = vld [vmem:[%s261_s1 + $0x38] sm:$0xff]   ;;  %v213_v9 = vld [vmem:[%s262_s0] sm:$0xff]  }
   0x6   :  { %186 = vmatpush3.bf16.msra.mxu0 %v206_v2 }
   0x7   :  { %187 = vmatprep.subr.bf16.mxu0 %v214_v0 }
   0xa   :  { %188 = vmatpush3.bf16.msra.mxu0 %v207_v3 }
   0xb   :  { %189 = vmatprep.subr.bf16.mxu0 %v214_v0 }
   0xe   :  { %190 = vmatpush3.bf16.msra.mxu0 %v208_v4 }
   0xf   :  { %191 = vmatprep.subr.bf16.mxu0 %v214_v0 }
  0x12   :  { %192 = vmatpush3.bf16.msra.mxu0 %v209_v5 }
  0x13   :  { %193 = vmatprep.subr.bf16.mxu0 %v214_v0 }
  0x16   :  { %194 = vmatpush3.bf16.msra.mxu0 %v210_v6 }
  0x17   :  { %195 = vmatprep.subr.bf16.mxu0 %v214_v0 }
  0x1a   :  { %196 = vmatpush3.bf16.msra.mxu0 %v211_v7 }
  0x1b   :  { %197 = vmatprep.subr.bf16.mxu0 %v214_v0 }
  0x1e   :  { %198 = vmatpush3.bf16.msra.mxu0 %v212_v8 }
  0x21   :  { %200 = vmatmul.mubr.bf16.vlgmr.msra.gmra.mrb[0].mxu0 %v213_v9 }
  0xf4   :  { %v126_v10 = vpop.f32.mrb[0].mxu0 }
  0xf5   :  { %v201_v11 = vpop.f32.mrb[1].mxu0 }
  0xf6   :  { %v129_v12 = vpop.f32.mrb[2].mxu0 }
  0xf7   :  { %v172_v13 = vpack.c.bf16 %v129_v12, %v126_v10  ;;  %v202_v14 = vpop.f32.mrb[3].mxu0 }
  0xf9   :  { %173 = vst [vmem:[%s263_s2] sm:$0xff] %v172_v13  }

// kernel: decur_forward.12
= control target key start
LH: loop header
LB: loop body
LE: loop exit
PB: predicated region body
PF: predicated region fallthrough
CT: control target
= control target key end

     0   :  { %s1170_s15 = smov 0   ;;  %s1172_s16 = smov 0   ;;  %s1350_s0 = inlined_call_operand.vmem [shape: bf16[32,128], index: 0, kind: input, shape index: {}]   ;;  %s1351_s1 = inlined_call_operand.vmem [shape: bf16[128,512], index: 1, kind: input, shape index: {}]   ;;  %s1352_s2 = inlined_call_operand.vmem [shape: f32[1,512], index: 2, kind: input, shape index: {}]   ;;  %s1353_s3 = inlined_call_operand.vmem [shape: f32[1,512], index: 3, kind: input, shape index: {}]   ;;  %s1354_s4 = inlined_call_operand.vmem [shape: bf16[32,512], index: 4, kind: output, shape index: {}]  }
   0x1   :  { %s1174_s17 = smov 0   ;;  %s1176_s18 = smov 0  }
   0x2   :  { %s1178_s19 = smov 0  }
   0x3 LB: > { %s26_s20 = sadd.s32 1, %s1138_s18  ;;  %s959_s21 = sadd.s32 4294967295, %s1142_s19   ;;  %s1142_s19 = sphi %s1178_s19, %s14_s19   ;;  %s1138_s18 = sphi %s1176_s18, %s1360_s18   ;;  %s1134_s17 = sphi %s1174_s17, %s1359_s17   ;;  %s1130_s16 = sphi %s1172_s16, %s1358_s16   ;;  %s1126_s15 = sphi %s1170_s15, %s1357_s15  }
   0x4   : > { %p28_p0 = scmp.ge.s32.totalorder %s26_s20, 2  ;;  %p68_p1 = scmp.ne.s32.totalorder %s1130_s16, %s1126_s15 }
   0x5   : > { %p69_p2 = scmp.eq.s32.totalorder %s1142_s19, 0  ;;  %p150_p4 = scmp.eq.s32.totalorder %s959_s21, 1 }
   0x6   : > { %s1362_s20 = smov (%p28_p0, %s26_s20), 0  ;;  %s61_s23 = sadd.s32 1, %s1130_s16 }
   0x7   : > { %p70_p3 = por %p69_p2, %p68_p1  ;;  %s57_s22 = ssub.s32 %s1138_s18, %s1362_s20 }
   0x8   : > { %p59_p5 = scmp.eq.s32.totalorder %s57_s22, 0  ;;  %p1205_p6 = por %p150_p4, %p68_p1 }
   0x9   : > { %p963_p7 = scmp.ge.s32.totalorder %s1142_s19, 2 }
   0xa   : > { %s1210_s25 = scalar_select %p59_p5, %s1130_s16, %s61_s23  }
   0xb   : > { %179 = sbr.rel (%p963_p7) target bundleno = 30 (0x1e), region = 20 }
  0x12   : > { %182 = sbr.rel (!%p70_p3) target bundleno = 30 (0x1e), region = 24  ;;  %s184_s26 = sand.u32 (%p70_p3), 1, %s1130_s16  }
  0x13   : > { %s999_s27 = sshll.u32 (%p70_p3), %s1138_s18, 3  ;;  %s964_s28 = sshll.u32 (%p70_p3), %s184_s26, 7 }
  0x14   : > { %s1218_s5 = scalar_lea.vmem (%p70_p3), %s1351_s1, %s999_s27  ;;  %s186_s6 = scalar_lea.vmem (%p70_p3), [#allocation3], %s964_s28 }
  0x15   : > { %v250_v0 = vld [vmem:[%s1218_s5] sm:$0xff] (%p70_p3)  ;;  %v252_v1 = vld [vmem:[%s1218_s5 + $0x10] sm:$0xff] (%p70_p3) }
  0x16   : > { %v254_v2 = vld [vmem:[%s1218_s5 + $0x20] sm:$0xff] (%p70_p3)  ;;  %251 = vst [vmem:[%s186_s6] sm:$0xff] (%p70_p3), %v250_v0  ;;  %253 = vst [vmem:[%s186_s6 + $0x8] sm:$0xff] (%p70_p3), %v252_v1  ;;  %v256_v3 = vld [vmem:[%s1218_s5 + $0x30] sm:$0xff] (%p70_p3) }
  0x17   : > { %255 = vst [vmem:[%s186_s6 + $0x10] sm:$0xff] (%p70_p3), %v254_v2  ;;  %v258_v4 = vld [vmem:[%s1218_s5 + $0x40] sm:$0xff] (%p70_p3)  ;;  %v260_v5 = vld [vmem:[%s1218_s5 + $0x50] sm:$0xff] (%p70_p3)  ;;  %257 = vst [vmem:[%s186_s6 + $0x18] sm:$0xff] (%p70_p3), %v256_v3 }
  0x18   : > { %259 = vst [vmem:[%s186_s6 + $0x20] sm:$0xff] (%p70_p3), %v258_v4  ;;  %261 = vst [vmem:[%s186_s6 + $0x28] sm:$0xff] (%p70_p3), %v260_v5  ;;  %v262_v6 = vld [vmem:[%s1218_s5 + $0x60] sm:$0xff] (%p70_p3)  ;;  %v264_v7 = vld [vmem:[%s1218_s5 + $0x70] sm:$0xff] (%p70_p3) }
  0x19   : > { %v266_v8 = vld [vmem:[%s1218_s5 + $0x80] sm:$0xff]  ;;  %263 = vst [vmem:[%s186_s6 + $0x30] sm:$0xff] %v262_v6  ;;  %265 = vst [vmem:[%s186_s6 + $0x38] sm:$0xff] %v264_v7  ;;  %v268_v9 = vld [vmem:[%s1218_s5 + $0x90] sm:$0xff] }
  0x1a   : > { %267 = vst [vmem:[%s186_s6 + $0x40] sm:$0xff] %v266_v8  ;;  %v270_v10 = vld [vmem:[%s1218_s5 + $0xa0] sm:$0xff]  ;;  %v272_v11 = vld [vmem:[%s1218_s5 + $0xb0] sm:$0xff]  ;;  %269 = vst [vmem:[%s186_s6 + $0x48] sm:$0xff] %v268_v9 }
  0x1b   : > { %271 = vst [vmem:[%s186_s6 + $0x50] sm:$0xff] %v270_v10  ;;  %273 = vst [vmem:[%s186_s6 + $0x58] sm:$0xff] %v272_v11  ;;  %v274_v12 = vld [vmem:[%s1218_s5 + $0xc0] sm:$0xff]  ;;  %v276_v13 = vld [vmem:[%s1218_s5 + $0xd0] sm:$0xff] }
  0x1c   : > { %v278_v14 = vld [vmem:[%s1218_s5 + $0xe0] sm:$0xff]  ;;  %275 = vst [vmem:[%s186_s6 + $0x60] sm:$0xff] %v274_v12  ;;  %277 = vst [vmem:[%s186_s6 + $0x68] sm:$0xff] %v276_v13  ;;  %v280_v15 = vld [vmem:[%s1218_s5 + $0xf0] sm:$0xff] }
  0x1d   : > { %279 = vst [vmem:[%s186_s6 + $0x70] sm:$0xff] %v278_v14  ;;  %281 = vst [vmem:[%s186_s6 + $0x78] sm:$0xff] %v280_v15 }
  0x1e PF: > { %p967_p8 = scmp.ge.s32.totalorder %s1142_s19, 1  ;;  %p302_p9 = scmp.lt.s32.totalorder %s1142_s19, 3 }
  0x20   : > { %p303_p10 = pnand %p967_p8, %p302_p9 }
  0x21   : > { %s309_s7 = sand.u32 (!%p303_p10), 1, %s1126_s15   ;;  %v1144_v16 = vmov (!%p303_p10), 0   ;;  %v1086_v33 = vld [vmem:[%s1350_s0] sm:$0xff] (!%p303_p10)   ;;  %v1087_v34 = vld [vmem:[%s1350_s0 + $0x8] sm:$0xff] (!%p303_p10)   ;;  %v730_v41 = vlaneseq (!%p303_p10)  ;;  %s970_s14 = sshll.u32 (!%p303_p10), %s1134_s17, 1 }
  0x22   : > { %306 = sbr.rel (%p303_p10) target bundleno = 352 (0x160), region = 70  ;;  %s968_s8 = sshll.u32 (!%p303_p10), %s309_s7, 7  ;;  %527 = vmatprep.mubr.bf16.mxu0 (!%p303_p10), %v1144_v16  ;;  %537 = vmatprep.mubr.bf16.mxu1 (!%p303_p10), %v1144_v16 }
  0x23   : > { %s1241_s9 = scalar_lea.vmem (!%p303_p10), [#allocation3], %s968_s8  ;;  %p1300_p11 = scmp.lt.s32.totalorder (!%p303_p10), %s970_s14, 3 }
  0x24   : > { %v1062_v17 = vld [vmem:[%s1241_s9 + $0x4] ss:$8 sps:$4 sm:$0xff] (!%p303_p10)   ;;  %v1064_v18 = vld [vmem:[%s1241_s9] ss:$8 sps:$4 sm:$0xff] (!%p303_p10)   ;;  %v1065_v19 = vld [vmem:[%s1241_s9 + $0x14] ss:$8 sps:$4 sm:$0xff] (!%p303_p10)  }
  0x25   : > { %495 = vmatprep.subr.bf16.mxu0 (!%p303_p10), %v1062_v17  ;;  %1005 = vmatprep.subr.bf16.mxu1 (!%p303_p10), %v1062_v17  ;;  %v1067_v20 = vld [vmem:[%s1241_s9 + $0x10] ss:$8 sps:$4 sm:$0xff] (!%p303_p10)   ;;  %v1068_v21 = vld [vmem:[%s1241_s9 + $0x24] ss:$8 sps:$4 sm:$0xff] (!%p303_p10)   ;;  %v1070_v22 = vld [vmem:[%s1241_s9 + $0x20] ss:$8 sps:$4 sm:$0xff] (!%p303_p10)  }
  0x26   : > { %496 = vmatpush1.bf16.msra.mxu0 (!%p303_p10), %v1064_v18  ;;  %1013 = vmatpush1.bf16.msra.mxu1 (!%p303_p10), %v1064_v18  ;;  %v1071_v23 = vld [vmem:[%s1241_s9 + $0x34] ss:$8 sps:$4 sm:$0xff] (!%p303_p10)   ;;  %v1073_v24 = vld [vmem:[%s1241_s9 + $0x30] ss:$8 sps:$4 sm:$0xff] (!%p303_p10)   ;;  %v1074_v25 = vld [vmem:[%s1241_s9 + $0x44] ss:$8 sps:$4 sm:$0xff] (!%p303_p10)  }
  0x27   : > { %497 = vmatprep.subr.bf16.mxu0 (!%p303_p10), %v1065_v19  ;;  %1006 = vmatprep.subr.bf16.mxu1 (!%p303_p10), %v1065_v19  ;;  %v1076_v26 = vld [vmem:[%s1241_s9 + $0x40] ss:$8 sps:$4 sm:$0xff] (!%p303_p10)   ;;  %v1077_v27 = vld [vmem:[%s1241_s9 + $0x54] ss:$8 sps:$4 sm:$0xff] (!%p303_p10)   ;;  %v1079_v28 = vld [vmem:[%s1241_s9 + $0x50] ss:$8 sps:$4 sm:$0xff] (!%p303_p10)  }
  0x28   : > { %v1080_v29 = vld [vmem:[%s1241_s9 + $0x64] ss:$8 sps:$4 sm:$0xff] (!%p303_p10)   ;;  %v1082_v30 = vld [vmem:[%s1241_s9 + $0x60] ss:$8 sps:$4 sm:$0xff] (!%p303_p10)   ;;  %v1083_v31 = vld [vmem:[%s1241_s9 + $0x74] ss:$8 sps:$4 sm:$0xff] (!%p303_p10)  }
  0x29   : > { %v1085_v32 = vld [vmem:[%s1241_s9 + $0x70] ss:$8 sps:$4 sm:$0xff]   ;;  %s1364_s14 = smov (!%p1300_p11, %s970_s14), 3  ;;  %s969_s30 = sshll.u32 %s309_s7, 5 }
  0x2a   : > { %498 = vmatpush1.bf16.msra.mxu0 %v1067_v20  ;;  %1014 = vmatpush1.bf16.msra.mxu1 %v1067_v20  ;;  %s354_s26 = scalar_lea.vmem %s1352_s2, %s1364_s14  ;;  %s359_s29 = scalar_lea.vmem %s1353_s3, %s1364_s14 }
  0x2b   : > { %499 = vmatprep.subr.bf16.mxu0 %v1068_v21  ;;  %1007 = vmatprep.subr.bf16.mxu1 %v1068_v21  ;;  %s344_s15 = scalar_lea.vmem [#allocation4], %s969_s30  ;;  %s1004_s5 = sshll.u32 (%p1205_p6), %s1134_s17, 3 }
  0x2c   : > { %s813_s8 = scalar_lea.vmem (%p1205_p6), %s1354_s4, %s1004_s5 }
  0x2e   : > { %500 = vmatpush1.bf16.msra.mxu0 %v1070_v22  ;;  %1015 = vmatpush1.bf16.msra.mxu1 %v1070_v22 }
  0x2f   : > { %501 = vmatprep.subr.bf16.mxu0 %v1071_v23  ;;  %1008 = vmatprep.subr.bf16.mxu1 %v1071_v23 }
  0x32   : > { %502 = vmatpush1.bf16.msra.mxu0 %v1073_v24  ;;  %1016 = vmatpush1.bf16.msra.mxu1 %v1073_v24 }
  0x33   : > { %503 = vmatprep.subr.bf16.mxu0 %v1074_v25  ;;  %1009 = vmatprep.subr.bf16.mxu1 %v1074_v25 }
  0x36   : > { %504 = vmatpush1.bf16.msra.mxu0 %v1076_v26  ;;  %1017 = vmatpush1.bf16.msra.mxu1 %v1076_v26 }
  0x37   : > { %505 = vmatprep.subr.bf16.mxu0 %v1077_v27  ;;  %1010 = vmatprep.subr.bf16.mxu1 %v1077_v27 }
  0x3a   : > { %506 = vmatpush1.bf16.msra.mxu0 %v1079_v28  ;;  %1018 = vmatpush1.bf16.msra.mxu1 %v1079_v28 }
  0x3b   : > { %507 = vmatprep.subr.bf16.mxu0 %v1080_v29  ;;  %1011 = vmatprep.subr.bf16.mxu1 %v1080_v29 }
  0x3e   : > { %508 = vmatpush1.bf16.msra.mxu0 %v1082_v30  ;;  %1019 = vmatpush1.bf16.msra.mxu1 %v1082_v30 }
  0x3f   : > { %509 = vmatprep.subr.bf16.mxu0 %v1083_v31  ;;  %1012 = vmatprep.subr.bf16.mxu1 %v1083_v31 }
  0x42   : > { %510 = vmatpush1.bf16.msra.mxu0 %v1085_v32  ;;  %1020 = vmatpush1.bf16.msra.mxu1 %v1085_v32 }
  0x45   : > { %528 = vmatmul.mubr.bf16.vlgmr.msra.gmra.mrb[0].mxu0 %v1086_v33  ;;  %538 = vmatmul.mubr.bf16.vlgmr.msra.gmra.mrb[0].mxu1 %v1087_v34 }
 0x118   : > { %v529_v35 = vpop.f32.mrb[0].mxu0  ;;  %v539_v36 = vpop.f32.mrb[0].mxu1 }
 0x119   : > { %v575_v37 = vrot.slane %v529_v35, 4  ;;  %v599_v38 = vrot.slane %v539_v36, 4  ;;  %v531_v39 = vpop.f32.mrb[1].mxu0  ;;  %v541_v40 = vpop.f32.mrb[1].mxu1 }
 0x11a   : > { %v581_v42 = vrot.slane %v531_v39, 4  ;;  %v605_v43 = vrot.slane %v541_v40, 4  ;;  %v533_v44 = vpop.f32.mrb[2].mxu0  ;;  %v543_v45 = vpop.f32.mrb[2].mxu1 }
 0x11b   : > { %v576_v46 = vadd.f32 %v575_v37, %v529_v35  ;;  %v600_v47 = vadd.f32 %v599_v38, %v539_v36  ;;  %v587_v48 = vrot.slane %v533_v44, 4  ;;  %v611_v49 = vrot.slane %v543_v45, 4  ;;  %v535_v50 = vpop.f32.mrb[3].mxu0  ;;  %v545_v51 = vpop.f32.mrb[3].mxu1 }
 0x11c   : > { %v582_v52 = vadd.f32 %v581_v42, %v531_v39  ;;  %v606_v53 = vadd.f32 %v605_v43, %v541_v40  ;;  %v593_v54 = vrot.slane %v535_v50, 4  ;;  %v617_v55 = vrot.slane %v545_v51, 4 }
 0x11d   : > { %v577_v56 = vrot.slane %v576_v46, 2  ;;  %v601_v57 = vrot.slane %v600_v47, 2  ;;  %v588_v58 = vadd.f32 %v587_v48, %v533_v44  ;;  %v612_v59 = vadd.f32 %v611_v49, %v543_v45 }
 0x11e   : > { %v583_v60 = vrot.slane %v582_v52, 2  ;;  %v607_v61 = vrot.slane %v606_v53, 2  ;;  %v594_v62 = vadd.f32 %v593_v54, %v535_v50  ;;  %v618_v63 = vadd.f32 %v617_v55, %v545_v51 }
 0x11f   : > { %v578_v0 = vadd.f32 %v577_v56, %v576_v46  ;;  %v602_v1 = vadd.f32 %v601_v57, %v600_v47  ;;  %v589_v2 = vrot.slane %v588_v58, 2  ;;  %v613_v3 = vrot.slane %v612_v59, 2 }
 0x120   : > { %v584_v4 = vadd.f32 %v583_v60, %v582_v52  ;;  %v608_v5 = vadd.f32 %v607_v61, %v606_v53  ;;  %v595_v6 = vrot.slane %v594_v62, 2  ;;  %v619_v7 = vrot.slane %v618_v63, 2 }
 0x121   : > { %v579_v8 = vrot.slane %v578_v0, 1  ;;  %v603_v9 = vrot.slane %v602_v1, 1  ;;  %v590_v10 = vadd.f32 %v589_v2, %v588_v58  ;;  %v614_v11 = vadd.f32 %v613_v3, %v612_v59 }
 0x122   : > { %v585_v12 = vrot.slane %v584_v4, 1  ;;  %v609_v13 = vrot.slane %v608_v5, 1  ;;  %v596_v14 = vadd.f32 %v595_v6, %v594_v62  ;;  %v620_v15 = vadd.f32 %v619_v7, %v618_v63 }
 0x123   : > { %v580_v16 = vadd.f32 %v579_v8, %v578_v0  ;;  %v604_v17 = vadd.f32 %v603_v9, %v602_v1  ;;  %v591_v18 = vrot.slane %v590_v10, 1  ;;  %v615_v19 = vrot.slane %v614_v11, 1 }
 0x124   : > { %v586_v20 = vadd.f32 %v585_v12, %v584_v4  ;;  %v610_v21 = vadd.f32 %v609_v13, %v608_v5  ;;  %v597_v22 = vrot.slane %v596_v14, 1  ;;  %v621_v23 = vrot.slane %v620_v15, 1 }
 0x125   : > { %v624_v24 = vmul.f32 0.125, %v580_v16  ;;  %v628_v25 = vmul.f32 0.125, %v604_v17  ;;  %v592_v26 = vadd.f32 %v591_v18, %v590_v10  ;;  %v616_v27 = vadd.f32 %v615_v19, %v614_v11 }
 0x126   : > { %v625_v28 = vmul.f32 0.125, %v586_v20  ;;  %v629_v29 = vmul.f32 0.125, %v610_v21  ;;  %v598_v30 = vadd.f32 %v597_v22, %v596_v14  ;;  %v622_v31 = vadd.f32 %v621_v23, %v620_v15 }
 0x127   : > { %v1265_v32 = vsub.f32 %v529_v35, %v624_v24  ;;  %v1267_v33 = vsub.f32 %v539_v36, %v628_v25  ;;  %v626_v34 = vmul.f32 0.125, %v592_v26  ;;  %v630_v37 = vmul.f32 0.125, %v616_v27 }
 0x128   : > { %v1269_v38 = vsub.f32 %v531_v39, %v625_v28  ;;  %v1271_v42 = vsub.f32 %v541_v40, %v629_v29  ;;  %v627_v43 = vmul.f32 0.125, %v598_v30  ;;  %v631_v46 = vmul.f32 0.125, %v622_v31 }
 0x129   : > { %v640_v47 = vmul.f32 %v1265_v32, %v1265_v32  ;;  %v644_v48 = vmul.f32 %v1267_v33, %v1267_v33  ;;  %v1277_v49 = vsub.f32 %v533_v44, %v626_v34  ;;  %v1279_v35 = vsub.f32 %v543_v45, %v630_v37 }
 0x12a   : > { %v641_v36 = vmul.f32 %v1269_v38, %v1269_v38  ;;  %v645_v39 = vmul.f32 %v1271_v42, %v1271_v42  ;;  %v1285_v40 = vsub.f32 %v535_v50, %v627_v43  ;;  %v1287_v52 = vsub.f32 %v545_v51, %v631_v46 }
 0x12b   : > { %v648_v53 = vrot.slane %v640_v47, 4  ;;  %v672_v54 = vrot.slane %v644_v48, 4  ;;  %v642_v55 = vmul.f32 %v1277_v49, %v1277_v49  ;;  %v646_v44 = vmul.f32 %v1279_v35, %v1279_v35 }
 0x12c   : > { %v654_v45 = vrot.slane %v641_v36, 4  ;;  %v678_v56 = vrot.slane %v645_v39, 4  ;;  %v643_v57 = vmul.f32 %v1285_v40, %v1285_v40  ;;  %v647_v58 = vmul.f32 %v1287_v52, %v1287_v52 }
 0x12d   : > { %v649_v50 = vadd.f32 %v648_v53, %v640_v47  ;;  %v673_v51 = vadd.f32 %v672_v54, %v644_v48  ;;  %v660_v59 = vrot.slane %v642_v55, 4  ;;  %v684_v60 = vrot.slane %v646_v44, 4 }
 0x12e   : > { %v655_v61 = vadd.f32 %v654_v45, %v641_v36  ;;  %v679_v62 = vadd.f32 %v678_v56, %v645_v39  ;;  %v666_v63 = vrot.slane %v643_v57, 4  ;;  %v690_v0 = vrot.slane %v647_v58, 4 }
 0x12f   : > { %v650_v1 = vrot.slane %v649_v50, 2  ;;  %v674_v2 = vrot.slane %v673_v51, 2  ;;  %v661_v3 = vadd.f32 %v660_v59, %v642_v55  ;;  %v685_v4 = vadd.f32 %v684_v60, %v646_v44 }
 0x130   : > { %v656_v5 = vrot.slane %v655_v61, 2  ;;  %v680_v6 = vrot.slane %v679_v62, 2  ;;  %v667_v7 = vadd.f32 %v666_v63, %v643_v57  ;;  %v691_v8 = vadd.f32 %v690_v0, %v647_v58  ;;  %v728_v0 = vld [vmem:[%s354_s26] sm:$0x3] }
 0x131   : > { %v651_v9 = vadd.f32 %v650_v1, %v649_v50  ;;  %v675_v10 = vadd.f32 %v674_v2, %v673_v51  ;;  %v662_v11 = vrot.slane %v661_v3, 2  ;;  %v686_v12 = vrot.slane %v685_v4, 2  ;;  %v748_v1 = vld [vmem:[%s359_s29] sm:$0x3] }
 0x132   : > { %v657_v13 = vadd.f32 %v656_v5, %v655_v61  ;;  %v681_v14 = vadd.f32 %v680_v6, %v679_v62  ;;  %v668_v15 = vrot.slane %v667_v7, 2  ;;  %v692_v16 = vrot.slane %v691_v8, 2 }
 0x133   : > { %v652_v17 = vrot.slane %v651_v9, 1  ;;  %v676_v18 = vrot.slane %v675_v10, 1  ;;  %v663_v19 = vadd.f32 %v662_v11, %v661_v3  ;;  %v687_v20 = vadd.f32 %v686_v12, %v685_v4 }
 0x134   : > { %v658_v21 = vrot.slane %v657_v13, 1  ;;  %v682_v22 = vrot.slane %v681_v14, 1  ;;  %v669_v23 = vadd.f32 %v668_v15, %v667_v7  ;;  %v693_v24 = vadd.f32 %v692_v16, %v691_v8 }
 0x135   : > { %v653_v25 = vadd.f32 %v652_v17, %v651_v9  ;;  %v677_v26 = vadd.f32 %v676_v18, %v675_v10  ;;  %v664_v27 = vrot.slane %v663_v19, 1  ;;  %v688_v28 = vrot.slane %v687_v20, 1 }
 0x136   : > { %v659_v29 = vadd.f32 %v658_v21, %v657_v13  ;;  %v683_v30 = vadd.f32 %v682_v22, %v681_v14  ;;  %v670_v31 = vrot.slane %v669_v23, 1  ;;  %v694_v34 = vrot.slane %v693_v24, 1 }
 0x137   : > { %v696_v37 = vmul.f32 0.125, %v653_v25  ;;  %v700_v43 = vmul.f32 0.125, %v677_v26  ;;  %v665_v46 = vadd.f32 %v664_v27, %v663_v19  ;;  %v689_v47 = vadd.f32 %v688_v28, %v687_v20 }
 0x138   : > { %v697_v48 = vmul.f32 0.125, %v659_v29  ;;  %v701_v36 = vmul.f32 0.125, %v683_v30  ;;  %v671_v39 = vadd.f32 %v670_v31, %v669_v23  ;;  %v695_v53 = vadd.f32 %v694_v34, %v693_v24 }
 0x139   : > { %v704_v54 = vadd.f32 1e-05, %v696_v37  ;;  %v708_v55 = vadd.f32 1e-05, %v700_v43  ;;  %v698_v44 = vmul.f32 0.125, %v665_v46  ;;  %v702_v45 = vmul.f32 0.125, %v689_v47 }
 0x13a   : > { %v705_v56 = vadd.f32 1e-05, %v697_v48  ;;  %v709_v57 = vadd.f32 1e-05, %v701_v36  ;;  %v699_v58 = vmul.f32 0.125, %v671_v39  ;;  %v703_v50 = vmul.f32 0.125, %v695_v53 }
 0x13b   : > { %1088 = vrsqrt.f32 %v704_v54  ;;  %v706_v51 = vadd.f32 1e-05, %v698_v44  ;;  %v731_v59 = vshrl.u32 %v730_v41, 7  ;;  %v710_v60 = vadd.f32 1e-05, %v702_v45 }
 0x13c   : > { %1090 = vrsqrt.f32 %v708_v55  ;;  %v707_v61 = vadd.f32 1e-05, %v699_v58  ;;  %v711_v62 = vadd.f32 1e-05, %v703_v50 }
 0x13d   : > { %1092 = vrsqrt.f32 %v705_v56  ;;  %v732_v63 = vsub.s32 0, %v731_v59  ;;  %v736_v41 = vsub.s32 1, %v731_v59 }
 0x13e   : > { %1094 = vrsqrt.f32 %v709_v57 }
 0x13f   : > { %1096 = vrsqrt.f32 %v706_v51  ;;  %v733_v2 = vrot.slane %v728_v0, %v732_v63  ;;  %v753_v6 = vrot.slane %v748_v1, %v732_v63  ;;  %v737_v7 = vrot.slane %v728_v0, %v736_v41 }
 0x140   : > { %1098 = vrsqrt.f32 %v710_v60  ;;  %v757_v13 = vrot.slane %v748_v1, %v736_v41 }
 0x141   : > { %1100 = vrsqrt.f32 %v707_v61 }
 0x142   : > { %1102 = vrsqrt.f32 %v711_v62 }
 0x145   : > { %v1089_v3 = vpop.eup %1088 }
 0x146   : > { %v1091_v4 = vpop.eup %1090  ;;  %v720_v5 = vmul.f32 %v1089_v3, %v1265_v32 }
 0x147   : > { %v1093_v8 = vpop.eup %1092  ;;  %v724_v9 = vmul.f32 %v1091_v4, %v1267_v33 }
 0x148   : > { %v1095_v10 = vpop.eup %1094  ;;  %v740_v11 = vmul.f32 %v733_v2, %v720_v5  ;;  %v721_v12 = vmul.f32 %v1093_v8, %v1269_v38 }
 0x149   : > { %v1097_v14 = vpop.eup %1096  ;;  %v744_v15 = vmul.f32 %v733_v2, %v724_v9  ;;  %v725_v16 = vmul.f32 %v1095_v10, %v1271_v42 }
 0x14a   : > { %v1099_v17 = vpop.eup %1098  ;;  %v760_v18 = vadd.f32 %v753_v6, %v740_v11  ;;  %v741_v19 = vmul.f32 %v737_v7, %v721_v12  ;;  %v722_v32 = vmul.f32 %v1097_v14, %v1277_v49 }
 0x14b   : > { %v1101_v20 = vpop.eup %1100  ;;  %v764_v21 = vadd.f32 %v753_v6, %v744_v15  ;;  %v745_v22 = vmul.f32 %v737_v7, %v725_v16  ;;  %v726_v33 = vmul.f32 %v1099_v17, %v1279_v35 }
 0x14c   : > { %v1103_v23 = vpop.eup %1102  ;;  %v768_v24 = vmax.f32 %v760_v18, 0.0  ;;  %v761_v38 = vadd.f32 %v757_v13, %v741_v19  ;;  %v742_v25 = vmul.f32 %v733_v2, %v722_v32  ;;  %v723_v26 = vmul.f32 %v1101_v20, %v1285_v40 }
 0x14d   : > { %v772_v27 = vmax.f32 %v764_v21, 0.0  ;;  %v765_v42 = vadd.f32 %v757_v13, %v745_v22  ;;  %v746_v28 = vmul.f32 %v733_v2, %v726_v33  ;;  %v727_v29 = vmul.f32 %v1103_v23, %v1287_v52 }
 0x14e   : > { %v769_v30 = vmax.f32 %v761_v38, 0.0  ;;  %v762_v49 = vadd.f32 %v753_v6, %v742_v25  ;;  %v743_v31 = vmul.f32 %v737_v7, %v723_v26 }
 0x14f   : > { %v773_v34 = vmax.f32 %v765_v42, 0.0  ;;  %v766_v37 = vadd.f32 %v753_v6, %v746_v28  ;;  %v747_v43 = vmul.f32 %v737_v7, %v727_v29 }
 0x150   : > { %v1000_v35 = vpack.c.bf16 %v769_v30, %v768_v24  ;;  %v770_v46 = vmax.f32 %v762_v49, 0.0  ;;  %v763_v47 = vadd.f32 %v757_v13, %v743_v31 }
 0x151   : > { %v1002_v48 = vpack.c.bf16 %v773_v34, %v772_v27  ;;  %v774_v36 = vmax.f32 %v766_v37, 0.0  ;;  %v767_v39 = vadd.f32 %v757_v13, %v747_v43  ;;  %810 = sbr.rel (!%p1205_p6) target bundleno = 352 (0x160), region = 86 }
 0x152   : > { %800 = vst [vmem:[%s344_s15] sm:$0xff] %v1000_v35  ;;  %v771_v40 = vmax.f32 %v763_v47, 0.0 }
 0x153   : > { %802 = vst [vmem:[%s344_s15 + $0x10] sm:$0xff] %v1002_v48  ;;  %v775_v53 = vmax.f32 %v767_v39, 0.0 }
 0x154   : > { %v1001_v54 = vpack.c.bf16 %v771_v40, %v770_v46 }
 0x155   : > { %v1003_v55 = vpack.c.bf16 %v775_v53, %v774_v36 }
 0x156   : > { %801 = vst [vmem:[%s344_s15 + $0x8] sm:$0xff] %v1001_v54 }
 0x157   : > { %803 = vst [vmem:[%s344_s15 + $0x18] sm:$0xff] %v1003_v55 }
 0x159   : > { %v847_v52 = vld [vmem:[%s344_s15] sm:$0xff] }
 0x15a   : > { %v851_v45 = vld [vmem:[%s344_s15 + $0x10] sm:$0xff]  ;;  %848 = vst [vmem:[%s813_s8] sm:$0xff] %v847_v52 }
 0x15b   : > { %852 = vst [vmem:[%s813_s8 + $0x20] sm:$0xff] %v851_v45 }
 0x15d   : > { %v849_v44 = vld [vmem:[%s344_s15 + $0x8] sm:$0xff] }
 0x15e   : > { %v853_v56 = vld [vmem:[%s344_s15 + $0x18] sm:$0xff]  ;;  %850 = vst [vmem:[%s813_s8 + $0x10] sm:$0xff] %v849_v44 }
 0x15f   : > { %854 = vst [vmem:[%s813_s8 + $0x30] sm:$0xff] %v853_v56 }
 0x160 PF: > { %s14_s19 = sadd.s32 1, %s1142_s19   ;;  %s1357_s15 = smov %s1130_s16 }
 0x161   : > { %p11_p12 = scmp.ge.s32.totalorder %s14_s19, 4   ;;  %s1358_s16 = smov %s1210_s25 }
 0x162   : > { %s1359_s17 = smov %s1138_s18  ;;  %s1360_s18 = smov %s1362_s20 }
 0x163   :  { %13 = sbr.rel (!%p11_p12) target bundleno = 3 (0x3), region = 164 }

// kernel: decur_forward.13
= control target key start
LH: loop header
LB: loop body
LE: loop exit
PB: predicated region body
PF: predicated region fallthrough
CT: control target
= control target key end

     0   :  { %s1865_s15 = smov 0   ;;  %s1867_s16 = smov 0   ;;  %s2248_s0 = inlined_call_operand.vmem [shape: bf16[32,512], index: 0, kind: input, shape index: {}]   ;;  %s2249_s1 = inlined_call_operand.vmem [shape: bf16[512,512], index: 1, kind: input, shape index: {}]   ;;  %s2250_s2 = inlined_call_operand.vmem [shape: f32[1,512], index: 2, kind: input, shape index: {}]   ;;  %s2251_s3 = inlined_call_operand.vmem [shape: f32[1,512], index: 3, kind: input, shape index: {}]   ;;  %s2252_s4 = inlined_call_operand.vmem [shape: bf16[32,512], index: 4, kind: output, shape index: {}]  }
   0x1   :  { %s1869_s17 = smov 0   ;;  %s1871_s18 = smov 0  }
   0x2   :  { %s1873_s19 = smov 0  }
   0x3 LB: > { %s26_s20 = sadd.s32 1, %s1834_s18  ;;  %s1528_s21 = sadd.s32 4294967295, %s1838_s19   ;;  %s1838_s19 = sphi %s1873_s19, %s14_s19   ;;  %s1834_s18 = sphi %s1871_s18, %s2258_s18   ;;  %s1830_s17 = sphi %s1869_s17, %s2257_s17   ;;  %s1826_s16 = sphi %s1867_s16, %s2256_s16   ;;  %s1822_s15 = sphi %s1865_s15, %s2255_s15  }
   0x4   : > { %p28_p0 = scmp.ge.s32.totalorder %s26_s20, 2  ;;  %p68_p1 = scmp.ne.s32.totalorder %s1826_s16, %s1822_s15 }
   0x5   : > { %p69_p2 = scmp.eq.s32.totalorder %s1838_s19, 0  ;;  %p150_p4 = scmp.eq.s32.totalorder %s1528_s21, 1 }
   0x6   : > { %s2260_s20 = smov (%p28_p0, %s26_s20), 0  ;;  %s61_s23 = sadd.s32 1, %s1826_s16 }
   0x7   : > { %p70_p3 = por %p69_p2, %p68_p1  ;;  %s57_s22 = ssub.s32 %s1834_s18, %s2260_s20 }
   0x8   : > { %p59_p5 = scmp.eq.s32.totalorder %s57_s22, 0  ;;  %p1900_p6 = por %p150_p4, %p68_p1 }
   0x9   : > { %p1532_p7 = scmp.ge.s32.totalorder %s1838_s19, 2 }
   0xa   : > { %s1905_s25 = scalar_select %p59_p5, %s1826_s16, %s61_s23  }
   0xb   : > { %181 = sbr.rel (%p1532_p7) target bundleno = 54 (0x36), region = 20 }
  0x12   : > { %184 = sbr.rel (!%p70_p3) target bundleno = 54 (0x36), region = 24  ;;  %s186_s26 = sand.u32 (%p70_p3), 1, %s1826_s16  }
  0x13   : > { %s1622_s27 = sshll.u32 (%p70_p3), %s1834_s18, 3  ;;  %s1533_s28 = sshll.u32 (%p70_p3), %s186_s26, 9 }
  0x14   : > { %s1913_s5 = scalar_lea.vmem (%p70_p3), %s2249_s1, %s1622_s27  ;;  %s1918_s6 = scalar_lea.vmem (%p70_p3), [#allocation3], %s1533_s28 }
  0x15   : > { %v348_v0 = vld [vmem:[%s1913_s5] sm:$0xff] (%p70_p3)  ;;  %v350_v1 = vld [vmem:[%s1913_s5 + $0x10] sm:$0xff] (%p70_p3) }
  0x16   : > { %v352_v2 = vld [vmem:[%s1913_s5 + $0x20] sm:$0xff] (%p70_p3)  ;;  %349 = vst [vmem:[%s1918_s6] sm:$0xff] (%p70_p3), %v348_v0  ;;  %351 = vst [vmem:[%s1918_s6 + $0x8] sm:$0xff] (%p70_p3), %v350_v1  ;;  %v354_v3 = vld [vmem:[%s1913_s5 + $0x30] sm:$0xff] (%p70_p3) }
  0x17   : > { %353 = vst [vmem:[%s1918_s6 + $0x10] sm:$0xff] (%p70_p3), %v352_v2  ;;  %v356_v4 = vld [vmem:[%s1913_s5 + $0x40] sm:$0xff] (%p70_p3)  ;;  %v358_v5 = vld [vmem:[%s1913_s5 + $0x50] sm:$0xff] (%p70_p3)  ;;  %355 = vst [vmem:[%s1918_s6 + $0x18] sm:$0xff] (%p70_p3), %v354_v3 }
  0x18   : > { %357 = vst [vmem:[%s1918_s6 + $0x20] sm:$0xff] (%p70_p3), %v356_v4  ;;  %359 = vst [vmem:[%s1918_s6 + $0x28] sm:$0xff] (%p70_p3), %v358_v5  ;;  %v360_v6 = vld [vmem:[%s1913_s5 + $0x60] sm:$0xff] (%p70_p3)  ;;  %v362_v7 = vld [vmem:[%s1913_s5 + $0x70] sm:$0xff] (%p70_p3) }
  0x19   : > { %v364_v8 = vld [vmem:[%s1913_s5 + $0x80] sm:$0xff]  ;;  %361 = vst [vmem:[%s1918_s6 + $0x30] sm:$0xff] %v360_v6  ;;  %363 = vst [vmem:[%s1918_s6 + $0x38] sm:$0xff] %v362_v7  ;;  %v366_v9 = vld [vmem:[%s1913_s5 + $0x90] sm:$0xff] }
  0x1a   : > { %365 = vst [vmem:[%s1918_s6 + $0x40] sm:$0xff] %v364_v8  ;;  %v368_v10 = vld [vmem:[%s1913_s5 + $0xa0] sm:$0xff]  ;;  %v370_v11 = vld [vmem:[%s1913_s5 + $0xb0] sm:$0xff]  ;;  %367 = vst [vmem:[%s1918_s6 + $0x48] sm:$0xff] %v366_v9 }
  0x1b   : > { %369 = vst [vmem:[%s1918_s6 + $0x50] sm:$0xff] %v368_v10  ;;  %371 = vst [vmem:[%s1918_s6 + $0x58] sm:$0xff] %v370_v11  ;;  %v372_v12 = vld [vmem:[%s1913_s5 + $0xc0] sm:$0xff]  ;;  %v374_v13 = vld [vmem:[%s1913_s5 + $0xd0] sm:$0xff] }
  0x1c   : > { %v376_v14 = vld [vmem:[%s1913_s5 + $0xe0] sm:$0xff]  ;;  %373 = vst [vmem:[%s1918_s6 + $0x60] sm:$0xff] %v372_v12  ;;  %375 = vst [vmem:[%s1918_s6 + $0x68] sm:$0xff] %v374_v13  ;;  %v378_v15 = vld [vmem:[%s1913_s5 + $0xf0] sm:$0xff] }
  0x1d   : > { %377 = vst [vmem:[%s1918_s6 + $0x70] sm:$0xff] %v376_v14  ;;  %v380_v16 = vld [vmem:[%s1913_s5 + $0x100] sm:$0xff]  ;;  %v382_v17 = vld [vmem:[%s1913_s5 + $0x110] sm:$0xff]  ;;  %379 = vst [vmem:[%s1918_s6 + $0x78] sm:$0xff] %v378_v15 }
  0x1e   : > { %381 = vst [vmem:[%s1918_s6 + $0x80] sm:$0xff] %v380_v16  ;;  %383 = vst [vmem:[%s1918_s6 + $0x88] sm:$0xff] %v382_v17  ;;  %v384_v18 = vld [vmem:[%s1913_s5 + $0x120] sm:$0xff]  ;;  %v386_v19 = vld [vmem:[%s1913_s5 + $0x130] sm:$0xff] }
  0x1f   : > { %v388_v20 = vld [vmem:[%s1913_s5 + $0x140] sm:$0xff]  ;;  %385 = vst [vmem:[%s1918_s6 + $0x90] sm:$0xff] %v384_v18  ;;  %387 = vst [vmem:[%s1918_s6 + $0x98] sm:$0xff] %v386_v19  ;;  %v390_v21 = vld [vmem:[%s1913_s5 + $0x150] sm:$0xff] }
  0x20   : > { %389 = vst [vmem:[%s1918_s6 + $0xa0] sm:$0xff] %v388_v20  ;;  %v392_v22 = vld [vmem:[%s1913_s5 + $0x160] sm:$0xff]  ;;  %v394_v23 = vld [vmem:[%s1913_s5 + $0x170] sm:$0xff]  ;;  %391 = vst [vmem:[%s1918_s6 + $0xa8] sm:$0xff] %v390_v21 }
  0x21   : > { %393 = vst [vmem:[%s1918_s6 + $0xb0] sm:$0xff] %v392_v22  ;;  %395 = vst [vmem:[%s1918_s6 + $0xb8] sm:$0xff] %v394_v23  ;;  %v396_v24 = vld [vmem:[%s1913_s5 + $0x180] sm:$0xff]  ;;  %v398_v25 = vld [vmem:[%s1913_s5 + $0x190] sm:$0xff] }
  0x22   : > { %v400_v26 = vld [vmem:[%s1913_s5 + $0x1a0] sm:$0xff]  ;;  %397 = vst [vmem:[%s1918_s6 + $0xc0] sm:$0xff] %v396_v24  ;;  %399 = vst [vmem:[%s1918_s6 + $0xc8] sm:$0xff] %v398_v25  ;;  %v402_v27 = vld [vmem:[%s1913_s5 + $0x1b0] sm:$0xff] }
  0x23   : > { %401 = vst [vmem:[%s1918_s6 + $0xd0] sm:$0xff] %v400_v26  ;;  %v404_v28 = vld [vmem:[%s1913_s5 + $0x1c0] sm:$0xff]  ;;  %v406_v29 = vld [vmem:[%s1913_s5 + $0x1d0] sm:$0xff]  ;;  %403 = vst [vmem:[%s1918_s6 + $0xd8] sm:$0xff] %v402_v27 }
  0x24   : > { %405 = vst [vmem:[%s1918_s6 + $0xe0] sm:$0xff] %v404_v28  ;;  %407 = vst [vmem:[%s1918_s6 + $0xe8] sm:$0xff] %v406_v29  ;;  %v408_v30 = vld [vmem:[%s1913_s5 + $0x1e0] sm:$0xff]  ;;  %v410_v31 = vld [vmem:[%s1913_s5 + $0x1f0] sm:$0xff] }
  0x25   : > { %v412_v32 = vld [vmem:[%s1913_s5 + $0x200] sm:$0xff]  ;;  %409 = vst [vmem:[%s1918_s6 + $0xf0] sm:$0xff] %v408_v30  ;;  %411 = vst [vmem:[%s1918_s6 + $0xf8] sm:$0xff] %v410_v31  ;;  %v414_v33 = vld [vmem:[%s1913_s5 + $0x210] sm:$0xff] }
  0x26   : > { %413 = vst [vmem:[%s1918_s6 + $0x100] sm:$0xff] %v412_v32  ;;  %v416_v34 = vld [vmem:[%s1913_s5 + $0x220] sm:$0xff]  ;;  %v418_v35 = vld [vmem:[%s1913_s5 + $0x230] sm:$0xff]  ;;  %415 = vst [vmem:[%s1918_s6 + $0x108] sm:$0xff] %v414_v33 }
  0x27   : > { %417 = vst [vmem:[%s1918_s6 + $0x110] sm:$0xff] %v416_v34  ;;  %419 = vst [vmem:[%s1918_s6 + $0x118] sm:$0xff] %v418_v35  ;;  %v420_v36 = vld [vmem:[%s1913_s5 + $0x240] sm:$0xff]  ;;  %v422_v37 = vld [vmem:[%s1913_s5 + $0x250] sm:$0xff] }
  0x28   : > { %v424_v38 = vld [vmem:[%s1913_s5 + $0x260] sm:$0xff]  ;;  %421 = vst [vmem:[%s1918_s6 + $0x120] sm:$0xff] %v420_v36  ;;  %423 = vst [vmem:[%s1918_s6 + $0x128] sm:$0xff] %v422_v37  ;;  %v426_v39 = vld [vmem:[%s1913_s5 + $0x270] sm:$0xff] }
  0x29   : > { %425 = vst [vmem:[%s1918_s6 + $0x130] sm:$0xff] %v424_v38  ;;  %v428_v40 = vld [vmem:[%s1913_s5 + $0x280] sm:$0xff]  ;;  %v430_v41 = vld [vmem:[%s1913_s5 + $0x290] sm:$0xff]  ;;  %427 = vst [vmem:[%s1918_s6 + $0x138] sm:$0xff] %v426_v39 }
  0x2a   : > { %429 = vst [vmem:[%s1918_s6 + $0x140] sm:$0xff] %v428_v40  ;;  %431 = vst [vmem:[%s1918_s6 + $0x148] sm:$0xff] %v430_v41  ;;  %v432_v42 = vld [vmem:[%s1913_s5 + $0x2a0] sm:$0xff]  ;;  %v434_v43 = vld [vmem:[%s1913_s5 + $0x2b0] sm:$0xff] }
  0x2b   : > { %v436_v44 = vld [vmem:[%s1913_s5 + $0x2c0] sm:$0xff]  ;;  %433 = vst [vmem:[%s1918_s6 + $0x150] sm:$0xff] %v432_v42  ;;  %435 = vst [vmem:[%s1918_s6 + $0x158] sm:$0xff] %v434_v43  ;;  %v438_v45 = vld [vmem:[%s1913_s5 + $0x2d0] sm:$0xff] }
  0x2c   : > { %437 = vst [vmem:[%s1918_s6 + $0x160] sm:$0xff] %v436_v44  ;;  %v440_v46 = vld [vmem:[%s1913_s5 + $0x2e0] sm:$0xff]  ;;  %v442_v47 = vld [vmem:[%s1913_s5 + $0x2f0] sm:$0xff]  ;;  %439 = vst [vmem:[%s1918_s6 + $0x168] sm:$0xff] %v438_v45 }
  0x2d   : > { %441 = vst [vmem:[%s1918_s6 + $0x170] sm:$0xff] %v440_v46  ;;  %443 = vst [vmem:[%s1918_s6 + $0x178] sm:$0xff] %v442_v47  ;;  %v444_v48 = vld [vmem:[%s1913_s5 + $0x300] sm:$0xff]  ;;  %v446_v49 = vld [vmem:[%s1913_s5 + $0x310] sm:$0xff] }
  0x2e   : > { %v448_v50 = vld [vmem:[%s1913_s5 + $0x320] sm:$0xff]  ;;  %445 = vst [vmem:[%s1918_s6 + $0x180] sm:$0xff] %v444_v48  ;;  %447 = vst [vmem:[%s1918_s6 + $0x188] sm:$0xff] %v446_v49  ;;  %v450_v51 = vld [vmem:[%s1913_s5 + $0x330] sm:$0xff] }
  0x2f   : > { %449 = vst [vmem:[%s1918_s6 + $0x190] sm:$0xff] %v448_v50  ;;  %v452_v52 = vld [vmem:[%s1913_s5 + $0x340] sm:$0xff]  ;;  %v454_v53 = vld [vmem:[%s1913_s5 + $0x350] sm:$0xff]  ;;  %451 = vst [vmem:[%s1918_s6 + $0x198] sm:$0xff] %v450_v51 }
  0x30   : > { %453 = vst [vmem:[%s1918_s6 + $0x1a0] sm:$0xff] %v452_v52  ;;  %455 = vst [vmem:[%s1918_s6 + $0x1a8] sm:$0xff] %v454_v53  ;;  %v456_v54 = vld [vmem:[%s1913_s5 + $0x360] sm:$0xff]  ;;  %v458_v55 = vld [vmem:[%s1913_s5 + $0x370] sm:$0xff] }
  0x31   : > { %v460_v56 = vld [vmem:[%s1913_s5 + $0x380] sm:$0xff]  ;;  %457 = vst [vmem:[%s1918_s6 + $0x1b0] sm:$0xff] %v456_v54  ;;  %459 = vst [vmem:[%s1918_s6 + $0x1b8] sm:$0xff] %v458_v55  ;;  %v462_v57 = vld [vmem:[%s1913_s5 + $0x390] sm:$0xff] }
  0x32   : > { %461 = vst [vmem:[%s1918_s6 + $0x1c0] sm:$0xff] %v460_v56  ;;  %v464_v58 = vld [vmem:[%s1913_s5 + $0x3a0] sm:$0xff]  ;;  %v466_v59 = vld [vmem:[%s1913_s5 + $0x3b0] sm:$0xff]  ;;  %463 = vst [vmem:[%s1918_s6 + $0x1c8] sm:$0xff] %v462_v57 }
  0x33   : > { %465 = vst [vmem:[%s1918_s6 + $0x1d0] sm:$0xff] %v464_v58  ;;  %467 = vst [vmem:[%s1918_s6 + $0x1d8] sm:$0xff] %v466_v59  ;;  %v468_v60 = vld [vmem:[%s1913_s5 + $0x3c0] sm:$0xff]  ;;  %v470_v61 = vld [vmem:[%s1913_s5 + $0x3d0] sm:$0xff] }
  0x34   : > { %v472_v62 = vld [vmem:[%s1913_s5 + $0x3e0] sm:$0xff]  ;;  %469 = vst [vmem:[%s1918_s6 + $0x1e0] sm:$0xff] %v468_v60  ;;  %471 = vst [vmem:[%s1918_s6 + $0x1e8] sm:$0xff] %v470_v61  ;;  %v474_v63 = vld [vmem:[%s1913_s5 + $0x3f0] sm:$0xff] }
  0x35   : > { %473 = vst [vmem:[%s1918_s6 + $0x1f0] sm:$0xff] %v472_v62  ;;  %475 = vst [vmem:[%s1918_s6 + $0x1f8] sm:$0xff] %v474_v63 }
  0x36 PF: > { %p1536_p8 = scmp.ge.s32.totalorder %s1838_s19, 1  ;;  %p496_p9 = scmp.lt.s32.totalorder %s1838_s19, 3 }
  0x38   : > { %p497_p10 = pnand %p1536_p8, %p496_p9 }
  0x39   : > { %s503_s7 = sand.u32 (!%p497_p10), 1, %s1822_s15   ;;  %v1774_v0 = vld [vmem:[%s2248_s0 + $0x4] ss:$16 sps:$4 sm:$0xff] (!%p497_p10)   ;;  %v1777_v1 = vld [vmem:[%s2248_s0 + $0xc] ss:$16 sps:$4 sm:$0xff] (!%p497_p10)   ;;  %s1539_s9 = sshll.u32 (!%p497_p10), %s1830_s17, 1 }
  0x3a   : > { %500 = sbr.rel (%p497_p10) target bundleno = 415 (0x19f), region = 70  ;;  %s1537_s8 = sshll.u32 (!%p497_p10), %s503_s7, 9  ;;  %1043 = vmatprep.mubr.bf16.mxu1 (!%p497_p10), %v1774_v0  ;;  %1096 = vmatprep.mubr.bf16.mxu0 (!%p497_p10), %v1777_v1 }
  0x3b   : > { %s2056_s13 = scalar_lea.vmem (!%p497_p10), [#allocation3], %s1537_s8  ;;  %p2197_p11 = scmp.lt.s32.totalorder (!%p497_p10), %s1539_s9, 3 }
  0x3c   : > { %v1676_v2 = vld [vmem:[%s2056_s13 + $0x4] ss:$8 sps:$4 sm:$0xff] (!%p497_p10)   ;;  %v1680_v4 = vld [vmem:[%s2056_s13] ss:$8 sps:$4 sm:$0xff] (!%p497_p10)   ;;  %v1682_v6 = vld [vmem:[%s2056_s13 + $0x14] ss:$8 sps:$4 sm:$0xff] (!%p497_p10)  }
  0x3d   : > { %v1678_v3 = vld [vmem:[%s2056_s13 + $0x104] ss:$8 sps:$4 sm:$0xff] (!%p497_p10)   ;;  %1011 = vmatprep.subr.bf16.mxu1 (!%p497_p10), %v1676_v2  ;;  %v1681_v5 = vld [vmem:[%s2056_s13 + $0x100] ss:$8 sps:$4 sm:$0xff] (!%p497_p10)   ;;  %v1684_v7 = vld [vmem:[%s2056_s13 + $0x114] ss:$8 sps:$4 sm:$0xff] (!%p497_p10)  }
  0x3e   : > { %1064 = vmatprep.subr.bf16.mxu0 (!%p497_p10), %v1678_v3  ;;  %1012 = vmatpush1.bf16.msra.mxu1 (!%p497_p10), %v1680_v4  ;;  %v1686_v8 = vld [vmem:[%s2056_s13 + $0x10] ss:$8 sps:$4 sm:$0xff] (!%p497_p10)   ;;  %v1688_v10 = vld [vmem:[%s2056_s13 + $0x24] ss:$8 sps:$4 sm:$0xff] (!%p497_p10)   ;;  %v1692_v12 = vld [vmem:[%s2056_s13 + $0x20] ss:$8 sps:$4 sm:$0xff] (!%p497_p10)  }
  0x3f   : > { %1065 = vmatpush1.bf16.msra.mxu0 (!%p497_p10), %v1681_v5  ;;  %1013 = vmatprep.subr.bf16.mxu1 (!%p497_p10), %v1682_v6  ;;  %v1687_v9 = vld [vmem:[%s2056_s13 + $0x110] ss:$8 sps:$4 sm:$0xff] (!%p497_p10)   ;;  %v1690_v11 = vld [vmem:[%s2056_s13 + $0x124] ss:$8 sps:$4 sm:$0xff] (!%p497_p10)   ;;  %v1693_v13 = vld [vmem:[%s2056_s13 + $0x120] ss:$8 sps:$4 sm:$0xff] (!%p497_p10)  }
  0x40   : > { %1066 = vmatprep.subr.bf16.mxu0 (!%p497_p10), %v1684_v7  ;;  %v1694_v14 = vld [vmem:[%s2056_s13 + $0x34] ss:$8 sps:$4 sm:$0xff] (!%p497_p10)   ;;  %v1698_v16 = vld [vmem:[%s2056_s13 + $0x30] ss:$8 sps:$4 sm:$0xff] (!%p497_p10)   ;;  %v1700_v18 = vld [vmem:[%s2056_s13 + $0x44] ss:$8 sps:$4 sm:$0xff] (!%p497_p10)  }
  0x41   : > { %v1696_v15 = vld [vmem:[%s2056_s13 + $0x134] ss:$8 sps:$4 sm:$0xff]   ;;  %v1699_v17 = vld [vmem:[%s2056_s13 + $0x130] ss:$8 sps:$4 sm:$0xff]   ;;  %v1702_v19 = vld [vmem:[%s2056_s13 + $0x144] ss:$8 sps:$4 sm:$0xff]  }
  0x42   : > { %1014 = vmatpush1.bf16.msra.mxu1 %v1686_v8  ;;  %v1704_v20 = vld [vmem:[%s2056_s13 + $0x40] ss:$8 sps:$4 sm:$0xff]   ;;  %v1706_v22 = vld [vmem:[%s2056_s13 + $0x54] ss:$8 sps:$4 sm:$0xff]   ;;  %v1710_v24 = vld [vmem:[%s2056_s13 + $0x50] ss:$8 sps:$4 sm:$0xff]  }
  0x43   : > { %1067 = vmatpush1.bf16.msra.mxu0 %v1687_v9  ;;  %1015 = vmatprep.subr.bf16.mxu1 %v1688_v10  ;;  %v1705_v21 = vld [vmem:[%s2056_s13 + $0x140] ss:$8 sps:$4 sm:$0xff]   ;;  %v1708_v23 = vld [vmem:[%s2056_s13 + $0x154] ss:$8 sps:$4 sm:$0xff]   ;;  %v1711_v25 = vld [vmem:[%s2056_s13 + $0x150] ss:$8 sps:$4 sm:$0xff]  }
  0x44   : > { %1068 = vmatprep.subr.bf16.mxu0 %v1690_v11  ;;  %v1712_v26 = vld [vmem:[%s2056_s13 + $0x64] ss:$8 sps:$4 sm:$0xff]   ;;  %v1716_v28 = vld [vmem:[%s2056_s13 + $0x60] ss:$8 sps:$4 sm:$0xff]   ;;  %v1718_v30 = vld [vmem:[%s2056_s13 + $0x74] ss:$8 sps:$4 sm:$0xff]  }
  0x45   : > { %v1714_v27 = vld [vmem:[%s2056_s13 + $0x164] ss:$8 sps:$4 sm:$0xff]   ;;  %v1717_v29 = vld [vmem:[%s2056_s13 + $0x160] ss:$8 sps:$4 sm:$0xff]   ;;  %v1720_v31 = vld [vmem:[%s2056_s13 + $0x174] ss:$8 sps:$4 sm:$0xff]  }
  0x46   : > { %1016 = vmatpush1.bf16.msra.mxu1 %v1692_v12  ;;  %v1722_v32 = vld [vmem:[%s2056_s13 + $0x70] ss:$8 sps:$4 sm:$0xff]   ;;  %v1724_v34 = vld [vmem:[%s2056_s13 + $0x84] ss:$8 sps:$4 sm:$0xff]   ;;  %v1728_v36 = vld [vmem:[%s2056_s13 + $0x80] ss:$8 sps:$4 sm:$0xff]  }
  0x47   : > { %1069 = vmatpush1.bf16.msra.mxu0 %v1693_v13  ;;  %1017 = vmatprep.subr.bf16.mxu1 %v1694_v14  ;;  %v1723_v33 = vld [vmem:[%s2056_s13 + $0x170] ss:$8 sps:$4 sm:$0xff]   ;;  %v1726_v35 = vld [vmem:[%s2056_s13 + $0x184] ss:$8 sps:$4 sm:$0xff]   ;;  %v1729_v37 = vld [vmem:[%s2056_s13 + $0x180] ss:$8 sps:$4 sm:$0xff]  }
  0x48   : > { %1070 = vmatprep.subr.bf16.mxu0 %v1696_v15  ;;  %v1730_v38 = vld [vmem:[%s2056_s13 + $0x94] ss:$8 sps:$4 sm:$0xff]   ;;  %v1734_v40 = vld [vmem:[%s2056_s13 + $0x90] ss:$8 sps:$4 sm:$0xff]   ;;  %v1736_v42 = vld [vmem:[%s2056_s13 + $0xa4] ss:$8 sps:$4 sm:$0xff]  }
  0x49   : > { %v1732_v39 = vld [vmem:[%s2056_s13 + $0x194] ss:$8 sps:$4 sm:$0xff]   ;;  %v1735_v41 = vld [vmem:[%s2056_s13 + $0x190] ss:$8 sps:$4 sm:$0xff]   ;;  %v1738_v43 = vld [vmem:[%s2056_s13 + $0x1a4] ss:$8 sps:$4 sm:$0xff]  }
  0x4a   : > { %1018 = vmatpush1.bf16.msra.mxu1 %v1698_v16  ;;  %v1740_v44 = vld [vmem:[%s2056_s13 + $0xa0] ss:$8 sps:$4 sm:$0xff]   ;;  %v1742_v46 = vld [vmem:[%s2056_s13 + $0xb4] ss:$8 sps:$4 sm:$0xff]   ;;  %v1746_v48 = vld [vmem:[%s2056_s13 + $0xb0] ss:$8 sps:$4 sm:$0xff]  }
  0x4b   : > { %1071 = vmatpush1.bf16.msra.mxu0 %v1699_v17  ;;  %1019 = vmatprep.subr.bf16.mxu1 %v1700_v18  ;;  %v1741_v45 = vld [vmem:[%s2056_s13 + $0x1a0] ss:$8 sps:$4 sm:$0xff]   ;;  %v1744_v47 = vld [vmem:[%s2056_s13 + $0x1b4] ss:$8 sps:$4 sm:$0xff]   ;;  %v1747_v49 = vld [vmem:[%s2056_s13 + $0x1b0] ss:$8 sps:$4 sm:$0xff]  }
  0x4c   : > { %1072 = vmatprep.subr.bf16.mxu0 %v1702_v19  ;;  %v1748_v50 = vld [vmem:[%s2056_s13 + $0xc4] ss:$8 sps:$4 sm:$0xff]   ;;  %v1752_v52 = vld [vmem:[%s2056_s13 + $0xc0] ss:$8 sps:$4 sm:$0xff]   ;;  %v1754_v54 = vld [vmem:[%s2056_s13 + $0xd4] ss:$8 sps:$4 sm:$0xff]  }
  0x4d   : > { %v1750_v51 = vld [vmem:[%s2056_s13 + $0x1c4] ss:$8 sps:$4 sm:$0xff]   ;;  %v1753_v53 = vld [vmem:[%s2056_s13 + $0x1c0] ss:$8 sps:$4 sm:$0xff]   ;;  %v1756_v55 = vld [vmem:[%s2056_s13 + $0x1d4] ss:$8 sps:$4 sm:$0xff]  }
  0x4e   : > { %1020 = vmatpush1.bf16.msra.mxu1 %v1704_v20  ;;  %v1758_v56 = vld [vmem:[%s2056_s13 + $0xd0] ss:$8 sps:$4 sm:$0xff]   ;;  %v1760_v58 = vld [vmem:[%s2056_s13 + $0xe4] ss:$8 sps:$4 sm:$0xff]   ;;  %v1764_v60 = vld [vmem:[%s2056_s13 + $0xe0] ss:$8 sps:$4 sm:$0xff]  }
  0x4f   : > { %1073 = vmatpush1.bf16.msra.mxu0 %v1705_v21  ;;  %1021 = vmatprep.subr.bf16.mxu1 %v1706_v22  ;;  %v1759_v57 = vld [vmem:[%s2056_s13 + $0x1d0] ss:$8 sps:$4 sm:$0xff]   ;;  %v1762_v59 = vld [vmem:[%s2056_s13 + $0x1e4] ss:$8 sps:$4 sm:$0xff]   ;;  %v1765_v61 = vld [vmem:[%s2056_s13 + $0x1e0] ss:$8 sps:$4 sm:$0xff]  }
  0x50   : > { %1074 = vmatprep.subr.bf16.mxu0 %v1708_v23  ;;  %v1766_v62 = vld [vmem:[%s2056_s13 + $0xf4] ss:$8 sps:$4 sm:$0xff]   ;;  %v1770_v0 = vld [vmem:[%s2056_s13 + $0xf0] ss:$8 sps:$4 sm:$0xff]   ;;  %s2262_s9 = smov (!%p2197_p11, %s1539_s9), 3  ;;  %s1538_s23 = sshll.u32 %s503_s7, 5 }
  0x51   : > { %v1768_v63 = vld [vmem:[%s2056_s13 + $0x1f4] ss:$8 sps:$4 sm:$0xff]   ;;  %v1771_v1 = vld [vmem:[%s2056_s13 + $0x1f0] ss:$8 sps:$4 sm:$0xff]   ;;  %s551_s13 = scalar_lea.vmem %s2250_s2, %s2262_s9  ;;  %s556_s22 = scalar_lea.vmem %s2251_s3, %s2262_s9 }
  0x52   : > { %1022 = vmatpush1.bf16.msra.mxu1 %v1710_v24  ;;  %v1772_v2 = vld [vmem:[%s2248_s0] ss:$16 sps:$4 sm:$0xff]   ;;  %v1775_v3 = vld [vmem:[%s2248_s0 + $0x8] ss:$16 sps:$4 sm:$0xff]   ;;  %v1778_v4 = vld [vmem:[%s2248_s0 + $0x24] ss:$16 sps:$4 sm:$0xff]   ;;  %v1299_v24 = vlaneseq }
  0x53   : > { %1075 = vmatpush1.bf16.msra.mxu0 %v1711_v25  ;;  %1023 = vmatprep.subr.bf16.mxu1 %v1712_v26  ;;  %v1780_v5 = vld [vmem:[%s2248_s0 + $0x2c] ss:$16 sps:$4 sm:$0xff]   ;;  %v1782_v6 = vld [vmem:[%s2248_s0 + $0x20] ss:$16 sps:$4 sm:$0xff]   ;;  %v1783_v7 = vld [vmem:[%s2248_s0 + $0x28] ss:$16 sps:$4 sm:$0xff]  }
  0x54   : > { %1076 = vmatprep.subr.bf16.mxu0 %v1714_v27  ;;  %s539_s15 = scalar_lea.vmem [#allocation4], %s1538_s23  ;;  %s1627_s7 = sshll.u32 (%p1900_p6), %s1830_s17, 3 }
  0x55   : > { %s1382_s28 = scalar_lea.vmem (%p1900_p6), %s2252_s4, %s1627_s7 }
  0x56   : > { %1024 = vmatpush1.bf16.msra.mxu1 %v1716_v28 }
  0x57   : > { %1077 = vmatpush1.bf16.msra.mxu0 %v1717_v29  ;;  %1025 = vmatprep.subr.bf16.mxu1 %v1718_v30 }
  0x58   : > { %1078 = vmatprep.subr.bf16.mxu0 %v1720_v31 }
  0x5a   : > { %1026 = vmatpush1.bf16.msra.mxu1 %v1722_v32 }
  0x5b   : > { %1079 = vmatpush1.bf16.msra.mxu0 %v1723_v33  ;;  %1027 = vmatprep.subr.bf16.mxu1 %v1724_v34 }
  0x5c   : > { %1080 = vmatprep.subr.bf16.mxu0 %v1726_v35 }
  0x5e   : > { %1028 = vmatpush1.bf16.msra.mxu1 %v1728_v36 }
  0x5f   : > { %1081 = vmatpush1.bf16.msra.mxu0 %v1729_v37  ;;  %1029 = vmatprep.subr.bf16.mxu1 %v1730_v38  ;;  %v2142_v38 = vshrl.u32 %v1299_v24, 7 }
  0x60   : > { %1082 = vmatprep.subr.bf16.mxu0 %v1732_v39 }
  0x62   : > { %1030 = vmatpush1.bf16.msra.mxu1 %v1734_v40 }
  0x63   : > { %1083 = vmatpush1.bf16.msra.mxu0 %v1735_v41  ;;  %1031 = vmatprep.subr.bf16.mxu1 %v1736_v42 }
  0x64   : > { %1084 = vmatprep.subr.bf16.mxu0 %v1738_v43 }
  0x66   : > { %1032 = vmatpush1.bf16.msra.mxu1 %v1740_v44 }
  0x67   : > { %1085 = vmatpush1.bf16.msra.mxu0 %v1741_v45  ;;  %1033 = vmatprep.subr.bf16.mxu1 %v1742_v46 }
  0x68   : > { %1086 = vmatprep.subr.bf16.mxu0 %v1744_v47 }
  0x6a   : > { %1034 = vmatpush1.bf16.msra.mxu1 %v1746_v48 }
  0x6b   : > { %1087 = vmatpush1.bf16.msra.mxu0 %v1747_v49  ;;  %1035 = vmatprep.subr.bf16.mxu1 %v1748_v50 }
  0x6c   : > { %1088 = vmatprep.subr.bf16.mxu0 %v1750_v51 }
  0x6e   : > { %1036 = vmatpush1.bf16.msra.mxu1 %v1752_v52 }
  0x6f   : > { %1089 = vmatpush1.bf16.msra.mxu0 %v1753_v53  ;;  %1037 = vmatprep.subr.bf16.mxu1 %v1754_v54 }
  0x70   : > { %1090 = vmatprep.subr.bf16.mxu0 %v1756_v55 }
  0x72   : > { %1038 = vmatpush1.bf16.msra.mxu1 %v1758_v56 }
  0x73   : > { %1091 = vmatpush1.bf16.msra.mxu0 %v1759_v57  ;;  %1039 = vmatprep.subr.bf16.mxu1 %v1760_v58 }
  0x74   : > { %1092 = vmatprep.subr.bf16.mxu0 %v1762_v59 }
  0x76   : > { %1040 = vmatpush1.bf16.msra.mxu1 %v1764_v60 }
  0x77   : > { %1093 = vmatpush1.bf16.msra.mxu0 %v1765_v61  ;;  %1041 = vmatprep.subr.bf16.mxu1 %v1766_v62 }
  0x78   : > { %1094 = vmatprep.subr.bf16.mxu0 %v1768_v63 }
  0x7a   : > { %1042 = vmatpush1.bf16.msra.mxu1 %v1770_v0 }
  0x7b   : > { %1095 = vmatpush1.bf16.msra.mxu0 %v1771_v1 }
  0x7d   : > { %1044 = vmatmul.mubr.bf16.vlgmr.msra.gmra.mrb[0].mxu1 %v1772_v2 }
  0x7e   : > { %1097 = vmatmul.mubr.bf16.vlgmr.msra.gmra.mrb[0].mxu0 %v1775_v3  ;;  %1053 = vmatprep.mubr.bf16.mxu1 %v1778_v4 }
  0x7f   : > { %1106 = vmatprep.mubr.bf16.mxu0 %v1780_v5 }
  0x85   : > { %1054 = vmatmul.mubr.bf16.gmra.mrb[4].mxu1 %v1782_v6 }
  0x86   : > { %1107 = vmatmul.mubr.bf16.gmra.mrb[4].mxu0 %v1783_v7 }
 0x150   : > { %v1045_v8 = vpop.f32.mrb[0].mxu1 }
 0x151   : > { %v1098_v9 = vpop.f32.mrb[0].mxu0  ;;  %v1047_v11 = vpop.f32.mrb[1].mxu1 }
 0x152   : > { %v1099_v10 = vadd.f32 %v1098_v9, %v1045_v8  ;;  %v1100_v12 = vpop.f32.mrb[1].mxu0  ;;  %v1049_v14 = vpop.f32.mrb[2].mxu1 }
 0x153   : > { %v1101_v13 = vadd.f32 %v1100_v12, %v1047_v11  ;;  %v1102_v15 = vpop.f32.mrb[2].mxu0  ;;  %v1051_v18 = vpop.f32.mrb[3].mxu1 }
 0x154   : > { %v1144_v16 = vrot.slane %v1099_v10, 4  ;;  %v1103_v17 = vadd.f32 %v1102_v15, %v1049_v14  ;;  %v1104_v19 = vpop.f32.mrb[3].mxu0 }
 0x155   : > { %v1150_v20 = vrot.slane %v1101_v13, 4  ;;  %v1105_v21 = vadd.f32 %v1104_v19, %v1051_v18 }
 0x156   : > { %v1145_v22 = vadd.f32 %v1144_v16, %v1099_v10  ;;  %v1156_v23 = vrot.slane %v1103_v17, 4 }
 0x157   : > { %v1151_v25 = vadd.f32 %v1150_v20, %v1101_v13  ;;  %v1162_v26 = vrot.slane %v1105_v21, 4 }
 0x158   : > { %v1146_v27 = vrot.slane %v1145_v22, 2  ;;  %v1157_v28 = vadd.f32 %v1156_v23, %v1103_v17  ;;  %v1055_v31 = vpop.f32.mrb[4].mxu1 }
 0x159   : > { %v1152_v29 = vrot.slane %v1151_v25, 2  ;;  %v1163_v30 = vadd.f32 %v1162_v26, %v1105_v21  ;;  %v1108_v32 = vpop.f32.mrb[4].mxu0  ;;  %v1057_v36 = vpop.f32.mrb[5].mxu1 }
 0x15a   : > { %v1147_v33 = vadd.f32 %v1146_v27, %v1145_v22  ;;  %v1158_v34 = vrot.slane %v1157_v28, 2  ;;  %v2140_v35 = vadd.f32 %v1108_v32, %v1055_v31  ;;  %v1110_v37 = vpop.f32.mrb[5].mxu0  ;;  %v1059_v42 = vpop.f32.mrb[6].mxu1 }
 0x15b   : > { %v1153_v39 = vadd.f32 %v1152_v29, %v1151_v25  ;;  %v1164_v40 = vrot.slane %v1163_v30, 2  ;;  %v2144_v41 = vadd.f32 %v1110_v37, %v1057_v36  ;;  %v1112_v43 = vpop.f32.mrb[6].mxu0  ;;  %v1061_v48 = vpop.f32.mrb[7].mxu1 }
 0x15c   : > { %v1148_v44 = vrot.slane %v1147_v33, 1  ;;  %v1159_v45 = vadd.f32 %v1158_v34, %v1157_v28  ;;  %v1168_v46 = vrot.slane %v2140_v35, 4  ;;  %v2147_v47 = vadd.f32 %v1112_v43, %v1059_v42  ;;  %v1114_v49 = vpop.f32.mrb[7].mxu0 }
 0x15d   : > { %v1154_v50 = vrot.slane %v1153_v39, 1  ;;  %v1165_v51 = vadd.f32 %v1164_v40, %v1163_v30  ;;  %v1174_v52 = vrot.slane %v2144_v41, 4  ;;  %v2150_v53 = vadd.f32 %v1114_v49, %v1061_v48 }
 0x15e   : > { %v1149_v54 = vadd.f32 %v1148_v44, %v1147_v33  ;;  %v1160_v55 = vrot.slane %v1159_v45, 1  ;;  %v1169_v56 = vadd.f32 %v1168_v46, %v2140_v35  ;;  %v1180_v57 = vrot.slane %v2147_v47, 4 }
 0x15f   : > { %v1155_v58 = vadd.f32 %v1154_v50, %v1153_v39  ;;  %v1166_v59 = vrot.slane %v1165_v51, 1  ;;  %v1175_v60 = vadd.f32 %v1174_v52, %v2144_v41  ;;  %v1186_v61 = vrot.slane %v2150_v53, 4 }
 0x160   : > { %v1193_v62 = vmul.f32 0.125, %v1149_v54  ;;  %v1161_v63 = vadd.f32 %v1160_v55, %v1159_v45  ;;  %v1170_v0 = vrot.slane %v1169_v56, 2  ;;  %v1181_v1 = vadd.f32 %v1180_v57, %v2147_v47 }
 0x161   : > { %v1194_v2 = vmul.f32 0.125, %v1155_v58  ;;  %v1167_v3 = vadd.f32 %v1166_v59, %v1165_v51  ;;  %v1176_v4 = vrot.slane %v1175_v60, 2  ;;  %v1187_v5 = vadd.f32 %v1186_v61, %v2150_v53 }
 0x162   : > { %v2158_v6 = vsub.f32 %v1099_v10, %v1193_v62  ;;  %v1195_v7 = vmul.f32 0.125, %v1161_v63  ;;  %v1171_v8 = vadd.f32 %v1170_v0, %v1169_v56  ;;  %v1182_v9 = vrot.slane %v1181_v1, 2 }
 0x163   : > { %v2160_v11 = vsub.f32 %v1101_v13, %v1194_v2  ;;  %v1196_v12 = vmul.f32 0.125, %v1167_v3  ;;  %v1177_v14 = vadd.f32 %v1176_v4, %v1175_v60  ;;  %v1188_v15 = vrot.slane %v1187_v5, 2 }
 0x164   : > { %v1209_v16 = vmul.f32 %v2158_v6, %v2158_v6  ;;  %v2164_v18 = vsub.f32 %v1103_v17, %v1195_v7  ;;  %v1172_v19 = vrot.slane %v1171_v8, 1  ;;  %v1183_v20 = vadd.f32 %v1182_v9, %v1181_v1 }
 0x165   : > { %v1210_v22 = vmul.f32 %v2160_v11, %v2160_v11  ;;  %v2168_v10 = vsub.f32 %v1105_v21, %v1196_v12  ;;  %v1178_v23 = vrot.slane %v1177_v14, 1  ;;  %v1189_v24 = vadd.f32 %v1188_v15, %v1187_v5 }
 0x166   : > { %v1217_v25 = vrot.slane %v1209_v16, 4  ;;  %v1211_v13 = vmul.f32 %v2164_v18, %v2164_v18  ;;  %v1173_v26 = vadd.f32 %v1172_v19, %v1171_v8  ;;  %v1184_v27 = vrot.slane %v1183_v20, 1 }
 0x167   : > { %v1223_v28 = vrot.slane %v1210_v22, 4  ;;  %v1212_v17 = vmul.f32 %v2168_v10, %v2168_v10  ;;  %v1179_v29 = vadd.f32 %v1178_v23, %v1177_v14  ;;  %v1190_v30 = vrot.slane %v1189_v24, 1 }
 0x168   : > { %v1218_v31 = vadd.f32 %v1217_v25, %v1209_v16  ;;  %v1229_v32 = vrot.slane %v1211_v13, 4  ;;  %v1197_v33 = vmul.f32 0.125, %v1173_v26  ;;  %v1185_v34 = vadd.f32 %v1184_v27, %v1183_v20 }
 0x169   : > { %v1224_v21 = vadd.f32 %v1223_v28, %v1210_v22  ;;  %v1235_v36 = vrot.slane %v1212_v17, 4  ;;  %v1198_v37 = vmul.f32 0.125, %v1179_v29  ;;  %v1191_v39 = vadd.f32 %v1190_v30, %v1189_v24 }
 0x16a   : > { %v1219_v40 = vrot.slane %v1218_v31, 2  ;;  %v1230_v42 = vadd.f32 %v1229_v32, %v1211_v13  ;;  %v2175_v43 = vsub.f32 %v2140_v35, %v1197_v33  ;;  %v1199_v44 = vmul.f32 0.125, %v1185_v34 }
 0x16b   : > { %v1225_v45 = vrot.slane %v1224_v21, 2  ;;  %v1236_v46 = vadd.f32 %v1235_v36, %v1212_v17  ;;  %v2178_v48 = vsub.f32 %v2144_v41, %v1198_v37  ;;  %v1200_v49 = vmul.f32 0.125, %v1191_v39 }
 0x16c   : > { %v1220_v50 = vadd.f32 %v1219_v40, %v1218_v31  ;;  %v1231_v51 = vrot.slane %v1230_v42, 2  ;;  %v1213_v52 = vmul.f32 %v2175_v43, %v2175_v43  ;;  %v2183_v54 = vsub.f32 %v2147_v47, %v1199_v44 }
 0x16d   : > { %v1226_v55 = vadd.f32 %v1225_v45, %v1224_v21  ;;  %v1237_v56 = vrot.slane %v1236_v46, 2  ;;  %v1214_v35 = vmul.f32 %v2178_v48, %v2178_v48  ;;  %v2188_v57 = vsub.f32 %v2150_v53, %v1200_v49 }
 0x16e   : > { %v1221_v41 = vrot.slane %v1220_v50, 1  ;;  %v1232_v58 = vadd.f32 %v1231_v51, %v1230_v42  ;;  %v1241_v59 = vrot.slane %v1213_v52, 4  ;;  %v1215_v60 = vmul.f32 %v2183_v54, %v2183_v54 }
 0x16f   : > { %v1227_v61 = vrot.slane %v1226_v55, 1  ;;  %v1238_v62 = vadd.f32 %v1237_v56, %v1236_v46  ;;  %v1247_v47 = vrot.slane %v1214_v35, 4  ;;  %v1216_v63 = vmul.f32 %v2188_v57, %v2188_v57  ;;  %v1297_v46 = vld [vmem:[%s551_s13] sm:$0x3] }
 0x170   : > { %v1222_v0 = vadd.f32 %v1221_v41, %v1220_v50  ;;  %v1233_v1 = vrot.slane %v1232_v58, 1  ;;  %v1242_v2 = vadd.f32 %v1241_v59, %v1213_v52  ;;  %v1253_v3 = vrot.slane %v1215_v60, 4  ;;  %v1317_v56 = vld [vmem:[%s556_s22] sm:$0x3] }
 0x171   : > { %v1228_v53 = vadd.f32 %v1227_v61, %v1226_v55  ;;  %v1239_v4 = vrot.slane %v1238_v62, 1  ;;  %v1248_v5 = vadd.f32 %v1247_v47, %v1214_v35  ;;  %v1259_v7 = vrot.slane %v1216_v63, 4 }
 0x172   : > { %v1265_v8 = vmul.f32 0.125, %v1222_v0  ;;  %v1234_v9 = vadd.f32 %v1233_v1, %v1232_v58  ;;  %v1243_v12 = vrot.slane %v1242_v2, 2  ;;  %v1254_v14 = vadd.f32 %v1253_v3, %v1215_v60 }
 0x173   : > { %v1266_v15 = vmul.f32 0.125, %v1228_v53  ;;  %v1240_v16 = vadd.f32 %v1239_v4, %v1238_v62  ;;  %v1249_v19 = vrot.slane %v1248_v5, 2  ;;  %v1260_v20 = vadd.f32 %v1259_v7, %v1216_v63 }
 0x174   : > { %v1273_v22 = vadd.f32 1e-05, %v1265_v8  ;;  %v1267_v23 = vmul.f32 0.125, %v1234_v9  ;;  %v1244_v24 = vadd.f32 %v1243_v12, %v1242_v2  ;;  %v1255_v25 = vrot.slane %v1254_v14, 2 }
 0x175   : > { %v1274_v13 = vadd.f32 1e-05, %v1266_v15  ;;  %v1268_v26 = vmul.f32 0.125, %v1240_v16  ;;  %v1250_v27 = vadd.f32 %v1249_v19, %v1248_v5  ;;  %v1261_v28 = vrot.slane %v1260_v20, 2 }
 0x176   : > { %1784 = vrsqrt.f32 %v1273_v22  ;;  %v1275_v17 = vadd.f32 1e-05, %v1267_v23  ;;  %v1245_v29 = vrot.slane %v1244_v24, 1  ;;  %v1256_v30 = vadd.f32 %v1255_v25, %v1254_v14 }
 0x177   : > { %1786 = vrsqrt.f32 %v1274_v13  ;;  %v1276_v31 = vadd.f32 1e-05, %v1268_v26  ;;  %v1251_v32 = vrot.slane %v1250_v27, 1  ;;  %v1262_v33 = vadd.f32 %v1261_v28, %v1260_v20 }
 0x178   : > { %1788 = vrsqrt.f32 %v1275_v17  ;;  %v1246_v34 = vadd.f32 %v1245_v29, %v1244_v24  ;;  %v1257_v21 = vrot.slane %v1256_v30, 1  ;;  %v1301_v42 = vsub.s32 0, %v2142_v38 }
 0x179   : > { %1790 = vrsqrt.f32 %v1276_v31  ;;  %v1252_v36 = vadd.f32 %v1251_v32, %v1250_v27  ;;  %v1263_v37 = vrot.slane %v1262_v33, 1  ;;  %v1305_v49 = vsub.s32 1, %v2142_v38 }
 0x17a   : > { %v1269_v39 = vmul.f32 0.125, %v1246_v34  ;;  %v1258_v40 = vadd.f32 %v1257_v21, %v1256_v30  ;;  %v1302_v41 = vrot.slane %v1297_v46, %v1301_v42  ;;  %v1322_v47 = vrot.slane %v1317_v56, %v1301_v42 }
 0x17b   : > { %v1270_v44 = vmul.f32 0.125, %v1252_v36  ;;  %v1264_v45 = vadd.f32 %v1263_v37, %v1262_v33  ;;  %v1306_v60 = vrot.slane %v1297_v46, %v1305_v49  ;;  %v1326_v0 = vrot.slane %v1317_v56, %v1305_v49 }
 0x17c   : > { %v1277_v50 = vadd.f32 1e-05, %v1269_v39  ;;  %v1271_v51 = vmul.f32 0.125, %v1258_v40 }
 0x17d   : > { %v1278_v52 = vadd.f32 1e-05, %v1270_v44  ;;  %v1272_v55 = vmul.f32 0.125, %v1264_v45 }
 0x17e   : > { %1792 = vrsqrt.f32 %v1277_v50  ;;  %v1279_v35 = vadd.f32 1e-05, %v1271_v51 }
 0x17f   : > { %1794 = vrsqrt.f32 %v1278_v52  ;;  %v1280_v58 = vadd.f32 1e-05, %v1272_v55 }
 0x180   : > { %v1785_v59 = vpop.eup %1784  ;;  %1796 = vrsqrt.f32 %v1279_v35 }
 0x181   : > { %v1787_v61 = vpop.eup %1786  ;;  %v1289_v62 = vmul.f32 %v1785_v59, %v2158_v6  ;;  %1798 = vrsqrt.f32 %v1280_v58 }
 0x182   : > { %v1789_v38 = vpop.eup %1788  ;;  %v1290_v63 = vmul.f32 %v1787_v61, %v2160_v11 }
 0x183   : > { %v1791_v1 = vpop.eup %1790  ;;  %v1309_v2 = vmul.f32 %v1302_v41, %v1289_v62  ;;  %v1291_v3 = vmul.f32 %v1789_v38, %v2164_v18 }
 0x184   : > { %v1310_v53 = vmul.f32 %v1306_v60, %v1290_v63  ;;  %v1292_v4 = vmul.f32 %v1791_v1, %v2168_v10 }
 0x185   : > { %v1329_v5 = vadd.f32 %v1322_v47, %v1309_v2  ;;  %v1311_v7 = vmul.f32 %v1302_v41, %v1291_v3 }
 0x186   : > { %v1330_v8 = vadd.f32 %v1326_v0, %v1310_v53  ;;  %v1312_v9 = vmul.f32 %v1306_v60, %v1292_v4 }
 0x187   : > { %v1337_v6 = vmax.f32 %v1329_v5, 0.0  ;;  %v1331_v12 = vadd.f32 %v1322_v47, %v1311_v7 }
 0x188   : > { %v1793_v14 = vpop.eup %1792  ;;  %v1338_v15 = vmax.f32 %v1330_v8, 0.0  ;;  %v1332_v16 = vadd.f32 %v1326_v0, %v1312_v9 }
 0x189   : > { %v1795_v11 = vpop.eup %1794  ;;  %v1339_v19 = vmax.f32 %v1331_v12, 0.0  ;;  %v1293_v20 = vmul.f32 %v1793_v14, %v2175_v43 }
 0x18a   : > { %v1797_v22 = vpop.eup %1796  ;;  %v1623_v18 = vpack.c.bf16 %v1338_v15, %v1337_v6  ;;  %v1340_v23 = vmax.f32 %v1332_v16, 0.0  ;;  %v1294_v10 = vmul.f32 %v1795_v11, %v2178_v48 }
 0x18b   : > { %v1799_v24 = vpop.eup %1798  ;;  %v1313_v25 = vmul.f32 %v1302_v41, %v1293_v20  ;;  %v1295_v13 = vmul.f32 %v1797_v22, %v2183_v54 }
 0x18c   : > { %1369 = vst [vmem:[%s539_s15] sm:$0xff] %v1623_v18  ;;  %v1624_v26 = vpack.c.bf16 %v1340_v23, %v1339_v19  ;;  %v1314_v27 = vmul.f32 %v1306_v60, %v1294_v10  ;;  %v1296_v28 = vmul.f32 %v1799_v24, %v2188_v57 }
 0x18d   : > { %v1333_v17 = vadd.f32 %v1322_v47, %v1313_v25  ;;  %v1315_v29 = vmul.f32 %v1302_v41, %v1295_v13 }
 0x18e   : > { %1370 = vst [vmem:[%s539_s15 + $0x8] sm:$0xff] %v1624_v26  ;;  %v1334_v30 = vadd.f32 %v1326_v0, %v1314_v27  ;;  %v1316_v43 = vmul.f32 %v1306_v60, %v1296_v28 }
 0x18f   : > { %v1341_v31 = vmax.f32 %v1333_v17, 0.0  ;;  %v1335_v32 = vadd.f32 %v1322_v47, %v1315_v29 }
 0x190   : > { %v1342_v33 = vmax.f32 %v1334_v30, 0.0  ;;  %v1336_v34 = vadd.f32 %v1326_v0, %v1316_v43  ;;  %1379 = sbr.rel (!%p1900_p6) target bundleno = 415 (0x19f), region = 86 }
 0x191   : > { %v1343_v48 = vmax.f32 %v1335_v32, 0.0 }
 0x192   : > { %v1625_v21 = vpack.c.bf16 %v1342_v33, %v1341_v31  ;;  %v1344_v36 = vmax.f32 %v1336_v34, 0.0 }
 0x193   : > { %v1416_v57 = vld [vmem:[%s539_s15] sm:$0xff] (%p1900_p6) }
 0x194   : > { %1371 = vst [vmem:[%s539_s15 + $0x10] sm:$0xff] %v1625_v21  ;;  %v1626_v54 = vpack.c.bf16 %v1344_v36, %v1343_v48  ;;  %1417 = vst [vmem:[%s1382_s28] sm:$0xff] (%p1900_p6), %v1416_v57 }
 0x195   : > { %v1418_v37 = vld [vmem:[%s539_s15 + $0x8] sm:$0xff] (%p1900_p6) }
 0x196   : > { %1372 = vst [vmem:[%s539_s15 + $0x18] sm:$0xff] %v1626_v54  ;;  %1419 = vst [vmem:[%s1382_s28 + $0x10] sm:$0xff] (%p1900_p6), %v1418_v37 }
 0x19b   : > { %v1420_v39 = vld [vmem:[%s539_s15 + $0x10] sm:$0xff] }
 0x19c   : > { %1421 = vst [vmem:[%s1382_s28 + $0x20] sm:$0xff] %v1420_v39 }
 0x19d   : > { %v1422_v40 = vld [vmem:[%s539_s15 + $0x18] sm:$0xff] }
 0x19e   : > { %1423 = vst [vmem:[%s1382_s28 + $0x30] sm:$0xff] %v1422_v40 }
 0x19f PF: > { %s14_s19 = sadd.s32 1, %s1838_s19   ;;  %s2255_s15 = smov %s1826_s16 }
 0x1a0   : > { %p11_p12 = scmp.ge.s32.totalorder %s14_s19, 4   ;;  %s2256_s16 = smov %s1905_s25 }
 0x1a1   : > { %s2257_s17 = smov %s1834_s18  ;;  %s2258_s18 = smov %s2260_s20 }
 0x1a2   :  { %13 = sbr.rel (!%p11_p12) target bundleno = 3 (0x3), region = 164 }

// kernel: decur_forward.14
= control target key start
LH: loop header
LB: loop body
LE: loop exit
PB: predicated region body
PF: predicated region fallthrough
CT: control target
= control target key end

     0   :  { %s1416_s9 = smov 0   ;;  %s1418_s10 = smov 0   ;;  %s1682_s0 = inlined_call_operand.vmem [shape: bf16[32,512], index: 0, kind: input, shape index: {}]   ;;  %s1683_s1 = inlined_call_operand.vmem [shape: bf16[512,256], index: 1, kind: input, shape index: {}]   ;;  %s1684_s2 = inlined_call_operand.vmem [shape: bf16[32,256], index: 2, kind: output, shape index: {}]  }
   0x1   :  { %s1420_s11 = smov 0   ;;  %s1422_s12 = smov 0  }
   0x2   :  { %s1424_s13 = smov 0  }
   0x3 LB: > { %s24_s14 = sadd.s32 1, %s1395_s12  ;;  %s1140_s15 = sadd.s32 4294967295, %s1399_s13   ;;  %s1399_s13 = sphi %s1424_s13, %s12_s13   ;;  %s1395_s12 = sphi %s1422_s12, %s1689_s12   ;;  %s1391_s11 = sphi %s1420_s11, %s1688_s11   ;;  %s1387_s10 = sphi %s1418_s10, %s1687_s10   ;;  %s1383_s9 = sphi %s1416_s9, %s1686_s9  }
   0x4   : > { %p26_p0 = scmp.ge.s32.totalorder %s24_s14, 2  ;;  %p66_p1 = scmp.ne.s32.totalorder %s1387_s10, %s1383_s9 }
   0x5   : > { %p67_p2 = scmp.eq.s32.totalorder %s1399_s13, 0  ;;  %p96_p4 = scmp.eq.s32.totalorder %s1140_s15, 1 }
   0x6   : > { %s1691_s14 = smov (%p26_p0, %s24_s14), 0  ;;  %s59_s17 = sadd.s32 1, %s1387_s10 }
   0x7   : > { %p68_p3 = por %p67_p2, %p66_p1  ;;  %s55_s16 = ssub.s32 %s1395_s12, %s1691_s14 }
   0x8   : > { %p57_p5 = scmp.eq.s32.totalorder %s55_s16, 0  ;;  %p1451_p6 = por %p96_p4, %p66_p1 }
   0x9   : > { %p1144_p7 = scmp.ge.s32.totalorder %s1399_s13, 2 }
   0xa   : > { %s1456_s19 = scalar_select %p57_p5, %s1387_s10, %s59_s17  }
   0xb   : > { %127 = sbr.rel (%p1144_p7) target bundleno = 64 (0x40), region = 20 }
  0x12   : > { %130 = sbr.rel (!%p68_p3) target bundleno = 64 (0x40), region = 24  ;;  %s132_s20 = sand.u32 (%p68_p3), 1, %s1387_s10  }
  0x13   : > { %s1146_s21 = sshll.u32 (%p68_p3), %s1395_s12, 2  ;;  %s1145_s22 = sshll.u32 (%p68_p3), %s132_s20, 8 }
  0x14   : > { %s1464_s25 = scalar_lea.vmem (%p68_p3), %s1683_s1, %s1146_s21  ;;  %s1468_s26 = scalar_lea.vmem (%p68_p3), [#allocation3], %s1145_s22 }
  0x15   : > { %v155_v0 = vld [vmem:[%s1464_s25] sm:$0xf] (%p68_p3)  ;;  %v157_v1 = vld [vmem:[%s1464_s25 + $0x8] sm:$0xf] (%p68_p3)  ;;  %v159_v2 = vld [vmem:[%s1464_s25 + $0x10] sm:$0xf] (%p68_p3) }
  0x16   : > { %156 = vst [vmem:[%s1468_s26] sm:$0xf] (%p68_p3), %v155_v0  ;;  %158 = vst [vmem:[%s1468_s26 + $0x4] sm:$0xf] (%p68_p3), %v157_v1  ;;  %v161_v3 = vld [vmem:[%s1464_s25 + $0x18] sm:$0xf] (%p68_p3) }
  0x17   : > { %v163_v4 = vld [vmem:[%s1464_s25 + $0x20] sm:$0xf] (%p68_p3)  ;;  %160 = vst [vmem:[%s1468_s26 + $0x8] sm:$0xf] (%p68_p3), %v159_v2  ;;  %162 = vst [vmem:[%s1468_s26 + $0xc] sm:$0xf] (%p68_p3), %v161_v3 }
  0x18   : > { %164 = vst [vmem:[%s1468_s26 + $0x10] sm:$0xf] (%p68_p3), %v163_v4  ;;  %v165_v5 = vld [vmem:[%s1464_s25 + $0x28] sm:$0xf] (%p68_p3)  ;;  %v167_v6 = vld [vmem:[%s1464_s25 + $0x30] sm:$0xf] (%p68_p3) }
  0x19   : > { %v169_v7 = vld [vmem:[%s1464_s25 + $0x38] sm:$0xf]  ;;  %166 = vst [vmem:[%s1468_s26 + $0x14] sm:$0xf] %v165_v5  ;;  %168 = vst [vmem:[%s1468_s26 + $0x18] sm:$0xf] %v167_v6 }
  0x1a   : > { %170 = vst [vmem:[%s1468_s26 + $0x1c] sm:$0xf] %v169_v7  ;;  %v171_v8 = vld [vmem:[%s1464_s25 + $0x40] sm:$0xf]  ;;  %v173_v9 = vld [vmem:[%s1464_s25 + $0x48] sm:$0xf] }
  0x1b   : > { %v175_v10 = vld [vmem:[%s1464_s25 + $0x50] sm:$0xf]  ;;  %172 = vst [vmem:[%s1468_s26 + $0x20] sm:$0xf] %v171_v8  ;;  %174 = vst [vmem:[%s1468_s26 + $0x24] sm:$0xf] %v173_v9 }
  0x1c   : > { %176 = vst [vmem:[%s1468_s26 + $0x28] sm:$0xf] %v175_v10  ;;  %v177_v11 = vld [vmem:[%s1464_s25 + $0x58] sm:$0xf]  ;;  %v179_v12 = vld [vmem:[%s1464_s25 + $0x60] sm:$0xf] }
  0x1d   : > { %v181_v13 = vld [vmem:[%s1464_s25 + $0x68] sm:$0xf]  ;;  %178 = vst [vmem:[%s1468_s26 + $0x2c] sm:$0xf] %v177_v11  ;;  %180 = vst [vmem:[%s1468_s26 + $0x30] sm:$0xf] %v179_v12 }
  0x1e   : > { %182 = vst [vmem:[%s1468_s26 + $0x34] sm:$0xf] %v181_v13  ;;  %v183_v14 = vld [vmem:[%s1464_s25 + $0x70] sm:$0xf]  ;;  %v185_v15 = vld [vmem:[%s1464_s25 + $0x78] sm:$0xf] }
  0x1f   : > { %v187_v16 = vld [vmem:[%s1464_s25 + $0x80] sm:$0xf]  ;;  %184 = vst [vmem:[%s1468_s26 + $0x38] sm:$0xf] %v183_v14  ;;  %186 = vst [vmem:[%s1468_s26 + $0x3c] sm:$0xf] %v185_v15 }
  0x20   : > { %188 = vst [vmem:[%s1468_s26 + $0x40] sm:$0xf] %v187_v16  ;;  %v189_v17 = vld [vmem:[%s1464_s25 + $0x88] sm:$0xf]  ;;  %v191_v18 = vld [vmem:[%s1464_s25 + $0x90] sm:$0xf] }
  0x21   : > { %v193_v19 = vld [vmem:[%s1464_s25 + $0x98] sm:$0xf]  ;;  %190 = vst [vmem:[%s1468_s26 + $0x44] sm:$0xf] %v189_v17  ;;  %192 = vst [vmem:[%s1468_s26 + $0x48] sm:$0xf] %v191_v18 }
  0x22   : > { %194 = vst [vmem:[%s1468_s26 + $0x4c] sm:$0xf] %v193_v19  ;;  %v195_v20 = vld [vmem:[%s1464_s25 + $0xa0] sm:$0xf]  ;;  %v197_v21 = vld [vmem:[%s1464_s25 + $0xa8] sm:$0xf] }
  0x23   : > { %v199_v22 = vld [vmem:[%s1464_s25 + $0xb0] sm:$0xf]  ;;  %196 = vst [vmem:[%s1468_s26 + $0x50] sm:$0xf] %v195_v20  ;;  %198 = vst [vmem:[%s1468_s26 + $0x54] sm:$0xf] %v197_v21 }
  0x24   : > { %200 = vst [vmem:[%s1468_s26 + $0x58] sm:$0xf] %v199_v22  ;;  %v201_v23 = vld [vmem:[%s1464_s25 + $0xb8] sm:$0xf]  ;;  %v203_v24 = vld [vmem:[%s1464_s25 + $0xc0] sm:$0xf] }
  0x25   : > { %v205_v25 = vld [vmem:[%s1464_s25 + $0xc8] sm:$0xf]  ;;  %202 = vst [vmem:[%s1468_s26 + $0x5c] sm:$0xf] %v201_v23  ;;  %204 = vst [vmem:[%s1468_s26 + $0x60] sm:$0xf] %v203_v24 }
  0x26   : > { %206 = vst [vmem:[%s1468_s26 + $0x64] sm:$0xf] %v205_v25  ;;  %v207_v26 = vld [vmem:[%s1464_s25 + $0xd0] sm:$0xf]  ;;  %v209_v27 = vld [vmem:[%s1464_s25 + $0xd8] sm:$0xf] }
  0x27   : > { %v211_v28 = vld [vmem:[%s1464_s25 + $0xe0] sm:$0xf]  ;;  %208 = vst [vmem:[%s1468_s26 + $0x68] sm:$0xf] %v207_v26  ;;  %210 = vst [vmem:[%s1468_s26 + $0x6c] sm:$0xf] %v209_v27 }
  0x28   : > { %212 = vst [vmem:[%s1468_s26 + $0x70] sm:$0xf] %v211_v28  ;;  %v213_v29 = vld [vmem:[%s1464_s25 + $0xe8] sm:$0xf]  ;;  %v215_v30 = vld [vmem:[%s1464_s25 + $0xf0] sm:$0xf] }
  0x29   : > { %v217_v31 = vld [vmem:[%s1464_s25 + $0xf8] sm:$0xf]  ;;  %214 = vst [vmem:[%s1468_s26 + $0x74] sm:$0xf] %v213_v29  ;;  %216 = vst [vmem:[%s1468_s26 + $0x78] sm:$0xf] %v215_v30 }
  0x2a   : > { %218 = vst [vmem:[%s1468_s26 + $0x7c] sm:$0xf] %v217_v31  ;;  %v219_v32 = vld [vmem:[%s1464_s25 + $0x100] sm:$0xf]  ;;  %v221_v33 = vld [vmem:[%s1464_s25 + $0x108] sm:$0xf] }
  0x2b   : > { %v223_v34 = vld [vmem:[%s1464_s25 + $0x110] sm:$0xf]  ;;  %220 = vst [vmem:[%s1468_s26 + $0x80] sm:$0xf] %v219_v32  ;;  %222 = vst [vmem:[%s1468_s26 + $0x84] sm:$0xf] %v221_v33 }
  0x2c   : > { %224 = vst [vmem:[%s1468_s26 + $0x88] sm:$0xf] %v223_v34  ;;  %v225_v35 = vld [vmem:[%s1464_s25 + $0x118] sm:$0xf]  ;;  %v227_v36 = vld [vmem:[%s1464_s25 + $0x120] sm:$0xf] }
  0x2d   : > { %v229_v37 = vld [vmem:[%s1464_s25 + $0x128] sm:$0xf]  ;;  %226 = vst [vmem:[%s1468_s26 + $0x8c] sm:$0xf] %v225_v35  ;;  %228 = vst [vmem:[%s1468_s26 + $0x90] sm:$0xf] %v227_v36 }
  0x2e   : > { %230 = vst [vmem:[%s1468_s26 + $0x94] sm:$0xf] %v229_v37  ;;  %v231_v38 = vld [vmem:[%s1464_s25 + $0x130] sm:$0xf]  ;;  %v233_v39 = vld [vmem:[%s1464_s25 + $0x138] sm:$0xf] }
  0x2f   : > { %v235_v40 = vld [vmem:[%s1464_s25 + $0x140] sm:$0xf]  ;;  %232 = vst [vmem:[%s1468_s26 + $0x98] sm:$0xf] %v231_v38  ;;  %234 = vst [vmem:[%s1468_s26 + $0x9c] sm:$0xf] %v233_v39 }
  0x30   : > { %236 = vst [vmem:[%s1468_s26 + $0xa0] sm:$0xf] %v235_v40  ;;  %v237_v41 = vld [vmem:[%s1464_s25 + $0x148] sm:$0xf]  ;;  %v239_v42 = vld [vmem:[%s1464_s25 + $0x150] sm:$0xf] }
  0x31   : > { %v241_v43 = vld [vmem:[%s1464_s25 + $0x158] sm:$0xf]  ;;  %238 = vst [vmem:[%s1468_s26 + $0xa4] sm:$0xf] %v237_v41  ;;  %240 = vst [vmem:[%s1468_s26 + $0xa8] sm:$0xf] %v239_v42 }
  0x32   : > { %242 = vst [vmem:[%s1468_s26 + $0xac] sm:$0xf] %v241_v43  ;;  %v243_v44 = vld [vmem:[%s1464_s25 + $0x160] sm:$0xf]  ;;  %v245_v45 = vld [vmem:[%s1464_s25 + $0x168] sm:$0xf] }
  0x33   : > { %v247_v46 = vld [vmem:[%s1464_s25 + $0x170] sm:$0xf]  ;;  %244 = vst [vmem:[%s1468_s26 + $0xb0] sm:$0xf] %v243_v44  ;;  %246 = vst [vmem:[%s1468_s26 + $0xb4] sm:$0xf] %v245_v45 }
  0x34   : > { %248 = vst [vmem:[%s1468_s26 + $0xb8] sm:$0xf] %v247_v46  ;;  %v249_v47 = vld [vmem:[%s1464_s25 + $0x178] sm:$0xf]  ;;  %v251_v48 = vld [vmem:[%s1464_s25 + $0x180] sm:$0xf] }
  0x35   : > { %v253_v49 = vld [vmem:[%s1464_s25 + $0x188] sm:$0xf]  ;;  %250 = vst [vmem:[%s1468_s26 + $0xbc] sm:$0xf] %v249_v47  ;;  %252 = vst [vmem:[%s1468_s26 + $0xc0] sm:$0xf] %v251_v48 }
  0x36   : > { %254 = vst [vmem:[%s1468_s26 + $0xc4] sm:$0xf] %v253_v49  ;;  %v255_v50 = vld [vmem:[%s1464_s25 + $0x190] sm:$0xf]  ;;  %v257_v51 = vld [vmem:[%s1464_s25 + $0x198] sm:$0xf] }
  0x37   : > { %v259_v52 = vld [vmem:[%s1464_s25 + $0x1a0] sm:$0xf]  ;;  %256 = vst [vmem:[%s1468_s26 + $0xc8] sm:$0xf] %v255_v50  ;;  %258 = vst [vmem:[%s1468_s26 + $0xcc] sm:$0xf] %v257_v51 }
  0x38   : > { %260 = vst [vmem:[%s1468_s26 + $0xd0] sm:$0xf] %v259_v52  ;;  %v261_v53 = vld [vmem:[%s1464_s25 + $0x1a8] sm:$0xf]  ;;  %v263_v54 = vld [vmem:[%s1464_s25 + $0x1b0] sm:$0xf] }
  0x39   : > { %v265_v55 = vld [vmem:[%s1464_s25 + $0x1b8] sm:$0xf]  ;;  %262 = vst [vmem:[%s1468_s26 + $0xd4] sm:$0xf] %v261_v53  ;;  %264 = vst [vmem:[%s1468_s26 + $0xd8] sm:$0xf] %v263_v54 }
  0x3a   : > { %266 = vst [vmem:[%s1468_s26 + $0xdc] sm:$0xf] %v265_v55  ;;  %v267_v56 = vld [vmem:[%s1464_s25 + $0x1c0] sm:$0xf]  ;;  %v269_v57 = vld [vmem:[%s1464_s25 + $0x1c8] sm:$0xf] }
  0x3b   : > { %v271_v58 = vld [vmem:[%s1464_s25 + $0x1d0] sm:$0xf]  ;;  %268 = vst [vmem:[%s1468_s26 + $0xe0] sm:$0xf] %v267_v56  ;;  %270 = vst [vmem:[%s1468_s26 + $0xe4] sm:$0xf] %v269_v57 }
  0x3c   : > { %272 = vst [vmem:[%s1468_s26 + $0xe8] sm:$0xf] %v271_v58  ;;  %v273_v59 = vld [vmem:[%s1464_s25 + $0x1d8] sm:$0xf]  ;;  %v275_v60 = vld [vmem:[%s1464_s25 + $0x1e0] sm:$0xf] }
  0x3d   : > { %v277_v61 = vld [vmem:[%s1464_s25 + $0x1e8] sm:$0xf]  ;;  %274 = vst [vmem:[%s1468_s26 + $0xec] sm:$0xf] %v273_v59  ;;  %276 = vst [vmem:[%s1468_s26 + $0xf0] sm:$0xf] %v275_v60 }
  0x3e   : > { %278 = vst [vmem:[%s1468_s26 + $0xf4] sm:$0xf] %v277_v61  ;;  %v279_v62 = vld [vmem:[%s1464_s25 + $0x1f0] sm:$0xf]  ;;  %v281_v63 = vld [vmem:[%s1464_s25 + $0x1f8] sm:$0xf] }
  0x3f   : > { %280 = vst [vmem:[%s1468_s26 + $0xf8] sm:$0xf] %v279_v62  ;;  %282 = vst [vmem:[%s1468_s26 + $0xfc] sm:$0xf] %v281_v63 }
  0x40 PF: > { %p1147_p8 = scmp.ge.s32.totalorder %s1399_s13, 1  ;;  %p432_p9 = scmp.lt.s32.totalorder %s1399_s13, 3 }
  0x42   : > { %p433_p10 = pnand %p1147_p8, %p432_p9 }
  0x43   : > { %s439_s27 = sand.u32 (!%p433_p10), 1, %s1383_s9   ;;  %v1343_v0 = vld [vmem:[%s1682_s0 + $0x4] ss:$16 sps:$4 sm:$0xff] (!%p433_p10)   ;;  %v1346_v1 = vld [vmem:[%s1682_s0 + $0xc] ss:$16 sps:$4 sm:$0xff] (!%p433_p10)  }
  0x44   : > { %436 = sbr.rel (%p433_p10) target bundleno = 390 (0x186), region = 65  ;;  %s1148_s28 = sshll.u32 (!%p433_p10), %s439_s27, 8  ;;  %820 = vmatprep.mubr.bf16.mxu0 (!%p433_p10), %v1343_v0  ;;  %869 = vmatprep.mubr.bf16.mxu1 (!%p433_p10), %v1346_v1  ;;  %v1341_v32 = vld [vmem:[%s1682_s0] ss:$16 sps:$4 sm:$0xff] (!%p433_p10)   ;;  %v1344_v34 = vld [vmem:[%s1682_s0 + $0x8] ss:$16 sps:$4 sm:$0xff] (!%p433_p10)  }
  0x45   : > { %s1607_s5 = scalar_lea.vmem (!%p433_p10), [#allocation3], %s1148_s28  ;;  %v1347_v36 = vld [vmem:[%s1682_s0 + $0x24] ss:$16 sps:$4 sm:$0xff] (!%p433_p10)   ;;  %v1349_v37 = vld [vmem:[%s1682_s0 + $0x2c] ss:$16 sps:$4 sm:$0xff] (!%p433_p10)   ;;  %s1149_s26 = sshll.u32 (!%p433_p10), %s439_s27, 4 }
  0x46   : > { %v1309_v2 = vld [vmem:[%s1607_s5 + $0x40] sm:$0xff] (!%p433_p10)   ;;  %v1313_v6 = vld [vmem:[%s1607_s5 + $0x48] sm:$0xff] (!%p433_p10)   ;;  %v1317_v10 = vld [vmem:[%s1607_s5 + $0x50] sm:$0xff] (!%p433_p10)   ;;  %s463_s28 = scalar_lea.vmem (!%p433_p10), [#allocation4], %s1149_s26 }
  0x47   : > { %v1310_v3 = vld [vmem:[%s1607_s5 + $0xc0] sm:$0xff] (!%p433_p10)   ;;  %1213 = vmatprep.subr.bf16.mxu0 (!%p433_p10), %v1309_v2  ;;  %v1314_v7 = vld [vmem:[%s1607_s5 + $0xc8] sm:$0xff] (!%p433_p10)   ;;  %v1318_v11 = vld [vmem:[%s1607_s5 + $0xd0] sm:$0xff] (!%p433_p10)  }
  0x48   : > { %v1311_v4 = vld [vmem:[%s1607_s5] sm:$0xff] (!%p433_p10)   ;;  %1241 = vmatprep.subr.bf16.mxu1 (!%p433_p10), %v1310_v3  ;;  %v1315_v8 = vld [vmem:[%s1607_s5 + $0x8] sm:$0xff] (!%p433_p10)   ;;  %v1319_v12 = vld [vmem:[%s1607_s5 + $0x10] sm:$0xff] (!%p433_p10)  }
  0x49   : > { %v1312_v5 = vld [vmem:[%s1607_s5 + $0x80] sm:$0xff] (!%p433_p10)   ;;  %1214 = vmatpush3.bf16.msra.mxu0 (!%p433_p10), %v1311_v4  ;;  %v1316_v9 = vld [vmem:[%s1607_s5 + $0x88] sm:$0xff] (!%p433_p10)   ;;  %v1320_v13 = vld [vmem:[%s1607_s5 + $0x90] sm:$0xff] (!%p433_p10)  }
  0x4a   : > { %1242 = vmatpush3.bf16.msra.mxu1 (!%p433_p10), %v1312_v5  ;;  %1215 = vmatprep.subr.bf16.mxu0 (!%p433_p10), %v1313_v6  ;;  %v1321_v14 = vld [vmem:[%s1607_s5 + $0x58] sm:$0xff] (!%p433_p10)   ;;  %v1325_v18 = vld [vmem:[%s1607_s5 + $0x60] sm:$0xff] (!%p433_p10)   ;;  %v1329_v22 = vld [vmem:[%s1607_s5 + $0x68] sm:$0xff] (!%p433_p10)  }
  0x4b   : > { %1243 = vmatprep.subr.bf16.mxu1 %v1314_v7  ;;  %v1322_v15 = vld [vmem:[%s1607_s5 + $0xd8] sm:$0xff]   ;;  %v1326_v19 = vld [vmem:[%s1607_s5 + $0xe0] sm:$0xff]   ;;  %v1330_v23 = vld [vmem:[%s1607_s5 + $0xe8] sm:$0xff]   ;;  %s1195_s29 = sshll.u32 (%p1451_p6), %s1391_s11, 2 }
  0x4c   : > { %v1323_v16 = vld [vmem:[%s1607_s5 + $0x18] sm:$0xff]   ;;  %v1327_v20 = vld [vmem:[%s1607_s5 + $0x20] sm:$0xff]   ;;  %v1331_v24 = vld [vmem:[%s1607_s5 + $0x28] sm:$0xff]   ;;  %s1006_s30 = scalar_lea.vmem (%p1451_p6), %s1684_s2, %s1195_s29 }
  0x4d   : > { %1216 = vmatpush3.bf16.msra.mxu0 %v1315_v8  ;;  %v1324_v17 = vld [vmem:[%s1607_s5 + $0x98] sm:$0xff]   ;;  %v1328_v21 = vld [vmem:[%s1607_s5 + $0xa0] sm:$0xff]   ;;  %v1332_v25 = vld [vmem:[%s1607_s5 + $0xa8] sm:$0xff]  }
  0x4e   : > { %1244 = vmatpush3.bf16.msra.mxu1 %v1316_v9  ;;  %1217 = vmatprep.subr.bf16.mxu0 %v1317_v10  ;;  %v1333_v26 = vld [vmem:[%s1607_s5 + $0x70] sm:$0xff]   ;;  %v1337_v30 = vld [vmem:[%s1607_s5 + $0x78] sm:$0xff]  }
  0x4f   : > { %1245 = vmatprep.subr.bf16.mxu1 %v1318_v11  ;;  %v1334_v27 = vld [vmem:[%s1607_s5 + $0xf0] sm:$0xff]   ;;  %v1338_v31 = vld [vmem:[%s1607_s5 + $0xf8] sm:$0xff]  }
  0x50   : > { %v1335_v28 = vld [vmem:[%s1607_s5 + $0x30] sm:$0xff]   ;;  %v1339_v33 = vld [vmem:[%s1607_s5 + $0x38] sm:$0xff]  }
  0x51   : > { %1218 = vmatpush3.bf16.msra.mxu0 %v1319_v12  ;;  %v1336_v29 = vld [vmem:[%s1607_s5 + $0xb0] sm:$0xff]   ;;  %v1340_v35 = vld [vmem:[%s1607_s5 + $0xb8] sm:$0xff]  }
  0x52   : > { %1246 = vmatpush3.bf16.msra.mxu1 %v1320_v13  ;;  %1219 = vmatprep.subr.bf16.mxu0 %v1321_v14  ;;  %v1351_v38 = vld [vmem:[%s1682_s0 + $0x20] ss:$16 sps:$4 sm:$0xff]   ;;  %v1352_v39 = vld [vmem:[%s1682_s0 + $0x28] ss:$16 sps:$4 sm:$0xff]  }
  0x53   : > { %1247 = vmatprep.subr.bf16.mxu1 %v1322_v15 }
  0x55   : > { %1220 = vmatpush3.bf16.msra.mxu0 %v1323_v16 }
  0x56   : > { %1248 = vmatpush3.bf16.msra.mxu1 %v1324_v17  ;;  %1221 = vmatprep.subr.bf16.mxu0 %v1325_v18 }
  0x57   : > { %1249 = vmatprep.subr.bf16.mxu1 %v1326_v19 }
  0x59   : > { %1222 = vmatpush3.bf16.msra.mxu0 %v1327_v20 }
  0x5a   : > { %1250 = vmatpush3.bf16.msra.mxu1 %v1328_v21  ;;  %1223 = vmatprep.subr.bf16.mxu0 %v1329_v22 }
  0x5b   : > { %1251 = vmatprep.subr.bf16.mxu1 %v1330_v23 }
  0x5d   : > { %1224 = vmatpush3.bf16.msra.mxu0 %v1331_v24 }
  0x5e   : > { %1252 = vmatpush3.bf16.msra.mxu1 %v1332_v25  ;;  %1225 = vmatprep.subr.bf16.mxu0 %v1333_v26 }
  0x5f   : > { %1253 = vmatprep.subr.bf16.mxu1 %v1334_v27 }
  0x61   : > { %1226 = vmatpush3.bf16.msra.mxu0 %v1335_v28 }
  0x62   : > { %1254 = vmatpush3.bf16.msra.mxu1 %v1336_v29  ;;  %1227 = vmatprep.subr.bf16.mxu0 %v1337_v30 }
  0x63   : > { %1255 = vmatprep.subr.bf16.mxu1 %v1338_v31 }
  0x65   : > { %1228 = vmatpush3.bf16.msra.mxu0 %v1339_v33 }
  0x66   : > { %1256 = vmatpush3.bf16.msra.mxu1 %v1340_v35 }
  0x68   : > { %821 = vmatmul.mubr.bf16.vlgmr.msra.gmra.mrb[0].mxu0 %v1341_v32 }
  0x69   : > { %870 = vmatmul.mubr.bf16.vlgmr.msra.gmra.mrb[0].mxu1 %v1344_v34  ;;  %828 = vmatprep.mubr.bf16.mxu0 %v1347_v36 }
  0x6a   : > { %877 = vmatprep.mubr.bf16.mxu1 %v1349_v37 }
  0x70   : > { %829 = vmatmul.mubr.bf16.gmra.mrb[4].mxu0 %v1351_v38 }
  0x71   : > { %878 = vmatmul.mubr.bf16.gmra.mrb[4].mxu1 %v1352_v39 }
 0x13b   : > { %v1229_v40 = vpop.f32.mrb[0].mxu0 }
 0x13c   : > { %v1257_v41 = vpop.f32.mrb[0].mxu1  ;;  %v1230_v42 = vpop.f32.mrb[1].mxu0 }
 0x13d   : > { %v1231_v43 = vadd.f32 %v1230_v42, %v1229_v40  ;;  %v1258_v44 = vpop.f32.mrb[1].mxu1  ;;  %v1232_v45 = vpop.f32.mrb[2].mxu0 }
 0x13e   : > { %v1259_v46 = vadd.f32 %v1258_v44, %v1257_v41  ;;  %v1260_v47 = vpop.f32.mrb[2].mxu1  ;;  %v1233_v48 = vpop.f32.mrb[3].mxu0 }
 0x13f   : > { %v1234_v49 = vadd.f32 %v1233_v48, %v1232_v45  ;;  %v1261_v50 = vpop.f32.mrb[3].mxu1 }
 0x140   : > { %v872_v51 = vadd.f32 %v1259_v46, %v1231_v43  ;;  %v1262_v52 = vadd.f32 %v1261_v50, %v1260_v47 }
 0x142   : > { %v901_v53 = vrot.slane %v872_v51, 4  ;;  %v875_v54 = vadd.f32 %v1262_v52, %v1234_v49 }
 0x143   : > { %v1235_v55 = vpop.f32.mrb[4].mxu0 }
 0x144   : > { %v902_v56 = vadd.f32 %v901_v53, %v872_v51  ;;  %v907_v57 = vrot.slane %v875_v54, 4  ;;  %v1263_v58 = vpop.f32.mrb[4].mxu1  ;;  %v1236_v59 = vpop.f32.mrb[5].mxu0 }
 0x145   : > { %v1237_v60 = vadd.f32 %v1236_v59, %v1235_v55  ;;  %v1264_v61 = vpop.f32.mrb[5].mxu1  ;;  %v1238_v62 = vpop.f32.mrb[6].mxu0 }
 0x146   : > { %v903_v63 = vrot.slane %v902_v56, 2  ;;  %v908_v0 = vadd.f32 %v907_v57, %v875_v54  ;;  %v1265_v1 = vadd.f32 %v1264_v61, %v1263_v58  ;;  %v1266_v2 = vpop.f32.mrb[6].mxu1  ;;  %v1239_v3 = vpop.f32.mrb[7].mxu0 }
 0x147   : > { %v1240_v4 = vadd.f32 %v1239_v3, %v1238_v62  ;;  %v1267_v5 = vpop.f32.mrb[7].mxu1 }
 0x148   : > { %v904_v6 = vadd.f32 %v903_v63, %v902_v56  ;;  %v909_v7 = vrot.slane %v908_v0, 2  ;;  %v880_v8 = vadd.f32 %v1265_v1, %v1237_v60  ;;  %v1268_v9 = vadd.f32 %v1267_v5, %v1266_v2 }
 0x14a   : > { %v905_v10 = vrot.slane %v904_v6, 1  ;;  %v910_v11 = vadd.f32 %v909_v7, %v908_v0  ;;  %v913_v12 = vrot.slane %v880_v8, 4  ;;  %v883_v13 = vadd.f32 %v1268_v9, %v1240_v4 }
 0x14c   : > { %v906_v14 = vadd.f32 %v905_v10, %v904_v6  ;;  %v911_v15 = vrot.slane %v910_v11, 1  ;;  %v914_v16 = vadd.f32 %v913_v12, %v880_v8  ;;  %v919_v17 = vrot.slane %v883_v13, 4 }
 0x14e   : > { %v926_v18 = vmul.f32 0.125, %v906_v14  ;;  %v912_v19 = vadd.f32 %v911_v15, %v910_v11  ;;  %v915_v20 = vrot.slane %v914_v16, 2  ;;  %v920_v21 = vadd.f32 %v919_v17, %v883_v13 }
 0x150   : > { %v930_v22 = vsub.f32 %v872_v51, %v926_v18  ;;  %v927_v23 = vmul.f32 0.125, %v912_v19  ;;  %v916_v24 = vadd.f32 %v915_v20, %v914_v16  ;;  %v921_v25 = vrot.slane %v920_v21, 2 }
 0x152   : > { %v934_v26 = vmul.f32 %v930_v22, %v930_v22  ;;  %v931_v27 = vsub.f32 %v875_v54, %v927_v23  ;;  %v917_v28 = vrot.slane %v916_v24, 1  ;;  %v922_v29 = vadd.f32 %v921_v25, %v920_v21 }
 0x154   : > { %v938_v30 = vrot.slane %v934_v26, 4  ;;  %v935_v31 = vmul.f32 %v931_v27, %v931_v27  ;;  %v918_v32 = vadd.f32 %v917_v28, %v916_v24  ;;  %v923_v33 = vrot.slane %v922_v29, 1 }
 0x156   : > { %v939_v34 = vadd.f32 %v938_v30, %v934_v26  ;;  %v944_v35 = vrot.slane %v935_v31, 4  ;;  %v928_v36 = vmul.f32 0.125, %v918_v32  ;;  %v924_v37 = vadd.f32 %v923_v33, %v922_v29 }
 0x158   : > { %v940_v38 = vrot.slane %v939_v34, 2  ;;  %v945_v39 = vadd.f32 %v944_v35, %v935_v31  ;;  %v932_v40 = vsub.f32 %v880_v8, %v928_v36  ;;  %v929_v41 = vmul.f32 0.125, %v924_v37 }
 0x15a   : > { %v941_v42 = vadd.f32 %v940_v38, %v939_v34  ;;  %v946_v43 = vrot.slane %v945_v39, 2  ;;  %v936_v44 = vmul.f32 %v932_v40, %v932_v40  ;;  %v933_v45 = vsub.f32 %v883_v13, %v929_v41 }
 0x15c   : > { %v942_v46 = vrot.slane %v941_v42, 1  ;;  %v947_v47 = vadd.f32 %v946_v43, %v945_v39  ;;  %v950_v48 = vrot.slane %v936_v44, 4  ;;  %v937_v49 = vmul.f32 %v933_v45, %v933_v45 }
 0x15e   : > { %v943_v50 = vadd.f32 %v942_v46, %v941_v42  ;;  %v948_v51 = vrot.slane %v947_v47, 1  ;;  %v951_v52 = vadd.f32 %v950_v48, %v936_v44  ;;  %v956_v53 = vrot.slane %v937_v49, 4 }
 0x160   : > { %v962_v54 = vmul.f32 0.125, %v943_v50  ;;  %v949_v55 = vadd.f32 %v948_v51, %v947_v47  ;;  %v952_v56 = vrot.slane %v951_v52, 2  ;;  %v957_v57 = vadd.f32 %v956_v53, %v937_v49 }
 0x162   : > { %v966_v58 = vadd.f32 1e-05, %v962_v54  ;;  %v963_v59 = vmul.f32 0.125, %v949_v55  ;;  %v953_v60 = vadd.f32 %v952_v56, %v951_v52  ;;  %v958_v61 = vrot.slane %v957_v57, 2 }
 0x164   : > { %1353 = vrsqrt.f32 %v966_v58  ;;  %v967_v62 = vadd.f32 1e-05, %v963_v59  ;;  %v954_v63 = vrot.slane %v953_v60, 1  ;;  %v959_v0 = vadd.f32 %v958_v61, %v957_v57 }
 0x166   : > { %1355 = vrsqrt.f32 %v967_v62  ;;  %v955_v1 = vadd.f32 %v954_v63, %v953_v60  ;;  %v960_v2 = vrot.slane %v959_v0, 1 }
 0x168   : > { %v964_v3 = vmul.f32 0.125, %v955_v1  ;;  %v961_v4 = vadd.f32 %v960_v2, %v959_v0 }
 0x16a   : > { %v968_v5 = vadd.f32 1e-05, %v964_v3  ;;  %v965_v6 = vmul.f32 0.125, %v961_v4 }
 0x16c   : > { %1357 = vrsqrt.f32 %v968_v5  ;;  %v969_v7 = vadd.f32 1e-05, %v965_v6 }
 0x16e   : > { %v1354_v8 = vpop.eup %1353  ;;  %1359 = vrsqrt.f32 %v969_v7 }
 0x16f   : > { %v974_v10 = vmul.f32 %v1354_v8, %v930_v22 }
 0x170   : > { %v1356_v9 = vpop.eup %1355 }
 0x171   : > { %v975_v11 = vmul.f32 %v1356_v9, %v931_v27 }
 0x173   : > { %v1205_v12 = vpack.c.bf16 %v975_v11, %v974_v10 }
 0x175   : > { %1206 = vst [vmem:[%s463_s28] sm:$0xff] %v1205_v12  }
 0x176   : > { %v1358_v13 = vpop.eup %1357 }
 0x177   : > { %v976_v15 = vmul.f32 %v1358_v13, %v932_v40  ;;  %1004 = sbr.rel (!%p1451_p6) target bundleno = 390 (0x186), region = 81 }
 0x178   : > { %v1360_v14 = vpop.eup %1359 }
 0x179   : > { %v977_v16 = vmul.f32 %v1360_v14, %v933_v45 }
 0x17b   : > { %v1210_v17 = vpack.c.bf16 %v977_v16, %v976_v15 }
 0x17c   : > { %v1022_v18 = vld [vmem:[%s463_s28] sm:$0xf] (%p1451_p6)  ;;  %v1024_v19 = vld [vmem:[%s463_s28 + $0x4] sm:$0xf] (%p1451_p6) }
 0x17d   : > { %1212 = vst [vmem:[%s463_s28 + $0x8] sm:$0xff] %v1210_v17   ;;  %1023 = vst [vmem:[%s1006_s30] sm:$0xf] (%p1451_p6), %v1022_v18 }
 0x17e   : > { %1025 = vst [vmem:[%s1006_s30 + $0x8] sm:$0xf] %v1024_v19 }
 0x184   : > { %v1026_v20 = vld [vmem:[%s463_s28 + $0x8] sm:$0xf]  ;;  %v1028_v21 = vld [vmem:[%s463_s28 + $0xc] sm:$0xf] }
 0x185   : > { %1027 = vst [vmem:[%s1006_s30 + $0x10] sm:$0xf] %v1026_v20  ;;  %1029 = vst [vmem:[%s1006_s30 + $0x18] sm:$0xf] %v1028_v21 }
 0x186 PF: > { %s12_s13 = sadd.s32 1, %s1399_s13   ;;  %s1686_s9 = smov %s1387_s10 }
 0x187   : > { %p9_p11 = scmp.ge.s32.totalorder %s12_s13, 4   ;;  %s1687_s10 = smov %s1456_s19 }
 0x188   : > { %s1688_s11 = smov %s1395_s12  ;;  %s1689_s12 = smov %s1691_s14 }
 0x189   :  { %11 = sbr.rel (!%p9_p11) target bundleno = 3 (0x3), region = 156 }

// kernel: decur_forward.15
= control target key start
LH: loop header
LB: loop body
LE: loop exit
PB: predicated region body
PF: predicated region fallthrough
CT: control target
= control target key end

     0   :  { %s5036_s0 = inlined_call_operand.vmem [shape: s32[3], index: 0, kind: input, shape index: {}]   ;;  %s5037_s1 = inlined_call_operand.vmem [shape: bf16[3,8,256], index: 1, kind: input, shape index: {}]   ;;  %s5038_s2 = inlined_call_operand.vmem [shape: bf16[3,8,256], index: 2, kind: input, shape index: {}]   ;;  %s5039_s3 = inlined_call_operand.vmem [shape: f32[3,8,256], index: 3, kind: output, shape index: {}]  }
   0x1   :  { %s8_s14 = sshll.u32 %s5036_s0, 4  ;;  %s9_s14 = int_to_ptr.vmem [resolvable:$true] %s8_s14 }
   0x2   :  { %s2317_s15 = scalar_lea.vmem %s9_s14, 16  ;;  %p2322_p1 = scmp.lt.s32.totalorder %s9_s14, %s9_s14 }
   0x3   :  { %p2318_p0 = scmp.ne.s32.totalorder %s9_s14, %s2317_s15  ;;  %p2323_p2 = scmp.lt.s32.totalorder %s2317_s15, %s2317_s15 }
   0x5   :  { %p2324_p3 = por %p2323_p2, %p2322_p1 }
   0x7   :  { %p2325_p4 = pnand %p2324_p3, %p2318_p0 }
   0x9   :  { %2328 = shalt.err (!%p2325_p4)  }
   0xa   :  { %s2355_s16 = smov [#allocation4]  }
   0xb   :  { %11 = dma.vmem_to_smem %s9_s14, 16, %s2355_s16, [#allocation3] }
   0xc   :  { %2341 = dma.done.wait [#allocation3], 16 }
   0xd   :  { %2342 = vsyncadd [#allocation3], 4294967280 }
   0xe   :  { %13 = sfence }
   0xf   :  { %s2382_s17 = smov 0   ;;  %s2384_s18 = smov 0  }
  0x10   :  { %s2386_s19 = smov 0  }
  0x11 LB: > { %s38_s0 = sadd.s32 1, %s2349_s18  ;;  %p2186_p5 = scmp.ge.s32.totalorder %s2353_s19, 1  ;;  %s2353_s19 = sphi %s2386_s19, %s19_s19   ;;  %s2349_s18 = sphi %s2384_s18, %s5763_s18   ;;  %s2345_s17 = sphi %s2382_s17, %s5762_s17  }
  0x12   : > { %p40_p6 = scmp.ge.s32.totalorder %s38_s0, 3  ;;  %p164_p7 = scmp.lt.s32.totalorder %s2353_s19, 4 }
  0x14   : > { %s5765_s0 = smov (%p40_p6, %s38_s0), 0  ;;  %p165_p8 = pnand %p2186_p5, %p164_p7 }
  0x16   : > { %168 = sbr.rel (%p165_p8) target bundleno = 621 (0x26d), region = 28 }
  0x1d   : > { %p204_p9 = scmp.lt.s32.totalorder %s2345_s17, 2  ;;  %v2356_v0 = vmov 0   ;;  %vm335_vm0 = vcmask 1043456   ;;  %vm286_vm1 = vcmask 64512   ;;  %s663_s28 = sld [smem:[#allocation4 + %s2345_s17]]  ;;  %v5053_v24 = vlaneseq }
  0x1e   : > { %374 = vmatprep.mubr.bf16.mxu0 %v2356_v0  ;;  %454 = vmatprep.mubr.bf16.mxu1 %v2356_v0  ;;  %v5110_v28 = vmov 0  ;;  %v5114_v32 = vmov 0  ;;  %v5126_v39 = vmov 0  ;;  %v5130_v41 = vmov 0 }
  0x1f   : > { %s2406_s20 = scalar_select %p204_p9, %s2345_s17, 2  ;;  %v2447_v25 = vshrl.u32 %v5053_v24, 7  ;;  %v2450_v26 = vand.u32 127, %v5053_v24  ;;  %v5132_v43 = vmov 0  ;;  %v5135_v45 = vmov 0 }
  0x20   : > { %v5138_v47 = vmov 0  ;;  %v5144_v54 = vmov 0  ;;  %v5195_v50 = vmov 0 }
  0x21   : > { %s2280_s21 = sshll.u32 %s2406_s20, 3  ;;  %5109 = vst [vmem:[#allocation6_spill] sm:$0xff] %v2447_v25  ;;  %v2463_v29 = vadd.s32 128, %v2450_v26  ;;  %v666_v30 = vadd.s32 8, %v2447_v25  ;;  %vm1264_vm5 = vcmp.eq.s32.totalorder %v2447_v25, %v2450_v26  ;;  %v2508_v37 = vadd.s32 16, %v2447_v25  ;;  %s2282_s29 = sshll.u32 %s2406_s20, 4 }
  0x22   : > { %s211_s24 = scalar_lea.vmem %s5037_s1, %s2280_s21  ;;  %s221_s27 = scalar_lea.vmem %s5038_s2, %s2280_s21  ;;  %v2539_v42 = vadd.s32 24, %v2447_v25  ;;  %v2552_v44 = vadd.s32 32, %v2447_v25  ;;  %v2588_v51 = vadd.s32 40, %v2447_v25  ;;  %v2603_v55 = vadd.s32 48, %v2447_v25 }
  0x23   : > { %v240_v1 = vld [vmem:[%s211_s24] sm:$0xff]  ;;  %v2452_v27 = vstv %s663_s28  ;;  %vm5041_vm15 = vcmp.eq.s32.totalorder %v666_v30, %v2450_v26  ;;  %v2614_v61 = vadd.s32 56, %v2447_v25  ;;  %s231_s5 = scalar_lea.vmem %s5039_s3, %s2282_s29 }
  0x24   : > { %v2193_v2 = vcombine.low %v240_v1, %v240_v1  ;;  %v241_v3 = vld [vmem:[%s221_s27] sm:$0xff]  ;;  %v2194_v7 = vcombine.high %v240_v1, %v240_v1  ;;  %vm739_vm2 = vcmp.lt.s32.totalorder %v2447_v25, %v2452_v27  ;;  %vm2458_vm3 = vcmp.lt.s32.totalorder %v2450_v26, %v2452_v27 }
  0x25   : > { %v2196_v4 = vcombine.high %v241_v3, %v241_v3  ;;  %v2195_v5 = vcombine.low %v241_v3, %v241_v3  ;;  %v5111_v28 = vsel %vm2458_vm3, 4294967295, %v5110_v28  ;;  %vm2468_vm4 = vmand %vm739_vm2, %vm2458_vm3  ;;  %vm837_vm6 = vcmp.ge.s32.totalorder %v2447_v25, %v2452_v27 }
  0x26   : > { %249 = vxpose.xlu0.c.b16.start.end [1/1] (short) %v2193_v2, 128  ;;  %vm2478_vm7 = vcmp.ge.s32.totalorder %v2450_v26, %v2452_v27  ;;  %vm2484_vm8 = vcmp.lt.s32.totalorder %v2463_v29, %v2452_v27  ;;  %vm5040_vm9 = vcmp.lt.s32.totalorder %v666_v30, %v2452_v27  ;;  %vm2491_vm10 = vcmp.ge.s32.totalorder %v2463_v29, %v2452_v27  ;;  %vm2497_vm11 = vmand %vm1264_vm5, %vm2468_vm4 }
  0x27   : > { %2197 = vmatprep.subr.msk.bf16.mxu0 %vm335_vm0, %v2196_v4  ;;  %v337_v6 = vsel %vm335_vm0, %v2195_v5, 0  ;;  %2283 = vmatprep.subr.msk.bf16.mxu1 %vm335_vm0, %v2196_v4  ;;  %v5115_v32 = vsel %vm2478_vm7, 4294967295, %v5114_v32  ;;  %vm2503_vm12 = vmand %vm837_vm6, %vm2478_vm7  ;;  %v2639_v2 = vadd.s32 64, %v2447_v25  ;;  %v2642_v3 = vadd.s32 128, %v2447_v25 }
  0x28   : > { %343 = vmatpush1.bf16.msra.mxu0 %v337_v6  ;;  %2284 = vmatpush1.bf16.msra.mxu1 %v337_v6  ;;  %vm2512_vm13 = vmand %vm739_vm2, %vm2484_vm8 }
  0x29   : > { %vm2520_vm14 = vmand %vm5040_vm9, %vm2458_vm3 }
  0x2a   : > { %v5127_v39 = vsel %vm2520_vm14, 4294967295, %v5126_v39  ;;  %vm2527_vm0 = vmand %vm837_vm6, %vm2491_vm10 }
  0x2b   : > { %vm2545_vm9 = vmand %vm5041_vm15, %vm2520_vm14  ;;  %vm5137_vm15 = vcmp.ge.s32.totalorder %v666_v30, %v2452_v27 }
  0x2c   : > { %v5133_v43 = vsel %vm2545_vm9, 4294967295, %v5132_v43  ;;  %vm2566_vm9 = vmand %vm5137_vm15, %vm2478_vm7 }
  0x2d   : > { %v5139_v47 = vsel %vm2566_vm9, 4294967295, %v5138_v47  ;;  %vm5143_vm14 = vmmov %vm5137_vm15  ;;  %vm5149_vm15 = vcmp.eq.s32.totalorder %v2508_v37, %v2450_v26 }
  0x43   : > { %265 = vxpose.xlu0.c.b16.start.end [1/1] (short) %v2194_v7, 128 }
  0x8c   : > { %v257_v8 = vpop.trf.xlu0 }
  0x8d   : > { %2198 = vmatmul.mubr.msk.bf16.vlgmr.msra.gmra.mrb[0].mxu0 %vm286_vm1, %v257_v8  ;;  %v2660_v8 = vadd.s32 72, %v2447_v25 }
  0x8e   : > { %384 = vmatprep.mubr.bf16.mxu0 %v2356_v0 }
  0x90   : > { %v258_v9 = vpop.trf.xlu0 }
  0x94   : > { %v259_v10 = vpop.trf.xlu0 }
  0x95   : > { %2199 = vmatmul.mubr.msk.bf16.gmra.mrb[4].mxu0 %vm286_vm1, %v258_v9 }
  0x96   : > { %394 = vmatprep.mubr.bf16.mxu0 %v2356_v0 }
  0x98   : > { %v260_v11 = vpop.trf.xlu0 }
  0x9c   : > { %v261_v12 = vpop.trf.xlu0 }
  0x9d   : > { %2200 = vmatmul.mubr.msk.bf16.gmra.mrb[8].mxu0 %vm286_vm1, %v259_v10 }
  0x9e   : > { %404 = vmatprep.mubr.bf16.mxu0 %v2356_v0 }
  0xa0   : > { %v262_v13 = vpop.trf.xlu0 }
  0xa4   : > { %v263_v14 = vpop.trf.xlu0 }
  0xa5   : > { %2201 = vmatmul.mubr.msk.bf16.gmra.mrb[12].mxu0 %vm286_vm1, %v260_v11 }
  0xa6   : > { %414 = vmatprep.mubr.bf16.mxu0 %v2356_v0 }
  0xa8   : > { %v264_v15 = vpop.trf.xlu0 }
  0xac   : > { %v273_v16 = vpop.trf.xlu0 }
  0xad   : > { %2202 = vmatmul.mubr.msk.bf16.gmra.mrb[16].mxu0 %vm286_vm1, %v261_v12  ;;  %2206 = vmatmul.mubr.msk.bf16.vlgmr.msra.gmra.mrb[0].mxu1 %vm286_vm1, %v273_v16 }
  0xae   : > { %424 = vmatprep.mubr.bf16.mxu0 %v2356_v0  ;;  %464 = vmatprep.mubr.bf16.mxu1 %v2356_v0 }
  0xb0   : > { %v274_v17 = vpop.trf.xlu0 }
  0xb4   : > { %v275_v18 = vpop.trf.xlu0 }
  0xb5   : > { %2203 = vmatmul.mubr.msk.bf16.gmra.mrb[20].mxu0 %vm286_vm1, %v262_v13  ;;  %2207 = vmatmul.mubr.msk.bf16.gmra.mrb[4].mxu1 %vm286_vm1, %v274_v17 }
  0xb6   : > { %434 = vmatprep.mubr.bf16.mxu0 %v2356_v0  ;;  %474 = vmatprep.mubr.bf16.mxu1 %v2356_v0 }
  0xb8   : > { %v276_v19 = vpop.trf.xlu0 }
  0xbc   : > { %v277_v20 = vpop.trf.xlu0 }
  0xbd   : > { %2204 = vmatmul.mubr.msk.bf16.gmra.mrb[24].mxu0 %vm286_vm1, %v263_v14  ;;  %2208 = vmatmul.mubr.msk.bf16.gmra.mrb[8].mxu1 %vm286_vm1, %v275_v18  ;;  %v5163_v18 = vmov 0 }
  0xbe   : > { %444 = vmatprep.mubr.bf16.mxu0 %v2356_v0  ;;  %484 = vmatprep.mubr.bf16.mxu1 %v2356_v0 }
  0xc0   : > { %v278_v21 = vpop.trf.xlu0 }
  0xc4   : > { %v279_v22 = vpop.trf.xlu0 }
  0xc5   : > { %2205 = vmatmul.mubr.msk.bf16.gmra.mrb[28].mxu0 %vm286_vm1, %v264_v15  ;;  %2209 = vmatmul.mubr.msk.bf16.gmra.mrb[12].mxu1 %vm286_vm1, %v276_v19 }
  0xc6   : > { %494 = vmatprep.mubr.bf16.mxu1 %v2356_v0 }
  0xc8   : > { %v280_v23 = vpop.trf.xlu0 }
  0xcd   : > { %2210 = vmatmul.mubr.msk.bf16.gmra.mrb[16].mxu1 %vm286_vm1, %v277_v20 }
  0xce   : > { %504 = vmatprep.mubr.bf16.mxu1 %v2356_v0 }
  0xd5   : > { %2211 = vmatmul.mubr.msk.bf16.gmra.mrb[20].mxu1 %vm286_vm1, %v278_v21 }
  0xd6   : > { %514 = vmatprep.mubr.bf16.mxu1 %v2356_v0 }
  0xdd   : > { %2212 = vmatmul.mubr.msk.bf16.gmra.mrb[24].mxu1 %vm286_vm1, %v279_v22 }
  0xde   : > { %524 = vmatprep.mubr.bf16.mxu1 %v2356_v0 }
  0xe5   : > { %2213 = vmatmul.mubr.msk.bf16.gmra.mrb[28].mxu1 %vm286_vm1, %v280_v23  ;;  %vm2533_vm1 = vmand %vm1264_vm5, %vm2503_vm12  ;;  %vm5134_vm5 = vcmp.lt.s32.totalorder %v666_v30, %v2452_v27 }
  0xe6   : > { %v5131_v41 = vsel %vm2533_vm1, 4294967295, %v5130_v41  ;;  %vm2558_vm2 = vmand %vm5134_vm5, %vm2484_vm8  ;;  %vm5140_vm5 = vcmp.lt.s32.totalorder %v2508_v37, %v2452_v27 }
  0xe7   : > { %v5136_v45 = vsel %vm2558_vm2, 4294967295, %v5135_v45  ;;  %vm2579_vm2 = vmand %vm5140_vm5, %vm2458_vm3 }
  0xe8   : > { %vm2594_vm1 = vmand %vm5143_vm14, %vm2491_vm10  ;;  %vm5146_vm14 = vcmp.eq.s32.totalorder %v666_v30, %v2450_v26 }
  0xe9   : > { %v5145_v54 = vsel %vm2594_vm1, 4294967295, %v5144_v54  ;;  %vm2609_vm6 = vmand %vm5146_vm14, %vm2566_vm9  ;;  %vm5152_vm14 = vcmp.lt.s32.totalorder %v2508_v37, %v2452_v27  ;;  %vm5166_vm9 = vnez %v5133_v43 }
  0xea   : > { %vm2621_vm5 = vmand %vm5149_vm15, %vm2579_vm2  ;;  %vm5155_vm15 = vcmp.ge.s32.totalorder %v2508_v37, %v2452_v27 }
  0xeb   : > { %vm2630_vm1 = vmand %vm5152_vm14, %vm2484_vm8 }
  0xec   : > { %vm2653_vm14 = vmand %vm5155_vm15, %vm2478_vm7 }
 0x160   : > { %v376_v46 = vpop.f32.mrb[0].mxu0 }
 0x161   : > { %v535_v48 = vmul.f32 0.03125, %v376_v46  ;;  %v378_v49 = vpop.f32.mrb[1].mxu0 }
 0x162   : > { %v536_v52 = vmul.f32 0.03125, %v378_v49  ;;  %v380_v53 = vpop.f32.mrb[2].mxu0 }
 0x163   : > { %v599_v56 = vmul.f32 %v535_v48, %v535_v48  ;;  %v2214_v57 = vadd.f32 -1.0, %v535_v48  ;;  %v537_v58 = vmul.f32 0.03125, %v380_v53  ;;  %v382_v59 = vpop.f32.mrb[3].mxu0 }
 0x164   : > { %v600_v62 = vmul.f32 %v536_v52, %v536_v52  ;;  %v538_v63 = vmul.f32 0.03125, %v382_v59 }
 0x165   : > { %v936_v4 = vsel %vm2468_vm4, %v599_v56, 0.0  ;;  %v1392_v5 = vmul.f32 %v2214_v57, %v2214_v57  ;;  %v1683_v6 = vsel %vm2497_vm11, %v599_v56, 0.0  ;;  %v1101_v10 = vsel %vm2503_vm12, %v599_v56, 0.0 }
 0x166   : > { %v937_v9 = vsel %vm2512_vm13, %v600_v62, 0.0  ;;  %v1102_v11 = vsel %vm2527_vm0, %v600_v62, 0.0  ;;  %v601_v12 = vmul.f32 %v537_v58, %v537_v58  ;;  %vm5158_vm4 = vcmp.lt.s32.totalorder %v2539_v42, %v2452_v27 }
 0x167   : > { %vm2673_vm15 = vmand %vm5158_vm4, %vm2458_vm3  ;;  %v1522_v14 = vsel %vm2497_vm11, %v1392_v5, 0.0  ;;  %vm5161_vm13 = vnez %v5131_v41  ;;  %v2216_v16 = vadd.f32 -1.0, %v537_v58  ;;  %v602_v17 = vmul.f32 %v538_v63, %v538_v63 }
 0x168   : > { %v1908_v15 = vsel %vm5161_vm13, %v599_v56, 0.0  ;;  %vm5162_vm12 = vcmp.ge.s32.totalorder %v2508_v37, %v2452_v27  ;;  %vm5165_vm4 = vnez %v5127_v39  ;;  %v1685_v20 = vsel %vm5166_vm9, %v601_v12, 0.0  ;;  %vm5168_vm13 = vmmov %vm2609_vm6  ;;  %v386_v23 = vpop.f32.mrb[4].mxu0 }
 0x169   : > { %vm2686_vm0 = vmand %vm5162_vm12, %vm2491_vm10  ;;  %v938_v19 = vsel %vm5165_vm4, %v601_v12, 0.0  ;;  %vm5167_vm11 = vnez %v5139_v47  ;;  %v1910_v22 = vsel %vm5168_vm13, %v601_v12, 0.0  ;;  %vm5169_vm12 = vcmp.eq.s32.totalorder %v2508_v37, %v2450_v26  ;;  %v388_v39 = vpop.f32.mrb[5].mxu0 }
 0x16a   : > { %v5164_v18 = vsel %vm2686_vm0, 4294967295, %v5163_v18  ;;  %v1103_v21 = vsel %vm5167_vm11, %v601_v12, 0.0  ;;  %vm2703_vm6 = vmand %vm5169_vm12, %vm2653_vm14  ;;  %v1000_v31 = vadd.f32 %v938_v19, %v936_v4  ;;  %v1394_v35 = vmul.f32 %v2216_v16, %v2216_v16  ;;  %v390_v48 = vpop.f32.mrb[6].mxu0 }
 0x16b   : > { %v1747_v36 = vadd.f32 %v1685_v20, %v1683_v6  ;;  %vm5172_vm11 = vnez %v5136_v45  ;;  %vm5173_vm13 = vcmp.eq.s32.totalorder %v2539_v42, %v2450_v26  ;;  %v5174_v37 = vmov 0  ;;  %v392_v56 = vpop.f32.mrb[7].mxu0 }
 0x16c   : > { %v939_v38 = vsel %vm5172_vm11, %v602_v17, 0.0  ;;  %vm2716_vm0 = vmand %vm5173_vm13, %vm2673_vm15  ;;  %vm5176_vm12 = vnez %v5145_v54  ;;  %v1165_v46 = vadd.f32 %v1103_v21, %v1101_v10  ;;  %v1972_v47 = vadd.f32 %v1910_v22, %v1908_v15 }
 0x16d   : > { %v5175_v37 = vsel %vm2716_vm0, 4294967295, %v5174_v37  ;;  %v1037_v40 = vadd.f32 %v939_v38, %v937_v9  ;;  %v1104_v41 = vsel %vm5176_vm12, %v602_v17, 0.0  ;;  %vm5177_vm11 = vcmp.lt.s32.totalorder %v2539_v42, %v2452_v27 }
 0x16e   : > { %vm2727_vm4 = vmand %vm5177_vm11, %vm2484_vm8  ;;  %v5178_v45 = vmov 0  ;;  %v1524_v49 = vsel %vm5166_vm9, %v1394_v35, 0.0  ;;  %v1202_v52 = vadd.f32 %v1104_v41, %v1102_v11  ;;  %v539_v53 = vmul.f32 0.03125, %v386_v23 }
 0x16f   : > { %v5179_v45 = vsel %vm2727_vm4, 4294967295, %v5178_v45  ;;  %v540_v54 = vmul.f32 0.03125, %v388_v39  ;;  %vm5180_vm12 = vcmp.ge.s32.totalorder %v2539_v42, %v2452_v27  ;;  %v1586_v58 = vadd.f32 %v1524_v49, %v1522_v14 }
 0x170   : > { %vm2740_vm0 = vmand %vm5180_vm12, %vm2478_vm7  ;;  %v541_v59 = vmul.f32 0.03125, %v390_v48  ;;  %v542_v43 = vmul.f32 0.03125, %v392_v56  ;;  %vm5183_vm9 = vcmp.lt.s32.totalorder %v2552_v44, %v2452_v27  ;;  %v2756_v62 = vadd.s32 136, %v2447_v25  ;;  %v396_v38 = vpop.f32.mrb[8].mxu0 }
 0x171   : > { %vm2751_vm13 = vmand %vm5183_vm9, %vm2458_vm3  ;;  %v603_v63 = vmul.f32 %v539_v53, %v539_v53  ;;  %v2218_v4 = vadd.f32 -1.0, %v539_v53  ;;  %v604_v5 = vmul.f32 %v540_v54, %v540_v54  ;;  %v5186_v6 = vmov 0  ;;  %v398_v41 = vpop.f32.mrb[9].mxu0 }
 0x172   : > { %vm2763_vm11 = vmand %vm5180_vm12, %vm2491_vm10  ;;  %v2768_v9 = vadd.s32 80, %v2447_v25  ;;  %v605_v10 = vmul.f32 %v541_v59, %v541_v59  ;;  %v2220_v11 = vadd.f32 -1.0, %v541_v59  ;;  %v606_v12 = vmul.f32 %v542_v43, %v542_v43 }
 0x173   : > { %v5187_v6 = vsel %vm2763_vm11, 4294967295, %v5186_v6  ;;  %vm5188_vm9 = vcmp.eq.s32.totalorder %v2539_v42, %v2450_v26  ;;  %v5189_v14 = vmov 0  ;;  %v2782_v15 = vadd.s32 144, %v2447_v25 }
 0x174   : > { %vm2775_vm4 = vmand %vm5188_vm9, %vm2740_vm0  ;;  %v940_v16 = vsel %vm2579_vm2, %v603_v63, 0.0  ;;  %v1396_v17 = vmul.f32 %v2218_v4, %v2218_v4  ;;  %v1687_v19 = vsel %vm2621_vm5, %v603_v63, 0.0  ;;  %v941_v42 = vsel %vm2630_vm1, %v604_v5, 0.0 }
 0x175   : > { %v5190_v14 = vsel %vm2775_vm4, 4294967295, %v5189_v14  ;;  %vm5191_vm9 = vcmp.eq.s32.totalorder %v2552_v44, %v2450_v26  ;;  %vm5194_vm2 = vcmp.lt.s32.totalorder %v2552_v44, %v2452_v27  ;;  %vm5197_vm1 = vcmp.ge.s32.totalorder %v2552_v44, %v2452_v27 }
 0x176   : > { %vm2795_vm4 = vmand %vm5191_vm9, %vm2751_vm13  ;;  %v1001_v21 = vadd.f32 %v1000_v31, %v940_v16  ;;  %v1748_v22 = vadd.f32 %v1747_v36, %v1687_v19  ;;  %v1038_v23 = vadd.f32 %v1037_v40, %v941_v42  ;;  %v1105_v35 = vsel %vm2653_vm14, %v603_v63, 0.0 }
 0x177   : > { %vm2804_vm12 = vmand %vm5194_vm2, %vm2484_vm8  ;;  %vm5200_vm2 = vcmp.lt.s32.totalorder %v2588_v51, %v2452_v27  ;;  %v5201_v39 = vmov 0  ;;  %v1526_v31 = vsel %vm2621_vm5, %v1396_v17, 0.0  ;;  %vm5203_vm9 = vnez %v5164_v18 }
 0x178   : > { %v5196_v50 = vsel %vm2804_vm12, 4294967295, %v5195_v50  ;;  %vm2813_vm11 = vmand %vm5197_vm1, %vm2478_vm7  ;;  %v1106_v7 = vsel %vm5203_vm9, %v604_v5, 0.0  ;;  %v1166_v36 = vadd.f32 %v1165_v46, %v1105_v35  ;;  %v1912_v40 = vsel %vm2703_vm6, %v603_v63, 0.0  ;;  %v400_v46 = vpop.f32.mrb[10].mxu0 }
 0x179   : > { %vm2826_vm12 = vmand %vm5200_vm2, %vm2458_vm3  ;;  %v1587_v49 = vadd.f32 %v1586_v58, %v1526_v31  ;;  %v1203_v0 = vadd.f32 %v1202_v52, %v1106_v7  ;;  %v1973_v53 = vadd.f32 %v1972_v47, %v1912_v40  ;;  %v942_v18 = vsel %vm2673_vm15, %v605_v10, 0.0  ;;  %v402_v13 = vpop.f32.mrb[11].mxu0 }
 0x17a   : > { %v5202_v39 = vsel %vm2826_vm12, 4294967295, %v5201_v39  ;;  %vm5204_vm14 = vmmov %vm5197_vm1  ;;  %vm5207_vm6 = vcmp.eq.s32.totalorder %v2552_v44, %v2450_v26  ;;  %v1002_v54 = vadd.f32 %v1001_v21, %v942_v18  ;;  %v1398_v56 = vmul.f32 %v2220_v11, %v2220_v11  ;;  %v406_v7 = vpop.f32.mrb[12].mxu0 }
 0x17b   : > { %vm2843_vm2 = vmand %vm5204_vm14, %vm2491_vm10  ;;  %vm5210_vm9 = vnez %v5175_v37  ;;  %vm5211_vm14 = vnez %v5179_v45  ;;  %vm5212_vm15 = vcmp.eq.s32.totalorder %v2588_v51, %v2450_v26  ;;  %v1107_v43 = vsel %vm2740_vm0, %v605_v10, 0.0 }
 0x17c   : > { %vm2854_vm5 = vmand %vm5207_vm6, %vm2813_vm11  ;;  %v1689_v58 = vsel %vm5210_vm9, %v605_v10, 0.0  ;;  %v943_v47 = vsel %vm5211_vm14, %v606_v12, 0.0  ;;  %vm5215_vm14 = vnez %v5187_v6  ;;  %v5217_v63 = vmov 0 }
 0x17d   : > { %vm2867_vm1 = vmand %vm5212_vm15, %vm2826_vm12  ;;  %v1749_v52 = vadd.f32 %v1748_v22, %v1689_v58  ;;  %v1039_v59 = vadd.f32 %v1038_v23, %v943_v47  ;;  %v1108_v45 = vsel %vm5215_vm14, %v606_v12, 0.0  ;;  %vm5216_vm15 = vcmp.lt.s32.totalorder %v2588_v51, %v2452_v27 }
 0x17e   : > { %vm2882_vm12 = vmand %vm5216_vm15, %vm2484_vm8  ;;  %v1528_v4 = vsel %vm5210_vm9, %v1398_v56, 0.0  ;;  %v1167_v5 = vadd.f32 %v1166_v36, %v1107_v43  ;;  %v1204_v11 = vadd.f32 %v1203_v0, %v1108_v45  ;;  %vm5219_vm6 = vnez %v5190_v14 }
 0x17f   : > { %v5218_v63 = vsel %vm2882_vm12, 4294967295, %v5217_v63  ;;  %v1914_v57 = vsel %vm5219_vm6, %v605_v10, 0.0  ;;  %vm5220_vm0 = vcmp.ge.s32.totalorder %v2588_v51, %v2452_v27  ;;  %v1588_v12 = vadd.f32 %v1587_v49, %v1528_v4 }
 0x180   : > { %vm2895_vm14 = vmand %vm5220_vm0, %vm2478_vm7  ;;  %v1974_v37 = vadd.f32 %v1973_v53, %v1914_v57  ;;  %v543_v16 = vmul.f32 0.03125, %v396_v38  ;;  %v544_v17 = vmul.f32 0.03125, %v398_v41  ;;  %vm5223_vm9 = vcmp.lt.s32.totalorder %v2603_v55, %v2452_v27 }
 0x181   : > { %vm2906_vm6 = vmand %vm5223_vm9, %vm2458_vm3  ;;  %v545_v14 = vmul.f32 0.03125, %v400_v46  ;;  %v546_v19 = vmul.f32 0.03125, %v402_v13  ;;  %v5227_v42 = vmov 0  ;;  %v2922_v21 = vadd.s32 88, %v2447_v25 }
 0x182   : > { %vm5226_vm15 = vmmov %vm5220_vm0  ;;  %v2925_v22 = vadd.s32 152, %v2447_v25  ;;  %v607_v23 = vmul.f32 %v543_v16, %v543_v16  ;;  %v2222_v35 = vadd.f32 -1.0, %v543_v16  ;;  %v608_v38 = vmul.f32 %v544_v17, %v544_v17 }
 0x183   : > { %vm2917_vm12 = vmand %vm5226_vm15, %vm2491_vm10  ;;  %vm5229_vm9 = vcmp.eq.s32.totalorder %v2588_v51, %v2450_v26  ;;  %v5230_v31 = vmov 0  ;;  %v2937_v36 = vadd.s32 96, %v2447_v25  ;;  %v609_v40 = vmul.f32 %v545_v14, %v545_v14  ;;  %v408_v51 = vpop.f32.mrb[13].mxu0 }
 0x184   : > { %v5228_v42 = vsel %vm2917_vm12, 4294967295, %v5227_v42  ;;  %vm2932_vm0 = vmand %vm5229_vm9, %vm2895_vm14  ;;  %v2224_v41 = vadd.f32 -1.0, %v545_v14  ;;  %v610_v49 = vmul.f32 %v546_v19, %v546_v19  ;;  %v547_v0 = vmul.f32 0.03125, %v406_v7  ;;  %v410_v13 = vpop.f32.mrb[14].mxu0 }
 0x185   : > { %v5231_v31 = vsel %vm2932_vm0, 4294967295, %v5230_v31  ;;  %vm5232_vm15 = vcmp.eq.s32.totalorder %v2603_v55, %v2450_v26  ;;  %v5233_v53 = vmov 0  ;;  %v944_v18 = vsel %vm2751_vm13, %v607_v23, 0.0  ;;  %v412_v1 = vpop.f32.mrb[15].mxu0 }
 0x186   : > { %vm2944_vm12 = vmand %vm5232_vm15, %vm2906_vm6  ;;  %v1400_v46 = vmul.f32 %v2222_v35, %v2222_v35  ;;  %v1691_v56 = vsel %vm2795_vm4, %v607_v23, 0.0  ;;  %vm5235_vm0 = vnez %v5196_v50  ;;  %vm5236_vm15 = vcmp.ge.s32.totalorder %v2603_v55, %v2452_v27 }
 0x187   : > { %v5234_v53 = vsel %vm2944_vm12, 4294967295, %v5233_v53  ;;  %v945_v58 = vsel %vm5235_vm0, %v608_v38, 0.0  ;;  %vm2961_vm12 = vmand %vm5236_vm15, %vm2478_vm7  ;;  %v1003_v60 = vadd.f32 %v1002_v54, %v944_v18  ;;  %v1750_v43 = vadd.f32 %v1749_v52, %v1691_v56 }
 0x188   : > { %v1040_v45 = vadd.f32 %v1039_v59, %v945_v58  ;;  %v1109_v50 = vsel %vm2813_vm11, %v607_v23, 0.0  ;;  %vm5239_vm0 = vcmp.lt.s32.totalorder %v2603_v55, %v2452_v27  ;;  %vm5242_vm15 = vcmp.lt.s32.totalorder %v2614_v61, %v2452_v27 }
 0x189   : > { %vm2974_vm9 = vmand %vm5239_vm0, %vm2484_vm8  ;;  %v1530_v52 = vsel %vm2795_vm4, %v1400_v46, 0.0  ;;  %v1110_v59 = vsel %vm2843_vm2, %v608_v38, 0.0  ;;  %v1168_v57 = vadd.f32 %v1167_v5, %v1109_v50  ;;  %v1916_v16 = vsel %vm2854_vm5, %v607_v23, 0.0  ;;  %v3058_v46 = vpop.f32.mrb[0].mxu1 }
 0x18a   : > { %vm2983_vm13 = vmand %vm5242_vm15, %vm2458_vm3  ;;  %vm5245_vm0 = vcmp.ge.s32.totalorder %v2603_v55, %v2452_v27  ;;  %v5246_v17 = vmov 0  ;;  %v1589_v14 = vadd.f32 %v1588_v12, %v1530_v52  ;;  %v1205_v19 = vadd.f32 %v1204_v11, %v1110_v59 }
 0x18b   : > { %vm3000_vm15 = vmand %vm5245_vm0, %vm2491_vm10  ;;  %v1975_v20 = vadd.f32 %v1974_v37, %v1916_v16  ;;  %vm5248_vm4 = vnez %v5202_v39  ;;  %vm5249_vm2 = vcmp.eq.s32.totalorder %v2603_v55, %v2450_v26  ;;  %v1402_v23 = vmul.f32 %v2224_v41, %v2224_v41 }
 0x18c   : > { %v5247_v17 = vsel %vm3000_vm15, 4294967295, %v5246_v17  ;;  %v946_v48 = vsel %vm5248_vm4, %v609_v40, 0.0  ;;  %vm3011_vm5 = vmand %vm5249_vm2, %vm2961_vm12  ;;  %v1693_v11 = vsel %vm2867_vm1, %v609_v40, 0.0  ;;  %vm5252_vm11 = vnez %v5218_v63 }
 0x18d   : > { %v1004_v5 = vadd.f32 %v1003_v60, %v946_v48  ;;  %v947_v39 = vsel %vm5252_vm11, %v610_v49, 0.0  ;;  %vm5253_vm4 = vcmp.eq.s32.totalorder %v2614_v61, %v2450_v26  ;;  %v1751_v12 = vadd.f32 %v1750_v43, %v1693_v11  ;;  %v3071_v43 = vpop.f32.mrb[1].mxu1 }
 0x18e   : > { %vm3026_vm2 = vmand %vm5253_vm4, %vm2983_vm13  ;;  %v1041_v37 = vadd.f32 %v1040_v45, %v947_v39  ;;  %v1111_v35 = vsel %vm2895_vm14, %v609_v40, 0.0  ;;  %vm5256_vm15 = vnez %v5228_v42  ;;  %vm5257_vm11 = vcmp.lt.s32.totalorder %v2614_v61, %v2452_v27  ;;  %v3088_v16 = vpop.f32.mrb[2].mxu1 }
 0x18f   : > { %v1112_v63 = vsel %vm5256_vm15, %v610_v49, 0.0  ;;  %vm3041_vm4 = vmand %vm5257_vm11, %vm2484_vm8  ;;  %v5258_v38 = vmov 0  ;;  %v1532_v7 = vsel %vm2867_vm1, %v1402_v23, 0.0  ;;  %v1169_v41 = vadd.f32 %v1168_v57, %v1111_v35  ;;  %v416_v49 = vpop.f32.mrb[16].mxu0  ;;  %v3111_v10 = vpop.f32.mrb[3].mxu1 }
 0x190   : > { %v5259_v38 = vsel %vm3041_vm4, 4294967295, %v5258_v38  ;;  %v1206_v18 = vadd.f32 %v1205_v19, %v1112_v63  ;;  %vm5260_vm0 = vnez %v5231_v31  ;;  %vm5261_vm14 = vcmp.ge.s32.totalorder %v2614_v61, %v2452_v27 }
 0x191   : > { %v1918_v6 = vsel %vm5260_vm0, %v609_v40, 0.0  ;;  %vm3054_vm15 = vmand %vm5261_vm14, %vm2478_vm7  ;;  %v1590_v56 = vadd.f32 %v1589_v14, %v1532_v7  ;;  %v611_v58 = vmul.f32 %v547_v0, %v547_v0  ;;  %v2226_v60 = vadd.f32 -1.0, %v547_v0  ;;  %v3069_v40 = vpop.f32.mrb[17].mxu0 }
 0x192   : > { %v1976_v44 = vadd.f32 %v1975_v20, %v1918_v6  ;;  %vm5264_vm1 = vcmp.lt.s32.totalorder %v2639_v2, %v2452_v27  ;;  %v548_v45 = vmul.f32 0.03125, %v408_v51  ;;  %v549_v50 = vmul.f32 0.03125, %v410_v13  ;;  %vm3080_vm4 = vmand %vm5261_vm14, %vm2491_vm10  ;;  %v3086_v57 = vpop.f32.mrb[18].mxu0 }
 0x193   : > { %vm3065_vm0 = vmand %vm5264_vm1, %vm2458_vm3  ;;  %v550_v52 = vmul.f32 0.03125, %v412_v1  ;;  %v5267_v0 = vmov 0  ;;  %v551_v59 = vmul.f32 0.03125, %v416_v49  ;;  %v948_v51 = vsel %vm2906_vm6, %v611_v58, 0.0  ;;  %v3107_v20 = vpop.f32.mrb[19].mxu0 }
 0x194   : > { %v5268_v0 = vsel %vm3080_vm4, 4294967295, %v5267_v0  ;;  %v1404_v13 = vmul.f32 %v2226_v60, %v2226_v60  ;;  %vm5269_vm14 = vnez %v5234_v53  ;;  %v1113_v14 = vsel %vm2961_vm12, %v611_v58, 0.0 }
 0x195   : > { %v1695_v1 = vsel %vm5269_vm14, %v611_v58, 0.0  ;;  %vm5270_vm1 = vcmp.eq.s32.totalorder %v2614_v61, %v2450_v26  ;;  %v1005_v48 = vadd.f32 %v1004_v5, %v948_v51  ;;  %v612_v47 = vmul.f32 %v548_v45, %v548_v45 }
 0x196   : > { %vm3103_vm4 = vmand %vm5270_vm1, %vm3054_vm15  ;;  %v1752_v23 = vadd.f32 %v1751_v12, %v1695_v1  ;;  %v1170_v11 = vadd.f32 %v1169_v41, %v1113_v14  ;;  %vm5273_vm12 = vcmp.eq.s32.totalorder %v2639_v2, %v2450_v26  ;;  %v1534_v39 = vsel %vm5269_vm14, %v1404_v13, 0.0 }
 0x197   : > { %vm3118_vm1 = vmand %vm5273_vm12, %vm3065_vm0  ;;  %v1920_v5 = vsel %vm3011_vm5, %v611_v58, 0.0  ;;  %v613_v12 = vmul.f32 %v549_v50, %v549_v50  ;;  %v2228_v35 = vadd.f32 -1.0, %v549_v50  ;;  %vm5276_vm6 = vcmp.lt.s32.totalorder %v2642_v3, %v2452_v27  ;;  %v3178_v50 = vpop.f32.mrb[4].mxu1 }
 0x198   : > { %vm3133_vm12 = vmand %vm5276_vm6, %vm2484_vm8  ;;  %v5277_v63 = vmov 0  ;;  %v1591_v7 = vadd.f32 %v1590_v56, %v1534_v39  ;;  %v949_v53 = vsel %vm2974_vm9, %v612_v47, 0.0  ;;  %vm5280_vm5 = vnez %v5247_v17  ;;  %v3197_v55 = vpop.f32.mrb[5].mxu1 }
 0x199   : > { %v5278_v63 = vsel %vm3133_vm12, 4294967295, %v5277_v63  ;;  %v1114_v30 = vsel %vm5280_vm5, %v612_v47, 0.0  ;;  %v1977_v41 = vadd.f32 %v1976_v44, %v1920_v5  ;;  %vm5281_vm14 = vcmp.ge.s32.totalorder %v2642_v3, %v2452_v27  ;;  %v3214_v5 = vpop.f32.mrb[6].mxu1 }
 0x19a   : > { %5279 = vst [vmem:[#allocation7_spill] sm:$0xff] %v5278_v63  ;;  %vm3148_vm6 = vmand %vm5281_vm14, %vm2491_vm10  ;;  %v5282_v6 = vmov 0  ;;  %v1042_v49 = vadd.f32 %v1041_v37, %v949_v53  ;;  %v1207_v58 = vadd.f32 %v1206_v18, %v1114_v30  ;;  %v950_v56 = vsel %vm2983_vm13, %v613_v12, 0.0  ;;  %v3176_v18 = vpop.f32.mrb[20].mxu0  ;;  %v3229_v30 = vpop.f32.mrb[7].mxu1 }
 0x19b   : > { %v5283_v6 = vsel %vm3148_vm6, 4294967295, %v5282_v6  ;;  %v1406_v4 = vmul.f32 %v2228_v35, %v2228_v35  ;;  %vm5285_vm9 = vcmp.lt.s32.totalorder %v2639_v2, %v2452_v27  ;;  %v1006_v44 = vadd.f32 %v1005_v48, %v950_v56  ;;  %v3195_v14 = vpop.f32.mrb[21].mxu0 }
 0x19c   : > { %5284 = vst [vmem:[#allocation8_spill] sm:$0xff] %v5283_v6  ;;  %vm3159_vm5 = vmand %vm5285_vm9, %vm2484_vm8  ;;  %v1697_v60 = vsel %vm3026_vm2, %v613_v12, 0.0  ;;  %v614_v45 = vmul.f32 %v550_v52, %v550_v52  ;;  %v1115_v37 = vsel %vm3054_vm15, %v613_v12, 0.0  ;;  %vm5288_vm13 = vcmp.ge.s32.totalorder %v2639_v2, %v2452_v27  ;;  %v3212_v39 = vpop.f32.mrb[22].mxu0 }
 0x19d   : > { %vm3172_vm14 = vmand %vm5288_vm13, %vm2478_vm7  ;;  %v1536_v51 = vsel %vm3026_vm2, %v1406_v4, 0.0  ;;  %v1753_v52 = vadd.f32 %v1752_v23, %v1697_v60  ;;  %v1171_v13 = vadd.f32 %v1170_v11, %v1115_v37  ;;  %v1922_v42 = vsel %vm3103_vm4, %v613_v12, 0.0  ;;  %v3227_v53 = vpop.f32.mrb[23].mxu0 }
 0x19e   : > { %vm5291_vm15 = vcmp.lt.s32.totalorder %v2660_v8, %v2452_v27  ;;  %v1592_v48 = vadd.f32 %v1591_v7, %v1536_v51  ;;  %vm5294_vm2 = vnez %v5259_v38  ;;  %vm5295_vm4 = vnez %v5268_v0 }
 0x19f   : > { %vm3189_vm9 = vmand %vm5291_vm15, %vm2458_vm3  ;;  %v951_v19 = vsel %vm5294_vm2, %v614_v45, 0.0  ;;  %v1116_v23 = vsel %vm5295_vm4, %v614_v45, 0.0  ;;  %v1978_v47 = vadd.f32 %v1977_v41, %v1922_v42  ;;  %v615_v35 = vmul.f32 %v551_v59, %v551_v59 }
 0x1a0   : > { %vm5296_vm15 = vmmov %vm5288_vm13  ;;  %v1043_v12 = vadd.f32 %v1042_v49, %v951_v19  ;;  %v1208_v38 = vadd.f32 %v1207_v58, %v1116_v23  ;;  %v2230_v7 = vadd.f32 -1.0, %v551_v59  ;;  %vm5299_vm2 = vcmp.eq.s32.totalorder %v2639_v2, %v2450_v26 }
 0x1a1   : > { %vm3208_vm11 = vmand %vm5296_vm15, %vm2491_vm10  ;;  %v552_v41 = vmul.f32 0.03125, %v3069_v40  ;;  %vm5302_vm13 = vcmp.eq.s32.totalorder %v2660_v8, %v2450_v26  ;;  %v5303_v2 = vmov 0  ;;  %v3244_v59 = vadd.s32 160, %v2447_v25 }
 0x1a2   : > { %vm3221_vm4 = vmand %vm5299_vm2, %vm3172_vm14  ;;  %v3247_v49 = vadd.s32 104, %v2447_v25  ;;  %v3250_v40 = vadd.s32 168, %v2447_v25  ;;  %v952_v58 = vsel %vm3065_vm0, %v615_v35, 0.0  ;;  %v1408_v56 = vmul.f32 %v2230_v7, %v2230_v7 }
 0x1a3   : > { %vm3237_vm3 = vmand %vm5302_vm13, %vm3189_vm9  ;;  %v1699_v4 = vsel %vm3118_vm1, %v615_v35, 0.0  ;;  %v1117_v60 = vsel %vm3172_vm14, %v615_v35, 0.0  ;;  %vm5305_vm13 = vcmp.eq.s32.totalorder %v2642_v3, %v2463_v29  ;;  %v5306_v45 = vmov 0 }
 0x1a4   : > { %v5304_v2 = vsel %vm3237_vm3, 4294967295, %v5303_v2  ;;  %vm3263_vm2 = vmand %vm5305_vm13, %vm3133_vm12  ;;  %vm5308_vm0 = vcmp.ge.s32.totalorder %v2756_v62, %v2452_v27  ;;  %v5309_v31 = vmov 0  ;;  %v1007_v37 = vadd.f32 %v1006_v44, %v952_v58 }
 0x1a5   : > { %v5307_v45 = vsel %vm3263_vm2, 4294967295, %v5306_v45  ;;  %vm3272_vm15 = vmand %vm5308_vm0, %vm2491_vm10  ;;  %v1754_v54 = vadd.f32 %v1753_v52, %v1699_v4  ;;  %v616_v51 = vmul.f32 %v552_v41, %v552_v41  ;;  %v553_v42 = vmul.f32 0.03125, %v3086_v57 }
 0x1a6   : > { %v5310_v31 = vsel %vm3272_vm15, 4294967295, %v5309_v31  ;;  %vm5312_vm13 = vcmp.ge.s32.totalorder %v2660_v8, %v2452_v27  ;;  %v1538_v44 = vsel %vm3118_vm1, %v1408_v56, 0.0  ;;  %vm5315_vm2 = vcmp.eq.s32.totalorder %v2642_v3, %v2463_v29 }
 0x1a7   : > { %5311 = vst [vmem:[#allocation9_spill] sm:$0xff] %v5310_v31  ;;  %vm3284_vm12 = vmand %vm5312_vm13, %vm2478_vm7  ;;  %v1172_v52 = vadd.f32 %v1171_v13, %v1117_v60  ;;  %v1924_v23 = vsel %vm3221_vm4, %v615_v35, 0.0  ;;  %v568_v7 = vmul.f32 0.03125, %v3071_v43  ;;  %vm5318_vm1 = vcmp.lt.s32.totalorder %v2756_v62, %v2452_v27  ;;  %v3326_v13 = vpop.f32.mrb[24].mxu0  ;;  %v3328_v35 = vpop.f32.mrb[8].mxu1 }
 0x1a8   : > { %vm3299_vm3 = vmand %vm5315_vm2, %vm3148_vm6  ;;  %v5319_v61 = vmov 0  ;;  %v1593_v41 = vadd.f32 %v1592_v48, %v1538_v44  ;;  %v953_v58 = vsel %vm3159_vm5, %v616_v51, 0.0  ;;  %vm5322_vm4 = vcmp.eq.s32.totalorder %v2756_v62, %v2463_v29  ;;  %5325 = vst [vmem:[#allocation11_spill] sm:$0xff] %v3328_v35  ;;  %v3347_v44 = vpop.f32.mrb[25].mxu0  ;;  %v3349_v24 = vpop.f32.mrb[9].mxu1 }
 0x1a9   : > { %vm3311_vm13 = vmand %vm5318_vm1, %vm2484_vm8  ;;  %v3331_v0 = vadd.s32 112, %v2447_v25  ;;  %v3334_v48 = vadd.s32 176, %v2447_v25  ;;  %v1044_v17 = vadd.f32 %v1043_v12, %v953_v58  ;;  %v1118_v56 = vsel %vm3208_vm11, %v616_v51, 0.0  ;;  %v3368_v58 = vpop.f32.mrb[10].mxu1 }
 0x1aa   : > { %v5320_v61 = vsel %vm3311_vm13, 4294967295, %v5319_v61  ;;  %vm3322_vm2 = vmand %vm5322_vm4, %vm3272_vm15  ;;  %v1979_v4 = vadd.f32 %v1978_v47, %v1924_v23  ;;  %vm5326_vm5 = vcmp.eq.s32.totalorder %v2660_v8, %v2450_v26  ;;  %v3352_v31 = vadd.s32 120, %v2447_v25  ;;  %v3366_v23 = vpop.f32.mrb[26].mxu0  ;;  %5333 = vst [vmem:[#allocation13_spill] sm:$0xff] %v3368_v58  ;;  %v3387_v58 = vpop.f32.mrb[11].mxu1 }
 0x1ab   : > { %5321 = vst [vmem:[#allocation10_spill] sm:$0xff] %v5320_v61  ;;  %vm3343_vm1 = vmand %vm5326_vm5, %vm3284_vm12  ;;  %v567_v11 = vmul.f32 0.03125, %v3058_v46  ;;  %v1209_v12 = vadd.f32 %v1208_v38, %v1118_v56  ;;  %v617_v47 = vmul.f32 %v553_v42, %v553_v42  ;;  %vm5330_vm11 = vcmp.lt.s32.totalorder %v2660_v8, %v2452_v27  ;;  %v3385_v35 = vpop.f32.mrb[27].mxu0 }
 0x1ac   : > { %5329 = vst [vmem:[#allocation12_spill] sm:$0xff] %v3352_v31  ;;  %vm3360_vm4 = vmand %vm5330_vm11, %vm2484_vm8  ;;  %v3371_v46 = vadd.s32 184, %v2447_v25  ;;  %v3373_v38 = vmul.f32 %v568_v7, %v568_v7  ;;  %v2247_v56 = vadd.f32 -1.0, %v568_v7  ;;  %v2232_v6 = vadd.f32 -1.0, %v553_v42 }
 0x1ad   : > { %v554_v63 = vmul.f32 0.03125, %v3107_v20  ;;  %vm5336_vm11 = vcmp.ge.s32.totalorder %v2660_v8, %v2452_v27  ;;  %5339 = vst [vmem:[#allocation16_spill] sm:$0xff] %v3385_v35  ;;  %5340 = vst [vmem:[#allocation17_spill] sm:$0xff] %v3387_v58  ;;  %vm5341_vm5 = vnez %v5304_v2  ;;  %v1119_v20 = vsel %vm3284_vm12, %v617_v47, 0.0 }
 0x1ae   : > { %5334 = vst [vmem:[#allocation14_spill] sm:$0xff] %v3371_v46  ;;  %5335 = vst [vmem:[#allocation15_spill] sm:$0xff] %v3373_v38  ;;  %v954_v46 = vsel %vm3189_vm9, %v617_v47, 0.0  ;;  %v1701_v42 = vsel %vm5341_vm5, %v617_v47, 0.0  ;;  %v1926_v8 = vsel %vm3343_vm1, %v617_v47, 0.0  ;;  %vm5343_vm0 = vcmp.lt.s32.totalorder %v2768_v9, %v2452_v27 }
 0x1af   : > { %vm3381_vm14 = vmand %vm5336_vm11, %vm2491_vm10  ;;  %vm5342_vm11 = vnez %v5111_v28  ;;  %v1008_v1 = vadd.f32 %v1007_v37, %v954_v46  ;;  %v1410_v58 = vmul.f32 %v2232_v6, %v2232_v6  ;;  %v3408_v35 = vadd.f32 %v1754_v54, %v1701_v42 }
 0x1b0   : > { %vm3402_vm15 = vmand %vm5343_vm0, %vm5342_vm11  ;;  %vm5346_vm12 = vcmp.eq.s32.totalorder %v2756_v62, %v2463_v29  ;;  %v3422_v60 = vadd.s32 192, %v2447_v25  ;;  %vm5350_vm9 = vcmp.lt.s32.totalorder %v2642_v3, %v2452_v27  ;;  %v5351_v6 = vmov 0 }
 0x1b1   : > { %vm3415_vm1 = vmand %vm5346_vm12, %vm3311_vm13  ;;  %v618_v37 = vmul.f32 %v554_v63, %v554_v63  ;;  %v3433_v54 = vadd.f32 %v1172_v52, %v1119_v20  ;;  %v3435_v47 = vadd.f32 %v1979_v4, %v1926_v8  ;;  %vm5353_vm12 = vcmp.ge.s32.totalorder %v2782_v15, %v2452_v27 }
 0x1b2   : > { %5349 = vst [vmem:[#allocation18_spill] sm:$0xff] %v3422_v60  ;;  %vm3429_vm6 = vmand %vm5350_vm9, %vm5342_vm11  ;;  %v5354_v46 = vmov 0  ;;  %v3449_v42 = vadd.s32 200, %v2447_v25  ;;  %v3451_v63 = vmul.f32 %v567_v11, %v567_v11  ;;  %v1540_v52 = vsel %vm5341_vm5, %v1410_v58, 0.0  ;;  %v3493_v25 = vpop.f32.mrb[28].mxu0 }
 0x1b3   : > { %v5352_v6 = vsel %vm3429_vm6, 4294967295, %v5351_v6  ;;  %vm3442_vm0 = vmand %vm5353_vm12, %vm2491_vm10  ;;  %v570_v4 = vmul.f32 0.03125, %v3111_v10  ;;  %v555_v20 = vmul.f32 0.03125, %v3176_v18  ;;  %vm5358_vm12 = vcmp.eq.s32.totalorder %v2768_v9, %v2450_v26  ;;  %5368 = vst [vmem:[#allocation21_spill] sm:$0xff] %v3493_v25 }
 0x1b4   : > { %v5355_v46 = vsel %vm3442_vm0, 4294967295, %v5354_v46  ;;  %5357 = vst [vmem:[#allocation20_spill] sm:$0xff] %v3449_v42  ;;  %vm3462_vm13 = vmand %vm5358_vm12, %vm3402_vm15  ;;  %vm5361_vm5 = vcmp.ge.s32.totalorder %v2642_v3, %v2452_v27  ;;  %v5362_v10 = vmov 0  ;;  %v1425_v18 = vmul.f32 %v2247_v56, %v2247_v56  ;;  %v3495_v56 = vpop.f32.mrb[12].mxu1 }
 0x1b5   : > { %5356 = vst [vmem:[#allocation19_spill] sm:$0xff] %v5355_v46  ;;  %vm3475_vm11 = vmand %vm5361_vm5, %vm2478_vm7  ;;  %vm5364_vm12 = vnez %v5307_v45  ;;  %v1594_v11 = vadd.f32 %v1593_v41, %v1540_v52  ;;  %v955_v58 = vsel %vm3360_vm4, %v618_v37, 0.0  ;;  %vm5365_vm6 = vcmp.lt.s32.totalorder %v2782_v15, %v2452_v27 }
 0x1b6   : > { %v5363_v10 = vsel %vm3475_vm11, 4294967295, %v5362_v10  ;;  %v1716_v2 = vsel %vm5364_vm12, %v3373_v38, 0.0  ;;  %vm3489_vm9 = vmand %vm5365_vm6, %vm2484_vm8  ;;  %v5366_v3 = vmov 0  ;;  %5369 = vst [vmem:[#allocation22_spill] sm:$0xff] %v3495_v56  ;;  %v1045_v42 = vadd.f32 %v1044_v17, %v955_v58  ;;  %v3519_v17 = vpop.f32.mrb[29].mxu0 }
 0x1b7   : > { %v5367_v3 = vsel %vm3489_vm9, 4294967295, %v5366_v3  ;;  %v1120_v41 = vsel %vm3381_vm14, %v618_v37, 0.0  ;;  %v3499_v52 = vmul.f32 %v570_v4, %v570_v4  ;;  %v2249_v51 = vadd.f32 -1.0, %v570_v4  ;;  %5377 = vst [vmem:[#allocation24_spill] sm:$0xff] %v3519_v17  ;;  %v3521_v37 = vpop.f32.mrb[13].mxu1  ;;  %v3535_v25 = vpop.f32.mrb[30].mxu0 }
 0x1b8   : > { %vm5371_vm4 = vcmp.eq.s32.totalorder %v2782_v15, %v2463_v29  ;;  %vm5374_vm5 = vcmp.ge.s32.totalorder %v2768_v9, %v2452_v27  ;;  %5378 = vst [vmem:[#allocation25_spill] sm:$0xff] %v3521_v37  ;;  %v1941_v4 = vsel %vm3299_vm3, %v3373_v38, 0.0  ;;  %v1210_v58 = vadd.f32 %v1209_v12, %v1120_v41  ;;  %5382 = vst [vmem:[#allocation26_spill] sm:$0xff] %v3535_v25  ;;  %v3537_v17 = vpop.f32.mrb[14].mxu1 }
 0x1b9   : > { %5370 = vst [vmem:[#allocation23_spill] sm:$0xff] %v3499_v52  ;;  %vm3506_vm6 = vmand %vm5371_vm4, %vm3442_vm0  ;;  %v619_v46 = vmul.f32 %v555_v20, %v555_v20  ;;  %v2234_v60 = vadd.f32 -1.0, %v555_v20  ;;  %vm5379_vm14 = vcmp.lt.s32.totalorder %v2768_v9, %v2452_v27  ;;  %v1427_v37 = vmul.f32 %v2249_v51, %v2249_v51  ;;  %v3557_v51 = vpop.f32.mrb[31].mxu0  ;;  %v3559_v38 = vpop.f32.mrb[15].mxu1 }
 0x1ba   : > { %vm3515_vm11 = vmand %vm5374_vm5, %vm2478_vm7  ;;  %5383 = vst [vmem:[#allocation27_spill] sm:$0xff] %v3537_v17  ;;  %v1718_v57 = vsel %vm3415_vm1, %v3499_v52, 0.0  ;;  %v1943_v12 = vsel %vm3322_vm2, %v3499_v52, 0.0  ;;  %v556_v20 = vmul.f32 0.03125, %v3195_v14  ;;  %vm5389_vm2 = vcmp.eq.s32.totalorder %v2768_v9, %v2450_v26 }
 0x1bb   : > { %vm3531_vm4 = vmand %vm5379_vm14, %vm2484_vm8  ;;  %5387 = vst [vmem:[#allocation28_spill] sm:$0xff] %v3557_v51  ;;  %v1800_v43 = vadd.f32 %v1718_v57, %v1716_v2  ;;  %v2025_v52 = vadd.f32 %v1943_v12, %v1941_v4  ;;  %v956_v14 = vsel %vm3402_vm15, %v619_v46, 0.0  ;;  %v1412_v17 = vmul.f32 %v2234_v60, %v2234_v60 }
 0x1bc   : > { %vm5384_vm3 = vmmov %vm5374_vm5  ;;  %5388 = vst [vmem:[#allocation29_spill] sm:$0xff] %v3559_v38  ;;  %v1555_v51 = vsel %vm5364_vm12, %v1425_v18, 0.0  ;;  %v1557_v2 = vsel %vm3415_vm1, %v1427_v37, 0.0  ;;  %v1009_v4 = vadd.f32 %v1008_v1, %v956_v14  ;;  %v1703_v7 = vsel %vm3462_vm13, %v619_v46, 0.0 }
 0x1bd   : > { %vm3551_vm5 = vmand %vm5384_vm3, %vm2491_vm10  ;;  %vm5392_vm15 = vnez %v5111_v28  ;;  %vm5393_vm14 = vcmp.lt.s32.totalorder %v2922_v21, %v2452_v27  ;;  %v569_v45 = vmul.f32 0.03125, %v3088_v16  ;;  %v1639_v19 = vadd.f32 %v1557_v2, %v1555_v51 }
 0x1be   : > { %vm3568_vm3 = vmand %vm5389_vm2, %vm3515_vm11  ;;  %v1542_v1 = vsel %vm3462_vm13, %v1412_v17, 0.0  ;;  %v1756_v60 = vadd.f32 %v3408_v35, %v1703_v7  ;;  %vm5396_vm1 = vcmp.eq.s32.totalorder %v2782_v15, %v2463_v29  ;;  %v620_v16 = vmul.f32 %v556_v20, %v556_v20 }
 0x1bf   : > { %vm3583_vm0 = vmand %vm5393_vm14, %vm5392_vm15  ;;  %v1595_v37 = vadd.f32 %v1594_v11, %v1542_v1  ;;  %v1121_v8 = vsel %vm3515_vm11, %v619_v46, 0.0  ;;  %v1928_v35 = vsel %vm3568_vm3, %v619_v46, 0.0  ;;  %vm5399_vm13 = vcmp.ge.s32.totalorder %v2925_v22, %v2452_v27 }
 0x1c0   : > { %vm3598_vm12 = vmand %vm5396_vm1, %vm3489_vm9  ;;  %v5400_v17 = vmov 0  ;;  %vm5403_vm11 = vcmp.lt.s32.totalorder %v2756_v62, %v2452_v27  ;;  %v5404_v25 = vmov 0  ;;  %vm5406_vm3 = vcmp.ge.s32.totalorder %v2756_v62, %v2452_v27 }
 0x1c1   : > { %vm3613_vm1 = vmand %vm5399_vm13, %vm2491_vm10  ;;  %v5407_v46 = vmov 0  ;;  %v1174_v11 = vadd.f32 %v3433_v54, %v1121_v8  ;;  %v3639_v31 = vadd.f32 %v3435_v47, %v1928_v35  ;;  %v572_v57 = vmul.f32 0.03125, %v3197_v55  ;;  %v3654_v54 = vpop.f32.mrb[16].mxu1 }
 0x1c2   : > { %v5401_v17 = vsel %vm3613_vm1, 4294967295, %v5400_v17  ;;  %vm3624_vm2 = vmand %vm5403_vm11, %vm5392_vm15  ;;  %v557_v12 = vmul.f32 0.03125, %v3212_v39  ;;  %vm5409_vm11 = vcmp.eq.s32.totalorder %v2922_v21, %v2450_v26  ;;  %5412 = vst [vmem:[#allocation31_spill] sm:$0xff] %v3654_v54  ;;  %v957_v39 = vsel %vm3531_vm4, %v620_v16, 0.0  ;;  %v3675_v14 = vpop.f32.mrb[17].mxu1 }
 0x1c3   : > { %5402 = vst [vmem:[#allocation30_spill] sm:$0xff] %v5401_v17  ;;  %v5405_v25 = vsel %vm3624_vm2, 4294967295, %v5404_v25  ;;  %vm3633_vm13 = vmand %vm5406_vm3, %vm2478_vm7  ;;  %v1122_v47 = vsel %vm3551_vm5, %v620_v16, 0.0  ;;  %v5415_v20 = vmov 0  ;;  %v558_v51 = vmul.f32 0.03125, %v3227_v53 }
 0x1c4   : > { %v5408_v46 = vsel %vm3633_vm13, 4294967295, %v5407_v46  ;;  %vm3648_vm14 = vmand %vm5409_vm11, %vm3583_vm0  ;;  %vm5414_vm11 = vcmp.lt.s32.totalorder %v2925_v22, %v2452_v27  ;;  %5418 = vst [vmem:[#allocation33_spill] sm:$0xff] %v3675_v14  ;;  %v1046_v56 = vadd.f32 %v1045_v42, %v957_v39  ;;  %v1211_v2 = vadd.f32 %v1210_v58, %v1122_v47  ;;  %v3697_v42 = vpop.f32.mrb[18].mxu1 }
 0x1c5   : > { %vm3668_vm13 = vmand %vm5414_vm11, %vm2484_vm8  ;;  %v3677_v41 = vmul.f32 %v572_v57, %v572_v57  ;;  %v2251_v7 = vadd.f32 -1.0, %v572_v57  ;;  %vm5419_vm4 = vcmp.eq.s32.totalorder %v2925_v22, %v2463_v29  ;;  %v5420_v1 = vmov 0  ;;  %5425 = vst [vmem:[#allocation34_spill] sm:$0xff] %v3697_v42  ;;  %v3715_v39 = vpop.f32.mrb[19].mxu1 }
 0x1c6   : > { %v5416_v20 = vsel %vm3668_vm13, 4294967295, %v5415_v20  ;;  %vm3684_vm5 = vmand %vm5419_vm4, %vm3613_vm1  ;;  %vm5422_vm11 = vcmp.ge.s32.totalorder %v2922_v21, %v2452_v27  ;;  %v3702_v16 = vmul.f32 %v569_v45, %v569_v45  ;;  %v621_v8 = vmul.f32 %v557_v12, %v557_v12  ;;  %5430 = vst [vmem:[#allocation35_spill] sm:$0xff] %v3715_v39 }
 0x1c7   : > { %5417 = vst [vmem:[#allocation32_spill] sm:$0xff] %v5416_v20  ;;  %v5421_v1 = vsel %vm3684_vm5, 4294967295, %v5420_v1  ;;  %vm3693_vm3 = vmand %vm5422_vm11, %vm2478_vm7  ;;  %v2236_v35 = vadd.f32 -1.0, %v557_v12  ;;  %vm5427_vm4 = vcmp.lt.s32.totalorder %v2922_v21, %v2452_v27  ;;  %v1429_v47 = vmul.f32 %v2251_v7, %v2251_v7 }
 0x1c8   : > { %vm3709_vm1 = vmand %vm5427_vm4, %vm2484_vm8  ;;  %v1720_v45 = vsel %vm3598_vm12, %v3677_v41, 0.0  ;;  %v1945_v12 = vsel %vm3506_vm6, %v3677_v41, 0.0  ;;  %v622_v58 = vmul.f32 %v558_v51, %v558_v51  ;;  %v5435_v7 = vmov 0 }
 0x1c9   : > { %vm5431_vm4 = vmmov %vm5422_vm11  ;;  %vm5434_vm11 = vcmp.lt.s32.totalorder %v2782_v15, %v2452_v27  ;;  %v1801_v61 = vadd.f32 %v1800_v43, %v1720_v45  ;;  %v2026_v51 = vadd.f32 %v2025_v52, %v1945_v12  ;;  %v958_v39 = vsel %vm3583_vm0, %v621_v8, 0.0 }
 0x1ca   : > { %vm3728_vm9 = vmand %vm5431_vm4, %vm2491_vm10  ;;  %v1414_v42 = vmul.f32 %v2236_v35, %v2236_v35  ;;  %vm5437_vm6 = vcmp.eq.s32.totalorder %v2922_v21, %v2450_v26  ;;  %v1559_v54 = vsel %vm3598_vm12, %v1429_v47, 0.0  ;;  %v3754_v38 = vadd.f32 %v1009_v4, %v958_v39 }
 0x1cb   : > { %vm3737_vm5 = vmand %vm5434_vm11, %vm5392_vm15  ;;  %v1705_v52 = vsel %vm3648_vm14, %v621_v8, 0.0  ;;  %v574_v43 = vmul.f32 0.03125, %v3229_v30  ;;  %vm5440_vm0 = vcmp.lt.s32.totalorder %v2937_v36, %v2452_v27  ;;  %v571_v4 = vmul.f32 0.03125, %v3178_v50 }
 0x1cc   : > { %v5436_v7 = vsel %vm3737_vm5, 4294967295, %v5435_v7  ;;  %vm3748_vm4 = vmand %vm5437_vm6, %vm3693_vm3  ;;  %v1640_v9 = vadd.f32 %v1639_v19, %v1559_v54  ;;  %v1544_v18 = vsel %vm3648_vm14, %v1414_v42, 0.0  ;;  %v1757_v35 = vadd.f32 %v1756_v60, %v1705_v52 }
 0x1cd   : > { %vm3764_vm11 = vmand %vm5440_vm0, %vm5392_vm15  ;;  %vm5443_vm12 = vcmp.eq.s32.totalorder %v2925_v22, %v2463_v29  ;;  %v3784_v39 = vadd.f32 %v1595_v37, %v1544_v18  ;;  %v959_v50 = vsel %vm3709_vm1, %v622_v58, 0.0  ;;  %v1123_v19 = vsel %vm3693_vm3, %v621_v8, 0.0  ;;  %v3803_v37 = vpop.f32.mrb[20].mxu1 }
 0x1ce   : > { %vm3778_vm5 = vmand %vm5443_vm12, %vm3668_vm13  ;;  %v1124_v60 = vsel %vm3728_vm9, %v622_v58, 0.0  ;;  %vm5446_vm14 = vcmp.ge.s32.totalorder %v3244_v59, %v2452_v27  ;;  %v5447_v62 = vmov 0  ;;  %5449 = vst [vmem:[#allocation36_spill] sm:$0xff] %v3803_v37  ;;  %vm5450_vm1 = vcmp.ge.s32.totalorder %v2782_v15, %v2452_v27  ;;  %v3836_v47 = vpop.f32.mrb[21].mxu1 }
 0x1cf   : > { %vm3797_vm12 = vmand %vm5446_vm14, %vm2491_vm10  ;;  %v5451_v54 = vmov 0  ;;  %vm5453_vm3 = vcmp.lt.s32.totalorder %v2925_v22, %v2452_v27  ;;  %v5454_v55 = vmov 0  ;;  %v1047_v53 = vadd.f32 %v1046_v56, %v959_v50  ;;  %5459 = vst [vmem:[#allocation37_spill] sm:$0xff] %v3836_v47  ;;  %v3853_v45 = vpop.f32.mrb[22].mxu1 }
 0x1d0   : > { %v5448_v62 = vsel %vm3797_vm12, 4294967295, %v5447_v62  ;;  %vm3810_vm9 = vmand %vm5450_vm1, %vm2478_vm7  ;;  %v1175_v42 = vadd.f32 %v1174_v11, %v1123_v19  ;;  %v1212_v58 = vadd.f32 %v1211_v2, %v1124_v60  ;;  %v1930_v57 = vsel %vm3748_vm4, %v621_v8, 0.0  ;;  %5465 = vst [vmem:[#allocation40_spill] sm:$0xff] %v3853_v45 }
 0x1d1   : > { %v5452_v54 = vsel %vm3810_vm9, 4294967295, %v5451_v54  ;;  %vm3819_vm14 = vmand %vm5453_vm3, %vm5392_vm15  ;;  %vm5456_vm1 = vcmp.eq.s32.totalorder %v2937_v36, %v2450_v26  ;;  %v3839_v11 = vadd.f32 %v3639_v31, %v1930_v57  ;;  %v3841_v56 = vmul.f32 %v574_v43, %v574_v43 }
 0x1d2   : > { %v5455_v55 = vsel %vm3819_vm14, 4294967295, %v5454_v55  ;;  %vm3830_vm0 = vmand %vm5456_vm1, %vm3764_vm11  ;;  %v2253_v14 = vadd.f32 -1.0, %v574_v43  ;;  %v559_v2 = vmul.f32 0.03125, %v3326_v13  ;;  %vm5461_vm4 = vcmp.lt.s32.totalorder %v3244_v59, %v2452_v27 }
 0x1d3   : > { %5460 = vst [vmem:[#allocation38_spill] sm:$0xff] %v3841_v56  ;;  %vm3849_vm1 = vmand %vm5461_vm4, %vm2484_vm8  ;;  %v5462_v8 = vmov 0  ;;  %v3861_v13 = vmul.f32 %v571_v4, %v571_v4  ;;  %vm5467_vm4 = vcmp.eq.s32.totalorder %v3244_v59, %v2463_v29  ;;  %v5468_v52 = vmov 0  ;;  %v3882_v4 = vpop.f32.mrb[23].mxu1 }
 0x1d4   : > { %v5463_v8 = vsel %vm3849_vm1, 4294967295, %v5462_v8  ;;  %vm3868_vm6 = vmand %vm5467_vm4, %vm3797_vm12  ;;  %v560_v43 = vmul.f32 0.03125, %v3347_v44  ;;  %vm5470_vm2 = vcmp.lt.s32.totalorder %v2937_v36, %v2452_v27  ;;  %5473 = vst [vmem:[#allocation41_spill] sm:$0xff] %v3882_v4  ;;  %v573_v50 = vmul.f32 0.03125, %v3214_v5 }
 0x1d5   : > { %5464 = vst [vmem:[#allocation39_spill] sm:$0xff] %v5463_v8  ;;  %v5469_v52 = vsel %vm3868_vm6, 4294967295, %v5468_v52  ;;  %vm3878_vm13 = vmand %vm5470_vm2, %vm2484_vm8  ;;  %v1431_v19 = vmul.f32 %v2253_v14, %v2253_v14  ;;  %v1722_v60 = vsel %vm3778_vm5, %v3841_v56, 0.0  ;;  %vm5474_vm4 = vcmp.ge.s32.totalorder %v2937_v36, %v2452_v27 }
 0x1d6   : > { %vm3893_vm3 = vmand %vm5474_vm4, %vm2478_vm7  ;;  %v576_v57 = vmul.f32 0.03125, %v3349_v24  ;;  %vm5477_vm2 = vcmp.ge.s32.totalorder %v2925_v22, %v2452_v27  ;;  %v5478_v5 = vmov 0  ;;  %v1802_v14 = vadd.f32 %v1801_v61, %v1722_v60 }
 0x1d7   : > { %vm3903_vm12 = vmand %vm5477_vm2, %vm2478_vm7  ;;  %vm5480_vm6 = vnez %v5421_v1  ;;  %v623_v31 = vmul.f32 %v559_v2, %v559_v2  ;;  %v2238_v4 = vadd.f32 -1.0, %v559_v2  ;;  %v1561_v22 = vsel %vm3778_vm5, %v1431_v19, 0.0  ;;  %v3965_v19 = vpop.f32.mrb[24].mxu1 }
 0x1d8   : > { %v5479_v5 = vsel %vm3903_vm12, 4294967295, %v5478_v5  ;;  %v1947_v12 = vsel %vm5480_vm6, %v3841_v56, 0.0  ;;  %vm3915_vm14 = vmand %vm5474_vm4, %vm2491_vm10  ;;  %v624_v1 = vmul.f32 %v560_v43, %v560_v43  ;;  %v561_v60 = vmul.f32 0.03125, %v3366_v23  ;;  %5493 = vst [vmem:[#allocation42_spill] sm:$0xff] %v3965_v19  ;;  %v3986_v15 = vpop.f32.mrb[25].mxu1 }
 0x1d9   : > { %v2027_v61 = vadd.f32 %v2026_v51, %v1947_v12  ;;  %vm5483_vm6 = vcmp.lt.s32.totalorder %v3247_v49, %v2452_v27  ;;  %v1641_v45 = vadd.f32 %v1640_v9, %v1561_v22  ;;  %v960_v30 = vsel %vm3764_vm11, %v623_v31, 0.0  ;;  %5497 = vst [vmem:[#allocation43_spill] sm:$0xff] %v3986_v15 }
 0x1da   : > { %vm3929_vm12 = vmand %vm5483_vm6, %vm5392_vm15  ;;  %v1416_v51 = vmul.f32 %v2238_v4, %v2238_v4  ;;  %v1707_v23 = vsel %vm3830_vm0, %v623_v31, 0.0  ;;  %vm5486_vm5 = vcmp.eq.s32.totalorder %v2937_v36, %v2450_v26  ;;  %v3951_v43 = vmul.f32 %v573_v50, %v573_v50 }
 0x1db   : > { %vm3944_vm6 = vmand %vm5486_vm5, %vm3893_vm3  ;;  %v1011_v21 = vadd.f32 %v3754_v38, %v960_v30  ;;  %v1758_v4 = vadd.f32 %v1757_v35, %v1707_v23  ;;  %vm5490_vm11 = vcmp.eq.s32.totalorder %v3244_v59, %v2463_v29  ;;  %v961_v38 = vsel %vm3878_vm13, %v624_v1, 0.0  ;;  %v4004_v23 = vpop.f32.mrb[26].mxu1 }
 0x1dc   : > { %vm3959_vm2 = vmand %vm5490_vm11, %vm3849_vm1  ;;  %v1546_v50 = vsel %vm3830_vm0, %v1416_v51, 0.0  ;;  %v1125_v35 = vsel %vm3893_vm3, %v623_v31, 0.0  ;;  %v1126_v22 = vsel %vm3915_vm14, %v624_v1, 0.0  ;;  %vm5494_vm11 = vcmp.eq.s32.totalorder %v3247_v49, %v2450_v26  ;;  %5501 = vst [vmem:[#allocation44_spill] sm:$0xff] %v4004_v23 }
 0x1dd   : > { %vm3980_vm5 = vmand %vm5494_vm11, %vm3929_vm12  ;;  %v1597_v18 = vadd.f32 %v3784_v39, %v1546_v50  ;;  %v3989_v44 = vadd.f32 %v1047_v53, %v961_v38  ;;  %v1176_v24 = vadd.f32 %v1175_v42, %v1125_v35  ;;  %v3991_v1 = vadd.f32 %v1212_v58, %v1126_v22  ;;  %v5546_v35 = vld [vmem:[#allocation17_spill] sm:$0xff] }
 0x1de   : > { %vm5498_vm13 = vcmp.lt.s32.totalorder %v3250_v40, %v2452_v27  ;;  %v5499_v51 = vmov 0  ;;  %vm5502_vm11 = vcmp.lt.s32.totalorder %v3244_v59, %v2452_v27  ;;  %v5503_v39 = vmov 0 }
 0x1df   : > { %vm3998_vm14 = vmand %vm5498_vm13, %vm2484_vm8  ;;  %vm5506_vm13 = vcmp.ge.s32.totalorder %v3244_v59, %v2452_v27  ;;  %v5507_v53 = vmov 0  ;;  %v1932_v42 = vsel %vm3944_vm6, %v623_v31, 0.0  ;;  %v4026_v58 = vmul.f32 %v576_v57, %v576_v57  ;;  %v4039_v59 = vpop.f32.mrb[27].mxu1 }
 0x1e0   : > { %v5500_v51 = vsel %vm3998_vm14, 4294967295, %v5499_v51  ;;  %vm4011_vm0 = vmand %vm5502_vm11, %vm5392_vm15  ;;  %v2255_v50 = vadd.f32 -1.0, %v576_v57  ;;  %v625_v38 = vmul.f32 %v561_v60, %v561_v60  ;;  %vm5510_vm11 = vcmp.ge.s32.totalorder %v3247_v49, %v2452_v27  ;;  %5513 = vst [vmem:[#allocation47_spill] sm:$0xff] %v4039_v59  ;;  %v5518_v59 = vld [vmem:[#allocation11_spill] sm:$0xff]  ;;  %v5519_v57 = vld [vmem:[#allocation16_spill] sm:$0xff] }
 0x1e1   : > { %v5504_v39 = vsel %vm4011_vm0, 4294967295, %v5503_v39  ;;  %vm4020_vm4 = vmand %vm5506_vm13, %vm2478_vm7  ;;  %v1983_v12 = vadd.f32 %v3839_v11, %v1932_v42  ;;  %v2240_v22 = vadd.f32 -1.0, %v561_v60  ;;  %v5516_v9 = vmov 0  ;;  %v5559_v11 = vld [vmem:[#allocation24_spill] sm:$0xff] }
 0x1e2   : > { %5505 = vst [vmem:[#allocation45_spill] sm:$0xff] %v5504_v39  ;;  %v5508_v53 = vsel %vm4020_vm4, 4294967295, %v5507_v53  ;;  %vm4033_vm3 = vmand %vm5510_vm11, %vm2478_vm7  ;;  %vm5515_vm11 = vcmp.ge.s32.totalorder %v3250_v40, %v2452_v27  ;;  %v575_v23 = vmul.f32 0.03125, %v5518_v59  ;;  %v1433_v15 = vmul.f32 %v2255_v50, %v2255_v50 }
 0x1e3   : > { %5509 = vst [vmem:[#allocation46_spill] sm:$0xff] %v5508_v53  ;;  %vm4053_vm7 = vmand %vm5515_vm11, %vm2491_vm10  ;;  %v1724_v31 = vsel %vm3959_vm2, %v4026_v58, 0.0  ;;  %v562_v19 = vmul.f32 0.03125, %v5519_v57  ;;  %vm5520_vm13 = vcmp.lt.s32.totalorder %v3247_v49, %v2452_v27  ;;  %vm5523_vm11 = vnez %v5469_v52  ;;  %v5547_v57 = vld [vmem:[#allocation21_spill] sm:$0xff] }
 0x1e4   : > { %v5517_v9 = vsel %vm4053_vm7, 4294967295, %v5516_v9  ;;  %vm4067_vm6 = vmand %vm5520_vm13, %vm2484_vm8  ;;  %v1803_v60 = vadd.f32 %v1802_v14, %v1724_v31  ;;  %v1949_v42 = vsel %vm5523_vm11, %v4026_v58, 0.0  ;;  %v962_v50 = vsel %vm3929_vm12, %v625_v38, 0.0 }
 0x1e5   : > { %v1418_v59 = vmul.f32 %v2240_v22, %v2240_v22  ;;  %vm5524_vm9 = vcmp.eq.s32.totalorder %v3247_v49, %v2450_v26  ;;  %v1563_v14 = vsel %vm3959_vm2, %v1433_v15, 0.0  ;;  %v2028_v31 = vadd.f32 %v2027_v61, %v1949_v42  ;;  %v4114_v22 = vpop.f32.mrb[28].mxu1 }
 0x1e6   : > { %vm4081_vm1 = vmand %vm5524_vm9, %vm4033_vm3  ;;  %v1012_v47 = vadd.f32 %v1011_v21, %v962_v50  ;;  %v1709_v52 = vsel %vm3980_vm5, %v625_v38, 0.0  ;;  %vm5527_vm12 = vcmp.ge.s32.totalorder %v3247_v49, %v2452_v27  ;;  %v1642_v21 = vadd.f32 %v1641_v45, %v1563_v14  ;;  %5534 = vst [vmem:[#allocation11_spill] sm:$0xff] %v4114_v22 }
 0x1e7   : > { %vm4094_vm13 = vmand %vm5527_vm12, %vm2491_vm10  ;;  %v1548_v36 = vsel %vm3980_vm5, %v1418_v59, 0.0  ;;  %v1759_v15 = vadd.f32 %v1758_v4, %v1709_v52  ;;  %vm5531_vm11 = vcmp.lt.s32.totalorder %v3331_v0, %v2452_v27  ;;  %vm5535_vm9 = vcmp.eq.s32.totalorder %v3250_v40, %v2463_v29  ;;  %v5538_v59 = vld [vmem:[#allocation12_spill] sm:$0xff] }
 0x1e8   : > { %vm4110_vm12 = vmand %vm5531_vm11, %vm5392_vm15  ;;  %v1598_v42 = vadd.f32 %v1597_v18, %v1548_v36  ;;  %v626_v4 = vmul.f32 %v562_v19, %v562_v19  ;;  %v1127_v30 = vsel %vm4033_vm3, %v625_v38, 0.0  ;;  %v1934_v50 = vsel %vm4081_vm1, %v625_v38, 0.0  ;;  %v4131_v18 = vpop.f32.mrb[29].mxu1 }
 0x1e9   : > { %vm4121_vm2 = vmand %vm5535_vm9, %vm4053_vm7  ;;  %5539 = vst [vmem:[#allocation16_spill] sm:$0xff] %v4131_v18  ;;  %v4136_v52 = vmul.f32 %v575_v23, %v575_v23  ;;  %v1177_v36 = vadd.f32 %v1176_v24, %v1127_v30  ;;  %v1984_v61 = vadd.f32 %v1983_v12, %v1934_v50  ;;  %v4149_v38 = vpop.f32.mrb[30].mxu1  ;;  %v578_v12 = vmul.f32 0.03125, %v5546_v35 }
 0x1ea   : > { %vm5542_vm3 = vmmov %vm5535_vm9  ;;  %5545 = vst [vmem:[#allocation48_spill] sm:$0xff] %v4149_v38  ;;  %v963_v23 = vsel %vm4067_vm6, %v626_v4, 0.0  ;;  %v1128_v24 = vsel %vm4094_vm13, %v626_v4, 0.0  ;;  %v563_v30 = vmul.f32 0.03125, %v5547_v57  ;;  %v4166_v14 = vpop.f32.mrb[31].mxu1  ;;  %vm5553_vm13 = vcmp.lt.s32.totalorder %v3250_v40, %v2452_v27 }
 0x1eb   : > { %5541 = vst [vmem:[#allocation12_spill] sm:$0xff] %v4136_v52  ;;  %vm4143_vm9 = vmand %vm5542_vm3, %vm3998_vm14  ;;  %vm5548_vm3 = vcmp.eq.s32.totalorder %v3331_v0, %v2450_v26  ;;  %v1049_v4 = vadd.f32 %v3989_v44, %v963_v23  ;;  %v1214_v35 = vadd.f32 %v3991_v1, %v1128_v24  ;;  %v4194_v38 = vmul.f32 %v578_v12, %v578_v12 }
 0x1ec   : > { %vm4162_vm5 = vmand %vm5548_vm3, %vm4110_vm12  ;;  %5551 = vst [vmem:[#allocation17_spill] sm:$0xff] %v4166_v14  ;;  %vm5556_vm3 = vcmp.lt.s32.totalorder %v3334_v48, %v2452_v27  ;;  %v564_v14 = vmul.f32 0.03125, %v5559_v11  ;;  %v2257_v18 = vadd.f32 -1.0, %v578_v12  ;;  %v627_v44 = vmul.f32 %v563_v30, %v563_v30  ;;  %v5572_v12 = vld [vmem:[#allocation25_spill] sm:$0xff] }
 0x1ed   : > { %vm4176_vm1 = vmand %vm5553_vm13, %vm5392_vm15  ;;  %v2242_v23 = vadd.f32 -1.0, %v563_v30  ;;  %vm5560_vm6 = vcmp.ge.s32.totalorder %v3334_v48, %v2452_v27  ;;  %v5564_v30 = vld [vmem:[#allocation13_spill] sm:$0xff]  ;;  %vm5565_vm13 = vnez %v5115_v32  ;;  %v1726_v11 = vsel %vm4143_vm9, %v4194_v38, 0.0 }
 0x1ee   : > { %vm4187_vm11 = vmand %vm5556_vm3, %vm2484_vm8  ;;  %v577_v22 = vmul.f32 0.03125, %v5564_v30  ;;  %v1435_v24 = vmul.f32 %v2257_v18, %v2257_v18  ;;  %v628_v17 = vmul.f32 %v564_v14, %v564_v14  ;;  %vm5569_vm3 = vcmp.lt.s32.totalorder %v3331_v0, %v2452_v27 }
 0x1ef   : > { %vm4201_vm7 = vmand %vm5560_vm6, %vm2491_vm10  ;;  %vm5566_vm6 = vcmp.ge.s32.totalorder %v3331_v0, %v2452_v27  ;;  %v580_v8 = vmul.f32 0.03125, %v5572_v12  ;;  %v1804_v56 = vadd.f32 %v1803_v60, %v1726_v11  ;;  %v1951_v18 = vsel %vm4121_vm2, %v4194_v38, 0.0  ;;  %v5575_v12 = vld [vmem:[#allocation14_spill] sm:$0xff] }
 0x1f0   : > { %vm4220_vm14 = vmand %vm5566_vm6, %vm5565_vm13  ;;  %v964_v20 = vsel %vm4110_vm12, %v627_v44, 0.0  ;;  %v1420_v14 = vmul.f32 %v2242_v23, %v2242_v23  ;;  %v1565_v60 = vsel %vm4143_vm9, %v1435_v24, 0.0  ;;  %v2029_v45 = vadd.f32 %v2028_v31, %v1951_v18 }
 0x1f1   : > { %vm4232_vm4 = vmand %vm5569_vm3, %vm2484_vm8  ;;  %v1013_v11 = vadd.f32 %v1012_v47, %v964_v20  ;;  %v1711_v49 = vsel %vm4162_vm5, %v627_v44, 0.0  ;;  %vm5576_vm2 = vcmp.eq.s32.totalorder %v3331_v0, %v2450_v26  ;;  %v1643_v52 = vadd.f32 %v1642_v21, %v1565_v60  ;;  %v5582_v47 = vld [vmem:[#allocation26_spill] sm:$0xff]  ;;  %v5596_v60 = vld [vmem:[#allocation27_spill] sm:$0xff] }
 0x1f2   : > { %vm4247_vm3 = vmand %vm5566_vm6, %vm2491_vm10  ;;  %v1550_v39 = vsel %vm4162_vm5, %v1420_v14, 0.0  ;;  %v1760_v19 = vadd.f32 %v1759_v15, %v1711_v49  ;;  %vm5579_vm9 = vcmp.eq.s32.totalorder %v3334_v48, %v2463_v29  ;;  %v565_v0 = vmul.f32 0.03125, %v5582_v47 }
 0x1f3   : > { %vm4262_vm12 = vmand %vm5576_vm2, %vm4220_vm14  ;;  %v4278_v31 = vmul.f32 %v577_v22, %v577_v22  ;;  %v1599_v24 = vadd.f32 %v1598_v42, %v1550_v39  ;;  %v965_v21 = vsel %vm4232_vm4, %v628_v17, 0.0  ;;  %v1129_v15 = vsel %vm4220_vm14, %v627_v44, 0.0 }
 0x1f4   : > { %vm4273_vm6 = vmand %vm5579_vm9, %vm4201_vm7  ;;  %v4295_v22 = vadd.f32 %v1049_v4, %v965_v21  ;;  %v1130_v39 = vsel %vm4247_vm3, %v628_v17, 0.0  ;;  %v1178_v42 = vadd.f32 %v1177_v36, %v1129_v15  ;;  %v1936_v37 = vsel %vm4262_vm12, %v627_v44, 0.0  ;;  %v5638_v17 = vld [vmem:[#allocation15_spill] sm:$0xff] }
 0x1f5   : > { %vm5583_vm5 = vmmov %vm5579_vm9  ;;  %vm5586_vm4 = vcmp.lt.s32.totalorder %v5538_v59, %v2452_v27  ;;  %v4310_v18 = vadd.f32 %v1214_v35, %v1130_v39  ;;  %v1985_v4 = vadd.f32 %v1984_v61, %v1936_v37  ;;  %v4312_v14 = vmul.f32 %v580_v8, %v580_v8  ;;  %v5595_v61 = vld [vmem:[#allocation22_spill] sm:$0xff] }
 0x1f6   : > { %vm4289_vm2 = vmand %vm5583_vm5, %vm4187_vm11  ;;  %v2259_v53 = vadd.f32 -1.0, %v580_v8  ;;  %vm5589_vm3 = vcmp.ge.s32.totalorder %v5538_v59, %v2452_v27  ;;  %vm5592_vm5 = vcmp.ge.s32.totalorder %v3250_v40, %v2452_v27  ;;  %v579_v8 = vmul.f32 0.03125, %v5595_v61  ;;  %v5604_v61 = vld [vmem:[#allocation28_spill] sm:$0xff] }
 0x1f7   : > { %vm4306_vm14 = vmand %vm5586_vm4, %vm5392_vm15  ;;  %v629_v35 = vmul.f32 %v565_v0, %v565_v0  ;;  %v2244_v44 = vadd.f32 -1.0, %v565_v0  ;;  %v581_v49 = vmul.f32 0.03125, %v5596_v60  ;;  %v978_v47 = vsel %vm4176_vm1, %v4278_v31, 0.0 }
 0x1f8   : > { %vm4319_vm12 = vmand %vm5589_vm3, %vm5565_vm13  ;;  %v1437_v21 = vmul.f32 %v2259_v53, %v2259_v53  ;;  %v1728_v40 = vsel %vm4289_vm2, %v4312_v14, 0.0  ;;  %v1953_v39 = vsel %vm4273_vm6, %v4312_v14, 0.0  ;;  %v566_v60 = vmul.f32 0.03125, %v5604_v61 }
 0x1f9   : > { %vm4328_vm4 = vmand %vm5592_vm5, %vm5565_vm13  ;;  %vm5598_vm5 = vcmp.eq.s32.totalorder %v5538_v59, %v2450_v26  ;;  %v4352_v15 = vadd.f32 %v1804_v56, %v1728_v40  ;;  %v1422_v37 = vmul.f32 %v2244_v44, %v2244_v44  ;;  %v4378_v44 = vadd.f32 %v2029_v45, %v1953_v39 }
 0x1fa   : > { %vm4348_vm9 = vmand %vm5598_vm5, %vm4306_vm14  ;;  %v1567_v20 = vsel %vm4289_vm2, %v1437_v21, 0.0  ;;  %v966_v26 = vsel %vm4306_vm14, %v629_v35, 0.0  ;;  %v1131_v40 = vsel %vm4319_vm12, %v629_v35, 0.0  ;;  %v4384_v61 = vmul.f32 %v579_v8, %v579_v8 }
 0x1fb   : > { %vm5601_vm0 = vmmov %vm5598_vm5  ;;  %vm5605_vm5 = vcmp.lt.s32.totalorder %v3334_v48, %v2452_v27  ;;  %v4395_v50 = vadd.f32 %v1643_v52, %v1567_v20  ;;  %v4397_v45 = vmul.f32 %v581_v49, %v581_v49  ;;  %v1014_v30 = vadd.f32 %v1013_v11, %v966_v26 }
 0x1fc   : > { %vm4362_vm3 = vmand %vm5601_vm0, %vm4319_vm12  ;;  %vm5608_vm0 = vcmp.ge.s32.totalorder %v3334_v48, %v2452_v27  ;;  %vm5611_vm14 = vcmp.lt.s32.totalorder %v5575_v12, %v2452_v27  ;;  %v1179_v48 = vadd.f32 %v1178_v42, %v1131_v40  ;;  %v1552_v52 = vsel %vm4348_vm9, %v1422_v37, 0.0 }
 0x1fd   : > { %vm4372_vm1 = vmand %vm5605_vm5, %vm5392_vm15  ;;  %v1713_v8 = vsel %vm4348_vm9, %v629_v35, 0.0  ;;  %v1938_v11 = vsel %vm4362_vm3, %v629_v35, 0.0  ;;  %vm5614_vm5 = vnez %v5352_v6  ;;  %v1600_v39 = vadd.f32 %v1599_v24, %v1552_v52  ;;  %v5619_v35 = vld [vmem:[#allocation18_spill] sm:$0xff] }
 0x1fe   : > { %vm4391_vm6 = vmand %vm5608_vm0, %vm5565_vm13  ;;  %v5615_v49 = vsel %vm5614_vm5, %v3451_v63, 0.0  ;;  %v4420_v20 = vadd.f32 %v1760_v19, %v1713_v8  ;;  %v4422_v26 = vadd.f32 %v1985_v4, %v1938_v11  ;;  %vm5616_vm0 = vcmp.lt.s32.totalorder %v5538_v59, %v2452_v27 }
 0x1ff   : > { %vm4406_vm12 = vmand %vm5611_vm14, %vm5392_vm15  ;;  %v1015_v21 = vadd.f32 %v1014_v30, %v5615_v49  ;;  %v1143_v6 = vsel %vm4328_vm4, %v4278_v31, 0.0  ;;  %vm5620_vm3 = vnez %v5500_v51  ;;  %vm5621_vm5 = vnez %v5363_v10 }
 0x200   : > { %vm4429_vm14 = vmand %vm5616_vm0, %vm2484_vm8  ;;  %v979_v19 = vsel %vm5620_vm3, %v4194_v38, 0.0  ;;  %v5622_v24 = vsel %vm5621_vm5, %v3451_v63, 0.0  ;;  %v630_v0 = vmul.f32 %v566_v60, %v566_v60  ;;  %vm5623_vm0 = vcmp.ge.s32.totalorder %v5538_v59, %v2452_v27 }
 0x201   : > { %v1180_v4 = vadd.f32 %v1179_v48, %v5622_v24  ;;  %vm4450_vm9 = vmand %vm5623_vm0, %vm2491_vm10  ;;  %vm5626_vm2 = vnez %v5517_v9  ;;  %v980_v63 = vsel %vm4372_vm1, %v4384_v61, 0.0  ;;  %v1145_v36 = vsel %vm4391_vm6, %v4384_v61, 0.0  ;;  %v5717_v9 = vld [vmem:[#allocation6_spill] sm:$0xff] }
 0x202   : > { %v1144_v10 = vsel %vm5626_vm2, %v4194_v38, 0.0  ;;  %vm5627_vm5 = vcmp.ge.s32.totalorder %v5575_v12, %v2452_v27  ;;  %vm5630_vm4 = vnez %v5405_v25  ;;  %v981_v56 = vsel %vm4187_vm11, %v4312_v14, 0.0 }
 0x203   : > { %vm4470_vm0 = vmand %vm5627_vm5, %vm5565_vm13  ;;  %v5631_v53 = vsel %vm5630_vm4, %v3702_v16, 0.0  ;;  %v1146_v23 = vsel %vm4201_vm7, %v4312_v14, 0.0  ;;  %vm5632_vm1 = vnez %v5408_v46  ;;  %v967_v30 = vsel %vm4429_vm14, %v630_v0, 0.0 }
 0x204   : > { %v1016_v60 = vadd.f32 %v1015_v21, %v5631_v53  ;;  %v5633_v40 = vsel %vm5632_vm1, %v3702_v16, 0.0  ;;  %v982_v25 = vsel %vm4406_vm12, %v4397_v45, 0.0  ;;  %vm5634_vm6 = vnez %v5436_v7  ;;  %v5639_v21 = vld [vmem:[#allocation7_spill] sm:$0xff] }
 0x205   : > { %v1181_v61 = vadd.f32 %v1180_v4, %v5633_v40  ;;  %v5635_v48 = vsel %vm5634_vm6, %v3861_v13, 0.0  ;;  %v1617_v8 = vrot.slane %v1600_v39, 4  ;;  %v1132_v11 = vsel %vm4450_vm9, %v630_v0, 0.0  ;;  %vm5641_vm9 = vmmov %vm5627_vm5  ;;  %v5647_v4 = vld [vmem:[#allocation10_spill] sm:$0xff] }
 0x206   : > { %v1017_v52 = vadd.f32 %v1016_v60, %v5635_v48  ;;  %v1147_v46 = vsel %vm4470_vm0, %v4397_v45, 0.0  ;;  %vm5636_vm4 = vnez %v5452_v54  ;;  %vm5640_vm12 = vnez %v5639_v21  ;;  %vm4517_vm5 = vmand %vm5641_vm9, %vm2491_vm10  ;;  %v5657_v48 = vld [vmem:[#allocation45_spill] sm:$0xff] }
 0x207   : > { %v5637_v16 = vsel %vm5636_vm4, %v3861_v13, 0.0  ;;  %v969_v7 = vsel %vm5640_vm12, %v5638_v17, 0.0  ;;  %v1051_v42 = vadd.f32 %v4295_v22, %v967_v30  ;;  %vm5644_vm0 = vnez %v5455_v55  ;;  %v5646_v22 = vld [vmem:[#allocation23_spill] sm:$0xff]  ;;  %v5656_v30 = vld [vmem:[#allocation20_spill] sm:$0xff] }
 0x208   : > { %v1182_v49 = vadd.f32 %v1181_v61, %v5637_v16  ;;  %v5645_v54 = vsel %vm5644_vm0, %v3951_v43, 0.0  ;;  %v2003_v24 = vrot.slane %v4422_v26, 4  ;;  %vm5648_vm1 = vnez %v5647_v4  ;;  %v5655_v61 = vld [vmem:[#allocation29_spill] sm:$0xff] }
 0x209   : > { %v1018_v13 = vadd.f32 %v1017_v52, %v5645_v54  ;;  %v971_v0 = vsel %vm5648_vm1, %v5646_v22, 0.0  ;;  %vm5649_vm6 = vnez %v5367_v3  ;;  %vm5650_vm4 = vcmp.lt.s32.totalorder %v5575_v12, %v2452_v27  ;;  %v5659_v52 = vld [vmem:[#allocation12_spill] sm:$0xff] }
 0x20a   : > { %v973_v37 = vsel %vm5649_vm6, %v3677_v41, 0.0  ;;  %vm4537_vm12 = vmand %vm5650_vm4, %vm2484_vm8  ;;  %vm5653_vm9 = vnez %v5479_v5  ;;  %v1052_v60 = vadd.f32 %v1051_v42, %v969_v7  ;;  %v1216_v40 = vadd.f32 %v4310_v18, %v1132_v11  ;;  %v5661_v5 = vld [vmem:[#allocation8_spill] sm:$0xff]  ;;  %v5664_v18 = vld [vmem:[#allocation46_spill] sm:$0xff] }
 0x20b   : > { %v5654_v59 = vsel %vm5653_vm9, %v3951_v43, 0.0  ;;  %v582_v3 = vmul.f32 0.03125, %v5655_v61  ;;  %vm5658_vm1 = vnez %v5657_v48  ;;  %v4553_v54 = vadd.f32 %v1617_v8, %v1600_v39  ;;  %v5673_v61 = vld [vmem:[#allocation19_spill] sm:$0xff] }
 0x20c   : > { %v1183_v53 = vadd.f32 %v1182_v49, %v5654_v59  ;;  %v5660_v16 = vsel %vm5658_vm1, %v5659_v52, 0.0  ;;  %vm5662_vm6 = vnez %v5661_v5  ;;  %v5663_v49 = vld [vmem:[#allocation31_spill] sm:$0xff]  ;;  %vm5665_vm9 = vnez %v5664_v18  ;;  %v5671_v59 = vld [vmem:[#allocation9_spill] sm:$0xff] }
 0x20d   : > { %v1019_v21 = vadd.f32 %v1018_v13, %v5660_v16  ;;  %v1134_v43 = vsel %vm5662_vm6, %v5638_v17, 0.0  ;;  %v583_v7 = vmul.f32 0.03125, %v5663_v49  ;;  %v5666_v11 = vsel %vm5665_vm9, %v5659_v52, 0.0  ;;  %v5685_v16 = vld [vmem:[#allocation38_spill] sm:$0xff] }
 0x20e   : > { %v1184_v42 = vadd.f32 %v1183_v53, %v5666_v11  ;;  %vm5667_vm1 = vcmp.eq.s32.totalorder %v5575_v12, %v2463_v29  ;;  %v1053_v8 = vadd.f32 %v1052_v60, %v971_v0  ;;  %v1217_v17 = vadd.f32 %v1216_v40, %v1134_v43 }
 0x20f   : > { %vm4570_vm0 = vmand %vm5667_vm1, %vm4517_vm5  ;;  %v4574_v13 = vmul.f32 %v582_v3, %v582_v3  ;;  %v1020_v4 = vadd.f32 %v1019_v21, %v978_v47  ;;  %vm5672_vm9 = vnez %v5671_v59  ;;  %vm5674_vm4 = vnez %v5673_v61 }
 0x210   : > { %v1136_v53 = vsel %vm5672_vm9, %v5646_v22, 0.0  ;;  %v1138_v48 = vsel %vm5674_vm4, %v3677_v41, 0.0  ;;  %v2261_v52 = vadd.f32 -1.0, %v582_v3  ;;  %vm4591_vm14 = vmand %vm5667_vm1, %vm4537_vm12  ;;  %v1185_v2 = vadd.f32 %v1184_v42, %v1143_v6  ;;  %v5708_v41 = vld [vmem:[#allocation34_spill] sm:$0xff] }
 0x211   : > { %v1054_v31 = vadd.f32 %v1053_v8, %v973_v37  ;;  %v1218_v47 = vadd.f32 %v1217_v17, %v1136_v53  ;;  %v647_v60 = vmul.f32 %v583_v7, %v583_v7  ;;  %vm5677_vm6 = vcmp.lt.s32.totalorder %v5619_v35, %v2452_v27 }
 0x212   : > { %vm4600_vm4 = vmand %vm5677_vm6, %vm5392_vm15  ;;  %v1021_v12 = vadd.f32 %v1020_v4, %v980_v63  ;;  %v983_v6 = vsel %vm4537_vm12, %v4574_v13, 0.0  ;;  %v1148_v22 = vsel %vm4517_vm5, %v4574_v13, 0.0  ;;  %v1439_v37 = vmul.f32 %v2261_v52, %v2261_v52  ;;  %v5683_v63 = vld [vmem:[#allocation32_spill] sm:$0xff] }
 0x213   : > { %vm5680_vm1 = vcmp.ge.s32.totalorder %v5619_v35, %v2452_v27  ;;  %v1186_v3 = vadd.f32 %v1185_v2, %v1145_v36  ;;  %vm5684_vm9 = vnez %v5683_v63  ;;  %v1219_v5 = vadd.f32 %v1218_v47, %v1138_v48  ;;  %v5702_v48 = vld [vmem:[#allocation33_spill] sm:$0xff] }
 0x214   : > { %vm4617_vm6 = vmand %vm5680_vm1, %vm5565_vm13  ;;  %v5686_v55 = vsel %vm5684_vm9, %v5685_v16, 0.0  ;;  %v1730_v45 = vsel %vm4591_vm14, %v4574_v13, 0.0  ;;  %v1022_v36 = vadd.f32 %v1021_v12, %v982_v25  ;;  %v1569_v49 = vsel %vm4591_vm14, %v1439_v37, 0.0  ;;  %v5693_v25 = vld [vmem:[#allocation39_spill] sm:$0xff] }
 0x215   : > { %v1055_v21 = vadd.f32 %v1054_v31, %v5686_v55  ;;  %vm5687_vm5 = vmmov %vm5680_vm1  ;;  %v1806_v7 = vadd.f32 %v4352_v15, %v1730_v45  ;;  %v1955_v18 = vsel %vm4570_vm0, %v4574_v13, 0.0  ;;  %vm5690_vm9 = vcmp.lt.s32.totalorder %v5619_v35, %v2452_v27  ;;  %v5696_v15 = vld [vmem:[#allocation30_spill] sm:$0xff] }
 0x216   : > { %vm4633_vm12 = vmand %vm5687_vm5, %vm2491_vm10  ;;  %v1187_v42 = vadd.f32 %v1186_v3, %v1147_v46  ;;  %vm5694_vm5 = vnez %v5693_v25  ;;  %vm5697_vm14 = vnez %v5696_v15  ;;  %v1645_v4 = vadd.f32 %v4395_v50, %v1569_v49  ;;  %v5716_v3 = vld [vmem:[#allocation36_spill] sm:$0xff] }
 0x217   : > { %vm4648_vm1 = vmand %vm5690_vm9, %vm2484_vm8  ;;  %v5695_v8 = vsel %vm5694_vm5, %v4026_v58, 0.0  ;;  %v5698_v39 = vsel %vm5697_vm14, %v5685_v16, 0.0  ;;  %v2031_v59 = vadd.f32 %v4378_v44, %v1955_v18  ;;  %v984_v53 = vsel %vm4600_vm4, %v647_v60, 0.0 }
 0x218   : > { %v1056_v17 = vadd.f32 %v1055_v21, %v5695_v8  ;;  %v1220_v13 = vadd.f32 %v1219_v5, %v5698_v39  ;;  %v1149_v46 = vsel %vm4617_vm6, %v647_v60, 0.0  ;;  %vm5699_vm0 = vcmp.eq.s32.totalorder %v5619_v35, %v2463_v29 }
 0x219   : > { %vm4671_vm9 = vmand %vm5699_vm0, %vm4633_vm12  ;;  %v584_v52 = vmul.f32 0.03125, %v5702_v48  ;;  %vm5703_vm4 = vnez %v5448_v62  ;;  %v1023_v2 = vadd.f32 %v1022_v36, %v984_v53  ;;  %v1188_v31 = vadd.f32 %v1187_v42, %v1149_v46 }
 0x21a   : > { %v1057_v44 = vadd.f32 %v1056_v17, %v979_v19  ;;  %v5704_v50 = vsel %vm5703_vm4, %v4026_v58, 0.0  ;;  %vm5705_vm6 = vmmov %vm5699_vm0  ;;  %v585_v19 = vmul.f32 0.03125, %v5708_v41  ;;  %vm5709_vm3 = vcmp.lt.s32.totalorder %v5656_v30, %v2452_v27  ;;  %v5712_v58 = vld [vmem:[#allocation35_spill] sm:$0xff] }
 0x21b   : > { %v1221_v0 = vadd.f32 %v1220_v13, %v5704_v50  ;;  %vm4689_vm5 = vmand %vm5705_vm6, %vm4648_vm1  ;;  %v648_v51 = vmul.f32 %v584_v52, %v584_v52  ;;  %v2263_v60 = vadd.f32 -1.0, %v584_v52  ;;  %v586_v12 = vmul.f32 0.03125, %v5712_v58 }
 0x21c   : > { %vm4699_vm14 = vmand %vm5709_vm3, %vm5392_vm15  ;;  %v1058_v37 = vadd.f32 %v1057_v44, %v981_v56  ;;  %vm5713_vm0 = vcmp.ge.s32.totalorder %v5656_v30, %v2452_v27  ;;  %v587_v63 = vmul.f32 0.03125, %v5716_v3  ;;  %v4723_v16 = vadd.s32 208, %v5717_v9 }
 0x21d   : > { %v1222_v35 = vadd.f32 %v1221_v0, %v1144_v10  ;;  %vm4717_vm4 = vmand %vm5713_vm0, %vm2491_vm10  ;;  %v985_v38 = vsel %vm4648_vm1, %v648_v51, 0.0  ;;  %v1150_v57 = vsel %vm4633_vm12, %v648_v51, 0.0  ;;  %v1441_v10 = vmul.f32 %v2263_v60, %v2263_v60  ;;  %v5730_v0 = vld [vmem:[#allocation37_spill] sm:$0xff]  ;;  %v5733_v60 = vld [vmem:[#allocation40_spill] sm:$0xff] }
 0x21e   : > { %v1732_v56 = vsel %vm4689_vm5, %v648_v51, 0.0  ;;  %vm5718_vm11 = vmmov %vm5709_vm3  ;;  %v1059_v21 = vadd.f32 %v1058_v37, %v983_v6  ;;  %v1957_v43 = vsel %vm4671_vm9, %v648_v51, 0.0  ;;  %v649_v49 = vmul.f32 %v585_v19, %v585_v19 }
 0x21f   : > { %vm4736_vm2 = vmand %vm5718_vm11, %vm2484_vm8  ;;  %v1223_v5 = vadd.f32 %v1222_v35, %v1146_v23  ;;  %v1807_v45 = vadd.f32 %v1806_v7, %v1732_v56  ;;  %v1571_v6 = vsel %vm4689_vm5, %v1441_v10, 0.0  ;;  %v2032_v1 = vadd.f32 %v2031_v59, %v1957_v43  ;;  %v5734_v35 = vld [vmem:[#allocation41_spill] sm:$0xff] }
 0x220   : > { %vm5721_vm12 = vmmov %vm5713_vm0  ;;  %vm5724_vm7 = vcmp.eq.s32.totalorder %v5656_v30, %v2463_v29  ;;  %v650_v23 = vmul.f32 %v586_v12, %v586_v12  ;;  %v1060_v18 = vadd.f32 %v1059_v21, %v985_v38  ;;  %v1646_v11 = vadd.f32 %v1645_v4, %v1571_v6 }
 0x221   : > { %vm4751_vm1 = vmand %vm5721_vm12, %vm5565_vm13  ;;  %v1224_v7 = vadd.f32 %v1223_v5, %v1148_v22  ;;  %v2265_v42 = vadd.f32 -1.0, %v586_v12  ;;  %v986_v8 = vsel %vm4699_vm14, %v649_v49, 0.0  ;;  %v651_v61 = vmul.f32 %v587_v63, %v587_v63 }
 0x222   : > { %vm4762_vm9 = vmand %vm5724_vm7, %vm4717_vm4  ;;  %v1151_v17 = vsel %vm4751_vm1, %v649_v49, 0.0  ;;  %v987_v22 = vsel %vm4736_vm2, %v650_v23, 0.0  ;;  %v1152_v15 = vsel %vm4717_vm4, %v650_v23, 0.0  ;;  %v1024_v13 = vadd.f32 %v1023_v2, %v986_v8 }
 0x223   : > { %vm5727_vm6 = vmmov %vm5724_vm7  ;;  %v1225_v39 = vadd.f32 %v1224_v7, %v1150_v57  ;;  %v1189_v4 = vadd.f32 %v1188_v31, %v1151_v17  ;;  %v1061_v30 = vadd.f32 %v1060_v18, %v987_v22  ;;  %v1443_v59 = vmul.f32 %v2265_v42, %v2265_v42  ;;  %v5737_v18 = vld [vmem:[#allocation42_spill] sm:$0xff]  ;;  %v5738_v22 = vld [vmem:[#allocation43_spill] sm:$0xff] }
 0x224   : > { %vm4771_vm5 = vmand %vm5727_vm6, %vm4736_vm2  ;;  %v1959_v46 = vsel %vm4762_vm9, %v650_v23, 0.0  ;;  %vm765_vm3 = vcmp.lt.s32.totalorder %v4723_v16, %v2452_v27  ;;  %vm863_vm0 = vcmp.ge.s32.totalorder %v4723_v16, %v2452_v27  ;;  %vm1317_vm4 = vcmp.eq.s32.totalorder %v4723_v16, %v2463_v29  ;;  %v5745_v16 = vld [vmem:[#allocation11_spill] sm:$0xff] }
 0x225   : > { %v1734_v53 = vsel %vm4771_vm5, %v650_v23, 0.0  ;;  %v1226_v48 = vadd.f32 %v1225_v39, %v1152_v15  ;;  %v2033_v44 = vadd.f32 %v2032_v1, %v1959_v46  ;;  %v1573_v50 = vsel %vm4771_vm5, %v1443_v59, 0.0  ;;  %vm825_vm14 = vmand %vm765_vm3, %vm5392_vm15 }
 0x226   : > { %v1808_v52 = vadd.f32 %v1807_v45, %v1734_v53  ;;  %v588_v2 = vmul.f32 0.03125, %v5730_v0  ;;  %v1647_v31 = vadd.f32 %v1646_v11, %v1573_v50  ;;  %vm4800_vm11 = vmand %vm765_vm3, %vm2484_vm8  ;;  %v988_v51 = vsel %vm825_vm14, %v651_v61, 0.0  ;;  %v5749_v50 = vld [vmem:[#allocation48_spill] sm:$0xff] }
 0x227   : > { %v589_v41 = vmul.f32 0.03125, %v5733_v60  ;;  %v692_v19 = vadd.s32 216, %v5717_v9  ;;  %vm923_vm2 = vmand %vm863_vm0, %vm5565_vm13  ;;  %v1025_v62 = vadd.f32 %v1024_v13, %v988_v51  ;;  %v590_v37 = vmul.f32 0.03125, %v5734_v35  ;;  %v5741_v51 = vld [vmem:[#allocation44_spill] sm:$0xff] }
 0x228   : > { %v652_v58 = vmul.f32 %v588_v2, %v588_v2  ;;  %v2267_v12 = vadd.f32 -1.0, %v588_v2  ;;  %vm924_vm12 = vmand %vm863_vm0, %vm2491_vm10  ;;  %v1153_v40 = vsel %vm923_vm2, %v651_v61, 0.0  ;;  %v591_v11 = vmul.f32 0.03125, %v5737_v18 }
 0x229   : > { %v653_v3 = vmul.f32 %v589_v41, %v589_v41  ;;  %vm766_vm1 = vcmp.lt.s32.totalorder %v692_v19, %v2452_v27  ;;  %vm864_vm7 = vcmp.ge.s32.totalorder %v692_v19, %v2452_v27  ;;  %v1190_v63 = vadd.f32 %v1189_v4, %v1153_v40  ;;  %vm1897_vm9 = vmand %vm1317_vm4, %vm924_vm12 }
 0x22a   : > { %v989_v38 = vsel %vm4800_vm11, %v652_v58, 0.0  ;;  %v1154_v57 = vsel %vm924_vm12, %v652_v58, 0.0  ;;  %v1445_v10 = vmul.f32 %v2267_v12, %v2267_v12  ;;  %vm1511_vm6 = vmand %vm1317_vm4, %vm4800_vm11  ;;  %v1961_v21 = vsel %vm1897_vm9, %v652_v58, 0.0  ;;  %v5742_v12 = vld [vmem:[#allocation47_spill] sm:$0xff] }
 0x22b   : > { %v1062_v56 = vadd.f32 %v1061_v30, %v989_v38  ;;  %v1227_v55 = vadd.f32 %v1226_v48, %v1154_v57  ;;  %vm1319_vm5 = vcmp.eq.s32.totalorder %v692_v19, %v2463_v29  ;;  %v1736_v45 = vsel %vm1511_vm6, %v652_v58, 0.0  ;;  %vm827_vm3 = vmand %vm766_vm1, %vm5392_vm15 }
 0x22c   : > { %v1575_v5 = vsel %vm1511_vm6, %v1445_v10, 0.0  ;;  %v2034_v43 = vadd.f32 %v2033_v44, %v1961_v21  ;;  %v654_v36 = vmul.f32 %v590_v37, %v590_v37  ;;  %v1809_v1 = vadd.f32 %v1808_v52, %v1736_v45  ;;  %vm4832_vm14 = vmand %vm766_vm1, %vm2484_vm8 }
 0x22d   : > { %v1648_v6 = vadd.f32 %v1647_v31, %v1575_v5  ;;  %v990_v49 = vsel %vm827_vm3, %v653_v3, 0.0  ;;  %v2269_v14 = vadd.f32 -1.0, %v590_v37  ;;  %vm925_vm0 = vmand %vm864_vm7, %vm5565_vm13  ;;  %v693_v42 = vadd.s32 224, %v5717_v9 }
 0x22e   : > { %v1026_v23 = vadd.f32 %v1025_v62, %v990_v49  ;;  %v991_v7 = vsel %vm4832_vm14, %v654_v36, 0.0  ;;  %vm926_vm4 = vmand %vm864_vm7, %vm2491_vm10  ;;  %v1155_v25 = vsel %vm925_vm0, %v653_v3, 0.0  ;;  %v592_v15 = vmul.f32 0.03125, %v5738_v22 }
 0x22f   : > { %v1063_v8 = vadd.f32 %v1062_v56, %v991_v7  ;;  %v1447_v17 = vmul.f32 %v2269_v14, %v2269_v14  ;;  %v1191_v39 = vadd.f32 %v1190_v63, %v1155_v25  ;;  %vm1899_vm11 = vmand %vm1319_vm5, %vm926_vm4  ;;  %v1156_v13 = vsel %vm926_vm4, %v654_v36, 0.0 }
 0x230   : > { %v655_v4 = vmul.f32 %v591_v11, %v591_v11  ;;  %vm767_vm2 = vcmp.lt.s32.totalorder %v693_v42, %v2452_v27  ;;  %v1228_v30 = vadd.f32 %v1227_v55, %v1156_v13  ;;  %vm1513_vm12 = vmand %vm1319_vm5, %vm4832_vm14  ;;  %v1963_v59 = vsel %vm1899_vm11, %v654_v36, 0.0  ;;  %v5746_v11 = vld [vmem:[#allocation16_spill] sm:$0xff] }
 0x231   : > { %vm865_vm1 = vcmp.ge.s32.totalorder %v693_v42, %v2452_v27  ;;  %vm1321_vm7 = vcmp.eq.s32.totalorder %v693_v42, %v2463_v29  ;;  %v1577_v53 = vsel %vm1513_vm12, %v1447_v17, 0.0  ;;  %v1738_v46 = vsel %vm1513_vm12, %v654_v36, 0.0  ;;  %vm829_vm9 = vmand %vm767_vm2, %vm5392_vm15 }
 0x232   : > { %v2035_v61 = vadd.f32 %v2034_v43, %v1963_v59  ;;  %v656_v48 = vmul.f32 %v592_v15, %v592_v15  ;;  %v1649_v52 = vadd.f32 %v1648_v6, %v1577_v53  ;;  %v1810_v44 = vadd.f32 %v1809_v1, %v1738_v46  ;;  %vm4862_vm6 = vmand %vm767_vm2, %vm2484_vm8 }
 0x233   : > { %v992_v0 = vsel %vm829_vm9, %v655_v4, 0.0  ;;  %v2271_v2 = vadd.f32 -1.0, %v592_v15  ;;  %vm927_vm5 = vmand %vm865_vm1, %vm5565_vm13  ;;  %v593_v60 = vmul.f32 0.03125, %v5741_v51  ;;  %v694_v41 = vadd.s32 232, %v5717_v9 }
 0x234   : > { %v1027_v31 = vadd.f32 %v1026_v23, %v992_v0  ;;  %v993_v47 = vsel %vm4862_vm6, %v656_v48, 0.0  ;;  %vm928_vm3 = vmand %vm865_vm1, %vm2491_vm10  ;;  %v1157_v19 = vsel %vm927_vm5, %v655_v4, 0.0  ;;  %v594_v35 = vmul.f32 0.03125, %v5742_v12 }
 0x235   : > { %v1064_v62 = vadd.f32 %v1063_v8, %v993_v47  ;;  %v1449_v58 = vmul.f32 %v2271_v2, %v2271_v2  ;;  %v1192_v37 = vadd.f32 %v1191_v39, %v1157_v19  ;;  %vm1901_vm14 = vmand %vm1321_vm7, %vm928_vm3  ;;  %v1158_v40 = vsel %vm928_vm3, %v656_v48, 0.0 }
 0x236   : > { %v657_v3 = vmul.f32 %v593_v60, %v593_v60  ;;  %vm768_vm0 = vcmp.lt.s32.totalorder %v694_v41, %v2452_v27  ;;  %v1229_v63 = vadd.f32 %v1228_v30, %v1158_v40  ;;  %vm1515_vm4 = vmand %vm1321_vm7, %vm4862_vm6  ;;  %v1965_v38 = vsel %vm1901_vm14, %v656_v48, 0.0 }
 0x237   : > { %vm866_vm11 = vcmp.ge.s32.totalorder %v694_v41, %v2452_v27  ;;  %vm1323_vm2 = vcmp.eq.s32.totalorder %v694_v41, %v2463_v29  ;;  %v1579_v57 = vsel %vm1515_vm4, %v1449_v58, 0.0  ;;  %v1740_v10 = vsel %vm1515_vm4, %v656_v48, 0.0  ;;  %vm831_vm12 = vmand %vm768_vm0, %vm5392_vm15 }
 0x238   : > { %v2036_v56 = vadd.f32 %v2035_v61, %v1965_v38  ;;  %v658_v55 = vmul.f32 %v594_v35, %v594_v35  ;;  %v1650_v21 = vadd.f32 %v1649_v52, %v1579_v57  ;;  %v1811_v5 = vadd.f32 %v1810_v44, %v1740_v10  ;;  %vm4892_vm1 = vmand %vm768_vm0, %vm2484_vm8 }
 0x239   : > { %v994_v43 = vsel %vm831_vm12, %v657_v3, 0.0  ;;  %v2273_v36 = vadd.f32 -1.0, %v594_v35  ;;  %vm929_vm7 = vmand %vm866_vm11, %vm5565_vm13  ;;  %v595_v49 = vmul.f32 0.03125, %v5745_v16  ;;  %v695_v14 = vadd.s32 240, %v5717_v9 }
 0x23a   : > { %v1028_v6 = vadd.f32 %v1027_v31, %v994_v43  ;;  %v995_v1 = vsel %vm4892_vm1, %v658_v55, 0.0  ;;  %vm930_vm9 = vmand %vm866_vm11, %vm2491_vm10  ;;  %v1159_v23 = vsel %vm929_vm7, %v657_v3, 0.0  ;;  %v596_v42 = vmul.f32 0.03125, %v5746_v11 }
 0x23b   : > { %v1065_v7 = vadd.f32 %v1064_v62, %v995_v1  ;;  %v1451_v18 = vmul.f32 %v2273_v36, %v2273_v36  ;;  %v1193_v25 = vadd.f32 %v1192_v37, %v1159_v23  ;;  %vm1903_vm6 = vmand %vm1323_vm2, %vm930_vm9  ;;  %v1160_v8 = vsel %vm930_vm9, %v658_v55, 0.0  ;;  %v5752_v37 = vld [vmem:[#allocation17_spill] sm:$0xff] }
 0x23c   : > { %v659_v17 = vmul.f32 %v595_v49, %v595_v49  ;;  %vm769_vm5 = vcmp.lt.s32.totalorder %v695_v14, %v2452_v27  ;;  %v1230_v22 = vadd.f32 %v1229_v63, %v1160_v8  ;;  %vm1517_vm3 = vmand %vm1323_vm2, %vm4892_vm1  ;;  %v1967_v15 = vsel %vm1903_vm6, %v658_v55, 0.0 }
 0x23d   : > { %vm867_vm14 = vcmp.ge.s32.totalorder %v695_v14, %v2452_v27  ;;  %vm1325_vm0 = vcmp.eq.s32.totalorder %v695_v14, %v2463_v29  ;;  %v1581_v39 = vsel %vm1517_vm3, %v1451_v18, 0.0  ;;  %v1742_v13 = vsel %vm1517_vm3, %v658_v55, 0.0  ;;  %vm833_vm4 = vmand %vm769_vm5, %vm5392_vm15 }
 0x23e   : > { %v2037_v4 = vadd.f32 %v2036_v56, %v1967_v15  ;;  %v660_v30 = vmul.f32 %v596_v42, %v596_v42  ;;  %v1651_v59 = vadd.f32 %v1650_v21, %v1581_v39  ;;  %v1812_v53 = vadd.f32 %v1811_v5, %v1742_v13  ;;  %vm4922_vm11 = vmand %vm769_vm5, %vm2484_vm8 }
 0x23f   : > { %v996_v61 = vsel %vm833_vm4, %v659_v17, 0.0  ;;  %v2275_v48 = vadd.f32 -1.0, %v596_v42  ;;  %vm931_vm2 = vmand %vm867_vm14, %vm5565_vm13  ;;  %v597_v0 = vmul.f32 0.03125, %v5749_v50  ;;  %v696_v2 = vadd.s32 248, %v5717_v9 }
 0x240   : > { %v1029_v52 = vadd.f32 %v1028_v6, %v996_v61  ;;  %v997_v44 = vsel %vm4922_vm11, %v660_v30, 0.0  ;;  %vm932_vm12 = vmand %vm867_vm14, %vm2491_vm10  ;;  %v1161_v31 = vsel %vm931_vm2, %v659_v17, 0.0  ;;  %v2357_v58 = vmov 0.0  }
 0x241   : > { %v1066_v47 = vadd.f32 %v1065_v7, %v997_v44  ;;  %v1453_v51 = vmul.f32 %v2275_v48, %v2275_v48  ;;  %v1194_v60 = vadd.f32 %v1193_v25, %v1161_v31  ;;  %vm4940_vm1 = vmand %vm1325_vm0, %vm932_vm12  ;;  %v1162_v19 = vsel %vm932_vm12, %v660_v30, 0.0  ;;  %238 = vst [vmem:[#allocation2] sm:$0xff] %v2357_v58 }
 0x242   : > { %v661_v62 = vmul.f32 %v597_v0, %v597_v0  ;;  %vm770_vm7 = vcmp.lt.s32.totalorder %v696_v2, %v2452_v27  ;;  %239 = vst [vmem:[#allocation2 + $0x8] sm:$0xff] %v2357_v58  ;;  %v1778_v12 = vrot.slane %v4420_v20, 4  ;;  %v1231_v35 = vadd.f32 %v1230_v22, %v1162_v19  ;;  %vm1519_vm9 = vmand %vm1325_vm0, %vm4922_vm11 }
 0x243   : > { %vm868_vm6 = vcmp.ge.s32.totalorder %v696_v2, %v2452_v27  ;;  %v598_v40 = vmul.f32 0.03125, %v5752_v37  ;;  %v1619_v3 = vrot.slane %v4553_v54, 2  ;;  %v4956_v63 = vadd.f32 %v2003_v24, %v4422_v26  ;;  %vm835_vm5 = vmand %vm770_vm7, %vm5392_vm15 }
 0x244   : > { %v1583_v38 = vsel %vm1519_vm9, %v1453_v51, 0.0  ;;  %v1744_v57 = vsel %vm1519_vm9, %v660_v30, 0.0  ;;  %vm836_vm3 = vmand %vm770_vm7, %vm2484_vm8  ;;  %v998_v55 = vsel %vm835_vm5, %v661_v62, 0.0  ;;  %v1969_v26 = vsel %vm4940_vm1, %v660_v30, 0.0 }
 0x245   : > { %v1652_v10 = vadd.f32 %v1651_v59, %v1583_v38  ;;  %v1813_v56 = vadd.f32 %v1812_v53, %v1744_v57  ;;  %v662_v21 = vmul.f32 %v598_v40, %v598_v40  ;;  %vm933_vm14 = vmand %vm868_vm6, %vm5565_vm13  ;;  %v1030_v28 = vadd.f32 %v1029_v52, %v998_v55 }
 0x246   : > { %vm1327_vm15 = vcmp.eq.s32.totalorder %v696_v2, %v2463_v29  ;;  %v2277_v24 = vadd.f32 -1.0, %v598_v40  ;;  %vm4977_vm0 = vmand %vm868_vm6, %vm2491_vm10  ;;  %v1163_v5 = vsel %vm933_vm14, %v661_v62, 0.0  ;;  %v1779_v1 = vadd.f32 %v1778_v12, %v4420_v20 }
 0x247   : > { %v999_v45 = vsel %vm836_vm3, %v662_v21, 0.0  ;;  %v1031_v43 = vrot.slane %v1030_v28, 4  ;;  %v1195_v36 = vadd.f32 %v1194_v60, %v1163_v5  ;;  %vm4983_vm8 = vmand %vm1327_vm15, %vm836_vm3  ;;  %v2005_v34 = vrot.slane %v4956_v63, 2 }
 0x248   : > { %v1067_v32 = vadd.f32 %v1066_v47, %v999_v45  ;;  %v1455_v27 = vmul.f32 %v2277_v24, %v2277_v24  ;;  %v2038_v16 = vadd.f32 %v2037_v4, %v1969_v26  ;;  %v1620_v49 = vadd.f32 %v1619_v3, %v4553_v54  ;;  %vm4994_vm10 = vmand %vm1327_vm15, %vm4977_vm0 }
 0x249   : > { %v1032_v14 = vadd.f32 %v1031_v43, %v1030_v28  ;;  %v1196_v23 = vrot.slane %v1195_v36, 4  ;;  %v2358_v11 = vmov 1966171168   ;;  %v1164_v20 = vsel %vm4977_vm0, %v662_v21, 0.0 }
 0x24a   : > { %v1068_v7 = vrot.slane %v1067_v32, 4  ;;  %v1078_v42 = vunpack.c.l.s4 %v2358_v11  ;;  %v1585_v25 = vsel %vm4983_vm8, %v1455_v27, 0.0  ;;  %v1746_v54 = vsel %vm4983_vm8, %v662_v21, 0.0 }
 0x24b   : > { %v1033_v8 = vrot.slane %v1032_v14, 2  ;;  %v1197_v17 = vadd.f32 %v1196_v23, %v1195_v36  ;;  %v1232_v15 = vadd.f32 %v1231_v35, %v1164_v20  ;;  %v1653_v29 = vadd.f32 %v1652_v10, %v1585_v25 }
 0x24c   : > { %v1069_v22 = vadd.f32 %v1068_v7, %v1067_v32  ;;  %v1780_v39 = vrot.slane %v1779_v1, 2  ;;  %v1814_v13 = vadd.f32 %v1813_v56, %v1746_v54  ;;  %v1971_v4 = vsel %vm4994_vm10, %v662_v21, 0.0 }
 0x24d   : > { %v1034_v30 = vadd.f32 %v1033_v8, %v1032_v14  ;;  %v1198_v59 = vrot.slane %v1197_v17, 2  ;;  %v1233_v46 = vrot.slane %v1232_v15, 4  ;;  %v1079_v61 = vunpack.c.0.s8 %v1078_v42 }
 0x24e   : > { %v1070_v53 = vrot.slane %v1069_v22, 2  ;;  %v1654_v48 = vrot.slane %v1653_v29, 4  ;;  %v1815_v52 = vrot.slane %v1814_v13, 4  ;;  %v2039_v44 = vadd.f32 %v2038_v16, %v1971_v4  ;;  %v1682_v4 = vld [vmem:[#allocation2 + $0x3] ss:$8 sm:$0x3] }
 0x24f   : > { %v1035_v50 = vrot.slane %v1034_v30, 1  ;;  %v1199_v0 = vadd.f32 %v1198_v59, %v1197_v17  ;;  %v1234_v31 = vadd.f32 %v1233_v46, %v1232_v15  ;;  %v1781_v51 = vadd.f32 %v1780_v39, %v1779_v1  ;;  %v1100_v17 = vld [vmem:[#allocation2 + $0x1] ss:$8 sm:$0x3] }
 0x250   : > { %v1071_v2 = vadd.f32 %v1070_v53, %v1069_v22  ;;  %v1655_v47 = vadd.f32 %v1654_v48, %v1653_v29  ;;  %v1816_v60 = vadd.f32 %v1815_v52, %v1814_v13  ;;  %v2040_v41 = vrot.slane %v2039_v44, 4  ;;  %v1457_v13 = vld [vmem:[#allocation2 + $0x2] ss:$8 sm:$0x3] }
 0x251   : > { %v1036_v19 = vadd.f32 %v1035_v50, %v1034_v30  ;;  %v1200_v62 = vrot.slane %v1199_v0, 1  ;;  %v1235_v12 = vrot.slane %v1234_v31, 2  ;;  %v2006_v35 = vadd.f32 %v2005_v34, %v4956_v63  ;;  %v935_v34 = vld [vmem:[#allocation2] ss:$8 sm:$0x3] }
 0x252   : > { %v1072_v58 = vrot.slane %v1071_v2, 1  ;;  %v1656_v37 = vrot.slane %v1655_v47, 2  ;;  %v1817_v40 = vrot.slane %v1816_v60, 2  ;;  %v2041_v3 = vadd.f32 %v2040_v41, %v2039_v44 }
 0x253   : > { %v1621_v38 = vrot.slane %v1620_v49, 1  ;;  %v1082_v10 = vsub.s32 %v1079_v61, %v5717_v9  ;;  %v1236_v56 = vadd.f32 %v1235_v12, %v1234_v31  ;;  %v1782_v21 = vrot.slane %v1781_v51, 1  ;;  %v1843_v61 = vld [vmem:[#allocation2 + $0x4] ss:$8 sm:$0x3] }
 0x254   : > { %v1073_v57 = vadd.f32 %v1072_v58, %v1071_v2  ;;  %v1657_v55 = vadd.f32 %v1656_v37, %v1655_v47  ;;  %v1818_v26 = vadd.f32 %v1817_v40, %v1816_v60  ;;  %v2042_v28 = vrot.slane %v2041_v3, 2 }
 0x255   : > { %v1201_v24 = vadd.f32 %v1200_v62, %v1199_v0  ;;  %v1237_v5 = vrot.slane %v1236_v56, 1  ;;  %v2007_v36 = vrot.slane %v2006_v35, 1  ;;  %v1622_v63 = vadd.f32 %v1621_v38, %v1620_v49 }
 0x256   : > { %v1076_v33 = vcombine.low %v1036_v19, %v1073_v57  ;;  %v1658_v45 = vrot.slane %v1657_v55, 1  ;;  %v1819_v43 = vrot.slane %v1818_v26, 1  ;;  %v2043_v32 = vadd.f32 %v2042_v28, %v2041_v3 }
 0x257   : > { %v1238_v1 = vadd.f32 %v1237_v5, %v1236_v56  ;;  %v1783_v16 = vadd.f32 %v1782_v21, %v1781_v51  ;;  %v5759_v7 = vlaneseq  ;;  %v2008_v25 = vadd.f32 %v2007_v36, %v2006_v35 }
 0x258   : > { %v1083_v6 = vrot.slane %v1076_v33, %v1082_v10  ;;  %v1659_v27 = vadd.f32 %v1658_v45, %v1657_v55  ;;  %v1820_v14 = vadd.f32 %v1819_v43, %v1818_v26  ;;  %v2044_v9 = vrot.slane %v2043_v32, 1 }
 0x259   : > { %vm5009_vm13 = vcmp.lt.s32.totalorder %v5759_v7, 256  ;;  %v1241_v11 = vcombine.low %v1201_v24, %v1238_v1 }
 0x25a   : > { %v1090_v23 = vrot.slane %v1083_v6, %v1082_v10  ;;  %v1662_v42 = vcombine.low %v1622_v63, %v1659_v27  ;;  %v1823_v20 = vcombine.low %v1783_v16, %v1820_v14  ;;  %v2045_v54 = vadd.f32 %v2044_v9, %v2043_v32 }
 0x25b   : > { %v1248_v49 = vrot.slane %v1241_v11, %v1082_v10 }
 0x25c   : > { %v1092_v8 = vadd.f32 %v1090_v23, %v935_v34  ;;  %v1669_v22 = vrot.slane %v1662_v42, %v1082_v10  ;;  %v1830_v15 = vrot.slane %v1823_v20, %v1082_v10  ;;  %v2048_v29 = vcombine.low %v2008_v25, %v2045_v54 }
 0x25d   : > { %v1255_v39 = vrot.slane %v1248_v49, %v1082_v10 }
 0x25e   : > { %1097 = vst.msk [vmem:[#allocation2] ss:$8 sm:$0x3] %vm5009_vm13, %v1092_v8  ;;  %v1676_v30 = vrot.slane %v1669_v22, %v1082_v10  ;;  %v1837_v59 = vrot.slane %v1830_v15, %v1082_v10  ;;  %v2055_v53 = vrot.slane %v2048_v29, %v1082_v10 }
 0x25f   : > { %v1257_v46 = vadd.f32 %v1255_v39, %v1100_v17 }
 0x260   : > { %v1678_v48 = vadd.f32 %v1676_v30, %v1457_v13  ;;  %v1839_v52 = vadd.f32 %v1837_v59, %v1682_v4  ;;  %v2062_v44 = vrot.slane %v2055_v53, %v1082_v10 }
 0x261   : > { %1258 = vst.msk [vmem:[#allocation2 + $0x1] ss:$8 sm:$0x3] %vm5009_vm13, %v1257_v46 }
 0x262   : > { %1679 = vst.msk [vmem:[#allocation2 + $0x2] ss:$8 sm:$0x3] %vm5009_vm13, %v1678_v48  ;;  %1840 = vst.msk [vmem:[#allocation2 + $0x3] ss:$8 sm:$0x3] %vm5009_vm13, %v1839_v52  ;;  %v2064_v50 = vadd.f32 %v2062_v44, %v1843_v61 }
 0x264   : > { %2065 = vst.msk [vmem:[#allocation2 + $0x4] ss:$8 sm:$0x3] %vm5009_vm13, %v2064_v50 }
 0x26b   : > { %v2070_v0 = vld [vmem:[#allocation2] sm:$0xff]  ;;  %v2071_v2 = vld [vmem:[#allocation2 + $0x8] sm:$0xff] }
 0x26c   : > { %2072 = vst [vmem:[%s231_s5] sm:$0xff] %v2070_v0  ;;  %2073 = vst [vmem:[%s231_s5 + $0x8] sm:$0xff] %v2071_v2 }
 0x26d PF: > { %s19_s19 = sadd.s32 1, %s2353_s19   ;;  %s5762_s17 = smov %s2349_s18 }
 0x26e   : > { %p16_p10 = scmp.ge.s32.totalorder %s19_s19, 5   ;;  %s5763_s18 = smov %s5765_s0 }
 0x270   :  { %18 = sbr.rel (!%p16_p10) target bundleno = 17 (0x11), region = 77 }

</bundles_post_ra>
